<compile_context>
chip_gen: v7x
topology: tpu7x:2x2x1
jax: 0.10.0
libtpu: 0.0.40
codegen_flags: <defaults>
</compile_context>

<pallas_src>
from functools import partial

import jax
import jax.numpy as jnp
from jax.experimental import pallas as pl
from jax.experimental.pallas import tpu as pltpu


def _flow_head_kernel(x_ref, w1_ref, b1_ref, w2_ref, b2_ref, o_ref, prod_ref,
                      *, H, W, TH):
    # x_ref   : (H+2, W+2, C_in)   zero-padded NHWC input, bf16, one batch element
    # w1_ref  : (9, C_in, C_hid)   bf16, tap k = ky*3 + kx, w1_t[k] = w1[:, :, ky, kx].T
    # b1_ref  : (1, C_hid)         f32
    # w2_ref  : (C_hid, 9*C_out)   bf16, column = k*C_out + co
    # b2_ref  : (1, 1, C_out)      f32
    # o_ref   : (C_out, H, W)      output (channel-major, NCHW block)
    # prod_ref: (H+2, W+2, 9*C_out) f32 scratch, halo-padded conv2 per-tap products
    C_in = x_ref.shape[-1]
    C_out = o_ref.shape[0]
    P = w2_ref.shape[-1]          # 9 * C_out
    n_blocks = H // TH

    # ---- zero only the 1-pixel halo of the product scratch (interior is fully
    #      overwritten below; done every step so "parallel" grid sharding is safe) ----
    zrow = jnp.zeros((1, W + 2, P), jnp.float32)
    prod_ref[pl.ds(0, 1), :, :] = zrow
    prod_ref[pl.ds(H + 1, 1), :, :] = zrow
    zcol = jnp.zeros((H, 1, P), jnp.float32)
    prod_ref[pl.ds(1, H), pl.ds(0, 1), :] = zcol
    prod_ref[pl.ds(1, H), pl.ds(W + 1, 1), :] = zcol

    # ---- fused conv1 (+bias,ReLU) and conv2 matmul, row block by row block ----
    for rb in range(n_blocks):
        r0 = rb * TH
        acc = None                                     # (TH*W, C_hid) f32
        for k in range(9):
            ky, kx = divmod(k, 3)
            slab = x_ref[pl.ds(r0 + ky, TH), pl.ds(kx, W), :]       # (TH, W, C_in) bf16
            slab = slab.reshape(TH * W, C_in)
            p = jnp.dot(slab, w1_ref[k], preferred_element_type=jnp.float32)
            acc = p if acc is None else acc + p
        hid = jnp.maximum(acc + b1_ref[...], 0.0).astype(jnp.bfloat16)   # (TH*W, C_hid)

        # conv2 "multiply" stage: one wide matmul producing all 9 tap products at once.
        prod = jnp.dot(hid, w2_ref[...], preferred_element_type=jnp.float32)  # (TH*W, P)
        prod_ref[pl.ds(1 + r0, TH), pl.ds(1, W), :] = prod.reshape(TH, W, P)

    # ---- conv2 "shift" stage: accumulate 9 shifted slices on the VPU ----
    acc3 = None                                        # (H, W, C_out) f32
    for k in range(9):
        ky, kx = divmod(k, 3)
        sl = prod_ref[pl.ds(ky, H), pl.ds(kx, W), pl.ds(k * C_out, C_out)]
        acc3 = sl if acc3 is None else acc3 + sl
    acc3 = acc3 + b2_ref[...]                          # broadcast (1,1,C_out)

    # channel-major store -> output is already NCHW, no wrapper transpose needed
    for co in range(C_out):
        o_ref[co, :, :] = acc3[:, :, co].astype(o_ref.dtype)


def flow_head(x_nchw, w1, b1, w2, b2):
    """FlowHead forward.

    x_nchw: (B, C_in, H, W)
    w1: (C_hid, C_in, 3, 3), b1: (C_hid,)
    w2: (C_out, C_hid, 3, 3), b2: (C_out,)
    Returns (B, C_out, H, W) == nn.Conv2d(pad=1) -> ReLU -> nn.Conv2d(pad=1).
    """
    B, C_in, H, W = x_nchw.shape
    C_hid = w1.shape[0]
    C_out = w2.shape[0]

    # NCHW -> NHWC (channels on the lane axis), pad spatially by 1, bf16 MXU operands.
    x = jnp.transpose(x_nchw, (0, 2, 3, 1)).astype(jnp.bfloat16)
    x_pad = jnp.pad(x, ((0, 0), (1, 1), (1, 1), (0, 0)))

    # PyTorch conv is cross-correlation:
    #   conv1: hid[h,w,:] = b1 + sum_k x_pad[h+ky, w+kx, :] @ w1[:, :, ky, kx].T
    w1_t = jnp.transpose(w1, (2, 3, 1, 0)).reshape(9, C_in, C_hid).astype(jnp.bfloat16)
    #   conv2 (scatter form): w2_p[ci, k*C_out + co] = w2[co, ci, ky, kx]
    w2_p = jnp.transpose(w2, (1, 2, 3, 0)).reshape(C_hid, 9 * C_out).astype(jnp.bfloat16)
    b1_r = b1.reshape(1, C_hid).astype(jnp.float32)
    b2_r = b2.reshape(1, 1, C_out).astype(jnp.float32)

    # Row-block size: TH*W ~ 128 matmul rows so the live f32 accumulator stays small.
    th_cap = max(1, 128 // W)
    TH = max(d for d in range(1, min(H, th_cap) + 1) if H % d == 0)

    kernel = partial(_flow_head_kernel, H=H, W=W, TH=TH)
    out = pl.pallas_call(
        kernel,
        out_shape=jax.ShapeDtypeStruct((B, C_out, H, W), x_nchw.dtype),
        grid=(B,),
        in_specs=[
            pl.BlockSpec((None, H + 2, W + 2, C_in), lambda b: (b, 0, 0, 0)),
            pl.BlockSpec((9, C_in, C_hid), lambda b: (0, 0, 0)),
            pl.BlockSpec((1, C_hid), lambda b: (0, 0)),
            pl.BlockSpec((C_hid, 9 * C_out), lambda b: (0, 0)),
            pl.BlockSpec((1, 1, C_out), lambda b: (0, 0, 0)),
        ],
        out_specs=pl.BlockSpec((None, C_out, H, W), lambda b: (b, 0, 0, 0)),
        scratch_shapes=[pltpu.VMEM((H + 2, W + 2, 9 * C_out), jnp.float32)],
        compiler_params=pltpu.CompilerParams(
            dimension_semantics=("parallel",),
            vmem_limit_bytes=32 * 1024 * 1024,
        ),
    )(x_pad, w1_t, b1_r, w2_p, b2_r)
    return out


def flow_head_ref(x, w1, b1, w2, b2):
    dn = ("NCHW", "OIHW", "NCHW")
    y = jax.lax.conv_general_dilated(x, w1, (1, 1), "SAME", dimension_numbers=dn)
    y = jnp.maximum(y + b1[None, :, None, None], 0.0)
    z = jax.lax.conv_general_dilated(y, w2, (1, 1), "SAME", dimension_numbers=dn)
    return z + b2[None, :, None, None]


if __name__ == "__main__":
    B, C_in, H, W = 2, 128, 16, 16        # module defaults: input_dim=128
    C_hid, C_out = 256, 2                 # hidden 256, out_cha=2

    key = jax.random.PRNGKey(0)
    k1, k2, k3, k4, k5 = jax.random.split(key, 5)

    # Inputs/weights exactly bf16-representable so the wrapper's bf16 casts are lossless;
    # the only real rounding vs. the f32 reference is the bf16 hidden activation.
    def q(a):
        return a.astype(jnp.bfloat16).astype(jnp.float32)

    x = q(jax.random.normal(k1, (B, C_in, H, W), dtype=jnp.float32))
    w1 = q(jax.random.normal(k2, (C_hid, C_in, 3, 3), dtype=jnp.float32) * 0.05)
    b1 = q(jax.random.normal(k3, (C_hid,), dtype=jnp.float32) * 0.1)
    w2 = q(jax.random.normal(k4, (C_out, C_hid, 3, 3), dtype=jnp.float32) * 0.05)
    b2 = q(jax.random.normal(k5, (C_out,), dtype=jnp.float32) * 0.1)

    out = jax.block_until_ready(flow_head(x, w1, b1, w2, b2))
    ref = flow_head_ref(x, w1, b1, w2, b2)

    assert out.shape == (B, C_out, H, W)
    err = float(jnp.max(jnp.abs(out - ref)))
    # bf16 MXU operands (incl. the 256-channel hidden) vs. a pure-f32 reference:
    # expected max |err| ~1e-2 here; any structural bug (wrong tap/shift/bias) is >=1e-1.
    assert jnp.allclose(out, ref, atol=3e-2, rtol=3e-2), err
    print("KERNEL_OK")
</pallas_src>

<mosaic_0001>
module attributes {stable_mosaic.version = 11 : i64} {
  func.func @_flow_head_kernel(%arg0: i32, %arg1: memref<1x18x18x128xbf16, #tpu.memory_space<vmem>>, %arg2: memref<9x128x256xbf16, #tpu.memory_space<vmem>>, %arg3: memref<1x256xf32, #tpu.memory_space<vmem>>, %arg4: memref<256x18xbf16, #tpu.memory_space<vmem>>, %arg5: memref<1x1x2xf32, #tpu.memory_space<vmem>>, %arg6: memref<1x2x16x16xf32, #tpu.memory_space<vmem>>, %arg7: memref<18x18x18xf32, #tpu.memory_space<vmem>>) attributes {dimension_semantics = [#tpu.dimension_semantics<parallel>], iteration_bounds = array<i64: 2>, scalar_prefetch = 0 : i64, scratch_operands = 1 : i64, tpu.core_type = #tpu.core_type<tc>, window_params = [{transform_indices = @transform_0, window_bounds = array<i64: 1, 18, 18, 128>}, {pipeline_mode = #tpu.pipeline_mode<synchronous>, transform_indices = @transform_1, window_bounds = array<i64: 9, 128, 256>}, {pipeline_mode = #tpu.pipeline_mode<synchronous>, transform_indices = @transform_2, window_bounds = array<i64: 1, 256>}, {pipeline_mode = #tpu.pipeline_mode<synchronous>, transform_indices = @transform_3, window_bounds = array<i64: 256, 18>}, {pipeline_mode = #tpu.pipeline_mode<synchronous>, transform_indices = @transform_4, window_bounds = array<i64: 1, 1, 2>}, {transform_indices = @transform_5, window_bounds = array<i64: 1, 2, 16, 16>}]} {
    %cst = arith.constant 0.000000e+00 : f32
    %0 = vector.broadcast %cst : f32 to vector<1x18x18xf32>
    %c0 = arith.constant 0 : index
    %c0_0 = arith.constant 0 : index
    %c0_1 = arith.constant 0 : index
    %1 = vector.load %arg7[%c0, %c0_0, %c0_1] : memref<18x18x18xf32, #tpu.memory_space<vmem>>, vector<1x18x18xf32>
    tpu.vector_store %arg7[%c0, %c0_0, %c0_1], %0 {strides = array<i32>} : memref<18x18x18xf32, #tpu.memory_space<vmem>>, vector<1x18x18xf32>,
    %c17 = arith.constant 17 : index
    %c0_2 = arith.constant 0 : index
    %c0_3 = arith.constant 0 : index
    %2 = vector.load %arg7[%c17, %c0_2, %c0_3] : memref<18x18x18xf32, #tpu.memory_space<vmem>>, vector<1x18x18xf32>
    tpu.vector_store %arg7[%c17, %c0_2, %c0_3], %0 {strides = array<i32>} : memref<18x18x18xf32, #tpu.memory_space<vmem>>, vector<1x18x18xf32>,
    %cst_4 = arith.constant 0.000000e+00 : f32
    %3 = vector.broadcast %cst_4 : f32 to vector<16x1x18xf32>
    %c1 = arith.constant 1 : index
    %c0_5 = arith.constant 0 : index
    %c0_6 = arith.constant 0 : index
    %4 = vector.load %arg7[%c1, %c0_5, %c0_6] : memref<18x18x18xf32, #tpu.memory_space<vmem>>, vector<16x1x18xf32>
    tpu.vector_store %arg7[%c1, %c0_5, %c0_6], %3 {strides = array<i32>} : memref<18x18x18xf32, #tpu.memory_space<vmem>>, vector<16x1x18xf32>,
    %c1_7 = arith.constant 1 : index
    %c17_8 = arith.constant 17 : index
    %c0_9 = arith.constant 0 : index
    %5 = vector.load %arg7[%c1_7, %c17_8, %c0_9] : memref<18x18x18xf32, #tpu.memory_space<vmem>>, vector<16x1x18xf32>
    tpu.vector_store %arg7[%c1_7, %c17_8, %c0_9], %3 {strides = array<i32>} : memref<18x18x18xf32, #tpu.memory_space<vmem>>, vector<16x1x18xf32>,
    %c0_10 = arith.constant 0 : index
    %c0_11 = arith.constant 0 : index
    %c0_12 = arith.constant 0 : index
    %c0_13 = arith.constant 0 : index
    %6 = vector.load %arg1[%c0_10, %c0_11, %c0_12, %c0_13] : memref<1x18x18x128xbf16, #tpu.memory_space<vmem>>, vector<1x8x16x128xbf16>
    %7 = vector.shape_cast %6 : vector<1x8x16x128xbf16> to vector<8x16x128xbf16>
    %8 = vector.shape_cast %7 : vector<8x16x128xbf16> to vector<128x128xbf16>
    %c0_14 = arith.constant 0 : index
    %c0_15 = arith.constant 0 : index
    %c0_16 = arith.constant 0 : index
    %9 = vector.load %arg2[%c0_14, %c0_15, %c0_16] : memref<9x128x256xbf16, #tpu.memory_space<vmem>>, vector<1x128x256xbf16>
    %10 = vector.shape_cast %9 : vector<1x128x256xbf16> to vector<128x256xbf16>
    %cst_17 = arith.constant dense<0.000000e+00> : vector<128x256xf32>
    %11 = tpu.matmul %8, %10, %cst_17 {dimension_numbers = #tpu.dot_dimension_numbers<[1], [0], [0], [1], [0, 0, 1, 1], [], []>} : vector<128x128xbf16>, vector<128x256xbf16>, vector<128x256xf32> -> vector<128x256xf32>
    %c0_18 = arith.constant 0 : index
    %c0_19 = arith.constant 0 : index
    %c1_20 = arith.constant 1 : index
    %c0_21 = arith.constant 0 : index
    %12 = vector.load %arg1[%c0_18, %c0_19, %c1_20, %c0_21] : memref<1x18x18x128xbf16, #tpu.memory_space<vmem>>, vector<1x8x16x128xbf16>
    %13 = vector.shape_cast %12 : vector<1x8x16x128xbf16> to vector<8x16x128xbf16>
    %14 = vector.shape_cast %13 : vector<8x16x128xbf16> to vector<128x128xbf16>
    %c1_22 = arith.constant 1 : index
    %c0_23 = arith.constant 0 : index
    %c0_24 = arith.constant 0 : index
    %15 = vector.load %arg2[%c1_22, %c0_23, %c0_24] : memref<9x128x256xbf16, #tpu.memory_space<vmem>>, vector<1x128x256xbf16>
    %16 = vector.shape_cast %15 : vector<1x128x256xbf16> to vector<128x256xbf16>
    %cst_25 = arith.constant dense<0.000000e+00> : vector<128x256xf32>
    %17 = tpu.matmul %14, %16, %cst_25 {dimension_numbers = #tpu.dot_dimension_numbers<[1], [0], [0], [1], [0, 0, 1, 1], [], []>} : vector<128x128xbf16>, vector<128x256xbf16>, vector<128x256xf32> -> vector<128x256xf32>
    %18 = arith.addf %11, %17 : vector<128x256xf32>
    %c0_26 = arith.constant 0 : index
    %c0_27 = arith.constant 0 : index
    %c2 = arith.constant 2 : index
    %c0_28 = arith.constant 0 : index
    %19 = vector.load %arg1[%c0_26, %c0_27, %c2, %c0_28] : memref<1x18x18x128xbf16, #tpu.memory_space<vmem>>, vector<1x8x16x128xbf16>
    %20 = vector.shape_cast %19 : vector<1x8x16x128xbf16> to vector<8x16x128xbf16>
    %21 = vector.shape_cast %20 : vector<8x16x128xbf16> to vector<128x128xbf16>
    %c2_29 = arith.constant 2 : index
    %c0_30 = arith.constant 0 : index
    %c0_31 = arith.constant 0 : index
    %22 = vector.load %arg2[%c2_29, %c0_30, %c0_31] : memref<9x128x256xbf16, #tpu.memory_space<vmem>>, vector<1x128x256xbf16>
    %23 = vector.shape_cast %22 : vector<1x128x256xbf16> to vector<128x256xbf16>
    %cst_32 = arith.constant dense<0.000000e+00> : vector<128x256xf32>
    %24 = tpu.matmul %21, %23, %cst_32 {dimension_numbers = #tpu.dot_dimension_numbers<[1], [0], [0], [1], [0, 0, 1, 1], [], []>} : vector<128x128xbf16>, vector<128x256xbf16>, vector<128x256xf32> -> vector<128x256xf32>
    %25 = arith.addf %18, %24 : vector<128x256xf32>
    %c0_33 = arith.constant 0 : index
    %c1_34 = arith.constant 1 : index
    %c0_35 = arith.constant 0 : index
    %c0_36 = arith.constant 0 : index
    %26 = vector.load %arg1[%c0_33, %c1_34, %c0_35, %c0_36] : memref<1x18x18x128xbf16, #tpu.memory_space<vmem>>, vector<1x8x16x128xbf16>
    %27 = vector.shape_cast %26 : vector<1x8x16x128xbf16> to vector<8x16x128xbf16>
    %28 = vector.shape_cast %27 : vector<8x16x128xbf16> to vector<128x128xbf16>
    %c3 = arith.constant 3 : index
    %c0_37 = arith.constant 0 : index
    %c0_38 = arith.constant 0 : index
    %29 = vector.load %arg2[%c3, %c0_37, %c0_38] : memref<9x128x256xbf16, #tpu.memory_space<vmem>>, vector<1x128x256xbf16>
    %30 = vector.shape_cast %29 : vector<1x128x256xbf16> to vector<128x256xbf16>
    %cst_39 = arith.constant dense<0.000000e+00> : vector<128x256xf32>
    %31 = tpu.matmul %28, %30, %cst_39 {dimension_numbers = #tpu.dot_dimension_numbers<[1], [0], [0], [1], [0, 0, 1, 1], [], []>} : vector<128x128xbf16>, vector<128x256xbf16>, vector<128x256xf32> -> vector<128x256xf32>
    %32 = arith.addf %25, %31 : vector<128x256xf32>
    %c0_40 = arith.constant 0 : index
    %c1_41 = arith.constant 1 : index
    %c1_42 = arith.constant 1 : index
    %c0_43 = arith.constant 0 : index
    %33 = vector.load %arg1[%c0_40, %c1_41, %c1_42, %c0_43] : memref<1x18x18x128xbf16, #tpu.memory_space<vmem>>, vector<1x8x16x128xbf16>
    %34 = vector.shape_cast %33 : vector<1x8x16x128xbf16> to vector<8x16x128xbf16>
    %35 = vector.shape_cast %34 : vector<8x16x128xbf16> to vector<128x128xbf16>
    %c4 = arith.constant 4 : index
    %c0_44 = arith.constant 0 : index
    %c0_45 = arith.constant 0 : index
    %36 = vector.load %arg2[%c4, %c0_44, %c0_45] : memref<9x128x256xbf16, #tpu.memory_space<vmem>>, vector<1x128x256xbf16>
    %37 = vector.shape_cast %36 : vector<1x128x256xbf16> to vector<128x256xbf16>
    %cst_46 = arith.constant dense<0.000000e+00> : vector<128x256xf32>
    %38 = tpu.matmul %35, %37, %cst_46 {dimension_numbers = #tpu.dot_dimension_numbers<[1], [0], [0], [1], [0, 0, 1, 1], [], []>} : vector<128x128xbf16>, vector<128x256xbf16>, vector<128x256xf32> -> vector<128x256xf32>
    %39 = arith.addf %32, %38 : vector<128x256xf32>
    %c0_47 = arith.constant 0 : index
    %c1_48 = arith.constant 1 : index
    %c2_49 = arith.constant 2 : index
    %c0_50 = arith.constant 0 : index
    %40 = vector.load %arg1[%c0_47, %c1_48, %c2_49, %c0_50] : memref<1x18x18x128xbf16, #tpu.memory_space<vmem>>, vector<1x8x16x128xbf16>
    %41 = vector.shape_cast %40 : vector<1x8x16x128xbf16> to vector<8x16x128xbf16>
    %42 = vector.shape_cast %41 : vector<8x16x128xbf16> to vector<128x128xbf16>
    %c5 = arith.constant 5 : index
    %c0_51 = arith.constant 0 : index
    %c0_52 = arith.constant 0 : index
    %43 = vector.load %arg2[%c5, %c0_51, %c0_52] : memref<9x128x256xbf16, #tpu.memory_space<vmem>>, vector<1x128x256xbf16>
    %44 = vector.shape_cast %43 : vector<1x128x256xbf16> to vector<128x256xbf16>
    %cst_53 = arith.constant dense<0.000000e+00> : vector<128x256xf32>
    %45 = tpu.matmul %42, %44, %cst_53 {dimension_numbers = #tpu.dot_dimension_numbers<[1], [0], [0], [1], [0, 0, 1, 1], [], []>} : vector<128x128xbf16>, vector<128x256xbf16>, vector<128x256xf32> -> vector<128x256xf32>
    %46 = arith.addf %39, %45 : vector<128x256xf32>
    %c0_54 = arith.constant 0 : index
    %c2_55 = arith.constant 2 : index
    %c0_56 = arith.constant 0 : index
    %c0_57 = arith.constant 0 : index
    %47 = vector.load %arg1[%c0_54, %c2_55, %c0_56, %c0_57] : memref<1x18x18x128xbf16, #tpu.memory_space<vmem>>, vector<1x8x16x128xbf16>
    %48 = vector.shape_cast %47 : vector<1x8x16x128xbf16> to vector<8x16x128xbf16>
    %49 = vector.shape_cast %48 : vector<8x16x128xbf16> to vector<128x128xbf16>
    %c6 = arith.constant 6 : index
    %c0_58 = arith.constant 0 : index
    %c0_59 = arith.constant 0 : index
    %50 = vector.load %arg2[%c6, %c0_58, %c0_59] : memref<9x128x256xbf16, #tpu.memory_space<vmem>>, vector<1x128x256xbf16>
    %51 = vector.shape_cast %50 : vector<1x128x256xbf16> to vector<128x256xbf16>
    %cst_60 = arith.constant dense<0.000000e+00> : vector<128x256xf32>
    %52 = tpu.matmul %49, %51, %cst_60 {dimension_numbers = #tpu.dot_dimension_numbers<[1], [0], [0], [1], [0, 0, 1, 1], [], []>} : vector<128x128xbf16>, vector<128x256xbf16>, vector<128x256xf32> -> vector<128x256xf32>
    %53 = arith.addf %46, %52 : vector<128x256xf32>
    %c0_61 = arith.constant 0 : index
    %c2_62 = arith.constant 2 : index
    %c1_63 = arith.constant 1 : index
    %c0_64 = arith.constant 0 : index
    %54 = vector.load %arg1[%c0_61, %c2_62, %c1_63, %c0_64] : memref<1x18x18x128xbf16, #tpu.memory_space<vmem>>, vector<1x8x16x128xbf16>
    %55 = vector.shape_cast %54 : vector<1x8x16x128xbf16> to vector<8x16x128xbf16>
    %56 = vector.shape_cast %55 : vector<8x16x128xbf16> to vector<128x128xbf16>
    %c7 = arith.constant 7 : index
    %c0_65 = arith.constant 0 : index
    %c0_66 = arith.constant 0 : index
    %57 = vector.load %arg2[%c7, %c0_65, %c0_66] : memref<9x128x256xbf16, #tpu.memory_space<vmem>>, vector<1x128x256xbf16>
    %58 = vector.shape_cast %57 : vector<1x128x256xbf16> to vector<128x256xbf16>
    %cst_67 = arith.constant dense<0.000000e+00> : vector<128x256xf32>
    %59 = tpu.matmul %56, %58, %cst_67 {dimension_numbers = #tpu.dot_dimension_numbers<[1], [0], [0], [1], [0, 0, 1, 1], [], []>} : vector<128x128xbf16>, vector<128x256xbf16>, vector<128x256xf32> -> vector<128x256xf32>
    %60 = arith.addf %53, %59 : vector<128x256xf32>
    %c0_68 = arith.constant 0 : index
    %c2_69 = arith.constant 2 : index
    %c2_70 = arith.constant 2 : index
    %c0_71 = arith.constant 0 : index
    %61 = vector.load %arg1[%c0_68, %c2_69, %c2_70, %c0_71] : memref<1x18x18x128xbf16, #tpu.memory_space<vmem>>, vector<1x8x16x128xbf16>
    %62 = vector.shape_cast %61 : vector<1x8x16x128xbf16> to vector<8x16x128xbf16>
    %63 = vector.shape_cast %62 : vector<8x16x128xbf16> to vector<128x128xbf16>
    %c8 = arith.constant 8 : index
    %c0_72 = arith.constant 0 : index
    %c0_73 = arith.constant 0 : index
    %64 = vector.load %arg2[%c8, %c0_72, %c0_73] : memref<9x128x256xbf16, #tpu.memory_space<vmem>>, vector<1x128x256xbf16>
    %65 = vector.shape_cast %64 : vector<1x128x256xbf16> to vector<128x256xbf16>
    %cst_74 = arith.constant dense<0.000000e+00> : vector<128x256xf32>
    %66 = tpu.matmul %63, %65, %cst_74 {dimension_numbers = #tpu.dot_dimension_numbers<[1], [0], [0], [1], [0, 0, 1, 1], [], []>} : vector<128x128xbf16>, vector<128x256xbf16>, vector<128x256xf32> -> vector<128x256xf32>
    %67 = arith.addf %60, %66 : vector<128x256xf32>
    %c0_75 = arith.constant 0 : index
    %c0_76 = arith.constant 0 : index
    %68 = vector.load %arg3[%c0_75, %c0_76] : memref<1x256xf32, #tpu.memory_space<vmem>>, vector<1x256xf32>
    %69 = vector.broadcast %68 : vector<1x256xf32> to vector<128x256xf32>
    %70 = arith.addf %67, %69 : vector<128x256xf32>
    %cst_77 = arith.constant 0.000000e+00 : f32
    %71 = vector.broadcast %cst_77 : f32 to vector<128x256xf32>
    %72 = arith.maximumf %70, %71 : vector<128x256xf32>
    %73 = arith.truncf %72 : vector<128x256xf32> to vector<128x256xbf16>
    %c0_78 = arith.constant 0 : index
    %c0_79 = arith.constant 0 : index
    %74 = vector.load %arg4[%c0_78, %c0_79] : memref<256x18xbf16, #tpu.memory_space<vmem>>, vector<256x18xbf16>
    %cst_80 = arith.constant dense<0.000000e+00> : vector<128x18xf32>
    %75 = tpu.matmul %73, %74, %cst_80 {dimension_numbers = #tpu.dot_dimension_numbers<[1], [0], [0], [1], [0, 0, 1, 1], [], []>} : vector<128x256xbf16>, vector<256x18xbf16>, vector<128x18xf32> -> vector<128x18xf32>
    %76 = vector.shape_cast %75 : vector<128x18xf32> to vector<8x16x18xf32>
    %c1_81 = arith.constant 1 : index
    %c1_82 = arith.constant 1 : index
    %c0_83 = arith.constant 0 : index
    %77 = vector.load %arg7[%c1_81, %c1_82, %c0_83] : memref<18x18x18xf32, #tpu.memory_space<vmem>>, vector<8x16x18xf32>
    tpu.vector_store %arg7[%c1_81, %c1_82, %c0_83], %76 {strides = array<i32>} : memref<18x18x18xf32, #tpu.memory_space<vmem>>, vector<8x16x18xf32>,
    %c0_84 = arith.constant 0 : index
    %c8_85 = arith.constant 8 : index
    %c0_86 = arith.constant 0 : index
    %c0_87 = arith.constant 0 : index
    %78 = vector.load %arg1[%c0_84, %c8_85, %c0_86, %c0_87] : memref<1x18x18x128xbf16, #tpu.memory_space<vmem>>, vector<1x8x16x128xbf16>
    %79 = vector.shape_cast %78 : vector<1x8x16x128xbf16> to vector<8x16x128xbf16>
    %80 = vector.shape_cast %79 : vector<8x16x128xbf16> to vector<128x128xbf16>
    %c0_88 = arith.constant 0 : index
    %c0_89 = arith.constant 0 : index
    %c0_90 = arith.constant 0 : index
    %81 = vector.load %arg2[%c0_88, %c0_89, %c0_90] : memref<9x128x256xbf16, #tpu.memory_space<vmem>>, vector<1x128x256xbf16>
    %82 = vector.shape_cast %81 : vector<1x128x256xbf16> to vector<128x256xbf16>
    %cst_91 = arith.constant dense<0.000000e+00> : vector<128x256xf32>
    %83 = tpu.matmul %80, %82, %cst_91 {dimension_numbers = #tpu.dot_dimension_numbers<[1], [0], [0], [1], [0, 0, 1, 1], [], []>} : vector<128x128xbf16>, vector<128x256xbf16>, vector<128x256xf32> -> vector<128x256xf32>
    %c0_92 = arith.constant 0 : index
    %c8_93 = arith.constant 8 : index
    %c1_94 = arith.constant 1 : index
    %c0_95 = arith.constant 0 : index
    %84 = vector.load %arg1[%c0_92, %c8_93, %c1_94, %c0_95] : memref<1x18x18x128xbf16, #tpu.memory_space<vmem>>, vector<1x8x16x128xbf16>
    %85 = vector.shape_cast %84 : vector<1x8x16x128xbf16> to vector<8x16x128xbf16>
    %86 = vector.shape_cast %85 : vector<8x16x128xbf16> to vector<128x128xbf16>
    %c1_96 = arith.constant 1 : index
    %c0_97 = arith.constant 0 : index
    %c0_98 = arith.constant 0 : index
    %87 = vector.load %arg2[%c1_96, %c0_97, %c0_98] : memref<9x128x256xbf16, #tpu.memory_space<vmem>>, vector<1x128x256xbf16>
    %88 = vector.shape_cast %87 : vector<1x128x256xbf16> to vector<128x256xbf16>
    %cst_99 = arith.constant dense<0.000000e+00> : vector<128x256xf32>
    %89 = tpu.matmul %86, %88, %cst_99 {dimension_numbers = #tpu.dot_dimension_numbers<[1], [0], [0], [1], [0, 0, 1, 1], [], []>} : vector<128x128xbf16>, vector<128x256xbf16>, vector<128x256xf32> -> vector<128x256xf32>
    %90 = arith.addf %83, %89 : vector<128x256xf32>
    %c0_100 = arith.constant 0 : index
    %c8_101 = arith.constant 8 : index
    %c2_102 = arith.constant 2 : index
    %c0_103 = arith.constant 0 : index
    %91 = vector.load %arg1[%c0_100, %c8_101, %c2_102, %c0_103] : memref<1x18x18x128xbf16, #tpu.memory_space<vmem>>, vector<1x8x16x128xbf16>
    %92 = vector.shape_cast %91 : vector<1x8x16x128xbf16> to vector<8x16x128xbf16>
    %93 = vector.shape_cast %92 : vector<8x16x128xbf16> to vector<128x128xbf16>
    %c2_104 = arith.constant 2 : index
    %c0_105 = arith.constant 0 : index
    %c0_106 = arith.constant 0 : index
    %94 = vector.load %arg2[%c2_104, %c0_105, %c0_106] : memref<9x128x256xbf16, #tpu.memory_space<vmem>>, vector<1x128x256xbf16>
    %95 = vector.shape_cast %94 : vector<1x128x256xbf16> to vector<128x256xbf16>
    %cst_107 = arith.constant dense<0.000000e+00> : vector<128x256xf32>
    %96 = tpu.matmul %93, %95, %cst_107 {dimension_numbers = #tpu.dot_dimension_numbers<[1], [0], [0], [1], [0, 0, 1, 1], [], []>} : vector<128x128xbf16>, vector<128x256xbf16>, vector<128x256xf32> -> vector<128x256xf32>
    %97 = arith.addf %90, %96 : vector<128x256xf32>
    %c0_108 = arith.constant 0 : index
    %c9 = arith.constant 9 : index
    %c0_109 = arith.constant 0 : index
    %c0_110 = arith.constant 0 : index
    %98 = vector.load %arg1[%c0_108, %c9, %c0_109, %c0_110] : memref<1x18x18x128xbf16, #tpu.memory_space<vmem>>, vector<1x8x16x128xbf16>
    %99 = vector.shape_cast %98 : vector<1x8x16x128xbf16> to vector<8x16x128xbf16>
    %100 = vector.shape_cast %99 : vector<8x16x128xbf16> to vector<128x128xbf16>
    %c3_111 = arith.constant 3 : index
    %c0_112 = arith.constant 0 : index
    %c0_113 = arith.constant 0 : index
    %101 = vector.load %arg2[%c3_111, %c0_112, %c0_113] : memref<9x128x256xbf16, #tpu.memory_space<vmem>>, vector<1x128x256xbf16>
    %102 = vector.shape_cast %101 : vector<1x128x256xbf16> to vector<128x256xbf16>
    %cst_114 = arith.constant dense<0.000000e+00> : vector<128x256xf32>
    %103 = tpu.matmul %100, %102, %cst_114 {dimension_numbers = #tpu.dot_dimension_numbers<[1], [0], [0], [1], [0, 0, 1, 1], [], []>} : vector<128x128xbf16>, vector<128x256xbf16>, vector<128x256xf32> -> vector<128x256xf32>
    %104 = arith.addf %97, %103 : vector<128x256xf32>
    %c0_115 = arith.constant 0 : index
    %c9_116 = arith.constant 9 : index
    %c1_117 = arith.constant 1 : index
    %c0_118 = arith.constant 0 : index
    %105 = vector.load %arg1[%c0_115, %c9_116, %c1_117, %c0_118] : memref<1x18x18x128xbf16, #tpu.memory_space<vmem>>, vector<1x8x16x128xbf16>
    %106 = vector.shape_cast %105 : vector<1x8x16x128xbf16> to vector<8x16x128xbf16>
    %107 = vector.shape_cast %106 : vector<8x16x128xbf16> to vector<128x128xbf16>
    %c4_119 = arith.constant 4 : index
    %c0_120 = arith.constant 0 : index
    %c0_121 = arith.constant 0 : index
    %108 = vector.load %arg2[%c4_119, %c0_120, %c0_121] : memref<9x128x256xbf16, #tpu.memory_space<vmem>>, vector<1x128x256xbf16>
    %109 = vector.shape_cast %108 : vector<1x128x256xbf16> to vector<128x256xbf16>
    %cst_122 = arith.constant dense<0.000000e+00> : vector<128x256xf32>
    %110 = tpu.matmul %107, %109, %cst_122 {dimension_numbers = #tpu.dot_dimension_numbers<[1], [0], [0], [1], [0, 0, 1, 1], [], []>} : vector<128x128xbf16>, vector<128x256xbf16>, vector<128x256xf32> -> vector<128x256xf32>
    %111 = arith.addf %104, %110 : vector<128x256xf32>
    %c0_123 = arith.constant 0 : index
    %c9_124 = arith.constant 9 : index
    %c2_125 = arith.constant 2 : index
    %c0_126 = arith.constant 0 : index
    %112 = vector.load %arg1[%c0_123, %c9_124, %c2_125, %c0_126] : memref<1x18x18x128xbf16, #tpu.memory_space<vmem>>, vector<1x8x16x128xbf16>
    %113 = vector.shape_cast %112 : vector<1x8x16x128xbf16> to vector<8x16x128xbf16>
    %114 = vector.shape_cast %113 : vector<8x16x128xbf16> to vector<128x128xbf16>
    %c5_127 = arith.constant 5 : index
    %c0_128 = arith.constant 0 : index
    %c0_129 = arith.constant 0 : index
    %115 = vector.load %arg2[%c5_127, %c0_128, %c0_129] : memref<9x128x256xbf16, #tpu.memory_space<vmem>>, vector<1x128x256xbf16>
    %116 = vector.shape_cast %115 : vector<1x128x256xbf16> to vector<128x256xbf16>
    %cst_130 = arith.constant dense<0.000000e+00> : vector<128x256xf32>
    %117 = tpu.matmul %114, %116, %cst_130 {dimension_numbers = #tpu.dot_dimension_numbers<[1], [0], [0], [1], [0, 0, 1, 1], [], []>} : vector<128x128xbf16>, vector<128x256xbf16>, vector<128x256xf32> -> vector<128x256xf32>
    %118 = arith.addf %111, %117 : vector<128x256xf32>
    %c0_131 = arith.constant 0 : index
    %c10 = arith.constant 10 : index
    %c0_132 = arith.constant 0 : index
    %c0_133 = arith.constant 0 : index
    %119 = vector.load %arg1[%c0_131, %c10, %c0_132, %c0_133] : memref<1x18x18x128xbf16, #tpu.memory_space<vmem>>, vector<1x8x16x128xbf16>
    %120 = vector.shape_cast %119 : vector<1x8x16x128xbf16> to vector<8x16x128xbf16>
    %121 = vector.shape_cast %120 : vector<8x16x128xbf16> to vector<128x128xbf16>
    %c6_134 = arith.constant 6 : index
    %c0_135 = arith.constant 0 : index
    %c0_136 = arith.constant 0 : index
    %122 = vector.load %arg2[%c6_134, %c0_135, %c0_136] : memref<9x128x256xbf16, #tpu.memory_space<vmem>>, vector<1x128x256xbf16>
    %123 = vector.shape_cast %122 : vector<1x128x256xbf16> to vector<128x256xbf16>
    %cst_137 = arith.constant dense<0.000000e+00> : vector<128x256xf32>
    %124 = tpu.matmul %121, %123, %cst_137 {dimension_numbers = #tpu.dot_dimension_numbers<[1], [0], [0], [1], [0, 0, 1, 1], [], []>} : vector<128x128xbf16>, vector<128x256xbf16>, vector<128x256xf32> -> vector<128x256xf32>
    %125 = arith.addf %118, %124 : vector<128x256xf32>
    %c0_138 = arith.constant 0 : index
    %c10_139 = arith.constant 10 : index
    %c1_140 = arith.constant 1 : index
    %c0_141 = arith.constant 0 : index
    %126 = vector.load %arg1[%c0_138, %c10_139, %c1_140, %c0_141] : memref<1x18x18x128xbf16, #tpu.memory_space<vmem>>, vector<1x8x16x128xbf16>
    %127 = vector.shape_cast %126 : vector<1x8x16x128xbf16> to vector<8x16x128xbf16>
    %128 = vector.shape_cast %127 : vector<8x16x128xbf16> to vector<128x128xbf16>
    %c7_142 = arith.constant 7 : index
    %c0_143 = arith.constant 0 : index
    %c0_144 = arith.constant 0 : index
    %129 = vector.load %arg2[%c7_142, %c0_143, %c0_144] : memref<9x128x256xbf16, #tpu.memory_space<vmem>>, vector<1x128x256xbf16>
    %130 = vector.shape_cast %129 : vector<1x128x256xbf16> to vector<128x256xbf16>
    %cst_145 = arith.constant dense<0.000000e+00> : vector<128x256xf32>
    %131 = tpu.matmul %128, %130, %cst_145 {dimension_numbers = #tpu.dot_dimension_numbers<[1], [0], [0], [1], [0, 0, 1, 1], [], []>} : vector<128x128xbf16>, vector<128x256xbf16>, vector<128x256xf32> -> vector<128x256xf32>
    %132 = arith.addf %125, %131 : vector<128x256xf32>
    %c0_146 = arith.constant 0 : index
    %c10_147 = arith.constant 10 : index
    %c2_148 = arith.constant 2 : index
    %c0_149 = arith.constant 0 : index
    %133 = vector.load %arg1[%c0_146, %c10_147, %c2_148, %c0_149] : memref<1x18x18x128xbf16, #tpu.memory_space<vmem>>, vector<1x8x16x128xbf16>
    %134 = vector.shape_cast %133 : vector<1x8x16x128xbf16> to vector<8x16x128xbf16>
    %135 = vector.shape_cast %134 : vector<8x16x128xbf16> to vector<128x128xbf16>
    %c8_150 = arith.constant 8 : index
    %c0_151 = arith.constant 0 : index
    %c0_152 = arith.constant 0 : index
    %136 = vector.load %arg2[%c8_150, %c0_151, %c0_152] : memref<9x128x256xbf16, #tpu.memory_space<vmem>>, vector<1x128x256xbf16>
    %137 = vector.shape_cast %136 : vector<1x128x256xbf16> to vector<128x256xbf16>
    %cst_153 = arith.constant dense<0.000000e+00> : vector<128x256xf32>
    %138 = tpu.matmul %135, %137, %cst_153 {dimension_numbers = #tpu.dot_dimension_numbers<[1], [0], [0], [1], [0, 0, 1, 1], [], []>} : vector<128x128xbf16>, vector<128x256xbf16>, vector<128x256xf32> -> vector<128x256xf32>
    %139 = arith.addf %132, %138 : vector<128x256xf32>
    %c0_154 = arith.constant 0 : index
    %c0_155 = arith.constant 0 : index
    %140 = vector.load %arg3[%c0_154, %c0_155] : memref<1x256xf32, #tpu.memory_space<vmem>>, vector<1x256xf32>
    %141 = vector.broadcast %140 : vector<1x256xf32> to vector<128x256xf32>
    %142 = arith.addf %139, %141 : vector<128x256xf32>
    %cst_156 = arith.constant 0.000000e+00 : f32
    %143 = vector.broadcast %cst_156 : f32 to vector<128x256xf32>
    %144 = arith.maximumf %142, %143 : vector<128x256xf32>
    %145 = arith.truncf %144 : vector<128x256xf32> to vector<128x256xbf16>
    %c0_157 = arith.constant 0 : index
    %c0_158 = arith.constant 0 : index
    %146 = vector.load %arg4[%c0_157, %c0_158] : memref<256x18xbf16, #tpu.memory_space<vmem>>, vector<256x18xbf16>
    %cst_159 = arith.constant dense<0.000000e+00> : vector<128x18xf32>
    %147 = tpu.matmul %145, %146, %cst_159 {dimension_numbers = #tpu.dot_dimension_numbers<[1], [0], [0], [1], [0, 0, 1, 1], [], []>} : vector<128x256xbf16>, vector<256x18xbf16>, vector<128x18xf32> -> vector<128x18xf32>
    %148 = vector.shape_cast %147 : vector<128x18xf32> to vector<8x16x18xf32>
    %c9_160 = arith.constant 9 : index
    %c1_161 = arith.constant 1 : index
    %c0_162 = arith.constant 0 : index
    %149 = vector.load %arg7[%c9_160, %c1_161, %c0_162] : memref<18x18x18xf32, #tpu.memory_space<vmem>>, vector<8x16x18xf32>
    tpu.vector_store %arg7[%c9_160, %c1_161, %c0_162], %148 {strides = array<i32>} : memref<18x18x18xf32, #tpu.memory_space<vmem>>, vector<8x16x18xf32>,
    %c0_163 = arith.constant 0 : index
    %c0_164 = arith.constant 0 : index
    %c0_165 = arith.constant 0 : index
    %150 = vector.load %arg7[%c0_163, %c0_164, %c0_165] : memref<18x18x18xf32, #tpu.memory_space<vmem>>, vector<16x16x2xf32>
    %c0_166 = arith.constant 0 : index
    %c1_167 = arith.constant 1 : index
    %c2_168 = arith.constant 2 : index
    %151 = vector.load %arg7[%c0_166, %c1_167, %c2_168] : memref<18x18x18xf32, #tpu.memory_space<vmem>>, vector<16x16x2xf32>
    %152 = arith.addf %150, %151 : vector<16x16x2xf32>
    %c0_169 = arith.constant 0 : index
    %c2_170 = arith.constant 2 : index
    %c4_171 = arith.constant 4 : index
    %153 = vector.load %arg7[%c0_169, %c2_170, %c4_171] : memref<18x18x18xf32, #tpu.memory_space<vmem>>, vector<16x16x2xf32>
    %154 = arith.addf %152, %153 : vector<16x16x2xf32>
    %c1_172 = arith.constant 1 : index
    %c0_173 = arith.constant 0 : index
    %c6_174 = arith.constant 6 : index
    %155 = vector.load %arg7[%c1_172, %c0_173, %c6_174] : memref<18x18x18xf32, #tpu.memory_space<vmem>>, vector<16x16x2xf32>
    %156 = arith.addf %154, %155 : vector<16x16x2xf32>
    %c1_175 = arith.constant 1 : index
    %c1_176 = arith.constant 1 : index
    %c8_177 = arith.constant 8 : index
    %157 = vector.load %arg7[%c1_175, %c1_176, %c8_177] : memref<18x18x18xf32, #tpu.memory_space<vmem>>, vector<16x16x2xf32>
    %158 = arith.addf %156, %157 : vector<16x16x2xf32>
    %c1_178 = arith.constant 1 : index
    %c2_179 = arith.constant 2 : index
    %c10_180 = arith.constant 10 : index
    %159 = vector.load %arg7[%c1_178, %c2_179, %c10_180] : memref<18x18x18xf32, #tpu.memory_space<vmem>>, vector<16x16x2xf32>
    %160 = arith.addf %158, %159 : vector<16x16x2xf32>
    %c2_181 = arith.constant 2 : index
    %c0_182 = arith.constant 0 : index
    %c12 = arith.constant 12 : index
    %161 = vector.load %arg7[%c2_181, %c0_182, %c12] : memref<18x18x18xf32, #tpu.memory_space<vmem>>, vector<16x16x2xf32>
    %162 = arith.addf %160, %161 : vector<16x16x2xf32>
    %c2_183 = arith.constant 2 : index
    %c1_184 = arith.constant 1 : index
    %c14 = arith.constant 14 : index
    %163 = vector.load %arg7[%c2_183, %c1_184, %c14] : memref<18x18x18xf32, #tpu.memory_space<vmem>>, vector<16x16x2xf32>
    %164 = arith.addf %162, %163 : vector<16x16x2xf32>
    %c2_185 = arith.constant 2 : index
    %c2_186 = arith.constant 2 : index
    %c16 = arith.constant 16 : index
    %165 = vector.load %arg7[%c2_185, %c2_186, %c16] : memref<18x18x18xf32, #tpu.memory_space<vmem>>, vector<16x16x2xf32>
    %166 = arith.addf %164, %165 : vector<16x16x2xf32>
    %c0_187 = arith.constant 0 : index
    %c0_188 = arith.constant 0 : index
    %c0_189 = arith.constant 0 : index
    %167 = vector.load %arg5[%c0_187, %c0_188, %c0_189] : memref<1x1x2xf32, #tpu.memory_space<vmem>>, vector<1x1x2xf32>
    %168 = vector.broadcast %167 : vector<1x1x2xf32> to vector<16x16x2xf32>
    %169 = arith.addf %166, %168 : vector<16x16x2xf32>
    %170 = vector.extract_strided_slice %169 {offsets = [0, 0, 0], sizes = [16, 16, 1], strides = [1, 1, 1]} : vector<16x16x2xf32> to vector<16x16x1xf32>
    %171 = vector.shape_cast %170 : vector<16x16x1xf32> to vector<16x16xf32>
    %c0_190 = arith.constant 0 : index
    %c0_191 = arith.constant 0 : index
    %c0_192 = arith.constant 0 : index
    %c0_193 = arith.constant 0 : index
    %172 = vector.load %arg6[%c0_190, %c0_191, %c0_192, %c0_193] : memref<1x2x16x16xf32, #tpu.memory_space<vmem>>, vector<1x1x16x16xf32>
    %173 = vector.shape_cast %172 : vector<1x1x16x16xf32> to vector<16x16xf32>
    %174 = vector.shape_cast %171 : vector<16x16xf32> to vector<1x1x16x16xf32>
    tpu.vector_store %arg6[%c0_190, %c0_191, %c0_192, %c0_193], %174 {strides = array<i32>} : memref<1x2x16x16xf32, #tpu.memory_space<vmem>>, vector<1x1x16x16xf32>,
    %175 = vector.extract_strided_slice %169 {offsets = [0, 0, 1], sizes = [16, 16, 1], strides = [1, 1, 1]} : vector<16x16x2xf32> to vector<16x16x1xf32>
    %176 = vector.shape_cast %175 : vector<16x16x1xf32> to vector<16x16xf32>
    %c0_194 = arith.constant 0 : index
    %c1_195 = arith.constant 1 : index
    %c0_196 = arith.constant 0 : index
    %c0_197 = arith.constant 0 : index
    %177 = vector.load %arg6[%c0_194, %c1_195, %c0_196, %c0_197] : memref<1x2x16x16xf32, #tpu.memory_space<vmem>>, vector<1x1x16x16xf32>
    %178 = vector.shape_cast %177 : vector<1x1x16x16xf32> to vector<16x16xf32>
    %179 = vector.shape_cast %176 : vector<16x16xf32> to vector<1x1x16x16xf32>
    tpu.vector_store %arg6[%c0_194, %c1_195, %c0_196, %c0_197], %179 {strides = array<i32>} : memref<1x2x16x16xf32, #tpu.memory_space<vmem>>, vector<1x1x16x16xf32>,
    return
  }
  func.func @transform_0(%arg0: i32) -> (i32, i32, i32, i32) {
    %c0_i32 = arith.constant 0 : i32
    %c0_i32_0 = arith.constant 0 : i32
    %c0_i32_1 = arith.constant 0 : i32
    %c0_i32_2 = arith.constant 0 : i32
    return %arg0, %c0_i32, %c0_i32_0, %c0_i32_1 : i32, i32, i32, i32
  }
  func.func @transform_1(%arg0: i32) -> (i32, i32, i32) {
    %c0_i32 = arith.constant 0 : i32
    %c0_i32_0 = arith.constant 0 : i32
    %c0_i32_1 = arith.constant 0 : i32
    %c0_i32_2 = arith.constant 0 : i32
    return %c0_i32, %c0_i32_0, %c0_i32_1 : i32, i32, i32
  }
  func.func @transform_2(%arg0: i32) -> (i32, i32) {
    %c0_i32 = arith.constant 0 : i32
    %c0_i32_0 = arith.constant 0 : i32
    %c0_i32_1 = arith.constant 0 : i32
    return %c0_i32, %c0_i32_0 : i32, i32
  }
  func.func @transform_3(%arg0: i32) -> (i32, i32) {
    %c0_i32 = arith.constant 0 : i32
    %c0_i32_0 = arith.constant 0 : i32
    %c0_i32_1 = arith.constant 0 : i32
    return %c0_i32, %c0_i32_0 : i32, i32
  }
  func.func @transform_4(%arg0: i32) -> (i32, i32, i32) {
    %c0_i32 = arith.constant 0 : i32
    %c0_i32_0 = arith.constant 0 : i32
    %c0_i32_1 = arith.constant 0 : i32
    %c0_i32_2 = arith.constant 0 : i32
    return %c0_i32, %c0_i32_0, %c0_i32_1 : i32, i32, i32
  }
  func.func @transform_5(%arg0: i32) -> (i32, i32, i32, i32) {
    %c0_i32 = arith.constant 0 : i32
    %c0_i32_0 = arith.constant 0 : i32
    %c0_i32_1 = arith.constant 0 : i32
    %c0_i32_2 = arith.constant 0 : i32
    return %arg0, %c0_i32, %c0_i32_0, %c0_i32_1 : i32, i32, i32, i32
  }
}

</mosaic_0001>

<bundles_post_ra>
// kernel: tpu_custom_call.1
= control target key start
LH: loop header
LB: loop body
LE: loop exit
PB: predicated region body
PF: predicated region fallthrough
CT: control target
= control target key end

     0   :  { %10 = vsyncpa [#allocation4], 0  ;;  %s15409_s0 = inlined_call_operand.vmem [shape: bf16[2,18,18,128], index: 0, kind: input, shape index: {}]   ;;  %s15410_s1 = inlined_call_operand.hbm [shape: bf16[9,128,256], index: 1, kind: input, shape index: {}]   ;;  %s15411_s2 = inlined_call_operand.vmem [shape: f32[1,256], index: 2, kind: input, shape index: {}]   ;;  %s15412_s3 = inlined_call_operand.vmem [shape: bf16[256,18], index: 3, kind: input, shape index: {}]   ;;  %s15413_s4 = inlined_call_operand.vmem [shape: f32[1,1,2], index: 4, kind: input, shape index: {}]   ;;  %s15414_s5 = inlined_call_operand.hbm [shape: f32[2,2,16,16], index: 5, kind: output, shape index: {}]  }
   0x1   :  { %11 = vsyncpa [#allocation5], 0 }
   0x2   :  { %13 = vsyncpa [#allocation5 + $0x1], 0  ;;  %s12167_s18 = smov 0   ;;  %s12169_s19 = smov 0  }
   0x3   :  { %s12171_s20 = smov 0   ;;  %s12173_s21 = smov 0  }
   0x4 LB: > { %s12188_s22 = sadd.s32 4294967295, %s12118_s21   ;;  %s9979_s23 = sadd.s32 4294967294, %s12118_s21   ;;  %s12118_s21 = sphi %s12173_s21, %s15650_s21   ;;  %s12114_s20 = sphi %s12171_s20, %s15649_s20   ;;  %s12110_s19 = sphi %s12169_s19, %s15648_s19   ;;  %s12106_s18 = sphi %s12167_s18, %s15647_s18  }
   0x5   : > { %s12192_s24 = sadd.s32 1, %s12118_s21   ;;  %s136_s25 = sadd.s32 1, %s12114_s20 }
   0x6   : > { %s133_s26 = ssub.s32 %s12118_s21, %s12192_s24  ;;  %p146_p0 = scmp.ne.s32.totalorder %s12114_s20, %s12110_s19 }
   0x7   : > { %p134_p1 = scmp.eq.s32.totalorder %s133_s26, 0  ;;  %p147_p2 = scmp.eq.s32.totalorder %s12188_s22, 1 }
   0x8   : > { %p152_p3 = scmp.ne.s32.totalorder %s12110_s19, %s12106_s18  ;;  %p153_p4 = scmp.eq.s32.totalorder %s9979_s23, 1 }
   0x9   : > { %s12203_s27 = scalar_select %p134_p1, %s12114_s20, %s136_s25  }
   0xa   : > { %p12205_p5 = por %p147_p2, %p146_p0  ;;  %p12209_p6 = por %p153_p4, %p152_p3 }
   0xb   : > { %p9980_p7 = scmp.ge.s32.totalorder %s12118_s21, 1  ;;  %p160_p8 = scmp.lt.s32.totalorder %s12118_s21, 3 }
   0xc   : > { %s15444_s28 = scalar_select %p12205_p5, 1, 0 }
   0xd   : > { %s15445_s29 = scalar_select %p12209_p6, 1, 0 }
   0xe   : > { %p15415_p9 = scmp.eq.s32.totalorder %s12188_s22, 0  ;;  %p12216_p10 = pnand %p9980_p7, %p160_p8 }
   0xf   : > { %s12120_s6 = smov [#allocation3]   ;;  %s12024_s11 = scalar_lea.hbm %s15410_s1, 18432 }
  0x10   : > { %s15446_s30 = scalar_select %p12216_p10, 1, 0 }
  0x11   : > { %s172_s7 = sshll.u32 %s12120_s6, 4  ;;  %p11379_p11 = pneg %p12216_p10  ;;  %s173_s7 = int_to_ptr.vmem [resolvable:$true] %s172_s7 }
  0x12   : > { %p12025_p13 = scmp.ne.s32.totalorder %s15410_s1, %s12024_s11  ;;  %p12031_p3 = scmp.lt.u32.totalorder %s12024_s11, %s15410_s1 }
  0x13   : > { %p12224_p12 = pnand %p15415_p9, %p11379_p11 }
  0x15   : > { %p12026_p0 = pneg %p12224_p12 }
  0x17   : > { %p12027_p1 = pnand %p12026_p0, %p12025_p13 }
  0x19   : > { %p12028_p2 = pneg %p12027_p1 }
  0x1b   : > { %p12033_p4 = pnand %p12031_p3, %p12028_p2 }
  0x1d   : > { %12036 = shalt.err (!%p12033_p4)
}
  0x1e   : > { %s12037_s16 = scalar_lea.vmem %s173_s7, 18432  ;;  %p12045_p9 = scmp.lt.s32.totalorder %s173_s7, %s173_s7 }
  0x1f   : > { %p12038_p7 = scmp.ne.s32.totalorder %s173_s7, %s12037_s16  ;;  %p12046_p6 = scmp.lt.s32.totalorder %s12037_s16, %s12037_s16 }
  0x21   : > { %p12040_p8 = pnand %p12038_p7, %p12026_p0  ;;  %p12047_p5 = por %p12046_p6, %p12045_p9 }
  0x23   : > { %p12041_p11 = pneg %p12040_p8 }
  0x25   : > { %p12048_p10 = pnand %p12047_p5, %p12041_p11 }
  0x27   : > { %12051 = shalt.err (!%p12048_p10)
}
  0x28   : > { %s12121_s17 = smov 128   ;;  %s12122_s23 = smov 8  }
  0x29   : > { %11382 = dma.hbm_to_vmem [thread:$0]  (!%p12224_p12), %s15410_s1, 18432, %s173_s7, [#allocation4], %s12121_s17, %s12121_s17, %s12122_s23  }
  0x2a   : > { %p15448_p13 = scmp.ne.s32.totalorder %s15446_s30, 0 }
  0x2c   : > { %205 = sbr.rel (%p15448_p13) target bundleno = 2368 (0x940), region = 40 }
  0x33   : > { %p15449_p1 = scmp.eq.s32.totalorder %s12188_s22, 0 }
  0x35   : > { %12097 = dma.done.wait (%p15449_p1), [#allocation4], 18432   ;;  %p15450_p0 = pmov %p15449_p1 }
  0x36   : > { %v15422_v0 = vmov 0   ;;  %p233_p5 = scmp.lt.s32.totalorder %s12188_s22, 1  ;;  %v11497_v1 = vld [vmem:[#allocation3 + $0x84] ss:$8 sps:$4 sm:$0xff]   ;;  %v11499_v2 = vld [vmem:[#allocation3 + $0x80] ss:$8 sps:$4 sm:$0xff]  }
  0x37   : > { %12099 = vsyncadd (%p15450_p0), [#allocation4], 4294948864  ;;  %678 = vmatprep.mubr.bf16.mxu0 %v15422_v0  ;;  %11438 = vset.pattern.permute.xlu0 %v15422_v0  ;;  %v11500_v3 = vld [vmem:[#allocation3 + $0x94] ss:$8 sps:$4 sm:$0xff]   ;;  %v11502_v4 = vld [vmem:[#allocation3 + $0x90] ss:$8 sps:$4 sm:$0xff]  }
  0x38   : > { %s234_s6 = scalar_select %p233_p5, %s12188_s22, 1  ;;  %646 = vmatprep.subr.bf16.mxu0 %v11497_v1  ;;  %v11503_v5 = vld [vmem:[#allocation3 + $0xa4] ss:$8 sps:$4 sm:$0xff]   ;;  %v11505_v6 = vld [vmem:[#allocation3 + $0xa0] ss:$8 sps:$4 sm:$0xff]   ;;  %v15451_v40 = vmov 0 }
  0x39   : > { %647 = vmatpush1.bf16.msra.mxu0 %v11499_v2  ;;  %v11506_v7 = vld [vmem:[#allocation3 + $0xb4] ss:$8 sps:$4 sm:$0xff]   ;;  %v11508_v9 = vld [vmem:[#allocation3 + $0xb0] ss:$8 sps:$4 sm:$0xff]   ;;  %v11509_v13 = vld [vmem:[#allocation3 + $0xc4] ss:$8 sps:$4 sm:$0xff]  }
  0x3a   : > { %s11372_s30 = smul.u32 216, %s234_s6  ;;  %648 = vmatprep.subr.bf16.mxu0 %v11500_v3  ;;  %v11511_v23 = vld [vmem:[#allocation3 + $0xc0] ss:$8 sps:$4 sm:$0xff]   ;;  %v11512_v25 = vld [vmem:[#allocation3 + $0xd4] ss:$8 sps:$4 sm:$0xff]   ;;  %vm1024_vm3 = vcmask 1042432  }
  0x3b   : > { %vm322_vm0 = vsmask.f32 3328  ;;  %vm323_vm1 = vsmask.f32 7440  ;;  %v11514_v34 = vld [vmem:[#allocation3 + $0xd0] ss:$8 sps:$4 sm:$0xff]  }
  0x3c   : > { %s12257_s9 = scalar_lea.vmem %s15409_s0, %s11372_s30  ;;  %v11515_v35 = vld [vmem:[#allocation3 + $0xe4] ss:$8 sps:$4 sm:$0xff]   ;;  %vm12287_vm2 = vmor %vm322_vm0, %vm323_vm1  ;;  %v11517_v46 = vld [vmem:[#allocation3 + $0xe0] ss:$8 sps:$4 sm:$0xff]   ;;  %vm1025_vm4 = vcmask 1046532   ;;  %vm239_vm6 = vcmask 146432  }
  0x3d   : > { %649 = vmatpush1.bf16.msra.mxu0 %v11502_v4  ;;  %v12260_v8 = vld [vmem:[%s12257_s9] sm:$0xf]  ;;  %v12263_v10 = vld [vmem:[%s12257_s9 + $0x4] sm:$0xf]  ;;  %v12270_v16 = vld [vmem:[%s12257_s9 + $0x8] sm:$0x1] }
  0x3e   : > { %650 = vmatprep.subr.bf16.mxu0 %v11503_v5  ;;  %v326_v11 = vshrl.u32 %v12260_v8, 16  ;;  %v329_v12 = vshll.u32 %v12260_v8, 16  ;;  %v335_v14 = vshll.u32 %v12263_v10, 16  ;;  %v339_v15 = vshrl.u32 %v12263_v10, 16  ;;  %v12275_v22 = vld [vmem:[%s12257_s9 + $0xc] sm:$0xf]  ;;  %vm12427_vm5 = vmor %vm1024_vm3, %vm1025_vm4 }
  0x3f   : > { %v10011_v19 = vcombine.low %v12260_v8, %v12263_v10  ;;  %v12278_v24 = vld [vmem:[%s12257_s9 + $0x10] sm:$0xf]  ;;  %v345_v27 = vshll.u32 %v12270_v16, 16  ;;  %v350_v28 = vshrl.u32 %v12275_v22, 16  ;;  %v353_v29 = vshll.u32 %v12275_v22, 16  ;;  %s12125_s14 = smov 126  }
  0x40   : > { %v328_v17 = vrot.slane %v326_v11, 4  ;;  %v331_v18 = vrot.slane %v329_v12, 5  ;;  %v337_v20 = vrot.slane %v335_v14, 5  ;;  %v341_v21 = vrot.slane %v339_v15, 4  ;;  %v12292_v42 = vld [vmem:[%s12257_s9 + $0x14] sm:$0x1] }
  0x41   : > { %651 = vmatpush1.bf16.msra.mxu0 %v11505_v6  ;;  %v359_v31 = vshll.u32 %v12278_v24, 16  ;;  %v363_v32 = vshrl.u32 %v12278_v24, 16  ;;  %v10012_v33 = vcombine.low %v12275_v22, %v12278_v24  ;;  %v347_v37 = vrot.slane %v345_v27, 5  ;;  %v12295_v45 = vld [vmem:[%s12257_s9 + $0x18] sm:$0xf]  ;;  %s12126_s15 = smov 124  }
  0x42   : > { %652 = vmatprep.subr.bf16.mxu0 %v11506_v7  ;;  %v332_v26 = vor.u32 %v331_v18, %v328_v17  ;;  %v342_v30 = vor.u32 %v341_v21, %v337_v20  ;;  %v352_v38 = vrot.slane %v350_v28, 4  ;;  %v355_v39 = vrot.slane %v353_v29, 5  ;;  %v12298_v47 = vld [vmem:[%s12257_s9 + $0x1c] sm:$0xf]  ;;  %v11518_v48 = vld [vmem:[#allocation3 + $0xf4] ss:$8 sps:$4 sm:$0xff]  }
  0x43   : > { %v15452_v40 = vsel %vm12287_vm2, 4294967295, %v15451_v40  ;;  %v361_v43 = vrot.slane %v359_v31, 5  ;;  %v365_v44 = vrot.slane %v363_v32, 4  ;;  %v369_v51 = vshll.u32 %v12292_v42, 16  ;;  %v11520_v56 = vld [vmem:[#allocation3 + $0xf0] ss:$8 sps:$4 sm:$0xff]  }
  0x44   : > { %v333_v36 = vrot.slane %v332_v26, 4  ;;  %15453 = vst [vmem:[#allocation9_spill] sm:$0xff] %v15452_v40  ;;  %v343_v41 = vrot.slane %v342_v30, 4  ;;  %v356_v50 = vor.u32 %v355_v39, %v352_v38  ;;  %v374_v54 = vshrl.u32 %v12295_v45, 16  ;;  %v11523_v57 = vld [vmem:[#allocation3 + $0x4] ss:$8 sps:$4 sm:$0xff]  }
  0x45   : > { %653 = vmatpush1.bf16.msra.mxu0 %v11508_v9  ;;  %v366_v53 = vor.u32 %v365_v44, %v361_v43  ;;  %v377_v55 = vshll.u32 %v12295_v45, 16  ;;  %v383_v58 = vshll.u32 %v12298_v47, 16  ;;  %v387_v59 = vshrl.u32 %v12298_v47, 16  ;;  %v12310_v60 = vld [vmem:[%s12257_s9 + $0x24] sm:$0xf]  ;;  %s12127_s16 = smov 116  }
  0x46   : > { %654 = vmatprep.subr.bf16.mxu0 %v11509_v13  ;;  %v338_v49 = vsel %vm12287_vm2, %v333_v36, %v337_v20  ;;  %v348_v52 = vsel %vm12287_vm2, %v343_v41, %v347_v37  ;;  %v371_v62 = vrot.slane %v369_v51, 5  ;;  %v12313_v63 = vld [vmem:[%s12257_s9 + $0x20] sm:$0x1]  ;;  %v12316_v1 = vld [vmem:[%s12257_s9 + $0x28] sm:$0xf]  ;;  %v357_v2 = vrot.slane %v356_v50, 4 }
  0x47   : > { %v9987_v61 = vcombine.low %v338_v49, %v348_v52  ;;  %v367_v3 = vrot.slane %v366_v53, 4  ;;  %v376_v4 = vrot.slane %v374_v54, 4  ;;  %v379_v5 = vrot.slane %v377_v55, 5  ;;  %v11521_v12 = vld [vmem:[#allocation3] ss:$8 sps:$4 sm:$0xff]   ;;  %s12128_s17 = smov 114  }
  0x48   : > { %v12318_v6 = vrot.slane %v383_v58, 5  ;;  %v389_v7 = vrot.slane %v387_v59, 4  ;;  %v398_v9 = vshrl.u32 %v12310_v60, 16  ;;  %v401_v11 = vshll.u32 %v12310_v60, 16  ;;  %v11526_v15 = vld [vmem:[#allocation3 + $0x14] ss:$8 sps:$4 sm:$0xff]  }
  0x49   : > { %655 = vmatpush1.bf16.msra.mxu0 %v11511_v23  ;;  %v407_v13 = vshll.u32 %v12316_v1, 16  ;;  %v411_v14 = vshrl.u32 %v12316_v1, 16  ;;  %v362_v17 = vsel %vm12287_vm2, %v357_v2, %v361_v43  ;;  %v380_v18 = vor.u32 %v379_v5, %v376_v4  ;;  %v12328_v21 = vld [vmem:[%s12257_s9 + $0x30] sm:$0xf]  ;;  %v12334_v29 = vld [vmem:[%s12257_s9 + $0x34] sm:$0xf] }
  0x4a   : > { %656 = vmatprep.subr.bf16.mxu0 %v11512_v25  ;;  %v393_v20 = vshll.u32 %v12313_v63, 16  ;;  %v372_v23 = vsel %vm12287_vm2, %v367_v3, %v371_v62  ;;  %v11524_v25 = vld [vmem:[#allocation3 + $0x10] ss:$8 sps:$4 sm:$0xff]   ;;  %v390_v26 = vor.u32 %v389_v7, %v12318_v6  ;;  %v400_v27 = vrot.slane %v398_v9, 4  ;;  %v12338_v30 = vld [vmem:[%s12257_s9 + $0x2c] sm:$0x1] }
  0x4b   : > { %v403_v28 = vrot.slane %v401_v11, 5  ;;  %v12340_v31 = vrot.slane %v407_v13, 5  ;;  %v413_v32 = vrot.slane %v411_v14, 4  ;;  %v425_v36 = vshll.u32 %v12328_v21, 16  ;;  %v12345_v37 = vld [vmem:[%s12257_s9 + $0x3c] sm:$0xf] }
  0x4c   : > { %v9988_v38 = vcombine.low %v362_v17, %v372_v23  ;;  %v395_v39 = vrot.slane %v393_v20, 5  ;;  %v431_v41 = vshll.u32 %v12334_v29, 16  ;;  %v435_v43 = vshrl.u32 %v12334_v29, 16  ;;  %v11527_v50 = vld [vmem:[#allocation3 + $0x20] ss:$8 sps:$4 sm:$0xff]   ;;  %s15432_s23 = smov 112  }
  0x4d   : > { %657 = vmatpush1.bf16.msra.mxu0 %v11514_v34  ;;  %v11529_v34 = vld [vmem:[#allocation3 + $0x24] ss:$8 sps:$4 sm:$0xff]   ;;  %v381_v44 = vrot.slane %v380_v18, 4  ;;  %v417_v49 = vshll.u32 %v12338_v30, 16  ;;  %v414_v51 = vor.u32 %v413_v32, %v12340_v31  ;;  %v11532_v52 = vld [vmem:[#allocation3 + $0x34] ss:$8 sps:$4 sm:$0xff]   ;;  %v10013_v23 = vcombine.low %v12295_v45, %v12298_v47 }
  0x4e   : > { %658 = vmatprep.subr.bf16.mxu0 %v11515_v35  ;;  %v422_v35 = vshrl.u32 %v12328_v21, 16  ;;  %v446_v53 = vshrl.u32 %v12345_v37, 16  ;;  %v449_v54 = vshll.u32 %v12345_v37, 16  ;;  %v12354_v55 = vld [vmem:[%s12257_s9 + $0x38] sm:$0x1]  ;;  %v12356_v59 = vrot.slane %v431_v41, 5 }
  0x4f   : > { %v11530_v58 = vld [vmem:[#allocation3 + $0x30] ss:$8 sps:$4 sm:$0xff]   ;;  %v386_v2 = vsel %vm12287_vm2, %v381_v44, %v12318_v6  ;;  %v419_v5 = vrot.slane %v417_v49, 5  ;;  %v11535_v7 = vld [vmem:[#allocation3 + $0x44] ss:$8 sps:$4 sm:$0xff]   ;;  %v415_v11 = vrot.slane %v414_v51, 4 }
  0x50   : > { %v12359_v62 = vld [vmem:[%s12257_s9 + $0x40] sm:$0xf]  ;;  %v12367_v9 = vld [vmem:[%s12257_s9 + $0x44] sm:$0x1]  ;;  %v448_v13 = vrot.slane %v446_v53, 4  ;;  %v451_v14 = vrot.slane %v449_v54, 5 }
  0x51   : > { %659 = vmatpush1.bf16.msra.mxu0 %v11517_v46  ;;  %v391_v46 = vrot.slane %v390_v26, 4  ;;  %v12372_v6 = vld [vmem:[%s12257_s9 + $0x48] sm:$0xf]  ;;  %v455_v17 = vshll.u32 %v12359_v62, 16  ;;  %v12376_v18 = vld [vmem:[%s12257_s9 + $0x4c] sm:$0xf] }
  0x52   : > { %660 = vmatprep.subr.bf16.mxu0 %v11518_v48  ;;  %v404_v48 = vor.u32 %v403_v28, %v400_v27  ;;  %v12379_v20 = vld [vmem:[%s12257_s9 + $0x54] sm:$0xf]  ;;  %v459_v28 = vshrl.u32 %v12359_v62, 16  ;;  %v12388_v32 = vld [vmem:[%s12257_s9 + $0x58] sm:$0xf]  ;;  %v1032_v41 = vrot.slane %v12270_v16, 5 }
  0x53   : > { %v396_v3 = vsel %vm12287_vm2, %v391_v46, %v395_v39  ;;  %v11533_v44 = vld [vmem:[#allocation3 + $0x40] ss:$8 sps:$4 sm:$0xff]   ;;  %v452_v46 = vor.u32 %v451_v14, %v448_v13  ;;  %v12409_v51 = vrot.slane %v455_v17, 5  ;;  %v11536_v16 = vld [vmem:[#allocation3 + $0x50] ss:$8 sps:$4 sm:$0xff]   ;;  %v1039_v13 = vrot.slane %v12292_v42, 5 }
  0x54   : > { %v405_v4 = vrot.slane %v404_v48, 4  ;;  %v9989_v26 = vcombine.low %v386_v2, %v396_v3  ;;  %v420_v48 = vsel %vm12287_vm2, %v415_v11, %v419_v5  ;;  %v12411_v53 = vrot.slane %v459_v28, 4  ;;  %v11541_v3 = vld [vmem:[#allocation3 + $0x64] ss:$8 sps:$4 sm:$0xff]   ;;  %v1001_v42 = vld [vmem:[%s12257_s9 + $0xc] sm:$0xe] }
  0x55   : > { %661 = vmatpush1.bf16.msra.mxu0 %v11520_v56  ;;  %v424_v56 = vrot.slane %v422_v35, 4  ;;  %v465_v35 = vshll.u32 %v12367_v9, 16  ;;  %v473_v2 = vshll.u32 %v12372_v6, 16  ;;  %v15454_v11 = vmov 0  ;;  %v11564_v8 = vld [vmem:[#allocation3 + $0x144] ss:$8 sps:$4 sm:$0xff]  }
  0x56   : > { %887 = vmatprep.subr.bf16.mxu0 %v11523_v57  ;;  %v427_v57 = vrot.slane %v425_v36, 5  ;;  %v10016_v36 = vcombine.low %v12345_v37, %v12359_v62  ;;  %v15455_v11 = vsel %vm12427_vm5, 4294967295, %v15454_v11  ;;  %v1043_v14 = vrot.slane %v12298_v47, 5  ;;  %v11572_v22 = vld [vmem:[#allocation3 + $0x164] ss:$8 sps:$4 sm:$0xff]   ;;  %s12130_s25 = smov 122  }
  0x57   : > { %15456 = vst [vmem:[#allocation10_spill] sm:$0xff] %v15455_v11  ;;  %v479_v17 = vshll.u32 %v12376_v18, 16  ;;  %v11579_v45 = vld [vmem:[#allocation3 + $0x184] ss:$8 sps:$4 sm:$0xff]   ;;  %v15457_v47 = vcombine.low %v12372_v6, %v12376_v18  ;;  %v11580_v37 = vld [vmem:[#allocation3 + $0x190] ss:$8 sps:$4 sm:$0xff]  }
  0x58   : > { %679 = vmatmul.mubr.bf16.vlgmr.msra.gmra.mrb[0].mxu0 %v9987_v61  ;;  %v437_v61 = vrot.slane %v435_v43, 4  ;;  %v410_v43 = vsel %vm12287_vm2, %v405_v4, %v12340_v31  ;;  %v1029_v31 = vrot.slane %v12263_v10, 5  ;;  %v11562_v10 = vld [vmem:[#allocation3 + $0x140] ss:$8 sps:$4 sm:$0xff]   ;;  %vm242_vm7 = vcmask 140288   ;;  %s12131_s26 = smov 120  }
  0x59   : > { %888 = vmatpush1.bf16.msra.mxu0 %v11521_v12  ;;  %688 = vmatprep.mubr.bf16.mxu0 %v15422_v0  ;;  %v441_v12 = vshll.u32 %v12354_v55, 16  ;;  %v9990_v5 = vcombine.low %v410_v43, %v420_v48  ;;  %vm249_vm8 = vcmask 139264   ;;  %s12132_s6 = smov 118   ;;  %v11944_v11 = vld [vmem:[#allocation3 + $0x394] ss:$8 sps:$4 sm:$0xff]   ;;  %s15502_s10 = smov 112  }
  0x5a   : > { %889 = vmatprep.subr.bf16.mxu0 %v11526_v15  ;;  %v428_v15 = vor.u32 %v427_v57, %v424_v56  ;;  %v438_v27 = vor.u32 %v437_v61, %v12356_v59  ;;  %v12416_v56 = vrot.slane %v465_v35, 5  ;;  %v470_v57 = vshrl.u32 %v12372_v6, 16  ;;  %v11583_v6 = vld [vmem:[#allocation3 + $0x1a0] ss:$8 sps:$4 sm:$0xff]   ;;  %p15645_p9 = scmp.ne.s32.totalorder %s15444_s28, 0 }
  0x5b   : > { %v12421_v61 = vrot.slane %v452_v46, 4  ;;  %v1031_v4 = vrot.slane %v1029_v31, 4  ;;  %v1046_v46 = vrot.slane %v12313_v63, 5  ;;  %vm9469_vm9 = vcmask 130112  }
  0x5c   : > { %v12405_v49 = vrot.slane %v428_v15, 4  ;;  %v12414_v54 = vrot.slane %v438_v27, 4  ;;  %v12434_v15 = vld [vmem:[%s12257_s9 + $0x50] sm:$0x1]  ;;  %v472_v48 = vrot.slane %v470_v57, 4  ;;  %vm9606_vm10 = vcmask 1041409  }
  0x5d   : > { %890 = vmatpush1.bf16.msra.mxu0 %v11524_v25  ;;  %v10014_v25 = vcombine.low %v12310_v60, %v12316_v1  ;;  %v12440_v28 = vsel %vm12427_vm5, %v1031_v4, %v1032_v41  ;;  %v11539_v41 = vld [vmem:[#allocation3 + $0x60] ss:$8 sps:$4 sm:$0xff]   ;;  %v15458_v60 = vcombine.low %v12379_v20, %v12388_v32  ;;  %vm9608_vm11 = vcmask 1042434  }
  0x5e   : > { %891 = vmatprep.subr.bf16.mxu0 %v11529_v34  ;;  %v10015_v34 = vcombine.low %v12328_v21, %v12334_v29  ;;  %v434_v35 = vsel %vm12287_vm2, %v12405_v49, %v12356_v59  ;;  %v462_v59 = vor.u32 %v12411_v53, %v12409_v51  ;;  %v11544_v49 = vld [vmem:[#allocation3 + $0x74] ss:$8 sps:$4 sm:$0xff]   ;;  %vm9610_vm12 = vcmask 1043459  }
  0x5f   : > { %v11582_v21 = vld [vmem:[#allocation3 + $0x194] ss:$8 sps:$4 sm:$0xff]   ;;  %vm9612_vm13 = vcmask 1044484   ;;  %vm9614_vm14 = vcmask 1045509   ;;  %vm9616_vm15 = vcmask 1046534   ;;  %vm9618_vm0 = vcmask 1047559  }
  0x60   : > { %689 = vmatmul.mubr.bf16.gmra.mrb[4].mxu0 %v9988_v38  ;;  %vm9629_vm1 = vcmask 130048  }
  0x61   : > { %698 = vmatprep.mubr.bf16.mxu0 %v15422_v0  ;;  %892 = vmatpush1.bf16.msra.mxu0 %v11527_v50  ;;  %v12407_v50 = vrot.slane %v441_v12, 5 }
  0x62   : > { %893 = vmatprep.subr.bf16.mxu0 %v11532_v52  ;;  %v11538_v52 = vld [vmem:[#allocation3 + $0x54] ss:$8 sps:$4 sm:$0xff]  }
  0x65   : > { %894 = vmatpush1.bf16.msra.mxu0 %v11530_v58  ;;  %v1036_v58 = vrot.slane %v12278_v24, 5  ;;  %v11570_v24 = vld [vmem:[#allocation3 + $0x160] ss:$8 sps:$4 sm:$0xff]  }
  0x66   : > { %895 = vmatprep.subr.bf16.mxu0 %v11535_v7  ;;  %v1000_v7 = vld [vmem:[%s12257_s9] sm:$0xe] }
  0x67   : > { %v1038_v12 = vrot.slane %v1036_v58, 4  ;;  %v10035_v27 = vrot.slane %v1000_v7, 9  ;;  %v10036_v7 = vrot.slane %v1001_v42, 9  ;;  %v11542_v42 = vld [vmem:[#allocation3 + $0x70] ss:$8 sps:$4 sm:$0xff]  }
  0x68   : > { %699 = vmatmul.mubr.bf16.gmra.mrb[8].mxu0 %v9989_v26  ;;  %v483_v26 = vshrl.u32 %v12376_v18, 16 }
  0x69   : > { %708 = vmatprep.mubr.bf16.mxu0 %v15422_v0  ;;  %896 = vmatpush1.bf16.msra.mxu0 %v11533_v44  ;;  %v12449_v43 = vsel %vm12427_vm5, %v1038_v12, %v1039_v13  ;;  %v1045_v44 = vrot.slane %v1043_v14, 4  ;;  %v12454_v4 = vsel %vm12427_vm5, %v10035_v27, %v1029_v31  ;;  %v1002_v13 = vld [vmem:[%s12257_s9 + $0x18] sm:$0xe]  ;;  %v489_v31 = vshll.u32 %v12434_v15, 16 }
  0x6a   : > { %897 = vmatprep.subr.bf16.mxu0 %v11538_v52  ;;  %v475_v52 = vrot.slane %v473_v2, 5  ;;  %v12469_v57 = vsel %vm12427_vm5, %v10036_v7, %v1036_v58  ;;  %v10037_v53 = vrot.slane %v1002_v13, 9  ;;  %v1003_v2 = vld [vmem:[%s12257_s9 + $0x24] sm:$0xe]  ;;  %v444_v27 = vsel %vm12287_vm2, %v12414_v54, %v12407_v50  ;;  %v11548_v58 = vld [vmem:[#allocation3 + $0x104] ss:$8 sps:$4 sm:$0xff]  }
  0x6b   : > { %v12463_v63 = vsel %vm12427_vm5, %v1045_v44, %v1046_v46  ;;  %v10038_v46 = vrot.slane %v1003_v2, 9  ;;  %v1060_v13 = vrot.slane %v12354_v55, 5  ;;  %v497_v50 = vshll.u32 %v12379_v20, 16 }
  0x6c   : > { %v12482_v7 = vsel %vm12427_vm5, %v10037_v53, %v1043_v14  ;;  %v9991_v14 = vcombine.low %v434_v35, %v444_v27  ;;  %v463_v53 = vrot.slane %v462_v59, 4  ;;  %v476_v55 = vor.u32 %v475_v52, %v472_v48 }
  0x6d   : > { %898 = vmatpush1.bf16.msra.mxu0 %v11536_v16  ;;  %v1050_v16 = vrot.slane %v12316_v1, 5  ;;  %v485_v38 = vrot.slane %v483_v26, 4  ;;  %v491_v59 = vrot.slane %v489_v31, 5  ;;  %v458_v52 = vsel %vm12287_vm2, %v12421_v61, %v12409_v51  ;;  %v11577_v1 = vld [vmem:[#allocation3 + $0x180] ss:$8 sps:$4 sm:$0xff]  }
  0x6e   : > { %899 = vmatprep.subr.bf16.mxu0 %v11541_v3  ;;  %v1053_v3 = vrot.slane %v12338_v30, 5  ;;  %v1004_v30 = vld [vmem:[%s12257_s9 + $0x30] sm:$0xe]  ;;  %v477_v26 = vrot.slane %v476_v55, 4  ;;  %v468_v31 = vsel %vm12287_vm2, %v463_v53, %v12416_v56  ;;  %v1067_v51 = vrot.slane %v12367_v9, 5 }
  0x6f   : > { %v1052_v12 = vrot.slane %v1050_v16, 4  ;;  %v12491_v54 = vsel %vm12427_vm5, %v10038_v46, %v1050_v16  ;;  %v10039_v2 = vrot.slane %v1004_v30, 9  ;;  %v481_v46 = vrot.slane %v479_v17, 5  ;;  %v321_v30 = vld [vmem:[%s12257_s9 + $0x5c] sm:$0x1] }
  0x70   : > { %709 = vmatmul.mubr.bf16.gmra.mrb[12].mxu0 %v9990_v5  ;;  %v1057_v5 = vrot.slane %v12334_v29, 5  ;;  %v503_v17 = vshll.u32 %v12388_v32, 16  ;;  %v15459_v29 = vcombine.low %v12454_v4, %v12440_v28  ;;  %v11592_v28 = vld [vmem:[#allocation3 + $0x1d0] ss:$8 sps:$4 sm:$0xff]   ;;  %v11597_v4 = vld [vmem:[#allocation3 + $0x1e4] ss:$8 sps:$4 sm:$0xff]  }
  0x71   : > { %718 = vmatprep.mubr.bf16.mxu0 %v15422_v0  ;;  %900 = vmatpush1.bf16.msra.mxu0 %v11539_v41  ;;  %v12495_v41 = vsel %vm12427_vm5, %v1052_v12, %v1053_v3  ;;  %v499_v3 = vrot.slane %v497_v50, 5  ;;  %v486_v27 = vor.u32 %v485_v38, %v481_v46  ;;  %v482_v9 = vsel %vm12287_vm2, %v477_v26, %v481_v46 }
  0x72   : > { %901 = vmatprep.subr.bf16.mxu0 %v11544_v49  ;;  %v10046_v44 = vcombine.low %v12491_v54, %v12495_v41  ;;  %v1059_v39 = vrot.slane %v1057_v5, 4  ;;  %v494_v49 = vshrl.u32 %v12379_v20, 16  ;;  %v12503_v16 = vsel %vm12427_vm5, %v10039_v2, %v1057_v5  ;;  %v11606_v54 = vld [vmem:[#allocation3 + $0x210] ss:$8 sps:$4 sm:$0xff]   ;;  %v11612_v41 = vld [vmem:[#allocation3 + $0x224] ss:$8 sps:$4 sm:$0xff]  }
  0x73   : > { %v505_v50 = vrot.slane %v503_v17, 5  ;;  %v15460_v20 = vcombine.low %v12469_v57, %v12449_v43  ;;  %v11595_v43 = vld [vmem:[#allocation3 + $0x1e0] ss:$8 sps:$4 sm:$0xff]   ;;  %v11600_v57 = vld [vmem:[#allocation3 + $0x1f4] ss:$8 sps:$4 sm:$0xff]  }
  0x74   : > { %v12507_v35 = vsel %vm12427_vm5, %v1059_v39, %v1060_v13  ;;  %v496_v12 = vrot.slane %v494_v49, 4  ;;  %v507_v39 = vshrl.u32 %v12388_v32, 16  ;;  %v9992_v13 = vcombine.low %v458_v52, %v468_v31 }
  0x75   : > { %902 = vmatpush1.bf16.msra.mxu0 %v11542_v42  ;;  %v10047_v48 = vcombine.low %v12503_v16, %v12507_v35  ;;  %v1005_v42 = vld [vmem:[%s12257_s9 + $0x3c] sm:$0xe]  ;;  %v513_v49 = vshll.u32 %v321_v30, 16  ;;  %v1071_v31 = vrot.slane %v12376_v18, 5  ;;  %v11588_v18 = vld [vmem:[#allocation3 + $0x1b4] ss:$8 sps:$4 sm:$0xff]  }
  0x76   : > { %1212 = vmatprep.subr.bf16.mxu0 %v11548_v58  ;;  %v1064_v58 = vrot.slane %v12359_v62, 5  ;;  %v10040_v61 = vrot.slane %v1005_v42, 9  ;;  %v509_v55 = vrot.slane %v507_v39, 4  ;;  %v500_v53 = vor.u32 %v499_v3, %v496_v12  ;;  %v1006_v39 = vld [vmem:[%s12257_s9 + $0x48] sm:$0xe]  ;;  %v11605_v16 = vld [vmem:[%s12257_s9 + $0x18] sm:$0xff]  }
  0x77   : > { %v10041_v42 = vrot.slane %v1006_v39, 9  ;;  %v515_v3 = vrot.slane %v513_v49, 5  ;;  %v11546_v39 = vld [vmem:[#allocation3 + $0x100] ss:$8 sps:$4 sm:$0xff]   ;;  %v11585_v62 = vld [vmem:[#allocation3 + $0x1a4] ss:$8 sps:$4 sm:$0xff]  }
  0x78   : > { %719 = vmatmul.mubr.bf16.gmra.mrb[16].mxu0 %v9991_v14  ;;  %v1066_v5 = vrot.slane %v1064_v58, 4  ;;  %v12527_v2 = vsel %vm12427_vm5, %v10040_v61, %v1064_v58  ;;  %v487_v14 = vrot.slane %v486_v27, 4  ;;  %v510_v17 = vor.u32 %v509_v55, %v505_v50  ;;  %v11610_v35 = vld [vmem:[#allocation3 + $0x220] ss:$8 sps:$4 sm:$0xff]  }
  0x79   : > { %728 = vmatprep.mubr.bf16.mxu0 %v15422_v0  ;;  %v1074_v27 = vrot.slane %v12434_v15, 5  ;;  %v1073_v58 = vrot.slane %v1071_v31, 4  ;;  %v12545_v46 = vsel %vm12427_vm5, %v10041_v42, %v1071_v31  ;;  %v501_v26 = vrot.slane %v500_v53, 4  ;;  %v11552_v31 = vld [vmem:[#allocation3 + $0x114] ss:$8 sps:$4 sm:$0xff]  }
  0x7a   : > { %v12531_v38 = vsel %vm12427_vm5, %v1066_v5, %v1067_v51  ;;  %v492_v52 = vsel %vm12287_vm2, %v487_v14, %v491_v59  ;;  %v511_v12 = vrot.slane %v510_v17, 4  ;;  %v1078_v14 = vrot.slane %v12388_v32, 5  ;;  %v11554_v42 = vld [vmem:[#allocation3 + $0x120] ss:$8 sps:$4 sm:$0xff]  }
  0x7b   : > { %v10048_v56 = vcombine.low %v12527_v2, %v12531_v38  ;;  %v9993_v51 = vcombine.low %v482_v9, %v492_v52  ;;  %v12549_v59 = vsel %vm12427_vm5, %v1073_v58, %v1074_v27  ;;  %v506_v15 = vsel %vm12287_vm2, %v501_v26, %v505_v50  ;;  %v11556_v27 = vld [vmem:[#allocation3 + $0x124] ss:$8 sps:$4 sm:$0xff]   ;;  %v11560_v58 = vld [vmem:[#allocation3 + $0x134] ss:$8 sps:$4 sm:$0xff]   ;;  %v11566_v26 = vld [vmem:[#allocation3 + $0x150] ss:$8 sps:$4 sm:$0xff]  }
  0x7c   : > { %v10049_v61 = vcombine.low %v12545_v46, %v12549_v59  ;;  %v516_v5 = vsel %vm12287_vm2, %v511_v12, %v515_v3  ;;  %v1081_v55 = vrot.slane %v321_v30, 5  ;;  %v1080_v53 = vrot.slane %v1078_v14, 4  ;;  %v11550_v30 = vld [vmem:[#allocation3 + $0x110] ss:$8 sps:$4 sm:$0xff]   ;;  %v11589_v32 = vld [vmem:[#allocation3 + $0x1c0] ss:$8 sps:$4 sm:$0xff]  }
  0x7d   : > { %v9994_v49 = vcombine.low %v506_v15, %v516_v5  ;;  %v11574_v12 = vld [vmem:[#allocation3 + $0x170] ss:$8 sps:$4 sm:$0xff]   ;;  %v11604_v15 = vld [vmem:[#allocation3 + $0x204] ss:$8 sps:$4 sm:$0xff]   ;;  %v11618_v46 = vld [vmem:[#allocation3 + $0x240] ss:$8 sps:$4 sm:$0xff]  }
  0x7e   : > { %v12566_v17 = vsel %vm12427_vm5, %v1080_v53, %v1081_v55  ;;  %v11598_v3 = vld [vmem:[#allocation3 + $0x1f0] ss:$8 sps:$4 sm:$0xff]   ;;  %v11620_v38 = vld [vmem:[#allocation3 + $0x244] ss:$8 sps:$4 sm:$0xff]   ;;  %v11624_v59 = vld [vmem:[#allocation3 + $0x254] ss:$8 sps:$4 sm:$0xff]  }
  0x7f   : > { %v11614_v2 = vld [vmem:[#allocation3 + $0x230] ss:$8 sps:$4 sm:$0xff]   ;;  %v11628_v5 = vld [vmem:[#allocation3 + $0x264] ss:$8 sps:$4 sm:$0xff]   ;;  %v11632_v55 = vld [vmem:[#allocation3 + $0x274] ss:$8 sps:$4 sm:$0xff]  }
  0x80   : > { %729 = vmatmul.mubr.bf16.gmra.mrb[20].mxu0 %v9992_v13  ;;  %v1007_v13 = vld [vmem:[%s12257_s9 + $0x54] sm:$0xe] }
  0x81   : > { %738 = vmatprep.mubr.bf16.mxu0 %v15422_v0  ;;  %v10042_v9 = vrot.slane %v1007_v13, 9  ;;  %v11613_v13 = vld [vmem:[%s12257_s9 + $0x30] sm:$0xff]  }
  0x82   : > { %v11635_v53 = vld [vmem:[#allocation3 + $0x284] ss:$8 sps:$4 sm:$0xff]  }
  0x83   : > { %v12562_v52 = vsel %vm12427_vm5, %v10042_v9, %v1078_v14  ;;  %v11626_v14 = vld [vmem:[#allocation3 + $0x260] ss:$8 sps:$4 sm:$0xff]   ;;  %v11630_v9 = vld [vmem:[#allocation3 + $0x270] ss:$8 sps:$4 sm:$0xff]  }
  0x84   : > { %v10050_v50 = vcombine.low %v12562_v52, %v12566_v17  ;;  %v11621_v52 = vld [vmem:[%s12257_s9 + $0x48] sm:$0xff]  }
  0x85   : > { %v10107_v17 = vld [vmem:[%s12257_s9 + $0xc] sm:$0xf] }
  0x88   : > { %739 = vmatmul.mubr.bf16.gmra.mrb[24].mxu0 %v9993_v51  ;;  %v11558_v51 = vld [vmem:[#allocation3 + $0x130] ss:$8 sps:$4 sm:$0xff]  }
  0x89   : > { %748 = vmatprep.mubr.bf16.mxu0 %v15422_v0 }
  0x90   : > { %749 = vmatmul.mubr.bf16.gmra.mrb[28].mxu0 %v9994_v49  ;;  %v11617_v49 = vld [vmem:[%s12257_s9 + $0x3c] sm:$0xff]  }
  0x91   : > { %919 = vmatprep.mubr.bf16.mxu0 %v15422_v0 }
  0x98   : > { %920 = vmatmul.mubr.bf16.vlgmr.msra.gmra.mrb[0].mxu0 %v10011_v19  ;;  %v11568_v19 = vld [vmem:[#allocation3 + $0x154] ss:$8 sps:$4 sm:$0xff]  }
  0x99   : > { %1213 = vmatpush1.bf16.msra.mxu0 %v11546_v39  ;;  %929 = vmatprep.mubr.bf16.mxu0 %v15422_v0  ;;  %v1689_v39 = vshrl.u32 %v10107_v17, 16 }
  0x9a   : > { %1214 = vmatprep.subr.bf16.mxu0 %v11552_v31  ;;  %v1692_v31 = vshll.u32 %v10107_v17, 16  ;;  %v11636_v17 = vld [vmem:[#allocation3 + $0x290] ss:$8 sps:$4 sm:$0xff]  }
  0x9d   : > { %1215 = vmatpush1.bf16.msra.mxu0 %v11550_v30 }
  0x9e   : > { %1216 = vmatprep.subr.bf16.mxu0 %v11556_v27 }
  0xa0   : > { %930 = vmatmul.mubr.bf16.gmra.mrb[4].mxu0 %v10012_v33  ;;  %v11576_v33 = vld [vmem:[#allocation3 + $0x174] ss:$8 sps:$4 sm:$0xff]  }
  0xa1   : > { %939 = vmatprep.mubr.bf16.mxu0 %v15422_v0  ;;  %1217 = vmatpush1.bf16.msra.mxu0 %v11554_v42  ;;  %v10110_v42 = vld [vmem:[%s12257_s9 + $0x18] sm:$0xf] }
  0xa2   : > { %1218 = vmatprep.subr.bf16.mxu0 %v11560_v58  ;;  %v11625_v58 = vld [vmem:[%s12257_s9 + $0x54] sm:$0xff]  }
  0xa5   : > { %1219 = vmatpush1.bf16.msra.mxu0 %v11558_v51  ;;  %v12656_v51 = vld [vmem:[%s12257_s9 + $0x1c] sm:$0xf] }
  0xa6   : > { %1220 = vmatprep.subr.bf16.mxu0 %v11564_v8  ;;  %v1691_v8 = vrot.slane %v1689_v39, 4 }
  0xa8   : > { %940 = vmatmul.mubr.bf16.gmra.mrb[8].mxu0 %v10013_v23  ;;  %v11586_v23 = vld [vmem:[#allocation3 + $0x1b0] ss:$8 sps:$4 sm:$0xff]  }
  0xa9   : > { %949 = vmatprep.mubr.bf16.mxu0 %v15422_v0  ;;  %1221 = vmatpush1.bf16.msra.mxu0 %v11562_v10  ;;  %v1694_v10 = vrot.slane %v1692_v31, 5 }
  0xaa   : > { %1222 = vmatprep.subr.bf16.mxu0 %v11568_v19 }
  0xad   : > { %1223 = vmatpush1.bf16.msra.mxu0 %v11566_v26 }
  0xae   : > { %1224 = vmatprep.subr.bf16.mxu0 %v11572_v22  ;;  %v12659_v22 = vld [vmem:[%s12257_s9 + $0x14] sm:$0x1] }
  0xb0   : > { %950 = vmatmul.mubr.bf16.gmra.mrb[12].mxu0 %v10014_v25  ;;  %v11591_v25 = vld [vmem:[#allocation3 + $0x1c4] ss:$8 sps:$4 sm:$0xff]  }
  0xb1   : > { %959 = vmatprep.mubr.bf16.mxu0 %v15422_v0  ;;  %1225 = vmatpush1.bf16.msra.mxu0 %v11570_v24  ;;  %v1713_v24 = vshrl.u32 %v10110_v42, 16 }
  0xb2   : > { %1226 = vmatprep.subr.bf16.mxu0 %v11576_v33  ;;  %v1716_v33 = vshll.u32 %v10110_v42, 16 }
  0xb5   : > { %1227 = vmatpush1.bf16.msra.mxu0 %v11574_v12  ;;  %v1722_v12 = vshll.u32 %v12656_v51, 16 }
  0xb6   : > { %1519 = vmatprep.subr.bf16.mxu0 %v11579_v45  ;;  %v1726_v45 = vshrl.u32 %v12656_v51, 16 }
  0xb8   : > { %960 = vmatmul.mubr.bf16.gmra.mrb[16].mxu0 %v10015_v34  ;;  %v11594_v34 = vld [vmem:[#allocation3 + $0x1d4] ss:$8 sps:$4 sm:$0xff]  }
  0xb9   : > { %969 = vmatprep.mubr.bf16.mxu0 %v15422_v0 }
  0xc0   : > { %970 = vmatmul.mubr.bf16.gmra.mrb[20].mxu0 %v10016_v36  ;;  %v15461_v36 = vcombine.low %v12482_v7, %v12463_v63  ;;  %v11601_v63 = vld [vmem:[%s12257_s9 + $0xc] sm:$0xff]  }
  0xc1   : > { %979 = vmatprep.mubr.bf16.mxu0 %v15422_v0  ;;  %v11608_v7 = vld [vmem:[#allocation3 + $0x214] ss:$8 sps:$4 sm:$0xff]  }
  0xc8   : > { %980 = vmatmul.mubr.bf16.gmra.mrb[24].mxu0 %v15457_v47  ;;  %v1695_v47 = vor.u32 %v1694_v10, %v1691_v8  ;;  %v12698_v8 = vld [vmem:[%s12257_s9 + $0x40] sm:$0xf] }
  0xc9   : > { %989 = vmatprep.mubr.bf16.mxu0 %v15422_v0 }
  0xd0   : > { %990 = vmatmul.mubr.bf16.gmra.mrb[28].mxu0 %v15458_v60 }
  0xd1   : > { %1244 = vmatprep.mubr.bf16.mxu0 %v15422_v0 }
  0xd8   : > { %1245 = vmatmul.mubr.bf16.vlgmr.msra.gmra.mrb[0].mxu0 %v15459_v29  ;;  %v1718_v29 = vrot.slane %v1716_v33, 5  ;;  %v11639_v33 = vld [vmem:[#allocation3 + $0x2a0] ss:$8 sps:$4 sm:$0xff]  }
  0xd9   : > { %1520 = vmatpush1.bf16.msra.mxu0 %v11577_v1  ;;  %1254 = vmatprep.mubr.bf16.mxu0 %v15422_v0  ;;  %v1708_v1 = vshll.u32 %v12659_v22, 16 }
  0xda   : > { %1521 = vmatprep.subr.bf16.mxu0 %v11582_v21  ;;  %v1715_v21 = vrot.slane %v1713_v24, 4 }
  0xdd   : > { %1522 = vmatpush1.bf16.msra.mxu0 %v11580_v37  ;;  %v1724_v37 = vrot.slane %v1722_v12, 5  ;;  %v12701_v12 = vld [vmem:[%s12257_s9 + $0x38] sm:$0x1] }
  0xde   : > { %1523 = vmatprep.subr.bf16.mxu0 %v11585_v62  ;;  %v1728_v62 = vrot.slane %v1726_v45, 4 }
  0xe0   : > { %1255 = vmatmul.mubr.bf16.gmra.mrb[4].mxu0 %v15460_v20  ;;  %v10113_v20 = vld [vmem:[%s12257_s9 + $0x24] sm:$0xf] }
  0xe1   : > { %1264 = vmatprep.mubr.bf16.mxu0 %v15422_v0  ;;  %1524 = vmatpush1.bf16.msra.mxu0 %v11583_v6  ;;  %v11629_v6 = vld [vmem:[%s12257_s9 + $0x60] sm:$0xff]  }
  0xe2   : > { %1525 = vmatprep.subr.bf16.mxu0 %v11588_v18  ;;  %v12667_v18 = vld [vmem:[%s12257_s9 + $0x20] sm:$0x1] }
  0xe5   : > { %1526 = vmatpush1.bf16.msra.mxu0 %v11586_v23  ;;  %v1696_v23 = vrot.slane %v1695_v47, 4 }
  0xe6   : > { %1527 = vmatprep.subr.bf16.mxu0 %v11591_v25 }
  0xe8   : > { %1265 = vmatmul.mubr.bf16.gmra.mrb[8].mxu0 %v15461_v36  ;;  %v1719_v36 = vor.u32 %v1718_v29, %v1715_v21  ;;  %v1794_v29 = vshll.u32 %v12698_v8, 16 }
  0xe9   : > { %1274 = vmatprep.mubr.bf16.mxu0 %v15422_v0  ;;  %1528 = vmatpush1.bf16.msra.mxu0 %v11589_v32  ;;  %v1710_v32 = vrot.slane %v1708_v1, 5 }
  0xea   : > { %1529 = vmatprep.subr.bf16.mxu0 %v11594_v34  ;;  %v12671_v34 = vld [vmem:[%s12257_s9 + $0x28] sm:$0xf] }
  0xed   : > { %1530 = vmatpush1.bf16.msra.mxu0 %v11592_v28  ;;  %v1729_v28 = vor.u32 %v1728_v62, %v1724_v37 }
  0xee   : > { %1531 = vmatprep.subr.bf16.mxu0 %v11597_v4  ;;  %v1732_v4 = vshll.u32 %v12667_v18, 16 }
  0xf0   : > { %1275 = vmatmul.mubr.bf16.gmra.mrb[12].mxu0 %v10046_v44  ;;  %v11602_v44 = vld [vmem:[#allocation3 + $0x200] ss:$8 sps:$4 sm:$0xff]  }
  0xf1   : > { %1284 = vmatprep.mubr.bf16.mxu0 %v15422_v0  ;;  %1532 = vmatpush1.bf16.msra.mxu0 %v11595_v43  ;;  %v1737_v43 = vshrl.u32 %v10113_v20, 16 }
  0xf2   : > { %1533 = vmatprep.subr.bf16.mxu0 %v11600_v57  ;;  %v1740_v57 = vshll.u32 %v10113_v20, 16 }
  0xf5   : > { %1534 = vmatpush1.bf16.msra.mxu0 %v11598_v3  ;;  %v1746_v3 = vshll.u32 %v12671_v34, 16 }
  0xf6   : > { %2009 = vmatprep.subr.bf16.mxu0 %v11604_v15  ;;  %v1750_v15 = vshrl.u32 %v12671_v34, 16 }
  0xf8   : > { %1285 = vmatmul.mubr.bf16.gmra.mrb[16].mxu0 %v10047_v48  ;;  %v11616_v48 = vld [vmem:[#allocation3 + $0x234] ss:$8 sps:$4 sm:$0xff]  }
  0xf9   : > { %1294 = vmatprep.mubr.bf16.mxu0 %v15422_v0 }
 0x100   : > { %1295 = vmatmul.mubr.bf16.gmra.mrb[20].mxu0 %v10048_v56  ;;  %v11609_v56 = vld [vmem:[%s12257_s9 + $0x24] sm:$0xff]  }
 0x101   : > { %1304 = vmatprep.mubr.bf16.mxu0 %v15422_v0 }
 0x108   : > { %1305 = vmatmul.mubr.bf16.gmra.mrb[24].mxu0 %v10049_v61  ;;  %v11622_v61 = vld [vmem:[#allocation3 + $0x250] ss:$8 sps:$4 sm:$0xff]  }
 0x109   : > { %1314 = vmatprep.mubr.bf16.mxu0 %v15422_v0 }
 0x110   : > { %1315 = vmatmul.mubr.bf16.gmra.mrb[28].mxu0 %v10050_v50  ;;  %v12648_v50 = vld [vmem:[%s12257_s9 + $0x10] sm:$0xf] }
 0x111   : > { %1551 = vmatprep.mubr.bf16.mxu0 %v15422_v0  ;;  %v1698_v30 = vshll.u32 %v12648_v50, 16  ;;  %v1702_v27 = vshrl.u32 %v12648_v50, 16 }
 0x113   : > { %v1700_v19 = vrot.slane %v1698_v30, 5  ;;  %v1704_v26 = vrot.slane %v1702_v27, 4  ;;  %v11641_v30 = vld [vmem:[#allocation3 + $0x2a4] ss:$8 sps:$4 sm:$0xff]  }
 0x115   : > { %v1705_v60 = vor.u32 %v1704_v26, %v1700_v19 }
 0x117   : > { %v1706_v25 = vrot.slane %v1705_v60, 4  ;;  %v11644_v60 = vld [vmem:[#allocation3 + $0x2b4] ss:$8 sps:$4 sm:$0xff]  }
 0x118   : > { %1552 = vmatmul.mubr.bf16.vlgmr.msra.gmra.mrb[0].mxu0 %v11601_v63  ;;  %v1701_v63 = vsel %vm12287_vm2, %v1696_v23, %v1700_v19 }
 0x119   : > { %2010 = vmatpush1.bf16.msra.mxu0 %v11602_v44  ;;  %1561 = vmatprep.mubr.bf16.mxu0 %v15422_v0  ;;  %v1711_v44 = vsel %vm12287_vm2, %v1706_v25, %v1710_v32  ;;  %v1780_v25 = vshll.u32 %v12701_v12, 16  ;;  %v11642_v32 = vld [vmem:[#allocation3 + $0x2b0] ss:$8 sps:$4 sm:$0xff]  }
 0x11a   : > { %2011 = vmatprep.subr.bf16.mxu0 %v11608_v7  ;;  %v1720_v7 = vrot.slane %v1719_v36, 4 }
 0x11d   : > { %2012 = vmatpush1.bf16.msra.mxu0 %v11606_v54  ;;  %v1730_v54 = vrot.slane %v1729_v28, 4 }
 0x11e   : > { %2013 = vmatprep.subr.bf16.mxu0 %v11612_v41  ;;  %v1734_v41 = vrot.slane %v1732_v4, 5  ;;  %v1796_v4 = vrot.slane %v1794_v29, 5 }
 0x120   : > { %1562 = vmatmul.mubr.bf16.gmra.mrb[4].mxu0 %v11605_v16  ;;  %v1739_v16 = vrot.slane %v1737_v43, 4 }
 0x121   : > { %1571 = vmatprep.mubr.bf16.mxu0 %v15422_v0  ;;  %2014 = vmatpush1.bf16.msra.mxu0 %v11610_v35  ;;  %v1742_v35 = vrot.slane %v1740_v57, 5  ;;  %v11647_v57 = vld [vmem:[#allocation3 + $0x2c4] ss:$8 sps:$4 sm:$0xff]  }
 0x122   : > { %2015 = vmatprep.subr.bf16.mxu0 %v11616_v48  ;;  %v10131_v48 = vcombine.low %v1701_v63, %v1711_v44  ;;  %v10122_v63 = vld [vmem:[%s12257_s9 + $0x48] sm:$0xf]  ;;  %v12716_v44 = vld [vmem:[%s12257_s9 + $0x4c] sm:$0xf] }
 0x125   : > { %2016 = vmatpush1.bf16.msra.mxu0 %v11614_v2  ;;  %v1748_v2 = vrot.slane %v1746_v3, 5  ;;  %v12712_v3 = vld [vmem:[%s12257_s9 + $0x44] sm:$0x1] }
 0x126   : > { %2017 = vmatprep.subr.bf16.mxu0 %v11620_v38  ;;  %v1752_v38 = vrot.slane %v1750_v15, 4 }
 0x128   : > { %1572 = vmatmul.mubr.bf16.gmra.mrb[8].mxu0 %v11609_v56  ;;  %v11633_v56 = vld [vmem:[#allocation3 + $0x280] ss:$8 sps:$4 sm:$0xff]  }
 0x129   : > { %1581 = vmatprep.mubr.bf16.mxu0 %v15422_v0  ;;  %2018 = vmatpush1.bf16.msra.mxu0 %v11618_v46  ;;  %v12682_v46 = vld [vmem:[%s12257_s9 + $0x2c] sm:$0x1] }
 0x12a   : > { %2019 = vmatprep.subr.bf16.mxu0 %v11624_v59  ;;  %v10116_v59 = vld [vmem:[%s12257_s9 + $0x30] sm:$0xf] }
 0x12d   : > { %2020 = vmatpush1.bf16.msra.mxu0 %v11622_v61  ;;  %v11638_v61 = vld [vmem:[#allocation3 + $0x294] ss:$8 sps:$4 sm:$0xff]  }
 0x12e   : > { %2021 = vmatprep.subr.bf16.mxu0 %v11628_v5  ;;  %v12686_v5 = vld [vmem:[%s12257_s9 + $0x34] sm:$0xf] }
 0x12f   : > { %v1770_v39 = vshll.u32 %v12686_v5, 16  ;;  %v1774_v31 = vshrl.u32 %v12686_v5, 16 }
 0x130   : > { %1582 = vmatmul.mubr.bf16.gmra.mrb[12].mxu0 %v11613_v13  ;;  %v1725_v13 = vsel %vm12287_vm2, %v1720_v7, %v1724_v37  ;;  %v1798_v37 = vshrl.u32 %v12698_v8, 16 }
 0x131   : > { %1591 = vmatprep.mubr.bf16.mxu0 %v15422_v0  ;;  %2022 = vmatpush1.bf16.msra.mxu0 %v11626_v14  ;;  %v1735_v14 = vsel %vm12287_vm2, %v1730_v54, %v1734_v41  ;;  %v1772_v45 = vrot.slane %v1770_v39, 5  ;;  %v1776_v47 = vrot.slane %v1774_v31, 4  ;;  %v1782_v41 = vrot.slane %v1780_v25, 5 }
 0x132   : > { %2023 = vmatprep.subr.bf16.mxu0 %v11632_v55  ;;  %v1743_v55 = vor.u32 %v1742_v35, %v1739_v16  ;;  %v10132_v27 = vcombine.low %v1725_v13, %v1735_v14  ;;  %v1800_v43 = vrot.slane %v1798_v37, 4  ;;  %v11645_v16 = vld [vmem:[#allocation3 + $0x2c0] ss:$8 sps:$4 sm:$0xff]   ;;  %v1822_v13 = vshrl.u32 %v12716_v44, 16 }
 0x133   : > { %v1777_v23 = vor.u32 %v1776_v47, %v1772_v45 }
 0x134   : > { %v1744_v42 = vrot.slane %v1743_v55, 4 }
 0x135   : > { %2024 = vmatpush1.bf16.msra.mxu0 %v11630_v9  ;;  %v1753_v9 = vor.u32 %v1752_v38, %v1748_v2  ;;  %v1778_v54 = vrot.slane %v1777_v23, 4  ;;  %v11650_v38 = vld [vmem:[#allocation3 + $0x2d4] ss:$8 sps:$4 sm:$0xff]  }
 0x136   : > { %2371 = vmatprep.subr.bf16.mxu0 %v11635_v53  ;;  %v1756_v53 = vshll.u32 %v12682_v46, 16  ;;  %v1749_v62 = vsel %vm12287_vm2, %v1744_v42, %v1748_v2  ;;  %v1804_v2 = vshll.u32 %v12712_v3, 16 }
 0x137   : > { %v1754_v10 = vrot.slane %v1753_v9, 4  ;;  %v1783_v55 = vsel %vm12287_vm2, %v1778_v54, %v1782_v41  ;;  %v11648_v9 = vld [vmem:[#allocation3 + $0x2d0] ss:$8 sps:$4 sm:$0xff]  }
 0x138   : > { %1592 = vmatmul.mubr.bf16.gmra.mrb[16].mxu0 %v11617_v49  ;;  %v1761_v49 = vshrl.u32 %v10116_v59, 16  ;;  %v1758_v19 = vrot.slane %v1756_v53, 5 }
 0x139   : > { %1601 = vmatprep.mubr.bf16.mxu0 %v15422_v0 }
 0x13a   : > { %v1763_v26 = vrot.slane %v1761_v49, 4 }
 0x140   : > { %1602 = vmatmul.mubr.bf16.gmra.mrb[20].mxu0 %v11621_v52  ;;  %v1764_v52 = vshll.u32 %v10116_v59, 16  ;;  %v1812_v59 = vshll.u32 %v10122_v63, 16 }
 0x141   : > { %1611 = vmatprep.mubr.bf16.mxu0 %v15422_v0 }
 0x142   : > { %v1766_v24 = vrot.slane %v1764_v52, 5  ;;  %v1806_v52 = vrot.slane %v1804_v2, 5  ;;  %v1814_v31 = vrot.slane %v1812_v59, 5 }
 0x144   : > { %v1767_v20 = vor.u32 %v1766_v24, %v1763_v26  ;;  %v11651_v26 = vld [vmem:[#allocation3 + $0x2e0] ss:$8 sps:$4 sm:$0xff]  }
 0x146   : > { %v1768_v7 = vrot.slane %v1767_v20, 4  ;;  %v11659_v20 = vld [vmem:[#allocation3 + $0x304] ss:$8 sps:$4 sm:$0xff]  }
 0x148   : > { %1612 = vmatmul.mubr.bf16.gmra.mrb[24].mxu0 %v11625_v58  ;;  %v10119_v58 = vld [vmem:[%s12257_s9 + $0x3c] sm:$0xf]  ;;  %v1773_v14 = vsel %vm12287_vm2, %v1768_v7, %v1772_v45  ;;  %v12746_v7 = vld [vmem:[%s12257_s9 + $0x64] sm:$0xf] }
 0x149   : > { %1621 = vmatprep.mubr.bf16.mxu0 %v15422_v0  ;;  %v1785_v1 = vshrl.u32 %v10119_v58, 16  ;;  %v1788_v21 = vshll.u32 %v10119_v58, 16  ;;  %v10134_v42 = vcombine.low %v1773_v14, %v1783_v55  ;;  %v12727_v58 = vld [vmem:[%s12257_s9 + $0x50] sm:$0x1]  ;;  %v1870_v59 = vshrl.u32 %v12746_v7, 16 }
 0x14b   : > { %v1787_v36 = vrot.slane %v1785_v1, 4  ;;  %v1790_v28 = vrot.slane %v1788_v21, 5  ;;  %v1828_v1 = vshll.u32 %v12727_v58, 16 }
 0x14d   : > { %v1791_v35 = vor.u32 %v1790_v28, %v1787_v36  ;;  %v1830_v36 = vrot.slane %v1828_v1, 5  ;;  %v10155_v1 = vld [vmem:[%s12257_s9 + $0xc] sm:$0xe] }
 0x14f   : > { %v1792_v53 = vrot.slane %v1791_v35, 4 }
 0x150   : > { %1622 = vmatmul.mubr.bf16.gmra.mrb[28].mxu0 %v11629_v6  ;;  %v1759_v6 = vsel %vm12287_vm2, %v1754_v10, %v1758_v19  ;;  %v10125_v10 = vld [vmem:[%s12257_s9 + $0x54] sm:$0xf]  ;;  %v12731_v19 = vld [vmem:[%s12257_s9 + $0x58] sm:$0xf] }
 0x151   : > { %2041 = vmatprep.mubr.bf16.mxu0 %v15422_v0  ;;  %v10133_v15 = vcombine.low %v1749_v62, %v1759_v6  ;;  %v1797_v24 = vsel %vm12287_vm2, %v1792_v53, %v1796_v4  ;;  %v1833_v21 = vshrl.u32 %v10125_v10, 16  ;;  %v1836_v29 = vshll.u32 %v10125_v10, 16  ;;  %v11654_v6 = vld [vmem:[#allocation3 + $0x2f0] ss:$8 sps:$4 sm:$0xff]  }
 0x152   : > { %v1842_v37 = vshll.u32 %v12731_v19, 16  ;;  %v1846_v62 = vshrl.u32 %v12731_v19, 16 }
 0x153   : > { %v1835_v28 = vrot.slane %v1833_v21, 4 }
 0x158   : > { %2042 = vmatmul.mubr.bf16.vlgmr.msra.gmra.mrb[0].mxu0 %v10131_v48  ;;  %v1801_v48 = vor.u32 %v1800_v43, %v1796_v4  ;;  %v1838_v4 = vrot.slane %v1836_v29, 5  ;;  %v1844_v43 = vrot.slane %v1842_v37, 5  ;;  %v10163_v29 = vrot.slane %v10155_v1, 9  ;;  %v11678_v1 = vld [vmem:[#allocation3 + $0x370] ss:$8 sps:$4 sm:$0xff]  }
 0x159   : > { %2372 = vmatpush1.bf16.msra.mxu0 %v11633_v56  ;;  %2051 = vmatprep.mubr.bf16.mxu0 %v15422_v0  ;;  %v1809_v56 = vshrl.u32 %v10122_v63, 16  ;;  %v10128_v63 = vld [vmem:[%s12257_s9 + $0x60] sm:$0xf] }
 0x15a   : > { %2373 = vmatprep.subr.bf16.mxu0 %v11638_v61  ;;  %v1818_v61 = vshll.u32 %v12716_v44, 16  ;;  %v1802_v49 = vrot.slane %v1801_v48, 4  ;;  %v1857_v2 = vshrl.u32 %v10128_v63, 16 }
 0x15b   : > { %v1811_v39 = vrot.slane %v1809_v56, 4  ;;  %v1866_v56 = vshll.u32 %v12746_v7, 16 }
 0x15c   : > { %v1807_v45 = vsel %vm12287_vm2, %v1802_v49, %v1806_v52  ;;  %v1872_v52 = vrot.slane %v1870_v59, 4  ;;  %v2209_v59 = vrot.slane %v12686_v5, 5 }
 0x15d   : > { %2374 = vmatpush1.bf16.msra.mxu0 %v11636_v17  ;;  %v11653_v17 = vld [vmem:[#allocation3 + $0x2e4] ss:$8 sps:$4 sm:$0xff]   ;;  %v1815_v47 = vor.u32 %v1814_v31, %v1811_v39  ;;  %v10135_v23 = vcombine.low %v1797_v24, %v1807_v45  ;;  %v1868_v49 = vrot.slane %v1866_v56, 5 }
 0x15e   : > { %2375 = vmatprep.subr.bf16.mxu0 %v11641_v30  ;;  %v1820_v30 = vrot.slane %v1818_v61, 5 }
 0x15f   : > { %v1816_v25 = vrot.slane %v1815_v47, 4 }
 0x160   : > { %2052 = vmatmul.mubr.bf16.gmra.mrb[4].mxu0 %v10132_v27  ;;  %v1824_v27 = vrot.slane %v1822_v13, 4 }
 0x161   : > { %2061 = vmatprep.mubr.bf16.mxu0 %v15422_v0  ;;  %2376 = vmatpush1.bf16.msra.mxu0 %v11639_v33  ;;  %v11656_v33 = vld [vmem:[#allocation3 + $0x2f4] ss:$8 sps:$4 sm:$0xff]   ;;  %v1821_v54 = vsel %vm12287_vm2, %v1816_v25, %v1820_v30  ;;  %v10156_v25 = vld [vmem:[%s12257_s9 + $0x18] sm:$0xe] }
 0x162   : > { %2377 = vmatprep.subr.bf16.mxu0 %v11644_v60  ;;  %v1825_v60 = vor.u32 %v1824_v27, %v1820_v30  ;;  %v1873_v27 = vor.u32 %v1872_v52, %v1868_v49  ;;  %v11674_v52 = vld [vmem:[#allocation3 + $0x354] ss:$8 sps:$4 sm:$0xff]  }
 0x164   : > { %v1874_v24 = vrot.slane %v1873_v27, 4  ;;  %v10159_v27 = vld [vmem:[%s12257_s9 + $0x3c] sm:$0xe] }
 0x165   : > { %2378 = vmatpush1.bf16.msra.mxu0 %v11642_v32  ;;  %v1826_v32 = vrot.slane %v1825_v60, 4  ;;  %v2188_v60 = vrot.slane %v12648_v50, 5 }
 0x166   : > { %2379 = vmatprep.subr.bf16.mxu0 %v11647_v57  ;;  %v1848_v57 = vrot.slane %v1846_v62, 4  ;;  %v2191_v62 = vrot.slane %v12659_v22, 5  ;;  %v11662_v22 = vld [vmem:[#allocation3 + $0x314] ss:$8 sps:$4 sm:$0xff]  }
 0x167   : > { %v1831_v41 = vsel %vm12287_vm2, %v1826_v32, %v1830_v36  ;;  %v2190_v37 = vrot.slane %v2188_v60, 4  ;;  %v11657_v32 = vld [vmem:[#allocation3 + $0x300] ss:$8 sps:$4 sm:$0xff]   ;;  %v10164_v36 = vrot.slane %v10156_v25, 9  ;;  %v10161_v25 = vld [vmem:[%s12257_s9 + $0x54] sm:$0xe] }
 0x168   : > { %2062 = vmatmul.mubr.bf16.gmra.mrb[8].mxu0 %v10133_v15  ;;  %v12742_v15 = vld [vmem:[%s12257_s9 + $0x5c] sm:$0x1]  ;;  %v1849_v35 = vor.u32 %v1848_v57, %v1844_v43  ;;  %v10136_v61 = vcombine.low %v1821_v54, %v1831_v41  ;;  %v10157_v54 = vld [vmem:[%s12257_s9 + $0x24] sm:$0xe] }
 0x169   : > { %2071 = vmatprep.mubr.bf16.mxu0 %v15422_v0  ;;  %2380 = vmatpush1.bf16.msra.mxu0 %v11645_v16  ;;  %v1839_v16 = vor.u32 %v1838_v4, %v1835_v28  ;;  %v1852_v48 = vshll.u32 %v12742_v15, 16  ;;  %v2198_v4 = vrot.slane %v12667_v18, 5  ;;  %v11665_v41 = vld [vmem:[#allocation3 + $0x324] ss:$8 sps:$4 sm:$0xff]   ;;  %v10165_v18 = vrot.slane %v10157_v54, 9 }
 0x16a   : > { %2381 = vmatprep.subr.bf16.mxu0 %v11650_v38  ;;  %v1860_v38 = vshll.u32 %v10128_v63, 16  ;;  %v1850_v14 = vrot.slane %v1849_v35, 4  ;;  %v2202_v63 = vrot.slane %v12671_v34, 5 }
 0x16b   : > { %v1840_v13 = vrot.slane %v1839_v16, 4  ;;  %v1854_v55 = vrot.slane %v1852_v48, 5  ;;  %v2205_v48 = vrot.slane %v12682_v46, 5 }
 0x16c   : > { %v1862_v53 = vrot.slane %v1860_v38, 5  ;;  %v2204_v35 = vrot.slane %v2202_v63, 4  ;;  %v11668_v38 = vld [vmem:[#allocation3 + $0x334] ss:$8 sps:$4 sm:$0xff]   ;;  %v2203_v56 = vsel %vm12427_vm5, %v10165_v18, %v2202_v63 }
 0x16d   : > { %2382 = vmatpush1.bf16.msra.mxu0 %v11648_v9  ;;  %v1859_v9 = vrot.slane %v1857_v2, 4  ;;  %v1845_v39 = vsel %vm12287_vm2, %v1840_v13, %v1844_v43  ;;  %v1855_v31 = vsel %vm12287_vm2, %v1850_v14, %v1854_v55  ;;  %v11663_v2 = vld [vmem:[#allocation3 + $0x320] ss:$8 sps:$4 sm:$0xff]   ;;  %v11671_v14 = vld [vmem:[#allocation3 + $0x344] ss:$8 sps:$4 sm:$0xff]  }
 0x16e   : > { %2383 = vmatprep.subr.bf16.mxu0 %v11653_v17  ;;  %v12757_v17 = vld [vmem:[%s12257_s9 + $0x68] sm:$0x1]  ;;  %v10137_v10 = vcombine.low %v1845_v39, %v1855_v31  ;;  %v2206_v34 = vsel %vm12427_vm5, %v2204_v35, %v2205_v48  ;;  %v10158_v13 = vld [vmem:[%s12257_s9 + $0x30] sm:$0xe]  ;;  %v2216_v31 = vrot.slane %v12698_v8, 5 }
 0x16f   : > { %v1863_v30 = vor.u32 %v1862_v53, %v1859_v9  ;;  %v10173_v46 = vcombine.low %v2203_v56, %v2206_v34  ;;  %v10166_v55 = vrot.slane %v10158_v13, 9  ;;  %v2211_v9 = vrot.slane %v2209_v59, 4  ;;  %v11688_v18 = vld [vmem:[#allocation3 + $0x394] ss:$8 sps:$4 sm:$0xff]   ;;  %v11692_v35 = vld [vmem:[#allocation3 + $0x3a4] ss:$8 sps:$4 sm:$0xff]  }
 0x170   : > { %2072 = vmatmul.mubr.bf16.gmra.mrb[12].mxu0 %v10134_v42  ;;  %v1876_v42 = vshll.u32 %v12757_v17, 16  ;;  %v2212_v53 = vrot.slane %v12701_v12, 5  ;;  %v11677_v12 = vld [vmem:[#allocation3 + $0x364] ss:$8 sps:$4 sm:$0xff]   ;;  %v2240_v63 = vrot.slane %v12757_v17, 5  ;;  %v11685_v48 = vld [vmem:[%s12257_s9 + $0x24] sm:$0xff]  }
 0x171   : > { %2081 = vmatprep.mubr.bf16.mxu0 %v15422_v0  ;;  %2384 = vmatpush1.bf16.msra.mxu0 %v11651_v26  ;;  %v1864_v26 = vrot.slane %v1863_v30, 4  ;;  %v2210_v5 = vsel %vm12427_vm5, %v10166_v55, %v2209_v59  ;;  %v11672_v30 = vld [vmem:[#allocation3 + $0x350] ss:$8 sps:$4 sm:$0xff]   ;;  %v11700_v34 = vld [vmem:[#allocation3 + $0x3c4] ss:$8 sps:$4 sm:$0xff]  }
 0x172   : > { %2385 = vmatprep.subr.bf16.mxu0 %v11656_v33  ;;  %v1878_v33 = vrot.slane %v1876_v42, 5  ;;  %v2213_v39 = vsel %vm12427_vm5, %v2211_v9, %v2212_v53  ;;  %v11686_v17 = vld [vmem:[#allocation3 + $0x390] ss:$8 sps:$4 sm:$0xff]   ;;  %v11689_v59 = vld [vmem:[%s12257_s9 + $0x30] sm:$0xff]   ;;  %v11704_v13 = vld [vmem:[#allocation3 + $0x3d4] ss:$8 sps:$4 sm:$0xff]  }
 0x173   : > { %v1869_v45 = vsel %vm12287_vm2, %v1864_v26, %v1868_v49  ;;  %v11669_v49 = vld [vmem:[#allocation3 + $0x340] ss:$8 sps:$4 sm:$0xff]   ;;  %v10174_v42 = vcombine.low %v2210_v5, %v2213_v39  ;;  %v2218_v26 = vrot.slane %v2216_v31, 4  ;;  %v11694_v56 = vld [vmem:[#allocation3 + $0x3b0] ss:$8 sps:$4 sm:$0xff]  }
 0x174   : > { %v1879_v47 = vsel %vm12287_vm2, %v1874_v24, %v1878_v33  ;;  %v2219_v24 = vrot.slane %v12712_v3, 5  ;;  %v11675_v33 = vld [vmem:[#allocation3 + $0x360] ss:$8 sps:$4 sm:$0xff]   ;;  %v11684_v3 = vld [vmem:[#allocation3 + $0x384] ss:$8 sps:$4 sm:$0xff]   ;;  %v11697_v5 = vld [vmem:[%s12257_s9 + $0x48] sm:$0xff]  }
 0x175   : > { %2386 = vmatpush1.bf16.msra.mxu0 %v11654_v6  ;;  %v10138_v21 = vcombine.low %v1869_v45, %v1879_v47  ;;  %v2189_v6 = vsel %vm12427_vm5, %v10163_v29, %v2188_v60  ;;  %v11680_v45 = vld [vmem:[#allocation3 + $0x374] ss:$8 sps:$4 sm:$0xff]   ;;  %v2223_v60 = vrot.slane %v12716_v44, 5  ;;  %v11693_v55 = vld [vmem:[%s12257_s9 + $0x3c] sm:$0xff]   ;;  %v11706_v9 = vld [vmem:[#allocation3 + $0x3e0] ss:$8 sps:$4 sm:$0xff]  }
 0x176   : > { %2678 = vmatprep.subr.bf16.mxu0 %v11659_v20  ;;  %v2192_v20 = vsel %vm12427_vm5, %v2190_v37, %v2191_v62  ;;  %v2220_v47 = vsel %vm12427_vm5, %v2218_v26, %v2219_v24  ;;  %v11712_v53 = vld [vmem:[#allocation3 + $0x3f4] ss:$8 sps:$4 sm:$0xff]   ;;  %v11701_v39 = vld [vmem:[%s12257_s9 + $0x54] sm:$0xff]  }
 0x177   : > { %v10171_v50 = vcombine.low %v2189_v6, %v2192_v20  ;;  %v2225_v62 = vrot.slane %v2223_v60, 4  ;;  %v2226_v6 = vrot.slane %v12727_v58, 5  ;;  %v2233_v58 = vrot.slane %v12742_v15, 5  ;;  %v10238_v26 = vld [vmem:[%s12257_s9 + $0x24] sm:$0xf] }
 0x178   : > { %2082 = vmatmul.mubr.bf16.gmra.mrb[16].mxu0 %v10135_v23  ;;  %v2195_v23 = vrot.slane %v12656_v51, 5  ;;  %v11660_v51 = vld [vmem:[#allocation3 + $0x310] ss:$8 sps:$4 sm:$0xff]  }
 0x179   : > { %2091 = vmatprep.mubr.bf16.mxu0 %v15422_v0  ;;  %v2227_v20 = vsel %vm12427_vm5, %v2225_v62, %v2226_v6  ;;  %v11705_v24 = vld [vmem:[%s12257_s9 + $0x60] sm:$0xff]  }
 0x17a   : > { %v2197_v28 = vrot.slane %v2195_v23, 4  ;;  %v2196_v43 = vsel %vm12427_vm5, %v10164_v36, %v2195_v23  ;;  %v2230_v23 = vrot.slane %v12731_v19, 5 }
 0x17c   : > { %v2199_v57 = vsel %vm12427_vm5, %v2197_v28, %v2198_v4  ;;  %v2232_v36 = vrot.slane %v2230_v23, 4 }
 0x17d   : > { %v10172_v16 = vcombine.low %v2196_v43, %v2199_v57  ;;  %v10162_v43 = vld [vmem:[%s12257_s9 + $0x60] sm:$0xe] }
 0x17e   : > { %v2234_v4 = vsel %vm12427_vm5, %v2232_v36, %v2233_v58  ;;  %v10170_v57 = vrot.slane %v10162_v43, 9  ;;  %v12867_v36 = vld [vmem:[%s12257_s9 + $0x2c] sm:$0x1]  ;;  %v10241_v58 = vld [vmem:[%s12257_s9 + $0x30] sm:$0xf] }
 0x17f   : > { %v12871_v43 = vld [vmem:[%s12257_s9 + $0x34] sm:$0xf] }
 0x180   : > { %2092 = vmatmul.mubr.bf16.gmra.mrb[20].mxu0 %v10136_v61  ;;  %v11666_v61 = vld [vmem:[#allocation3 + $0x330] ss:$8 sps:$4 sm:$0xff]  }
 0x181   : > { %2101 = vmatprep.mubr.bf16.mxu0 %v15422_v0 }
 0x188   : > { %2102 = vmatmul.mubr.bf16.gmra.mrb[24].mxu0 %v10137_v10  ;;  %v10167_v10 = vrot.slane %v10159_v27, 9 }
 0x189   : > { %2111 = vmatprep.mubr.bf16.mxu0 %v15422_v0 }
 0x18a   : > { %v2217_v8 = vsel %vm12427_vm5, %v10167_v10, %v2216_v31  ;;  %v10235_v31 = vld [vmem:[%s12257_s9 + $0x18] sm:$0xf] }
 0x18b   : > { %v10175_v29 = vcombine.low %v2217_v8, %v2220_v47  ;;  %v2848_v27 = vshrl.u32 %v10235_v31, 16 }
 0x190   : > { %2112 = vmatmul.mubr.bf16.gmra.mrb[28].mxu0 %v10138_v21  ;;  %v10160_v21 = vld [vmem:[%s12257_s9 + $0x48] sm:$0xe] }
 0x191   : > { %2403 = vmatprep.mubr.bf16.mxu0 %v15422_v0  ;;  %v10168_v37 = vrot.slane %v10160_v21, 9  ;;  %v2872_v21 = vshrl.u32 %v10238_v26, 16 }
 0x193   : > { %v2224_v44 = vsel %vm12427_vm5, %v10168_v37, %v2223_v60 }
 0x198   : > { %2404 = vmatmul.mubr.bf16.vlgmr.msra.gmra.mrb[0].mxu0 %v10171_v50  ;;  %v10176_v50 = vcombine.low %v2224_v44, %v2227_v20  ;;  %v2874_v20 = vrot.slane %v2872_v21, 4 }
 0x199   : > { %2679 = vmatpush1.bf16.msra.mxu0 %v11657_v32  ;;  %2413 = vmatprep.mubr.bf16.mxu0 %v15422_v0  ;;  %v10169_v32 = vrot.slane %v10161_v25, 9 }
 0x19a   : > { %2680 = vmatprep.subr.bf16.mxu0 %v11662_v22  ;;  %v2237_v22 = vrot.slane %v12746_v7, 5  ;;  %v11681_v7 = vld [vmem:[%s12257_s9 + $0x18] sm:$0xff]  }
 0x19b   : > { %v2231_v28 = vsel %vm12427_vm5, %v10169_v32, %v2230_v23  ;;  %v11709_v32 = vld [vmem:[%s12257_s9 + $0x6c] sm:$0xff]  }
 0x19c   : > { %v10177_v19 = vcombine.low %v2231_v28, %v2234_v4  ;;  %v2238_v15 = vsel %vm12427_vm5, %v10170_v57, %v2237_v22 }
 0x19d   : > { %2681 = vmatpush1.bf16.msra.mxu0 %v11660_v51  ;;  %v2239_v51 = vrot.slane %v2237_v22, 4 }
 0x19e   : > { %2682 = vmatprep.subr.bf16.mxu0 %v11665_v41 }
 0x19f   : > { %v2241_v54 = vsel %vm12427_vm5, %v2239_v51, %v2240_v63  ;;  %v2891_v51 = vshll.u32 %v12867_v36, 16  ;;  %v2896_v63 = vshrl.u32 %v10241_v58, 16 }
 0x1a0   : > { %2414 = vmatmul.mubr.bf16.gmra.mrb[4].mxu0 %v10172_v16  ;;  %v10178_v41 = vcombine.low %v2238_v15, %v2241_v54  ;;  %v11682_v16 = vld [vmem:[#allocation3 + $0x380] ss:$8 sps:$4 sm:$0xff]   ;;  %v2899_v15 = vshll.u32 %v10241_v58, 16  ;;  %v2905_v54 = vshll.u32 %v12871_v43, 16 }
 0x1a1   : > { %2423 = vmatprep.mubr.bf16.mxu0 %v15422_v0  ;;  %2683 = vmatpush1.bf16.msra.mxu0 %v11663_v2  ;;  %v11690_v2 = vld [vmem:[#allocation3 + $0x3a0] ss:$8 sps:$4 sm:$0xff]  }
 0x1a2   : > { %2684 = vmatprep.subr.bf16.mxu0 %v11668_v38  ;;  %v11696_v38 = vld [vmem:[#allocation3 + $0x3b4] ss:$8 sps:$4 sm:$0xff]  }
 0x1a5   : > { %2685 = vmatpush1.bf16.msra.mxu0 %v11666_v61  ;;  %v11698_v61 = vld [vmem:[#allocation3 + $0x3c0] ss:$8 sps:$4 sm:$0xff]  }
 0x1a6   : > { %2686 = vmatprep.subr.bf16.mxu0 %v11671_v14  ;;  %v11702_v14 = vld [vmem:[#allocation3 + $0x3d0] ss:$8 sps:$4 sm:$0xff]  }
 0x1a8   : > { %2424 = vmatmul.mubr.bf16.gmra.mrb[8].mxu0 %v10173_v46  ;;  %v11708_v46 = vld [vmem:[#allocation3 + $0x3e4] ss:$8 sps:$4 sm:$0xff]  }
 0x1a9   : > { %2433 = vmatprep.mubr.bf16.mxu0 %v15422_v0  ;;  %2687 = vmatpush1.bf16.msra.mxu0 %v11669_v49  ;;  %v11710_v49 = vld [vmem:[#allocation3 + $0x3f0] ss:$8 sps:$4 sm:$0xff]  }
 0x1aa   : > { %2688 = vmatprep.subr.bf16.mxu0 %v11674_v52  ;;  %v11715_v52 = vld [vmem:[#allocation3 + $0x404] ss:$8 sps:$4 sm:$0xff]  }
 0x1ad   : > { %2689 = vmatpush1.bf16.msra.mxu0 %v11672_v30  ;;  %v12848_v30 = vld [vmem:[%s12257_s9 + $0x1c] sm:$0xf] }
 0x1ae   : > { %2690 = vmatprep.subr.bf16.mxu0 %v11677_v12  ;;  %v2851_v12 = vshll.u32 %v10235_v31, 16  ;;  %v2861_v10 = vshrl.u32 %v12848_v30, 16 }
 0x1b0   : > { %2434 = vmatmul.mubr.bf16.gmra.mrb[12].mxu0 %v10174_v42  ;;  %v2857_v42 = vshll.u32 %v12848_v30, 16  ;;  %v2853_v8 = vrot.slane %v2851_v12, 5  ;;  %v2863_v60 = vrot.slane %v2861_v10, 4 }
 0x1b1   : > { %2443 = vmatprep.mubr.bf16.mxu0 %v15422_v0  ;;  %2691 = vmatpush1.bf16.msra.mxu0 %v11675_v33  ;;  %v12856_v33 = vld [vmem:[%s12257_s9 + $0x28] sm:$0xf] }
 0x1b2   : > { %2692 = vmatprep.subr.bf16.mxu0 %v11680_v45  ;;  %v2850_v45 = vrot.slane %v2848_v27, 4  ;;  %v2859_v47 = vrot.slane %v2857_v42, 5  ;;  %v2885_v37 = vshrl.u32 %v12856_v33, 16  ;;  %v11742_v27 = vld [vmem:[%s15412_s3 + $0x10] sm:$0xff]  }
 0x1b4   : > { %v2854_v62 = vor.u32 %v2853_v8, %v2850_v45  ;;  %v2864_v6 = vor.u32 %v2863_v60, %v2859_v47  ;;  %v11716_v45 = vld [vmem:[#allocation3 + $0x410] ss:$8 sps:$4 sm:$0xff]   ;;  %v11721_v60 = vld [vmem:[#allocation3 + $0x424] ss:$8 sps:$4 sm:$0xff]  }
 0x1b5   : > { %2693 = vmatpush1.bf16.msra.mxu0 %v11678_v1  ;;  %v12859_v1 = vld [vmem:[%s12257_s9 + $0x20] sm:$0x1] }
 0x1b6   : > { %3168 = vmatprep.subr.bf16.mxu0 %v11684_v3  ;;  %v2875_v3 = vshll.u32 %v10238_v26, 16  ;;  %v2867_v44 = vshll.u32 %v12859_v1, 16  ;;  %v2855_v28 = vrot.slane %v2854_v62, 4  ;;  %v2865_v4 = vrot.slane %v2864_v6, 4  ;;  %v11744_v62 = vld [vmem:[%s15412_s3 + $0x18] sm:$0xff]  }
 0x1b8   : > { %2444 = vmatmul.mubr.bf16.gmra.mrb[16].mxu0 %v10175_v29  ;;  %v2881_v29 = vshll.u32 %v12856_v33, 16  ;;  %v2877_v23 = vrot.slane %v2875_v3, 5  ;;  %v2869_v22 = vrot.slane %v2867_v44, 5 }
 0x1b9   : > { %2453 = vmatprep.mubr.bf16.mxu0 %v15422_v0 }
 0x1ba   : > { %v2883_v25 = vrot.slane %v2881_v29, 5  ;;  %v10247_v29 = vld [vmem:[%s12257_s9 + $0x48] sm:$0xf] }
 0x1c0   : > { %2454 = vmatmul.mubr.bf16.gmra.mrb[20].mxu0 %v10176_v50  ;;  %v2887_v50 = vrot.slane %v2885_v37, 4  ;;  %v12922_v37 = vld [vmem:[%s12257_s9 + $0x4c] sm:$0xf] }
 0x1c1   : > { %2463 = vmatprep.mubr.bf16.mxu0 %v15422_v0 }
 0x1c2   : > { %v2888_v57 = vor.u32 %v2887_v50, %v2883_v25  ;;  %v11719_v50 = vld [vmem:[#allocation3 + $0x420] ss:$8 sps:$4 sm:$0xff]  }
 0x1c8   : > { %2464 = vmatmul.mubr.bf16.gmra.mrb[24].mxu0 %v10177_v19  ;;  %v2878_v19 = vor.u32 %v2877_v23, %v2874_v20 }
 0x1c9   : > { %2473 = vmatprep.mubr.bf16.mxu0 %v15422_v0 }
 0x1d0   : > { %2474 = vmatmul.mubr.bf16.gmra.mrb[28].mxu0 %v10178_v41  ;;  %v2909_v41 = vshrl.u32 %v12871_v43, 16 }
 0x1d1   : > { %2710 = vmatprep.mubr.bf16.mxu0 %v15422_v0 }
 0x1d8   : > { %2711 = vmatmul.mubr.bf16.vlgmr.msra.gmra.mrb[0].mxu0 %v11681_v7  ;;  %v11737_v7 = vld [vmem:[%s15412_s3 + $0x40] sm:$0xff]  }
 0x1d9   : > { %3169 = vmatpush1.bf16.msra.mxu0 %v11682_v16  ;;  %2720 = vmatprep.mubr.bf16.mxu0 %v15422_v0  ;;  %v11738_v16 = vld [vmem:[%s15412_s3] sm:$0xff]  }
 0x1da   : > { %3170 = vmatprep.subr.bf16.mxu0 %v11688_v18  ;;  %v11739_v18 = vld [vmem:[%s15412_s3 + $0x48] sm:$0xff]   ;;  %10732 = vmatprep.subr.bf16.mxu1 %v11737_v7 }
 0x1db   : > { %10733 = vmatpush3.bf16.msra.mxu1 %v11738_v16 }
 0x1dc   : > { %10734 = vmatprep.subr.bf16.mxu1 %v11739_v18 }
 0x1dd   : > { %3171 = vmatpush1.bf16.msra.mxu0 %v11686_v17  ;;  %v2860_v17 = vsel %vm12287_vm2, %v2855_v28, %v2859_v47 }
 0x1de   : > { %3172 = vmatprep.subr.bf16.mxu0 %v11692_v35  ;;  %v2870_v35 = vsel %vm12287_vm2, %v2865_v4, %v2869_v22  ;;  %v11724_v4 = vld [vmem:[#allocation3 + $0x434] ss:$8 sps:$4 sm:$0xff]   ;;  %v2944_v22 = vshrl.u32 %v10247_v29, 16 }
 0x1e0   : > { %2721 = vmatmul.mubr.bf16.gmra.mrb[4].mxu0 %v11685_v48  ;;  %v2879_v48 = vrot.slane %v2878_v19, 4  ;;  %v2947_v19 = vshll.u32 %v10247_v29, 16 }
 0x1e1   : > { %2730 = vmatprep.mubr.bf16.mxu0 %v15422_v0  ;;  %3173 = vmatpush1.bf16.msra.mxu0 %v11690_v2  ;;  %v2889_v2 = vrot.slane %v2888_v57, 4  ;;  %v2953_v57 = vshll.u32 %v12922_v37, 16 }
 0x1e2   : > { %3174 = vmatprep.subr.bf16.mxu0 %v11696_v38  ;;  %v2893_v38 = vrot.slane %v2891_v51, 5  ;;  %v2957_v51 = vshrl.u32 %v12922_v37, 16 }
 0x1e5   : > { %3175 = vmatpush1.bf16.msra.mxu0 %v11694_v56  ;;  %v2898_v56 = vrot.slane %v2896_v63, 4  ;;  %v11746_v63 = vld [vmem:[%s15412_s3 + $0x20] sm:$0xff]  }
 0x1e6   : > { %3176 = vmatprep.subr.bf16.mxu0 %v11700_v34  ;;  %v2901_v34 = vrot.slane %v2899_v15, 5 }
 0x1e8   : > { %2731 = vmatmul.mubr.bf16.gmra.mrb[8].mxu0 %v11689_v59  ;;  %v11740_v59 = vld [vmem:[%s15412_s3 + $0x8] sm:$0xff]   ;;  %v2902_v31 = vor.u32 %v2901_v34, %v2898_v56  ;;  %v11727_v56 = vld [vmem:[#allocation3 + $0x444] ss:$8 sps:$4 sm:$0xff]   ;;  %v12952_v34 = vld [vmem:[%s12257_s9 + $0x50] sm:$0x1] }
 0x1e9   : > { %2740 = vmatprep.mubr.bf16.mxu0 %v15422_v0  ;;  %3177 = vmatpush1.bf16.msra.mxu0 %v11698_v61  ;;  %v10259_v61 = vcombine.low %v2860_v17, %v2870_v35  ;;  %v11722_v17 = vld [vmem:[#allocation3 + $0x430] ss:$8 sps:$4 sm:$0xff]   ;;  %v2946_v35 = vrot.slane %v2944_v22, 4 }
 0x1ea   : > { %3178 = vmatprep.subr.bf16.mxu0 %v11704_v13  ;;  %v12893_v13 = vrot.slane %v2905_v54, 5  ;;  %10735 = vmatpush3.bf16.msra.mxu1 %v11740_v59  ;;  %v2903_v3 = vrot.slane %v2902_v31, 4  ;;  %v11747_v54 = vld [vmem:[%s15412_s3 + $0x68] sm:$0xff]  }
 0x1eb   : > { %v11730_v31 = vld [vmem:[#allocation3 + $0x454] ss:$8 sps:$4 sm:$0xff]  }
 0x1ec   : > { %v2908_v15 = vsel %vm12287_vm2, %v2903_v3, %v12893_v13 }
 0x1ed   : > { %3179 = vmatpush1.bf16.msra.mxu0 %v11702_v14  ;;  %v2911_v14 = vrot.slane %v2909_v41, 4 }
 0x1ee   : > { %3180 = vmatprep.subr.bf16.mxu0 %v11708_v46  ;;  %v11741_v46 = vld [vmem:[%s15412_s3 + $0x50] sm:$0xff]  }
 0x1ef   : > { %v2912_v12 = vor.u32 %v2911_v14, %v12893_v13  ;;  %10736 = vmatprep.subr.bf16.mxu1 %v11741_v46  ;;  %v12956_v13 = vld [vmem:[%s12257_s9 + $0x58] sm:$0xf] }
 0x1f0   : > { %2741 = vmatmul.mubr.bf16.gmra.mrb[12].mxu0 %v11693_v55  ;;  %v11713_v55 = vld [vmem:[#allocation3 + $0x400] ss:$8 sps:$4 sm:$0xff]   ;;  %10737 = vmatpush3.bf16.msra.mxu1 %v11742_v27 }
 0x1f1   : > { %2750 = vmatprep.mubr.bf16.mxu0 %v15422_v0  ;;  %3181 = vmatpush1.bf16.msra.mxu0 %v11706_v9  ;;  %v12899_v9 = vld [vmem:[%s12257_s9 + $0x38] sm:$0x1]  ;;  %v2913_v6 = vrot.slane %v2912_v12, 4 }
 0x1f2   : > { %3182 = vmatprep.subr.bf16.mxu0 %v11712_v53  ;;  %v10244_v53 = vld [vmem:[%s12257_s9 + $0x3c] sm:$0xf]  ;;  %v2915_v42 = vshll.u32 %v12899_v9, 16 }
 0x1f3   : > { %v2920_v10 = vshrl.u32 %v10244_v53, 16  ;;  %v2923_v26 = vshll.u32 %v10244_v53, 16  ;;  %v11725_v53 = vld [vmem:[#allocation3 + $0x440] ss:$8 sps:$4 sm:$0xff]  }
 0x1f4   : > { %v2917_v44 = vrot.slane %v2915_v42, 5  ;;  %v2977_v42 = vshll.u32 %v12956_v13, 16 }
 0x1f5   : > { %3183 = vmatpush1.bf16.msra.mxu0 %v11710_v49  ;;  %v11718_v49 = vld [vmem:[#allocation3 + $0x414] ss:$8 sps:$4 sm:$0xff]   ;;  %v2922_v20 = vrot.slane %v2920_v10, 4  ;;  %v2925_v23 = vrot.slane %v2923_v26, 5  ;;  %v2981_v10 = vshrl.u32 %v12956_v13, 16 }
 0x1f6   : > { %3530 = vmatprep.subr.bf16.mxu0 %v11715_v52  ;;  %v12903_v52 = vld [vmem:[%s12257_s9 + $0x40] sm:$0xf]  ;;  %v2918_v41 = vsel %vm12287_vm2, %v2913_v6, %v2917_v44 }
 0x1f7   : > { %v2929_v8 = vshll.u32 %v12903_v52, 16  ;;  %v2933_v47 = vshrl.u32 %v12903_v52, 16  ;;  %v2926_v7 = vor.u32 %v2925_v23, %v2922_v20  ;;  %v10261_v59 = vcombine.low %v2908_v15, %v2918_v41  ;;  %v12968_v20 = vld [vmem:[%s12257_s9 + $0x5c] sm:$0x1]  ;;  %v10253_v23 = vld [vmem:[%s12257_s9 + $0x60] sm:$0xf] }
 0x1f8   : > { %2751 = vmatmul.mubr.bf16.gmra.mrb[16].mxu0 %v11697_v5  ;;  %v2884_v5 = vsel %vm12287_vm2, %v2879_v48, %v2883_v25  ;;  %v11745_v25 = vld [vmem:[%s15412_s3 + $0x60] sm:$0xff]   ;;  %v2949_v48 = vrot.slane %v2947_v19, 5  ;;  %v2983_v6 = vrot.slane %v2981_v10, 4 }
 0x1f9   : > { %2760 = vmatprep.mubr.bf16.mxu0 %v15422_v0  ;;  %v12933_v58 = vrot.slane %v2929_v8, 5  ;;  %v2935_v28 = vrot.slane %v2933_v47, 4  ;;  %v2927_v14 = vrot.slane %v2926_v7, 4  ;;  %v11734_v41 = vld [vmem:[#allocation3 + $0x470] ss:$8 sps:$4 sm:$0xff]  }
 0x1fb   : > { %v2936_v16 = vor.u32 %v2935_v28, %v12933_v58  ;;  %v2932_v26 = vsel %vm12287_vm2, %v2927_v14, %v12933_v58  ;;  %v11736_v28 = vld [vmem:[#allocation3 + $0x474] ss:$8 sps:$4 sm:$0xff]  }
 0x1fd   : > { %v2937_v46 = vrot.slane %v2936_v16, 4 }
 0x200   : > { %2761 = vmatmul.mubr.bf16.gmra.mrb[20].mxu0 %v11701_v39  ;;  %v2894_v39 = vsel %vm12287_vm2, %v2889_v2, %v2893_v38  ;;  %v2955_v2 = vrot.slane %v2953_v57, 5  ;;  %v2959_v38 = vrot.slane %v2957_v51, 4  ;;  %v2987_v57 = vshll.u32 %v12968_v20, 16 }
 0x201   : > { %2770 = vmatprep.mubr.bf16.mxu0 %v15422_v0  ;;  %v10260_v21 = vcombine.low %v2884_v5, %v2894_v39  ;;  %v2963_v39 = vshll.u32 %v12952_v34, 16  ;;  %v2992_v51 = vshrl.u32 %v10253_v23, 16 }
 0x202   : > { %v2960_v5 = vor.u32 %v2959_v38, %v2955_v2 }
 0x204   : > { %v2961_v47 = vrot.slane %v2960_v5, 4 }
 0x208   : > { %2771 = vmatmul.mubr.bf16.gmra.mrb[24].mxu0 %v11705_v24  ;;  %v11743_v24 = vld [vmem:[%s15412_s3 + $0x58] sm:$0xff]  }
 0x209   : > { %2780 = vmatprep.mubr.bf16.mxu0 %v15422_v0  ;;  %10738 = vmatprep.subr.bf16.mxu1 %v11743_v24 }
 0x20a   : > { %10739 = vmatpush3.bf16.msra.mxu1 %v11744_v62  ;;  %v2979_v62 = vrot.slane %v2977_v42, 5 }
 0x20b   : > { %10740 = vmatprep.subr.bf16.mxu1 %v11745_v25  ;;  %v12972_v25 = vld [vmem:[%s12257_s9 + $0x64] sm:$0xf] }
 0x20c   : > { %v2984_v19 = vor.u32 %v2983_v6, %v2979_v62  ;;  %v3001_v15 = vshll.u32 %v12972_v25, 16 }
 0x20e   : > { %10741 = vmatpush3.bf16.msra.mxu1 %v11746_v63  ;;  %v2995_v63 = vshll.u32 %v10253_v23, 16 }
 0x20f   : > { %10742 = vmatprep.subr.bf16.mxu1 %v11747_v54  ;;  %v3005_v54 = vshrl.u32 %v12972_v25, 16 }
 0x210   : > { %2781 = vmatmul.mubr.bf16.gmra.mrb[28].mxu0 %v11709_v32  ;;  %v12931_v32 = vld [vmem:[%s12257_s9 + $0x44] sm:$0x1] }
 0x211   : > { %3200 = vmatprep.mubr.bf16.mxu0 %v15422_v0  ;;  %v2939_v18 = vshll.u32 %v12931_v32, 16  ;;  %v3007_v38 = vrot.slane %v3005_v54, 4 }
 0x218   : > { %3201 = vmatmul.mubr.bf16.vlgmr.msra.gmra.mrb[0].mxu0 %v10259_v61  ;;  %v10250_v61 = vld [vmem:[%s12257_s9 + $0x54] sm:$0xf] }
 0x219   : > { %3531 = vmatpush1.bf16.msra.mxu0 %v11713_v55  ;;  %3210 = vmatprep.mubr.bf16.mxu0 %v15422_v0  ;;  %v2941_v55 = vrot.slane %v2939_v18, 5  ;;  %v2968_v27 = vshrl.u32 %v10250_v61, 16  ;;  %v2971_v12 = vshll.u32 %v10250_v61, 16  ;;  %v2985_v18 = vrot.slane %v2984_v19, 4  ;;  %v12987_v61 = vld [vmem:[%s12257_s9 + $0x70] sm:$0xf] }
 0x21a   : > { %3532 = vmatprep.subr.bf16.mxu0 %v11718_v49  ;;  %v2950_v49 = vor.u32 %v2949_v48, %v2946_v35  ;;  %v2994_v35 = vrot.slane %v2992_v51, 4  ;;  %v2997_v48 = vrot.slane %v2995_v63, 5  ;;  %v10283_v19 = vld [vmem:[%s12257_s9 + $0x18] sm:$0xe] }
 0x21b   : > { %v2942_v24 = vsel %vm12287_vm2, %v2937_v46, %v2941_v55  ;;  %v2970_v3 = vrot.slane %v2968_v27, 4  ;;  %v2973_v29 = vrot.slane %v2971_v12, 5  ;;  %v3029_v27 = vshrl.u32 %v12987_v61, 16 }
 0x21c   : > { %v2951_v8 = vrot.slane %v2950_v49, 4  ;;  %v10262_v44 = vcombine.low %v2932_v26, %v2942_v24  ;;  %v2998_v55 = vor.u32 %v2997_v48, %v2994_v35  ;;  %v10291_v51 = vrot.slane %v10283_v19, 9 }
 0x21d   : > { %3533 = vmatpush1.bf16.msra.mxu0 %v11716_v45  ;;  %v11728_v45 = vld [vmem:[#allocation3 + $0x450] ss:$8 sps:$4 sm:$0xff]   ;;  %v2974_v22 = vor.u32 %v2973_v29, %v2970_v3  ;;  %v3357_v35 = vrot.slane %v12867_v36, 5 }
 0x21e   : > { %3534 = vmatprep.subr.bf16.mxu0 %v11721_v60  ;;  %v2965_v60 = vrot.slane %v2963_v39, 5  ;;  %v2956_v58 = vsel %vm12287_vm2, %v2951_v8, %v2955_v2  ;;  %v3003_v2 = vrot.slane %v3001_v15, 5  ;;  %v2999_v42 = vrot.slane %v2998_v55, 4 }
 0x21f   : > { %v2975_v16 = vrot.slane %v2974_v22, 4  ;;  %v3347_v22 = vrot.slane %v12848_v30, 5  ;;  %v3350_v15 = vrot.slane %v12859_v1, 5 }
 0x220   : > { %3211 = vmatmul.mubr.bf16.gmra.mrb[4].mxu0 %v10260_v21  ;;  %v11733_v21 = vld [vmem:[#allocation3 + $0x464] ss:$8 sps:$4 sm:$0xff]  }
 0x221   : > { %3220 = vmatprep.mubr.bf16.mxu0 %v15422_v0  ;;  %3535 = vmatpush1.bf16.msra.mxu0 %v11719_v50  ;;  %v11731_v50 = vld [vmem:[#allocation3 + $0x460] ss:$8 sps:$4 sm:$0xff]   ;;  %v2980_v14 = vsel %vm12287_vm2, %v2975_v16, %v2979_v62  ;;  %v3349_v63 = vrot.slane %v3347_v22, 4  ;;  %v3348_v54 = vsel %vm12427_vm5, %v10291_v51, %v3347_v22  ;;  %v10284_v16 = vld [vmem:[%s12257_s9 + $0x24] sm:$0xe] }
 0x222   : > { %3536 = vmatprep.subr.bf16.mxu0 %v11724_v4  ;;  %v2966_v4 = vsel %vm12287_vm2, %v2961_v47, %v2965_v60  ;;  %v3031_v47 = vrot.slane %v3029_v27, 4  ;;  %v12998_v60 = vld [vmem:[%s12257_s9 + $0x74] sm:$0x1]  ;;  %v10290_v22 = vld [vmem:[%s12257_s9 + $0x6c] sm:$0xe] }
 0x223   : > { %v10263_v7 = vcombine.low %v2956_v58, %v2966_v4  ;;  %v3035_v6 = vshll.u32 %v12998_v60, 16  ;;  %v3399_v51 = vrot.slane %v12998_v60, 5  ;;  %v11749_v60 = vld [vmem:[%s15412_s3 + $0x70] sm:$0xff]  }
 0x225   : > { %3537 = vmatpush1.bf16.msra.mxu0 %v11722_v17  ;;  %v2989_v17 = vrot.slane %v2987_v57, 5  ;;  %v3037_v58 = vrot.slane %v3035_v6, 5  ;;  %v3389_v6 = vrot.slane %v12972_v25, 5  ;;  %v10298_v25 = vrot.slane %v10290_v22, 9  ;;  %v11764_v22 = vld [vmem:[#allocation3 + $0xb4] ss:$8 sps:$4 sm:$0xff]  }
 0x226   : > { %3538 = vmatprep.subr.bf16.mxu0 %v11727_v56  ;;  %v12983_v56 = vld [vmem:[%s12257_s9 + $0x68] sm:$0x1] }
 0x227   : > { %v2990_v46 = vsel %vm12287_vm2, %v2985_v18, %v2989_v17  ;;  %v3011_v49 = vshll.u32 %v12983_v56, 16  ;;  %v10292_v18 = vrot.slane %v10284_v16, 9  ;;  %v11752_v16 = vld [vmem:[%s15412_s3 + $0x38] sm:$0xff]  }
 0x228   : > { %3221 = vmatmul.mubr.bf16.gmra.mrb[8].mxu0 %v10261_v59  ;;  %v10256_v59 = vld [vmem:[%s12257_s9 + $0x6c] sm:$0xf]  ;;  %v10264_v12 = vcombine.low %v2980_v14, %v2990_v46  ;;  %v3364_v46 = vrot.slane %v12899_v9, 5 }
 0x229   : > { %3230 = vmatprep.mubr.bf16.mxu0 %v15422_v0  ;;  %3539 = vmatpush1.bf16.msra.mxu0 %v11725_v53  ;;  %v3008_v53 = vor.u32 %v3007_v38, %v3003_v2  ;;  %v3016_v5 = vshrl.u32 %v10256_v59, 16  ;;  %v3019_v39 = vshll.u32 %v10256_v59, 16  ;;  %v3013_v26 = vrot.slane %v3011_v49, 5  ;;  %v10285_v38 = vld [vmem:[%s12257_s9 + $0x30] sm:$0xe] }
 0x22a   : > { %3540 = vmatprep.subr.bf16.mxu0 %v11730_v31  ;;  %v3025_v31 = vshll.u32 %v12987_v61, 16  ;;  %v10293_v59 = vrot.slane %v10285_v38, 9  ;;  %v10286_v49 = vld [vmem:[%s12257_s9 + $0x3c] sm:$0xe]  ;;  %v3675_v38 = vld [vmem:[%s15411_s2] sm:$0x3] }
 0x22b   : > { %v3009_v10 = vrot.slane %v3008_v53, 4  ;;  %v3018_v24 = vrot.slane %v3016_v5, 4  ;;  %v3368_v53 = vrot.slane %v12903_v52, 5  ;;  %v10294_v5 = vrot.slane %v10286_v49, 9 }
 0x22c   : > { %v3027_v8 = vrot.slane %v3025_v31, 5  ;;  %v3371_v31 = vrot.slane %v12931_v32, 5 }
 0x22d   : > { %3541 = vmatpush1.bf16.msra.mxu0 %v11728_v45  ;;  %v3021_v45 = vrot.slane %v3019_v39, 5  ;;  %v3014_v3 = vsel %vm12287_vm2, %v3009_v10, %v3013_v26  ;;  %v3370_v39 = vrot.slane %v3368_v53, 4  ;;  %v3369_v9 = vsel %vm12427_vm5, %v10294_v5, %v3368_v53 }
 0x22e   : > { %3542 = vmatprep.subr.bf16.mxu0 %v11733_v21  ;;  %v3004_v21 = vsel %vm12287_vm2, %v2999_v42, %v3003_v2  ;;  %v3032_v62 = vor.u32 %v3031_v47, %v3027_v8  ;;  %v3361_v2 = vrot.slane %v12871_v43, 5  ;;  %v10287_v42 = vld [vmem:[%s12257_s9 + $0x48] sm:$0xe]  ;;  %v10288_v47 = vld [vmem:[%s12257_s9 + $0x54] sm:$0xe] }
 0x22f   : > { %v3022_v29 = vor.u32 %v3021_v45, %v3018_v24  ;;  %v3372_v27 = vsel %vm12427_vm5, %v3370_v39, %v3371_v31  ;;  %v10295_v10 = vrot.slane %v10287_v42, 9  ;;  %v3378_v24 = vrot.slane %v12952_v34, 5 }
 0x230   : > { %3231 = vmatmul.mubr.bf16.gmra.mrb[12].mxu0 %v10262_v44  ;;  %v10265_v44 = vcombine.low %v3004_v21, %v3014_v3  ;;  %v3363_v14 = vrot.slane %v3361_v2, 4  ;;  %v3362_v36 = vsel %vm12427_vm5, %v10293_v59, %v3361_v2  ;;  %v10302_v52 = vcombine.low %v3369_v9, %v3372_v27 }
 0x231   : > { %3240 = vmatprep.mubr.bf16.mxu0 %v15422_v0  ;;  %3543 = vmatpush1.bf16.msra.mxu0 %v11731_v50  ;;  %v3023_v23 = vrot.slane %v3022_v29, 4  ;;  %v3033_v50 = vrot.slane %v3032_v62, 4  ;;  %v10296_v21 = vrot.slane %v10288_v47, 9  ;;  %v3385_v29 = vrot.slane %v12968_v20, 5 }
 0x232   : > { %3544 = vmatprep.subr.bf16.mxu0 %v11736_v28  ;;  %v3365_v55 = vsel %vm12427_vm5, %v3363_v14, %v3364_v46 }
 0x233   : > { %v3028_v28 = vsel %vm12287_vm2, %v3023_v23, %v3027_v8  ;;  %v3038_v4 = vsel %vm12287_vm2, %v3033_v50, %v3037_v58  ;;  %v10301_v43 = vcombine.low %v3362_v36, %v3365_v55  ;;  %v3382_v8 = vrot.slane %v12956_v13, 5 }
 0x234   : > { %v10266_v57 = vcombine.low %v3028_v28, %v3038_v4  ;;  %v3391_v50 = vrot.slane %v3389_v6, 4  ;;  %v3392_v58 = vrot.slane %v12983_v56, 5  ;;  %v3396_v4 = vrot.slane %v12987_v61, 5  ;;  %v11748_v61 = vld [vmem:[%s15412_s3 + $0x28] sm:$0xff]  }
 0x235   : > { %3545 = vmatpush1.bf16.msra.mxu0 %v11734_v41  ;;  %v3351_v41 = vsel %vm12427_vm5, %v3349_v63, %v3350_v15  ;;  %v3384_v3 = vrot.slane %v3382_v8, 4  ;;  %v3383_v34 = vsel %vm12427_vm5, %v10296_v21, %v3382_v8  ;;  %10743 = vmatpush3.bf16.msra.mxu1 %v11748_v61 }
 0x236   : > { %v10299_v30 = vcombine.low %v3348_v54, %v3351_v41  ;;  %v3393_v28 = vsel %vm12427_vm5, %v3391_v50, %v3392_v58  ;;  %v3397_v56 = vsel %vm12427_vm5, %v10298_v25, %v3396_v4  ;;  %v11750_v54 = vld [vmem:[%s15412_s3 + $0x30] sm:$0xff]   ;;  %v3677_v41 = vlaneseq  ;;  %10744 = vmatprep.subr.bf16.mxu1 %v11749_v60 }
 0x237   : > { %v3386_v62 = vsel %vm12427_vm5, %v3384_v3, %v3385_v29  ;;  %v11756_v29 = vld [vmem:[#allocation3 + $0x90] ss:$8 sps:$4 sm:$0xff]   ;;  %v11767_v60 = vld [vmem:[#allocation3 + $0xc4] ss:$8 sps:$4 sm:$0xff]  }
 0x238   : > { %3241 = vmatmul.mubr.bf16.gmra.mrb[16].mxu0 %v10263_v7  ;;  %v3354_v7 = vrot.slane %v12856_v33, 5  ;;  %v10304_v13 = vcombine.low %v3383_v34, %v3386_v62 }
 0x239   : > { %3250 = vmatprep.mubr.bf16.mxu0 %v15422_v0  ;;  %10745 = vmatpush3.bf16.msra.mxu1 %v11750_v54 }
 0x23a   : > { %v3356_v17 = vrot.slane %v3354_v7, 4  ;;  %v3355_v1 = vsel %vm12427_vm5, %v10292_v18, %v3354_v7  ;;  %v11751_v7 = vld [vmem:[%s15412_s3 + $0x78] sm:$0xff]   ;;  %v9459_v18 = vand.u32 127, %v3677_v41 }
 0x23b   : > { %10746 = vmatprep.subr.bf16.mxu1 %v11751_v7 }
 0x23c   : > { %v3358_v48 = vsel %vm12427_vm5, %v3356_v17, %v3357_v35  ;;  %v9464_v35 = vadd.s32 4294967288, %v9459_v18 }
 0x23d   : > { %v10300_v33 = vcombine.low %v3355_v1, %v3358_v48  ;;  %10747 = vmatpush3.bf16.msra.mxu1 %v11752_v16  ;;  %v11755_v48 = vld [vmem:[#allocation3 + $0x84] ss:$8 sps:$4 sm:$0xff]  }
 0x23e   : > { %4369 = vmatprep.subr.bf16.mxu1 %v11755_v48 }
 0x240   : > { %3251 = vmatmul.mubr.bf16.gmra.mrb[20].mxu0 %v10264_v12  ;;  %v3375_v12 = vrot.slane %v12922_v37, 5 }
 0x241   : > { %3260 = vmatprep.mubr.bf16.mxu0 %v15422_v0 }
 0x242   : > { %v3377_v26 = vrot.slane %v3375_v12, 4  ;;  %v3376_v32 = vsel %vm12427_vm5, %v10295_v10, %v3375_v12 }
 0x244   : > { %v3379_v45 = vsel %vm12427_vm5, %v3377_v26, %v3378_v24  ;;  %v11753_v26 = vld [vmem:[#allocation3 + $0x80] ss:$8 sps:$4 sm:$0xff]  }
 0x245   : > { %v10303_v37 = vcombine.low %v3376_v32, %v3379_v45  ;;  %v11758_v45 = vld [vmem:[#allocation3 + $0x94] ss:$8 sps:$4 sm:$0xff]  }
 0x248   : > { %3261 = vmatmul.mubr.bf16.gmra.mrb[24].mxu0 %v10265_v44  ;;  %v10289_v44 = vld [vmem:[%s12257_s9 + $0x60] sm:$0xe] }
 0x249   : > { %3270 = vmatprep.mubr.bf16.mxu0 %v15422_v0  ;;  %v10297_v23 = vrot.slane %v10289_v44, 9 }
 0x24b   : > { %v3390_v20 = vsel %vm12427_vm5, %v10297_v23, %v3389_v6  ;;  %v11761_v6 = vld [vmem:[#allocation3 + $0xa4] ss:$8 sps:$4 sm:$0xff]  }
 0x24c   : > { %v10305_v19 = vcombine.low %v3390_v20, %v3393_v28  ;;  %v11759_v20 = vld [vmem:[#allocation3 + $0xa0] ss:$8 sps:$4 sm:$0xff]  }
 0x250   : > { %3271 = vmatmul.mubr.bf16.gmra.mrb[28].mxu0 %v10266_v57  ;;  %v3398_v57 = vrot.slane %v3396_v4, 4 }
 0x251   : > { %3562 = vmatprep.mubr.bf16.mxu0 %v15422_v0 }
 0x252   : > { %v3400_v63 = vsel %vm12427_vm5, %v3398_v57, %v3399_v51 }
 0x253   : > { %v10306_v15 = vcombine.low %v3397_v56, %v3400_v63  ;;  %v11762_v63 = vld [vmem:[#allocation3 + $0xb0] ss:$8 sps:$4 sm:$0xff]  }
 0x258   : > { %3563 = vmatmul.mubr.bf16.vlgmr.msra.gmra.mrb[0].mxu0 %v10299_v30  ;;  %v13090_v30 = vshrl.u32 %v3677_v41, 7 }
 0x259   : > { %3572 = vmatprep.mubr.bf16.mxu0 %v15422_v0 }
 0x25a   : > { %15462 = vst [vmem:[#allocation11_spill] sm:$0xff] %v13090_v30  ;;  %v13093_v17 = vsub.s32 %v9459_v18, %v13090_v30  ;;  %v13096_v1 = vsub.s32 %v9464_v35, %v13090_v30  ;;  %v15419_v2 = vsub.s32 0, %v13090_v30  ;;  %v11765_v35 = vld [vmem:[#allocation3 + $0xc0] ss:$8 sps:$4 sm:$0xff]  }
 0x25c   : > { %15463 = vst [vmem:[#allocation12_spill] sm:$0xff] %v13093_v17  ;;  %15464 = vst [vmem:[#allocation13_spill] sm:$0xff] %v13096_v1  ;;  %v13105_v59 = vrot.slane %v3675_v38, %v15419_v2  ;;  %v13805_v1 = vld [vmem:[%s12257_s9 + $0xc8] sm:$0x1] }
 0x260   : > { %3573 = vmatmul.mubr.bf16.gmra.mrb[4].mxu0 %v10300_v33  ;;  %v15418_v33 = vsub.s32 1, %v13090_v30  ;;  %v11927_v30 = vld [vmem:[#allocation3 + $0x344] ss:$8 sps:$4 sm:$0xff]  }
 0x261   : > { %3582 = vmatprep.mubr.bf16.mxu0 %v15422_v0 }
 0x262   : > { %v13109_v14 = vrot.slane %v3675_v38, %v15418_v33 }
 0x268   : > { %3583 = vmatmul.mubr.bf16.gmra.mrb[8].mxu0 %v10301_v43 }
 0x269   : > { %3592 = vmatprep.mubr.bf16.mxu0 %v15422_v0 }
 0x270   : > { %3593 = vmatmul.mubr.bf16.gmra.mrb[12].mxu0 %v10302_v52 }
 0x271   : > { %3602 = vmatprep.mubr.bf16.mxu0 %v15422_v0 }
 0x278   : > { %3603 = vmatmul.mubr.bf16.gmra.mrb[16].mxu0 %v10303_v37 }
 0x279   : > { %3612 = vmatprep.mubr.bf16.mxu0 %v15422_v0 }
 0x280   : > { %3613 = vmatmul.mubr.bf16.gmra.mrb[20].mxu0 %v10304_v13 }
 0x281   : > { %3622 = vmatprep.mubr.bf16.mxu0 %v15422_v0 }
 0x288   : > { %3623 = vmatmul.mubr.bf16.gmra.mrb[24].mxu0 %v10305_v19 }
 0x289   : > { %3632 = vmatprep.mubr.bf16.mxu0 %v15422_v0 }
 0x290   : > { %3633 = vmatmul.mubr.bf16.gmra.mrb[28].mxu0 %v10306_v15 }
 0x32b   : > { %v3564_v46 = vpop.f32.mrb[0].mxu0 }
 0x32c   : > { %v3687_v36 = vadd.f32 %v13105_v59, %v3564_v46  ;;  %v3566_v55 = vpop.f32.mrb[1].mxu0  ;;  %v11770_v46 = vld [vmem:[#allocation3 + $0xd4] ss:$8 sps:$4 sm:$0xff]  }
 0x32d   : > { %v3688_v53 = vadd.f32 %v13109_v14, %v3566_v55  ;;  %v3568_v49 = vpop.f32.mrb[2].mxu0 }
 0x32e   : > { %v3689_v43 = vadd.f32 %v13105_v59, %v3568_v49  ;;  %v3570_v5 = vpop.f32.mrb[3].mxu0  ;;  %v3719_v31 = vmax.f32 %v3687_v36, 0.0 }
 0x32f   : > { %v3690_v39 = vadd.f32 %v13109_v14, %v3570_v5  ;;  %v3720_v27 = vmax.f32 %v3688_v53, 0.0  ;;  %v11768_v5 = vld [vmem:[#allocation3 + $0xd0] ss:$8 sps:$4 sm:$0xff]  }
 0x330   : > { %v3721_v9 = vmax.f32 %v3689_v43, 0.0 }
 0x331   : > { %v3722_v12 = vmax.f32 %v3690_v39, 0.0 }
 0x332   : > { %v3751_v42 = vpack.c.bf16 %v3721_v9, %v3719_v31  ;;  %v11773_v9 = vld [vmem:[#allocation3 + $0xe4] ss:$8 sps:$4 sm:$0xff]  }
 0x333   : > { %v3574_v52 = vpop.f32.mrb[4].mxu0  ;;  %v3752_v10 = vpack.c.bf16 %v3722_v12, %v3720_v27 }
 0x334   : > { %v3691_v24 = vadd.f32 %v13105_v59, %v3574_v52  ;;  %v3576_v32 = vpop.f32.mrb[5].mxu0 }
 0x335   : > { %v3692_v8 = vadd.f32 %v13109_v14, %v3576_v32  ;;  %v3578_v47 = vpop.f32.mrb[6].mxu0  ;;  %3927 = vmatprep.mubr.bf16.mxu1 %v3752_v10 }
 0x336   : > { %v3693_v37 = vadd.f32 %v13105_v59, %v3578_v47  ;;  %v3580_v21 = vpop.f32.mrb[7].mxu0  ;;  %3928 = vmatmul.mubr.bf16.vlgmr.msra.gmra.mrb[0].mxu1 %v3751_v42  ;;  %v3723_v34 = vmax.f32 %v3691_v24, 0.0 }
 0x337   : > { %v3694_v3 = vadd.f32 %v13109_v14, %v3580_v21  ;;  %4370 = vmatpush1.bf16.msra.mxu1 %v11753_v26  ;;  %v3724_v44 = vmax.f32 %v3692_v8, 0.0  ;;  %v11771_v26 = vld [vmem:[#allocation3 + $0xe0] ss:$8 sps:$4 sm:$0xff]  }
 0x338   : > { %v3725_v62 = vmax.f32 %v3693_v37, 0.0  ;;  %4371 = vmatprep.subr.bf16.mxu1 %v11758_v45  ;;  %v11776_v45 = vld [vmem:[#allocation3 + $0xf4] ss:$8 sps:$4 sm:$0xff]  }
 0x339   : > { %v3726_v13 = vmax.f32 %v3694_v3, 0.0 }
 0x33a   : > { %v3753_v23 = vpack.c.bf16 %v3725_v62, %v3723_v34 }
 0x33b   : > { %v3754_v50 = vpack.c.bf16 %v3726_v13, %v3724_v44  ;;  %v3584_v58 = vpop.f32.mrb[8].mxu0  ;;  %4372 = vmatpush1.bf16.msra.mxu1 %v11756_v29  ;;  %v11774_v29 = vld [vmem:[#allocation3 + $0xf0] ss:$8 sps:$4 sm:$0xff]  }
 0x33c   : > { %v3695_v28 = vadd.f32 %v13105_v59, %v3584_v58  ;;  %v3586_v4 = vpop.f32.mrb[9].mxu0  ;;  %4373 = vmatprep.subr.bf16.mxu1 %v11761_v6  ;;  %v11779_v6 = vld [vmem:[#allocation3 + $0x4] ss:$8 sps:$4 sm:$0xff]  }
 0x33d   : > { %v3696_v19 = vadd.f32 %v13109_v14, %v3586_v4  ;;  %v3588_v25 = vpop.f32.mrb[10].mxu0  ;;  %3935 = vmatprep.mubr.bf16.mxu1 %v3754_v50 }
 0x33e   : > { %v3697_v57 = vadd.f32 %v13105_v59, %v3588_v25  ;;  %v3590_v51 = vpop.f32.mrb[11].mxu0  ;;  %3936 = vmatmul.mubr.bf16.gmra.mrb[4].mxu1 %v3753_v23  ;;  %v3727_v15 = vmax.f32 %v3695_v28, 0.0 }
 0x33f   : > { %v3698_v56 = vadd.f32 %v13109_v14, %v3590_v51  ;;  %4374 = vmatpush1.bf16.msra.mxu1 %v11759_v20  ;;  %v3728_v54 = vmax.f32 %v3696_v19, 0.0 }
 0x340   : > { %v3729_v61 = vmax.f32 %v3697_v57, 0.0  ;;  %4375 = vmatprep.subr.bf16.mxu1 %v11764_v22 }
 0x341   : > { %v3730_v41 = vmax.f32 %v3698_v56, 0.0 }
 0x342   : > { %v3755_v7 = vpack.c.bf16 %v3729_v61, %v3727_v15 }
 0x343   : > { %v3756_v16 = vpack.c.bf16 %v3730_v41, %v3728_v54  ;;  %v3594_v18 = vpop.f32.mrb[12].mxu0  ;;  %4376 = vmatpush1.bf16.msra.mxu1 %v11762_v63 }
 0x344   : > { %v3699_v48 = vadd.f32 %v13105_v59, %v3594_v18  ;;  %v3596_v38 = vpop.f32.mrb[13].mxu0  ;;  %4377 = vmatprep.subr.bf16.mxu1 %v11767_v60  ;;  %v13136_v60 = vld [vmem:[%s12257_s9 + $0x60] sm:$0xf] }
 0x345   : > { %v3700_v36 = vadd.f32 %v13109_v14, %v3596_v38  ;;  %v3598_v55 = vpop.f32.mrb[14].mxu0  ;;  %3943 = vmatprep.mubr.bf16.mxu1 %v3756_v16  ;;  %v4050_v38 = vshrl.u32 %v13136_v60, 16 }
 0x346   : > { %v3701_v53 = vadd.f32 %v13105_v59, %v3598_v55  ;;  %v3600_v49 = vpop.f32.mrb[15].mxu0  ;;  %3944 = vmatmul.mubr.bf16.gmra.mrb[8].mxu1 %v3755_v7  ;;  %v3731_v39 = vmax.f32 %v3699_v48, 0.0  ;;  %v13139_v7 = vld [vmem:[%s12257_s9 + $0x64] sm:$0xf] }
 0x347   : > { %v3702_v43 = vadd.f32 %v13109_v14, %v3600_v49  ;;  %4378 = vmatpush1.bf16.msra.mxu1 %v11765_v35  ;;  %v3732_v27 = vmax.f32 %v3700_v36, 0.0  ;;  %v4063_v49 = vshrl.u32 %v13139_v7, 16 }
 0x348   : > { %v3733_v31 = vmax.f32 %v3701_v53, 0.0  ;;  %4379 = vmatprep.subr.bf16.mxu1 %v11770_v46  ;;  %v4053_v46 = vshll.u32 %v13136_v60, 16  ;;  %v4059_v53 = vshll.u32 %v13139_v7, 16 }
 0x349   : > { %v3734_v12 = vmax.f32 %v3702_v43, 0.0 }
 0x34a   : > { %v3757_v42 = vpack.c.bf16 %v3733_v31, %v3731_v39 }
 0x34b   : > { %v3758_v52 = vpack.c.bf16 %v3734_v12, %v3732_v27  ;;  %v3604_v10 = vpop.f32.mrb[16].mxu0  ;;  %4380 = vmatpush1.bf16.msra.mxu1 %v11768_v5  ;;  %v4052_v27 = vrot.slane %v4050_v38, 4  ;;  %v4055_v12 = vrot.slane %v4053_v46, 5 }
 0x34c   : > { %v3703_v24 = vadd.f32 %v13105_v59, %v3604_v10  ;;  %v3606_v32 = vpop.f32.mrb[17].mxu0  ;;  %4381 = vmatprep.subr.bf16.mxu1 %v11773_v9  ;;  %v4061_v10 = vrot.slane %v4059_v53, 5 }
 0x34d   : > { %v3704_v8 = vadd.f32 %v13109_v14, %v3606_v32  ;;  %v3608_v47 = vpop.f32.mrb[18].mxu0  ;;  %3951 = vmatprep.mubr.bf16.mxu1 %v3758_v52  ;;  %v13150_v52 = vld [vmem:[%s12257_s9 + $0x68] sm:$0x1] }
 0x34e   : > { %v3705_v37 = vadd.f32 %v13105_v59, %v3608_v47  ;;  %v3610_v21 = vpop.f32.mrb[19].mxu0  ;;  %3952 = vmatmul.mubr.bf16.gmra.mrb[12].mxu1 %v3757_v42  ;;  %v3735_v34 = vmax.f32 %v3703_v24, 0.0 }
 0x34f   : > { %v3706_v3 = vadd.f32 %v13109_v14, %v3610_v21  ;;  %4382 = vmatpush1.bf16.msra.mxu1 %v11771_v26  ;;  %v3736_v44 = vmax.f32 %v3704_v8, 0.0  ;;  %v4065_v26 = vrot.slane %v4063_v49, 4 }
 0x350   : > { %v3737_v62 = vmax.f32 %v3705_v37, 0.0  ;;  %4383 = vmatprep.subr.bf16.mxu1 %v11776_v45  ;;  %v13153_v45 = vld [vmem:[%s12257_s9 + $0x6c] sm:$0xf]  ;;  %v13157_v37 = vld [vmem:[%s12257_s9 + $0x70] sm:$0xf] }
 0x351   : > { %v3738_v13 = vmax.f32 %v3706_v3, 0.0 }
 0x352   : > { %v3759_v23 = vpack.c.bf16 %v3737_v62, %v3735_v34  ;;  %v4069_v34 = vshll.u32 %v13150_v52, 16 }
 0x353   : > { %v3760_v50 = vpack.c.bf16 %v3738_v13, %v3736_v44  ;;  %v3614_v58 = vpop.f32.mrb[20].mxu0  ;;  %4384 = vmatpush1.bf16.msra.mxu1 %v11774_v29  ;;  %v4056_v29 = vor.u32 %v4055_v12, %v4052_v27  ;;  %v4066_v44 = vor.u32 %v4065_v26, %v4061_v10  ;;  %v4074_v13 = vshrl.u32 %v13153_v45, 16  ;;  %v13187_v27 = vld [vmem:[%s12257_s9 + $0x80] sm:$0x1] }
 0x354   : > { %v3707_v20 = vadd.f32 %v13105_v59, %v3614_v58  ;;  %v3616_v28 = vpop.f32.mrb[21].mxu0  ;;  %4610 = vmatprep.subr.bf16.mxu1 %v11779_v6  ;;  %v4083_v58 = vshll.u32 %v13157_v37, 16 }
 0x355   : > { %v3708_v4 = vadd.f32 %v13109_v14, %v3616_v28  ;;  %v3618_v22 = vpop.f32.mrb[22].mxu0  ;;  %3959 = vmatprep.mubr.bf16.mxu1 %v3760_v50 }
 0x356   : > { %v3709_v19 = vadd.f32 %v13105_v59, %v3618_v22  ;;  %v3620_v25 = vpop.f32.mrb[23].mxu0  ;;  %3960 = vmatmul.mubr.bf16.gmra.mrb[16].mxu1 %v3759_v23  ;;  %v3739_v51 = vmax.f32 %v3707_v20, 0.0  ;;  %v4077_v23 = vshll.u32 %v13153_v45, 16  ;;  %v4087_v20 = vshrl.u32 %v13157_v37, 16 }
 0x357   : > { %v3710_v57 = vadd.f32 %v13109_v14, %v3620_v25  ;;  %v3740_v63 = vmax.f32 %v3708_v4, 0.0  ;;  %v4071_v25 = vrot.slane %v4069_v34, 5 }
 0x358   : > { %v3741_v56 = vmax.f32 %v3709_v19, 0.0  ;;  %v4057_v19 = vrot.slane %v4056_v29, 4 }
 0x359   : > { %v3742_v15 = vmax.f32 %v3710_v57, 0.0 }
 0x35a   : > { %v3761_v61 = vpack.c.bf16 %v3741_v56, %v3739_v51  ;;  %v4067_v51 = vrot.slane %v4066_v44, 4  ;;  %v4076_v56 = vrot.slane %v4074_v13, 4  ;;  %v11780_v44 = vld [vmem:[#allocation3 + $0x10] ss:$8 sps:$4 sm:$0xff]  }
 0x35b   : > { %v3762_v54 = vpack.c.bf16 %v3742_v15, %v3740_v63  ;;  %v3624_v41 = vpop.f32.mrb[24].mxu0  ;;  %v4079_v63 = vrot.slane %v4077_v23, 5  ;;  %v13168_v15 = vld [vmem:[%s12257_s9 + $0x78] sm:$0xf] }
 0x35c   : > { %v3711_v16 = vadd.f32 %v13105_v59, %v3624_v41  ;;  %v3626_v18 = vpop.f32.mrb[25].mxu0  ;;  %v13171_v41 = vld [vmem:[%s12257_s9 + $0x74] sm:$0x1]  ;;  %v4072_v38 = vsel %vm12287_vm2, %v4067_v51, %v4071_v25 }
 0x35d   : > { %v3712_v35 = vadd.f32 %v13109_v14, %v3626_v18  ;;  %v3628_v48 = vpop.f32.mrb[26].mxu0  ;;  %3967 = vmatprep.mubr.bf16.mxu1 %v3762_v54  ;;  %v4089_v54 = vrot.slane %v4087_v20, 4  ;;  %v4098_v18 = vshrl.u32 %v13168_v15, 16  ;;  %v4080_v46 = vor.u32 %v4079_v63, %v4076_v56  ;;  %v11785_v20 = vld [vmem:[#allocation3 + $0x24] ss:$8 sps:$4 sm:$0xff]  }
 0x35e   : > { %v3713_v36 = vadd.f32 %v13105_v59, %v3628_v48  ;;  %v3630_v55 = vpop.f32.mrb[27].mxu0  ;;  %3968 = vmatmul.mubr.bf16.gmra.mrb[20].mxu1 %v3761_v61  ;;  %v3743_v5 = vmax.f32 %v3711_v16, 0.0  ;;  %v13174_v16 = vld [vmem:[%s12257_s9 + $0x7c] sm:$0xf]  ;;  %v4062_v48 = vsel %vm12287_vm2, %v4057_v19, %v4061_v10  ;;  %v11783_v19 = vld [vmem:[#allocation3 + $0x20] ss:$8 sps:$4 sm:$0xff]  }
 0x35f   : > { %v3714_v43 = vadd.f32 %v13109_v14, %v3630_v55  ;;  %v3744_v31 = vmax.f32 %v3712_v35, 0.0  ;;  %v4101_v35 = vshll.u32 %v13168_v15, 16  ;;  %v4093_v55 = vshll.u32 %v13171_v41, 16  ;;  %v13226_v63 = vld [vmem:[%s12257_s9 + $0x8c] sm:$0x1] }
 0x360   : > { %v3745_v39 = vmax.f32 %v3713_v36, 0.0  ;;  %v4107_v53 = vshll.u32 %v13174_v16, 16  ;;  %v4111_v49 = vshrl.u32 %v13174_v16, 16 }
 0x361   : > { %v3746_v9 = vmax.f32 %v3714_v43, 0.0  ;;  %v4100_v43 = vrot.slane %v4098_v18, 4  ;;  %v11788_v18 = vld [vmem:[#allocation3 + $0x34] ss:$8 sps:$4 sm:$0xff]  }
 0x362   : > { %v3763_v42 = vpack.c.bf16 %v3745_v39, %v3743_v5  ;;  %v4103_v5 = vrot.slane %v4101_v35, 5  ;;  %v10363_v39 = vcombine.low %v4062_v48, %v4072_v38  ;;  %v13189_v10 = vrot.slane %v4107_v53, 5 }
 0x363   : > { %v3764_v24 = vpack.c.bf16 %v3746_v9, %v3744_v31  ;;  %v3634_v32 = vpop.f32.mrb[28].mxu0  ;;  %v11777_v31 = vld [vmem:[#allocation3] ss:$8 sps:$4 sm:$0xff]   ;;  %v4081_v9 = vrot.slane %v4080_v46, 4  ;;  %v4113_v26 = vrot.slane %v4111_v49, 4 }
 0x364   : > { %v3715_v8 = vadd.f32 %v13105_v59, %v3634_v32  ;;  %v3636_v47 = vpop.f32.mrb[29].mxu0  ;;  %v11782_v32 = vld [vmem:[#allocation3 + $0x14] ss:$8 sps:$4 sm:$0xff]  }
 0x365   : > { %v3716_v21 = vadd.f32 %v13109_v14, %v3636_v47  ;;  %v3638_v3 = vpop.f32.mrb[30].mxu0  ;;  %3975 = vmatprep.mubr.bf16.mxu1 %v3764_v24  ;;  %v13192_v24 = vld [vmem:[%s12257_s9 + $0x84] sm:$0xf]  ;;  %v4104_v47 = vor.u32 %v4103_v5, %v4100_v43  ;;  %v4114_v13 = vor.u32 %v4113_v26, %v13189_v10  ;;  %v11786_v5 = vld [vmem:[#allocation3 + $0x30] ss:$8 sps:$4 sm:$0xff]  }
 0x366   : > { %v3717_v62 = vadd.f32 %v13105_v59, %v3638_v3  ;;  %v3640_v6 = vpop.f32.mrb[31].mxu0  ;;  %3976 = vmatmul.mubr.bf16.gmra.mrb[24].mxu1 %v3763_v42  ;;  %v3747_v28 = vmax.f32 %v3715_v8, 0.0  ;;  %v4095_v42 = vrot.slane %v4093_v55, 5  ;;  %v13195_v8 = vld [vmem:[%s12257_s9 + $0x88] sm:$0xf]  ;;  %v12124_v3 = vmov 0.0  }
 0x367   : > { %v3718_v50 = vadd.f32 %v13109_v14, %v3640_v6  ;;  %v3748_v22 = vmax.f32 %v3716_v21, 0.0  ;;  %v4085_v14 = vrot.slane %v4083_v58, 5  ;;  %v4117_v21 = vshll.u32 %v13187_v27, 16  ;;  %240 = vst.msk [vmem:[#allocation2] sm:$0xff] %vm239_vm6, %v12124_v3  ;;  %241 = vst.msk [vmem:[#allocation2 + $0x8] sm:$0xff] %vm239_vm6, %v12124_v3 }
 0x368   : > { %v3749_v4 = vmax.f32 %v3717_v62, 0.0  ;;  %245 = vst.msk [vmem:[#allocation2 + $0x198] sm:$0xff] %vm239_vm6, %v12124_v3  ;;  %246 = vst.msk [vmem:[#allocation2 + $0x1a0] sm:$0xff] %vm239_vm6, %v12124_v3  ;;  %v4122_v34 = vshrl.u32 %v13192_v24, 16  ;;  %v4125_v62 = vshll.u32 %v13192_v24, 16  ;;  %v4131_v23 = vshll.u32 %v13195_v8, 16 }
 0x369   : > { %v3750_v59 = vmax.f32 %v3718_v50, 0.0  ;;  %v4090_v36 = vor.u32 %v4089_v54, %v4085_v14  ;;  %v4086_v29 = vsel %vm12287_vm2, %v4081_v9, %v4085_v14  ;;  %v4135_v50 = vshrl.u32 %v13195_v8, 16  ;;  %v13217_v58 = vld [vmem:[%s12257_s9 + $0x90] sm:$0xf]  ;;  %243 = vst.msk [vmem:[#allocation2 + $0x10] sm:$0x3] %vm242_vm7, %v12124_v3 }
 0x36a   : > { %v3765_v57 = vpack.c.bf16 %v3749_v4, %v3747_v28  ;;  %v4105_v28 = vrot.slane %v4104_v47, 4  ;;  %v4119_v4 = vrot.slane %v4117_v21, 5  ;;  %247 = vst.msk [vmem:[#allocation2 + $0x1a8] sm:$0x3] %vm242_vm7, %v12124_v3  ;;  %v4124_v25 = vrot.slane %v4122_v34, 4 }
 0x36b   : > { %v3766_v61 = vpack.c.bf16 %v3750_v59, %v3748_v22  ;;  %v4091_v12 = vrot.slane %v4090_v36, 4  ;;  %v13220_v22 = vld [vmem:[%s12257_s9 + $0x94] sm:$0xf]  ;;  %v4146_v51 = vshrl.u32 %v13217_v58, 16  ;;  %v4115_v56 = vrot.slane %v4114_v13, 4 }
 0x36c   : > { %v4137_v14 = vrot.slane %v4135_v50, 4  ;;  %v4149_v54 = vshll.u32 %v13217_v58, 16  ;;  %v4155_v35 = vshll.u32 %v13220_v22, 16  ;;  %v4159_v48 = vshrl.u32 %v13220_v22, 16  ;;  %v13250_v21 = vld [vmem:[%s12257_s9 + $0x9c] sm:$0xf] }
 0x36d   : > { %3983 = vmatprep.mubr.bf16.mxu1 %v3766_v61  ;;  %v4096_v6 = vsel %vm12287_vm2, %v4091_v12, %v4095_v42  ;;  %v13228_v61 = vrot.slane %v4131_v23, 5  ;;  %v4141_v36 = vshll.u32 %v13226_v63, 16  ;;  %v4148_v55 = vrot.slane %v4146_v51, 4  ;;  %v11791_v42 = vld [vmem:[#allocation3 + $0x44] ss:$8 sps:$4 sm:$0xff]  }
 0x36e   : > { %3984 = vmatmul.mubr.bf16.gmra.mrb[28].mxu1 %v3765_v57  ;;  %v10364_v59 = vcombine.low %v4086_v29, %v4096_v6  ;;  %v4127_v57 = vrot.slane %v4125_v62, 5  ;;  %v7754_v38 = vld [vmem:[#allocation2 + $0x1] sm:$0xff]  ;;  %v4110_v53 = vsel %vm12287_vm2, %v4105_v28, %v13189_v10  ;;  %v4120_v49 = vsel %vm12287_vm2, %v4115_v56, %v4119_v4  ;;  %v11789_v23 = vld [vmem:[#allocation3 + $0x40] ss:$8 sps:$4 sm:$0xff]   ;;  %250 = vst.msk [vmem:[#allocation2 + $0x18] sm:$0x1] %vm249_vm8, %v12124_v3 }
 0x36f   : > { %4401 = vmatprep.mubr.bf16.mxu1 %v15422_v0  ;;  %7818 = vrot.lane.b32.xlu0 %v7754_v38, %s12125_s14  ;;  %v4138_v43 = vor.u32 %v4137_v14, %v13228_v61  ;;  %v13245_v9 = vrot.slane %v4155_v35, 5  ;;  %v4161_v12 = vrot.slane %v4159_v48, 4  ;;  %v10365_v10 = vcombine.low %v4110_v53, %v4120_v49  ;;  %v13253_v29 = vld [vmem:[%s12257_s9 + $0xa0] sm:$0xf]  ;;  %v8745_v48 = vld [vmem:[#allocation2 + $0x198] sm:$0xff] }
 0x370   : > { %v4128_v46 = vor.u32 %v4127_v57, %v4124_v25  ;;  %v7755_v26 = vld [vmem:[#allocation2 + $0x9] sm:$0xff]  ;;  %v4143_v6 = vrot.slane %v4141_v36, 5  ;;  %v4170_v28 = vshrl.u32 %v13250_v21, 16  ;;  %v4173_v4 = vshll.u32 %v13250_v21, 16  ;;  %v8746_v35 = vld [vmem:[#allocation2 + $0x1a0] sm:$0xff] }
 0x371   : > { %v7946_v34 = vld [vmem:[#allocation2 + $0x2] sm:$0xff]  ;;  %v4139_v62 = vrot.slane %v4138_v43, 4  ;;  %v4162_v50 = vor.u32 %v4161_v12, %v13245_v9  ;;  %v13291_v43 = vld [vmem:[%s12257_s9 + $0xac] sm:$0xf]  ;;  %251 = vst.msk [vmem:[#allocation2 + $0x30] sm:$0x1] %vm249_vm8, %v12124_v3 }
 0x372   : > { %v4129_v47 = vrot.slane %v4128_v46, 4  ;;  %v11792_v14 = vld [vmem:[#allocation3 + $0x50] ss:$8 sps:$4 sm:$0xff]   ;;  %v13274_v38 = vrot.slane %v4170_v28, 4  ;;  %v13285_v53 = vld [vmem:[%s12257_s9 + $0xa4] sm:$0x1] }
 0x373   : > { %7820 = vrot.lane.b32.xlu0 %v7755_v26, %s12125_s14  ;;  %v4144_v57 = vsel %vm12287_vm2, %v4139_v62, %v4143_v6  ;;  %v13288_v49 = vld [vmem:[%s12257_s9 + $0xa8] sm:$0xf]  ;;  %v11800_v12 = vld [vmem:[#allocation3 + $0x74] ss:$8 sps:$4 sm:$0xff]   ;;  %v8937_v26 = vld [vmem:[#allocation2 + $0x199] sm:$0xff]  ;;  %v4203_v6 = vshll.u32 %v13291_v43, 16 }
 0x374   : > { %v4134_v25 = vsel %vm12287_vm2, %v4129_v47, %v13228_v61  ;;  %v13276_v61 = vrot.slane %v4173_v4, 5  ;;  %252 = vst.msk [vmem:[#allocation2 + $0x48] sm:$0x1] %vm249_vm8, %v12124_v3  ;;  %253 = vst.msk [vmem:[#allocation2 + $0x60] sm:$0x1] %vm249_vm8, %v12124_v3  ;;  %v4197_v62 = vshll.u32 %v13288_v49, 16 }
 0x375   : > { %254 = vst.msk [vmem:[#allocation2 + $0x78] sm:$0x1] %vm249_vm8, %v12124_v3  ;;  %255 = vst.msk [vmem:[#allocation2 + $0x90] sm:$0x1] %vm249_vm8, %v12124_v3 }
 0x376   : > { %4402 = vmatmul.mubr.bf16.vlgmr.msra.gmra.mrb[32].mxu1 %v10363_v39  ;;  %v13243_v39 = vld [vmem:[%s12257_s9 + $0x98] sm:$0x1]  ;;  %256 = vst.msk [vmem:[#allocation2 + $0xa8] sm:$0x1] %vm249_vm8, %v12124_v3  ;;  %257 = vst.msk [vmem:[#allocation2 + $0xc0] sm:$0x1] %vm249_vm8, %v12124_v3 }
 0x377   : > { %4611 = vmatpush1.bf16.msra.mxu1 %v11777_v31  ;;  %4411 = vmatprep.mubr.bf16.mxu1 %v15422_v0  ;;  %v4151_v31 = vrot.slane %v4149_v54, 5  ;;  %v4165_v13 = vshll.u32 %v13243_v39, 16  ;;  %v13272_v54 = vrot.slane %v4162_v50, 4  ;;  %258 = vst.msk [vmem:[#allocation2 + $0xd8] sm:$0x1] %vm249_vm8, %v12124_v3  ;;  %v9130_v50 = vld [vmem:[#allocation2 + $0x1a2] sm:$0xff] }
 0x378   : > { %4612 = vmatprep.subr.bf16.mxu1 %v11782_v32  ;;  %v7947_v32 = vld [vmem:[#allocation2 + $0xa] sm:$0xff]  ;;  %8010 = vrot.lane.b32.xlu0 %v7946_v34, %s12126_s15  ;;  %v4189_v34 = vshll.u32 %v13285_v53, 16  ;;  %259 = vst.msk [vmem:[#allocation2 + $0xf0] sm:$0x1] %vm249_vm8, %v12124_v3  ;;  %260 = vst.msk [vmem:[#allocation2 + $0x108] sm:$0x1] %vm249_vm8, %v12124_v3 }
 0x379   : > { %8012 = vrot.lane.b32.xlu1 %v7947_v32, %s12126_s15  ;;  %v13270_v56 = vrot.slane %v4165_v13, 5  ;;  %261 = vst.msk [vmem:[#allocation2 + $0x120] sm:$0x1] %vm249_vm8, %v12124_v3  ;;  %262 = vst.msk [vmem:[#allocation2 + $0x138] sm:$0x1] %vm249_vm8, %v12124_v3 }
 0x37a   : > { %263 = vst.msk [vmem:[#allocation2 + $0x150] sm:$0x1] %vm249_vm8, %v12124_v3  ;;  %264 = vst.msk [vmem:[#allocation2 + $0x168] sm:$0x1] %vm249_vm8, %v12124_v3  ;;  %v11798_v13 = vld [vmem:[#allocation3 + $0x70] ss:$8 sps:$4 sm:$0xff]  }
 0x37b   : > { %4613 = vmatpush1.bf16.msra.mxu1 %v11780_v44  ;;  %v4152_v44 = vor.u32 %v4151_v31, %v4148_v55  ;;  %v10366_v55 = vcombine.low %v4134_v25, %v4144_v57  ;;  %v4168_v32 = vsel %vm12287_vm2, %v13272_v54, %v13270_v56  ;;  %265 = vst.msk [vmem:[#allocation2 + $0x180] sm:$0x1] %vm249_vm8, %v12124_v3  ;;  %266 = vst.msk [vmem:[#allocation2 + $0x29] sm:$0x1] %vm249_vm8, %v12124_v3  ;;  %v13380_v56 = vld [vmem:[%s12257_s9 + $0xb0] sm:$0x1] }
 0x37c   : > { %4614 = vmatprep.subr.bf16.mxu1 %v11785_v20  ;;  %v11794_v20 = vld [vmem:[#allocation3 + $0x54] ss:$8 sps:$4 sm:$0xff]   ;;  %8839 = vrot.lane.b32.xlu0 %v8745_v48, %s12127_s16  ;;  %267 = vst.msk [vmem:[#allocation2 + $0x41] sm:$0x1] %vm249_vm8, %v12124_v3  ;;  %268 = vst.msk [vmem:[#allocation2 + $0x59] sm:$0x1] %vm249_vm8, %v12124_v3 }
 0x37d   : > { %v13268_v51 = vrot.slane %v4152_v44, 4  ;;  %8841 = vrot.lane.b32.xlu1 %v8746_v35, %s12127_s16  ;;  %269 = vst.msk [vmem:[#allocation2 + $0x71] sm:$0x1] %vm249_vm8, %v12124_v3  ;;  %270 = vst.msk [vmem:[#allocation2 + $0x89] sm:$0x1] %vm249_vm8, %v12124_v3  ;;  %v4207_v44 = vshrl.u32 %v13291_v43, 16 }
 0x37e   : > { %4412 = vmatmul.mubr.bf16.gmra.mrb[36].mxu1 %v10364_v59  ;;  %v4179_v59 = vshll.u32 %v13253_v29, 16  ;;  %271 = vst.msk [vmem:[#allocation2 + $0xa1] sm:$0x1] %vm249_vm8, %v12124_v3  ;;  %272 = vst.msk [vmem:[#allocation2 + $0xb9] sm:$0x1] %vm249_vm8, %v12124_v3  ;;  %v4199_v25 = vrot.slane %v4197_v62, 5 }
 0x37f   : > { %4421 = vmatprep.mubr.bf16.mxu1 %v15422_v0  ;;  %4615 = vmatpush1.bf16.msra.mxu1 %v11783_v19  ;;  %v4183_v19 = vshrl.u32 %v13253_v29, 16  ;;  %v4158_v31 = vsel %vm12287_vm2, %v13268_v51, %v13245_v9  ;;  %273 = vst.msk [vmem:[#allocation2 + $0xd1] sm:$0x1] %vm249_vm8, %v12124_v3  ;;  %274 = vst.msk [vmem:[#allocation2 + $0xe9] sm:$0x1] %vm249_vm8, %v12124_v3  ;;  %v4194_v9 = vshrl.u32 %v13288_v49, 16 }
 0x380   : > { %4616 = vmatprep.subr.bf16.mxu1 %v11788_v18  ;;  %v11797_v18 = vld [vmem:[#allocation3 + $0x64] ss:$8 sps:$4 sm:$0xff]   ;;  %v13278_v46 = vrot.slane %v4179_v59, 5  ;;  %9031 = vrot.lane.b32.xlu0 %v8937_v26, %s12128_s17  ;;  %275 = vst.msk [vmem:[#allocation2 + $0x101] sm:$0x1] %vm249_vm8, %v12124_v3  ;;  %v4191_v59 = vrot.slane %v4189_v34, 5 }
 0x381   : > { %v13280_v36 = vrot.slane %v4183_v19, 4  ;;  %276 = vst.msk [vmem:[#allocation2 + $0x119] sm:$0x1] %vm249_vm8, %v12124_v3  ;;  %277 = vst.msk [vmem:[#allocation2 + $0x131] sm:$0x1] %vm249_vm8, %v12124_v3  ;;  %v4196_v19 = vrot.slane %v4194_v9, 4 }
 0x382   : > { %278 = vst.msk [vmem:[#allocation2 + $0x149] sm:$0x1] %vm249_vm8, %v12124_v3  ;;  %279 = vst.msk [vmem:[#allocation2 + $0x161] sm:$0x1] %vm249_vm8, %v12124_v3  ;;  %v4205_v57 = vrot.slane %v4203_v6, 5  ;;  %v4209_v51 = vrot.slane %v4207_v44, 4 }
 0x383   : > { %4617 = vmatpush1.bf16.msra.mxu1 %v11786_v5  ;;  %v11795_v5 = vld [vmem:[#allocation3 + $0x60] ss:$8 sps:$4 sm:$0xff]   ;;  %v4186_v47 = vor.u32 %v13280_v36, %v13278_v46  ;;  %280 = vst.msk [vmem:[#allocation2 + $0x179] sm:$0x1] %vm249_vm8, %v12124_v3  ;;  %281 = vst.msk [vmem:[#allocation2 + $0x191] sm:$0x1] %vm249_vm8, %v12124_v3  ;;  %v4200_v48 = vor.u32 %v4199_v25, %v4196_v19  ;;  %v10387_v25 = vcombine.low %v13136_v60, %v13139_v7 }
 0x384   : > { %4618 = vmatprep.subr.bf16.mxu1 %v11791_v42  ;;  %v8938_v42 = vld [vmem:[#allocation2 + $0x1a1] sm:$0xff]  ;;  %v13386_v54 = vld [vmem:[%s12257_s9 + $0xb8] sm:$0xf]  ;;  %v13400_v9 = vld [vmem:[%s12257_s9 + $0xbc] sm:$0x1] }
 0x385   : > { %9033 = vrot.lane.b32.xlu1 %v8938_v42, %s12128_s17  ;;  %v9129_v3 = vld [vmem:[#allocation2 + $0x19a] sm:$0xff]  ;;  %v4187_v4 = vrot.slane %v4186_v47, 4 }
 0x386   : > { %4422 = vmatmul.mubr.bf16.gmra.mrb[40].mxu1 %v10365_v10  ;;  %v4176_v10 = vor.u32 %v13276_v61, %v13274_v38  ;;  %9223 = vrot.lane.b32.xlu0 %v9129_v3, %s15432_s23  ;;  %v4210_v38 = vor.u32 %v4209_v51, %v4205_v57  ;;  %v4213_v61 = vshll.u32 %v13380_v56, 16  ;;  %v11808_v51 = vld [vmem:[#allocation3 + $0x114] ss:$8 sps:$4 sm:$0xff]   ;;  %v11814_v60 = vld [vmem:[#allocation3 + $0x130] ss:$8 sps:$4 sm:$0xff]  }
 0x387   : > { %4431 = vmatprep.mubr.bf16.mxu1 %v15422_v0  ;;  %4619 = vmatpush1.bf16.msra.mxu1 %v11789_v23  ;;  %v11804_v23 = vld [vmem:[#allocation3 + $0x104] ss:$8 sps:$4 sm:$0xff]   ;;  %v4192_v35 = vsel %vm12287_vm2, %v4187_v4, %v4191_v59 }
 0x388   : > { %4620 = vmatprep.subr.bf16.mxu1 %v11794_v20  ;;  %v10367_v20 = vcombine.low %v4158_v31, %v4168_v32  ;;  %v4177_v28 = vrot.slane %v4176_v10, 4  ;;  %v4231_v31 = vshrl.u32 %v13386_v54, 16  ;;  %v4211_v42 = vrot.slane %v4210_v38, 4  ;;  %v11810_v38 = vld [vmem:[#allocation3 + $0x120] ss:$8 sps:$4 sm:$0xff]  }
 0x389   : > { %9225 = vrot.lane.b32.xlu1 %v9130_v50, %s15432_s23  ;;  %v4215_v26 = vrot.slane %v4213_v61, 5  ;;  %v11816_v61 = vld [vmem:[#allocation3 + $0x134] ss:$8 sps:$4 sm:$0xff]  }
 0x38a   : > { %v4233_v34 = vrot.slane %v4231_v31, 4  ;;  %v11824_v31 = vld [vmem:[#allocation3 + $0x154] ss:$8 sps:$4 sm:$0xff]  }
 0x38b   : > { %4621 = vmatpush1.bf16.msra.mxu1 %v11792_v14  ;;  %v13383_v14 = vld [vmem:[%s12257_s9 + $0xb4] sm:$0xf]  ;;  %v4216_v6 = vsel %vm12287_vm2, %v4211_v42, %v4215_v26  ;;  %v11826_v42 = vld [vmem:[#allocation3 + $0x160] ss:$8 sps:$4 sm:$0xff]   ;;  %v11832_v26 = vld [vmem:[#allocation3 + $0x174] ss:$8 sps:$4 sm:$0xff]  }
 0x38c   : > { %4622 = vmatprep.subr.bf16.mxu1 %v11797_v18  ;;  %v4182_v18 = vsel %vm12287_vm2, %v4177_v28, %v13278_v46  ;;  %v4218_v36 = vshrl.u32 %v13383_v14, 16 }
 0x38d   : > { %v10368_v46 = vcombine.low %v4182_v18, %v4192_v35  ;;  %v11806_v18 = vld [vmem:[#allocation3 + $0x110] ss:$8 sps:$4 sm:$0xff]   ;;  %v11812_v35 = vld [vmem:[#allocation3 + $0x124] ss:$8 sps:$4 sm:$0xff]  }
 0x38e   : > { %4432 = vmatmul.mubr.bf16.gmra.mrb[44].mxu1 %v10366_v55  ;;  %v4221_v55 = vshll.u32 %v13383_v14, 16  ;;  %v4220_v32 = vrot.slane %v4218_v36, 4  ;;  %v11820_v36 = vld [vmem:[#allocation3 + $0x144] ss:$8 sps:$4 sm:$0xff]  }
 0x38f   : > { %4441 = vmatprep.mubr.bf16.mxu1 %v15422_v0  ;;  %4623 = vmatpush1.bf16.msra.mxu1 %v11795_v5  ;;  %v4227_v5 = vshll.u32 %v13386_v54, 16 }
 0x390   : > { %4624 = vmatprep.subr.bf16.mxu1 %v11800_v12  ;;  %v4201_v12 = vrot.slane %v4200_v48, 4  ;;  %v4223_v10 = vrot.slane %v4221_v55, 5  ;;  %v10388_v48 = vcombine.low %v13153_v45, %v13157_v37  ;;  %v10389_v55 = vcombine.low %v13168_v15, %v13174_v16  ;;  %v11822_v45 = vld [vmem:[#allocation3 + $0x150] ss:$8 sps:$4 sm:$0xff]  }
 0x391   : > { %v4229_v47 = vrot.slane %v4227_v5, 5  ;;  %v11818_v5 = vld [vmem:[#allocation3 + $0x140] ss:$8 sps:$4 sm:$0xff]   ;;  %v11830_v15 = vld [vmem:[#allocation3 + $0x170] ss:$8 sps:$4 sm:$0xff]  }
 0x392   : > { %v4206_v62 = vsel %vm12287_vm2, %v4201_v12, %v4205_v57  ;;  %v4224_v44 = vor.u32 %v4223_v10, %v4220_v32  ;;  %v11802_v57 = vld [vmem:[#allocation3 + $0x100] ss:$8 sps:$4 sm:$0xff]   ;;  %v10390_v12 = vcombine.low %v13192_v24, %v13195_v8  ;;  %v11835_v32 = vld [vmem:[#allocation3 + $0x184] ss:$8 sps:$4 sm:$0xff]   ;;  %v10391_v10 = vcombine.low %v13217_v58, %v13220_v22 }
 0x393   : > { %4625 = vmatpush1.bf16.msra.mxu1 %v11798_v13  ;;  %v4234_v13 = vor.u32 %v4233_v34, %v4229_v47  ;;  %v10369_v50 = vcombine.low %v4206_v62, %v4216_v6  ;;  %v10392_v24 = vcombine.low %v13250_v21, %v13253_v29  ;;  %v4749_v58 = vrot.slane %v13139_v7, 5  ;;  %v10411_v34 = vld [vmem:[%s12257_s9 + $0x60] sm:$0xe]  ;;  %v10412_v7 = vld [vmem:[%s12257_s9 + $0x6c] sm:$0xe] }
 0x394   : > { %4931 = vmatprep.subr.bf16.mxu1 %v11804_v23  ;;  %v4237_v23 = vshll.u32 %v13400_v9, 16  ;;  %v4225_v3 = vrot.slane %v4224_v44, 4  ;;  %v10394_v62 = vcombine.low %v13383_v14, %v13386_v54  ;;  %v10419_v6 = vrot.slane %v10411_v34, 9 }
 0x395   : > { %v4751_v44 = vrot.slane %v4749_v58, 4  ;;  %v4752_v21 = vrot.slane %v13150_v52, 5  ;;  %v10420_v14 = vrot.slane %v10412_v7, 9  ;;  %v11838_v52 = vld [vmem:[#allocation3 + $0x194] ss:$8 sps:$4 sm:$0xff]  }
 0x396   : > { %4442 = vmatmul.mubr.bf16.gmra.mrb[48].mxu1 %v10367_v20  ;;  %v4235_v20 = vrot.slane %v4234_v13, 4  ;;  %v4239_v28 = vrot.slane %v4237_v23, 5  ;;  %v4230_v4 = vsel %vm12287_vm2, %v4225_v3, %v4229_v47  ;;  %v10393_v47 = vcombine.low %v13288_v49, %v13291_v43  ;;  %v11833_v3 = vld [vmem:[#allocation3 + $0x180] ss:$8 sps:$4 sm:$0xff]  }
 0x397   : > { %4451 = vmatprep.mubr.bf16.mxu1 %v15422_v0  ;;  %v4750_v13 = vsel %vm12427_vm5, %v10419_v6, %v4749_v58  ;;  %v4753_v49 = vsel %vm12427_vm5, %v4751_v44, %v4752_v21  ;;  %v4756_v23 = vrot.slane %v13157_v37, 5  ;;  %v11836_v37 = vld [vmem:[#allocation3 + $0x190] ss:$8 sps:$4 sm:$0xff]   ;;  %v4780_v21 = vrot.slane %v13243_v39, 5 }
 0x398   : > { %v4240_v59 = vsel %vm12287_vm2, %v4235_v20, %v4239_v28  ;;  %v4759_v28 = vrot.slane %v13171_v41, 5 }
 0x399   : > { %v10370_v19 = vcombine.low %v4230_v4, %v4240_v59  ;;  %v4758_v20 = vrot.slane %v4756_v23, 4  ;;  %v4757_v4 = vsel %vm12427_vm5, %v10420_v14, %v4756_v23  ;;  %v10416_v14 = vld [vmem:[%s12257_s9 + $0x9c] sm:$0xe] }
 0x39b   : > { %v4760_v59 = vsel %vm12427_vm5, %v4758_v20, %v4759_v28  ;;  %v11860_v20 = vld [vmem:[#allocation3 + $0x204] ss:$8 sps:$4 sm:$0xff]  }
 0x39e   : > { %4452 = vmatmul.mubr.bf16.gmra.mrb[52].mxu1 %v10368_v46  ;;  %v11828_v46 = vld [vmem:[#allocation3 + $0x164] ss:$8 sps:$4 sm:$0xff]  }
 0x39f   : > { %4461 = vmatprep.mubr.bf16.mxu1 %v15422_v0 }
 0x3a6   : > { %4462 = vmatmul.mubr.bf16.gmra.mrb[56].mxu1 %v10369_v50  ;;  %v10427_v50 = vcombine.low %v4750_v13, %v4753_v49  ;;  %v11851_v13 = vld [vmem:[#allocation3 + $0x1e0] ss:$8 sps:$4 sm:$0xff]  }
 0x3a7   : > { %4471 = vmatprep.mubr.bf16.mxu1 %v15422_v0 }
 0x3ae   : > { %4472 = vmatmul.mubr.bf16.gmra.mrb[60].mxu1 %v10370_v19  ;;  %v4763_v19 = vrot.slane %v13174_v16, 5 }
 0x3af   : > { %4642 = vmatprep.mubr.bf16.mxu1 %v15422_v0 }
 0x3b6   : > { %4643 = vmatmul.mubr.bf16.vlgmr.msra.gmra.mrb[32].mxu1 %v10387_v25  ;;  %v10413_v25 = vld [vmem:[%s12257_s9 + $0x78] sm:$0xe] }
 0x3b7   : > { %4932 = vmatpush1.bf16.msra.mxu1 %v11802_v57  ;;  %4652 = vmatprep.mubr.bf16.mxu1 %v15422_v0  ;;  %v11841_v57 = vld [vmem:[#allocation3 + $0x1a4] ss:$8 sps:$4 sm:$0xff]   ;;  %v10421_v41 = vrot.slane %v10413_v25, 9 }
 0x3b8   : > { %4933 = vmatprep.subr.bf16.mxu1 %v11808_v51  ;;  %v10428_v51 = vcombine.low %v4757_v4, %v4760_v59 }
 0x3bb   : > { %4934 = vmatpush1.bf16.msra.mxu1 %v11806_v18  ;;  %v4765_v18 = vrot.slane %v4763_v19, 4 }
 0x3bc   : > { %4935 = vmatprep.subr.bf16.mxu1 %v11812_v35  ;;  %v4766_v35 = vrot.slane %v13187_v27, 5 }
 0x3be   : > { %4653 = vmatmul.mubr.bf16.gmra.mrb[36].mxu1 %v10388_v48  ;;  %v11839_v48 = vld [vmem:[#allocation3 + $0x1a0] ss:$8 sps:$4 sm:$0xff]   ;;  %v4767_v16 = vsel %vm12427_vm5, %v4765_v18, %v4766_v35 }
 0x3bf   : > { %4662 = vmatprep.mubr.bf16.mxu1 %v15422_v0  ;;  %4936 = vmatpush1.bf16.msra.mxu1 %v11810_v38  ;;  %v11844_v38 = vld [vmem:[#allocation3 + $0x1b4] ss:$8 sps:$4 sm:$0xff]  }
 0x3c0   : > { %4937 = vmatprep.subr.bf16.mxu1 %v11816_v61  ;;  %v4764_v61 = vsel %vm12427_vm5, %v10421_v41, %v4763_v19  ;;  %v10424_v19 = vrot.slane %v10416_v14, 9 }
 0x3c1   : > { %v10429_v27 = vcombine.low %v4764_v61, %v4767_v16  ;;  %v10417_v61 = vld [vmem:[%s12257_s9 + $0xa8] sm:$0xe] }
 0x3c3   : > { %4938 = vmatpush1.bf16.msra.mxu1 %v11814_v60  ;;  %v4770_v60 = vrot.slane %v13195_v8, 5 }
 0x3c4   : > { %4939 = vmatprep.subr.bf16.mxu1 %v11820_v36  ;;  %v11842_v36 = vld [vmem:[#allocation3 + $0x1b0] ss:$8 sps:$4 sm:$0xff]  }
 0x3c6   : > { %4663 = vmatmul.mubr.bf16.gmra.mrb[40].mxu1 %v10389_v55  ;;  %v10414_v55 = vld [vmem:[%s12257_s9 + $0x84] sm:$0xe] }
 0x3c7   : > { %4672 = vmatprep.mubr.bf16.mxu1 %v15422_v0  ;;  %4940 = vmatpush1.bf16.msra.mxu1 %v11818_v5  ;;  %v11847_v5 = vld [vmem:[#allocation3 + $0x1c4] ss:$8 sps:$4 sm:$0xff]  }
 0x3c8   : > { %4941 = vmatprep.subr.bf16.mxu1 %v11824_v31  ;;  %v10422_v31 = vrot.slane %v10414_v55, 9 }
 0x3ca   : > { %v4771_v8 = vsel %vm12427_vm5, %v10422_v31, %v4770_v60 }
 0x3cb   : > { %4942 = vmatpush1.bf16.msra.mxu1 %v11822_v45  ;;  %v4772_v45 = vrot.slane %v4770_v60, 4 }
 0x3cc   : > { %4943 = vmatprep.subr.bf16.mxu1 %v11828_v46  ;;  %v4773_v46 = vrot.slane %v13226_v63, 5  ;;  %v11853_v63 = vld [vmem:[#allocation3 + $0x1e4] ss:$8 sps:$4 sm:$0xff]  }
 0x3ce   : > { %4673 = vmatmul.mubr.bf16.gmra.mrb[44].mxu1 %v10390_v12  ;;  %v11845_v12 = vld [vmem:[#allocation3 + $0x1c0] ss:$8 sps:$4 sm:$0xff]  }
 0x3cf   : > { %4682 = vmatprep.mubr.bf16.mxu1 %v15422_v0  ;;  %4944 = vmatpush1.bf16.msra.mxu1 %v11826_v42  ;;  %v11850_v42 = vld [vmem:[#allocation3 + $0x1d4] ss:$8 sps:$4 sm:$0xff]  }
 0x3d0   : > { %4945 = vmatprep.subr.bf16.mxu1 %v11832_v26  ;;  %v4774_v26 = vsel %vm12427_vm5, %v4772_v45, %v4773_v46  ;;  %v4794_v45 = vrot.slane %v13380_v56, 5 }
 0x3d1   : > { %v10430_v58 = vcombine.low %v4771_v8, %v4774_v26  ;;  %v4798_v26 = vrot.slane %v13386_v54, 5 }
 0x3d3   : > { %4946 = vmatpush1.bf16.msra.mxu1 %v11830_v15  ;;  %v4777_v15 = vrot.slane %v13220_v22, 5  ;;  %v11856_v22 = vld [vmem:[#allocation3 + $0x1f4] ss:$8 sps:$4 sm:$0xff]  }
 0x3d4   : > { %5237 = vmatprep.subr.bf16.mxu1 %v11835_v32  ;;  %v11848_v32 = vld [vmem:[#allocation3 + $0x1d0] ss:$8 sps:$4 sm:$0xff]  }
 0x3d5   : > { %v4779_v44 = vrot.slane %v4777_v15, 4 }
 0x3d6   : > { %4683 = vmatmul.mubr.bf16.gmra.mrb[48].mxu1 %v10391_v10  ;;  %v10415_v10 = vld [vmem:[%s12257_s9 + $0x90] sm:$0xe] }
 0x3d7   : > { %4692 = vmatprep.mubr.bf16.mxu1 %v15422_v0  ;;  %v10423_v6 = vrot.slane %v10415_v10, 9  ;;  %v4781_v39 = vsel %vm12427_vm5, %v4779_v44, %v4780_v21 }
 0x3d9   : > { %v4778_v7 = vsel %vm12427_vm5, %v10423_v6, %v4777_v15  ;;  %v4801_v6 = vrot.slane %v13400_v9, 5 }
 0x3da   : > { %v10431_v4 = vcombine.low %v4778_v7, %v4781_v39 }
 0x3de   : > { %4693 = vmatmul.mubr.bf16.gmra.mrb[52].mxu1 %v10392_v24 }
 0x3df   : > { %4702 = vmatprep.mubr.bf16.mxu1 %v15422_v0 }
 0x3e6   : > { %4703 = vmatmul.mubr.bf16.gmra.mrb[56].mxu1 %v10393_v47 }
 0x3e7   : > { %4712 = vmatprep.mubr.bf16.mxu1 %v15422_v0 }
 0x3ee   : > { %4713 = vmatmul.mubr.bf16.gmra.mrb[60].mxu1 %v10394_v62 }
 0x3ef   : > { %4963 = vmatprep.mubr.bf16.mxu1 %v15422_v0 }
 0x3f6   : > { %4964 = vmatmul.mubr.bf16.vlgmr.msra.gmra.mrb[32].mxu1 %v10427_v50  ;;  %v4784_v50 = vrot.slane %v13253_v29, 5 }
 0x3f7   : > { %5238 = vmatpush1.bf16.msra.mxu1 %v11833_v3  ;;  %4973 = vmatprep.mubr.bf16.mxu1 %v15422_v0  ;;  %v11854_v3 = vld [vmem:[#allocation3 + $0x1f0] ss:$8 sps:$4 sm:$0xff]  }
 0x3f8   : > { %5239 = vmatprep.subr.bf16.mxu1 %v11838_v52  ;;  %v4786_v25 = vrot.slane %v4784_v50, 4 }
 0x3fb   : > { %5240 = vmatpush1.bf16.msra.mxu1 %v11836_v37 }
 0x3fc   : > { %5241 = vmatprep.subr.bf16.mxu1 %v11841_v57  ;;  %v4787_v57 = vrot.slane %v13285_v53, 5  ;;  %v4785_v53 = vsel %vm12427_vm5, %v10424_v19, %v4784_v50 }
 0x3fe   : > { %4974 = vmatmul.mubr.bf16.gmra.mrb[36].mxu1 %v10428_v51  ;;  %v4788_v35 = vsel %vm12427_vm5, %v4786_v25, %v4787_v57  ;;  %v11858_v25 = vld [vmem:[#allocation3 + $0x200] ss:$8 sps:$4 sm:$0xff]  }
 0x3ff   : > { %4983 = vmatprep.mubr.bf16.mxu1 %v15422_v0  ;;  %5242 = vmatpush1.bf16.msra.mxu1 %v11839_v48  ;;  %v4791_v48 = vrot.slane %v13291_v43, 5 }
 0x400   : > { %5243 = vmatprep.subr.bf16.mxu1 %v11844_v38 }
 0x401   : > { %v4793_v31 = vrot.slane %v4791_v48, 4 }
 0x403   : > { %5244 = vmatpush1.bf16.msra.mxu1 %v11842_v36  ;;  %v10432_v36 = vcombine.low %v4785_v53, %v4788_v35  ;;  %v4795_v56 = vsel %vm12427_vm5, %v4793_v31, %v4794_v45  ;;  %v11868_v35 = vld [vmem:[#allocation3 + $0x224] ss:$8 sps:$4 sm:$0xff]   ;;  %v11870_v31 = vld [vmem:[#allocation3 + $0x230] ss:$8 sps:$4 sm:$0xff]  }
 0x404   : > { %5245 = vmatprep.subr.bf16.mxu1 %v11847_v5  ;;  %v11876_v45 = vld [vmem:[#allocation3 + $0x244] ss:$8 sps:$4 sm:$0xff]  }
 0x406   : > { %4984 = vmatmul.mubr.bf16.gmra.mrb[40].mxu1 %v10429_v27  ;;  %v10425_v27 = vrot.slane %v10417_v61, 9  ;;  %v11861_v61 = vld [vmem:[%s12257_s9 + $0x78] sm:$0xff]  }
 0x407   : > { %4993 = vmatprep.mubr.bf16.mxu1 %v15422_v0  ;;  %5246 = vmatpush1.bf16.msra.mxu1 %v11845_v12 }
 0x408   : > { %5247 = vmatprep.subr.bf16.mxu1 %v11850_v42  ;;  %v4792_v8 = vsel %vm12427_vm5, %v10425_v27, %v4791_v48 }
 0x409   : > { %v10748_v24 = vpop.f32.mrb[0].mxu1 }
 0x40a   : > { %v10749_v47 = vpop.f32.mrb[1].mxu1 }
 0x40b   : > { %v10750_v34 = vadd.f32 %v10749_v47, %v10748_v24  ;;  %v10751_v62 = vpop.f32.mrb[2].mxu1  ;;  %5248 = vmatpush1.bf16.msra.mxu1 %v11848_v32  ;;  %v10418_v32 = vld [vmem:[%s12257_s9 + $0xb4] sm:$0xe]  ;;  %v10433_v24 = vcombine.low %v4792_v8, %v4795_v56  ;;  %v11874_v56 = vld [vmem:[#allocation3 + $0x240] ss:$8 sps:$4 sm:$0xff]  }
 0x40c   : > { %v10752_v49 = vpop.f32.mrb[3].mxu1  ;;  %5249 = vmatprep.subr.bf16.mxu1 %v11853_v63 }
 0x40d   : > { %3992 = vst.msk [vmem:[#allocation2 + $0x19] sm:$0xff] %vm239_vm6, %v10750_v34  ;;  %v10753_v23 = vadd.f32 %v10752_v49, %v10751_v62  ;;  %v10426_v34 = vrot.slane %v10418_v32, 9  ;;  %v4800_v62 = vrot.slane %v4798_v26, 4  ;;  %v11880_v32 = vld [vmem:[#allocation3 + $0x254] ss:$8 sps:$4 sm:$0xff]  }
 0x40e   : > { %4994 = vmatmul.mubr.bf16.gmra.mrb[44].mxu1 %v10430_v58 }
 0x40f   : > { %3993 = vst.msk [vmem:[#allocation2 + $0x21] sm:$0xff] %vm239_vm6, %v10753_v23  ;;  %5003 = vmatprep.mubr.bf16.mxu1 %v15422_v0  ;;  %5250 = vmatpush1.bf16.msra.mxu1 %v11851_v13  ;;  %v4799_v13 = vsel %vm12427_vm5, %v10426_v34, %v4798_v26  ;;  %v4802_v9 = vsel %vm12427_vm5, %v4800_v62, %v4801_v6  ;;  %v11882_v34 = vld [vmem:[#allocation3 + $0x260] ss:$8 sps:$4 sm:$0xff]   ;;  %v11888_v6 = vld [vmem:[#allocation3 + $0x274] ss:$8 sps:$4 sm:$0xff]  }
 0x410   : > { %5251 = vmatprep.subr.bf16.mxu1 %v11856_v22  ;;  %v10434_v7 = vcombine.low %v4799_v13, %v4802_v9  ;;  %v11873_v13 = vld [vmem:[%s12257_s9 + $0x9c] sm:$0xff]  }
 0x411   : > { %v10754_v28 = vpop.f32.mrb[4].mxu1 }
 0x412   : > { %v10755_v52 = vpop.f32.mrb[5].mxu1 }
 0x413   : > { %v10756_v59 = vadd.f32 %v10755_v52, %v10754_v28  ;;  %v10757_v37 = vpop.f32.mrb[6].mxu1  ;;  %5252 = vmatpush1.bf16.msra.mxu1 %v11854_v3 }
 0x414   : > { %v10758_v51 = vpop.f32.mrb[7].mxu1  ;;  %v7756_v41 = vld [vmem:[#allocation2 + $0x19] sm:$0xff]  ;;  %5726 = vmatprep.subr.bf16.mxu1 %v11860_v20 }
 0x415   : > { %v8138_v18 = vld [vmem:[#allocation2 + $0x18] sm:$0xff]  ;;  %3994 = vst.msk [vmem:[#allocation2 + $0x31] sm:$0xff] %vm239_vm6, %v10756_v59  ;;  %v10759_v29 = vadd.f32 %v10758_v51, %v10757_v37  ;;  %7822 = vrot.lane.b32.xlu1 %v7756_v41, %s12125_s14  ;;  %v11857_v59 = vld [vmem:[%s12257_s9 + $0x6c] sm:$0xff]  }
 0x416   : > { %8202 = vrot.lane.b32.xlu0 %v8138_v18, %s12130_s25  ;;  %5004 = vmatmul.mubr.bf16.gmra.mrb[48].mxu1 %v10431_v4  ;;  %v7757_v38 = vld [vmem:[#allocation2 + $0x21] sm:$0xff] }
 0x417   : > { %3995 = vst.msk [vmem:[#allocation2 + $0x39] sm:$0xff] %vm239_vm6, %v10759_v29  ;;  %5013 = vmatprep.mubr.bf16.mxu1 %v15422_v0  ;;  %v7949_v12 = vld [vmem:[#allocation2 + $0x22] sm:$0xff]  ;;  %v7948_v43 = vld [vmem:[#allocation2 + $0x1a] sm:$0xff] }
 0x418   : > { %v8139_v15 = vld [vmem:[#allocation2 + $0x20] sm:$0xff] }
 0x419   : > { %v10760_v16 = vpop.f32.mrb[8].mxu1  ;;  %7824 = vrot.lane.b32.xlu1 %v7757_v38, %s12125_s14  ;;  %v11862_v29 = vld [vmem:[#allocation3 + $0x210] ss:$8 sps:$4 sm:$0xff]  }
 0x41a   : > { %8394 = vrot.lane.b32.xlu0 %v7756_v41, %s12131_s26  ;;  %v10761_v60 = vpop.f32.mrb[9].mxu1  ;;  %v11864_v41 = vld [vmem:[#allocation3 + $0x214] ss:$8 sps:$4 sm:$0xff]  }
 0x41b   : > { %v10762_v55 = vadd.f32 %v10761_v60, %v10760_v16  ;;  %v10763_v5 = vpop.f32.mrb[10].mxu1 }
 0x41c   : > { %v10764_v46 = vpop.f32.mrb[11].mxu1  ;;  %v7758_v21 = vld [vmem:[#allocation2 + $0x31] sm:$0xff] }
 0x41d   : > { %3996 = vst.msk [vmem:[#allocation2 + $0x49] sm:$0xff] %vm239_vm6, %v10762_v55  ;;  %v10765_v42 = vadd.f32 %v10764_v46, %v10763_v5  ;;  %8016 = vrot.lane.b32.xlu1 %v7949_v12, %s12126_s15  ;;  %v8140_v49 = vld [vmem:[#allocation2 + $0x30] sm:$0xff]  ;;  %v11872_v5 = vld [vmem:[#allocation3 + $0x234] ss:$8 sps:$4 sm:$0xff]  }
 0x41e   : > { %8014 = vrot.lane.b32.xlu0 %v7948_v43, %s12126_s15  ;;  %5014 = vmatmul.mubr.bf16.gmra.mrb[52].mxu1 %v10432_v36  ;;  %v13521_v14 = vld [vmem:[#allocation2 + $0x39] sm:$0xff] }
 0x41f   : > { %3997 = vst.msk [vmem:[#allocation2 + $0x51] sm:$0xff] %vm239_vm6, %v10765_v42  ;;  %5023 = vmatprep.mubr.bf16.mxu1 %v15422_v0  ;;  %v13529_v28 = vld [vmem:[#allocation2 + $0x3a] sm:$0xff]  ;;  %v7950_v53 = vld [vmem:[#allocation2 + $0x32] sm:$0xff] }
 0x420   : > { %v8141_v51 = vld [vmem:[#allocation2 + $0x38] sm:$0xff] }
 0x421   : > { %v10766_v10 = vpop.f32.mrb[12].mxu1  ;;  %8204 = vrot.lane.b32.xlu1 %v8139_v15, %s12130_s25  ;;  %v11866_v36 = vld [vmem:[#allocation3 + $0x220] ss:$8 sps:$4 sm:$0xff]  }
 0x422   : > { %8586 = vrot.lane.b32.xlu0 %v7948_v43, %s12132_s6  ;;  %v10767_v63 = vpop.f32.mrb[13].mxu1  ;;  %v11865_v43 = vld [vmem:[%s12257_s9 + $0x84] sm:$0xff]  }
 0x423   : > { %v10768_v47 = vadd.f32 %v10767_v63, %v10766_v10  ;;  %v10769_v58 = vpop.f32.mrb[14].mxu1  ;;  %v11878_v63 = vld [vmem:[#allocation3 + $0x250] ss:$8 sps:$4 sm:$0xff]  }
 0x424   : > { %v10770_v44 = vpop.f32.mrb[15].mxu1  ;;  %v7760_v15 = vld [vmem:[#allocation2 + $0x49] sm:$0xff] }
 0x425   : > { %3998 = vst.msk [vmem:[#allocation2 + $0x61] sm:$0xff] %vm239_vm6, %v10768_v47  ;;  %v10771_v54 = vadd.f32 %v10770_v44, %v10769_v58  ;;  %8396 = vrot.lane.b32.xlu1 %v7757_v38, %s12131_s26  ;;  %v11884_v47 = vld [vmem:[#allocation3 + $0x264] ss:$8 sps:$4 sm:$0xff]   ;;  %v11886_v44 = vld [vmem:[#allocation3 + $0x270] ss:$8 sps:$4 sm:$0xff]  }
 0x426   : > { %7826 = vrot.lane.b32.xlu0 %v7758_v21, %s12125_s14  ;;  %5024 = vmatmul.mubr.bf16.gmra.mrb[56].mxu1 %v10433_v24  ;;  %v8142_v24 = vld [vmem:[#allocation2 + $0x48] sm:$0xff]  ;;  %v11869_v58 = vld [vmem:[%s12257_s9 + $0x90] sm:$0xff]  }
 0x427   : > { %3999 = vst.msk [vmem:[#allocation2 + $0x69] sm:$0xff] %vm239_vm6, %v10771_v54  ;;  %5033 = vmatprep.mubr.bf16.mxu1 %v15422_v0  ;;  %v7761_v62 = vld [vmem:[#allocation2 + $0x51] sm:$0xff] }
 0x428   : > { %v11891_v54 = vld [vmem:[#allocation3 + $0x284] ss:$8 sps:$4 sm:$0xff]  }
 0x429   : > { %v10772_v22 = vpop.f32.mrb[16].mxu1  ;;  %8588 = vrot.lane.b32.xlu1 %v7949_v12, %s12132_s6  ;;  %v8143_v9 = vld [vmem:[#allocation2 + $0x50] sm:$0xff] }
 0x42a   : > { %8206 = vrot.lane.b32.xlu0 %v8140_v49, %s12130_s25  ;;  %v10773_v23 = vpop.f32.mrb[17].mxu1 }
 0x42b   : > { %v10774_v39 = vadd.f32 %v10773_v23, %v10772_v22  ;;  %v10775_v50 = vpop.f32.mrb[18].mxu1  ;;  %v11877_v22 = vld [vmem:[%s12257_s9 + $0xa8] sm:$0xff]  }
 0x42c   : > { %v10776_v3 = vpop.f32.mrb[19].mxu1  ;;  %v10491_v23 = vld [vmem:[%s12257_s9 + $0x6c] sm:$0xf] }
 0x42d   : > { %4000 = vst.msk [vmem:[#allocation2 + $0x79] sm:$0xff] %vm239_vm6, %v10774_v39  ;;  %v10777_v20 = vadd.f32 %v10776_v3, %v10775_v50  ;;  %7828 = vrot.lane.b32.xlu1 %v13521_v14, %s12125_s14  ;;  %v5407_v39 = vshrl.u32 %v10491_v23, 16  ;;  %v5410_v50 = vshll.u32 %v10491_v23, 16 }
 0x42e   : > { %8398 = vrot.lane.b32.xlu0 %v7758_v21, %s12131_s26  ;;  %5034 = vmatmul.mubr.bf16.gmra.mrb[60].mxu1 %v10434_v7  ;;  %v13577_v7 = vld [vmem:[%s12257_s9 + $0x70] sm:$0xf] }
 0x42f   : > { %4001 = vst.msk [vmem:[#allocation2 + $0x81] sm:$0xff] %vm239_vm6, %v10777_v20  ;;  %5269 = vmatprep.mubr.bf16.mxu1 %v15422_v0  ;;  %v5416_v3 = vshll.u32 %v13577_v7, 16  ;;  %v10494_v20 = vld [vmem:[%s12257_s9 + $0x78] sm:$0xf] }
 0x431   : > { %v10778_v52 = vpop.f32.mrb[20].mxu1  ;;  %8020 = vrot.lane.b32.xlu1 %v13529_v28, %s12126_s15 }
 0x432   : > { %8779 = vrot.lane.b32.xlu0 %v8140_v49, %s12127_s16  ;;  %v10779_v4 = vpop.f32.mrb[21].mxu1  ;;  %v7952_v49 = vld [vmem:[#allocation2 + $0x4a] sm:$0xff] }
 0x433   : > { %v10780_v37 = vadd.f32 %v10779_v4, %v10778_v52  ;;  %v10781_v19 = vpop.f32.mrb[22].mxu1  ;;  %v13589_v52 = vld [vmem:[%s12257_s9 + $0x7c] sm:$0xf]  ;;  %v13591_v4 = vpop.permute.xlu0 %7818 }
 0x434   : > { %v10782_v57 = vpop.f32.mrb[23].mxu1 }
 0x435   : > { %4002 = vst.msk [vmem:[#allocation2 + $0x91] sm:$0xff] %vm239_vm6, %v10780_v37  ;;  %v10783_v18 = vadd.f32 %v10782_v57, %v10781_v19  ;;  %8208 = vrot.lane.b32.xlu1 %v8141_v51, %s12130_s25  ;;  %v5412_v37 = vrot.slane %v5410_v50, 5  ;;  %v5418_v19 = vrot.slane %v5416_v3, 5  ;;  %v7762_v57 = vld [vmem:[#allocation2 + $0x61] sm:$0xff]  ;;  %v13642_v50 = vld [vmem:[%s12257_s9 + $0x8c] sm:$0x1] }
 0x436   : > { %8971 = vrot.lane.b32.xlu0 %v7758_v21, %s12128_s17  ;;  %5270 = vmatmul.mubr.bf16.vlgmr.msra.gmra.mrb[32].mxu1 %v11857_v59  ;;  %v7953_v21 = vld [vmem:[#allocation2 + $0x52] sm:$0xff]  ;;  %v5409_v59 = vrot.slane %v5407_v39, 4  ;;  %v8147_v2 = vld [vmem:[#allocation2 + $0x80] sm:$0xff] }
 0x437   : > { %4003 = vst.msk [vmem:[#allocation2 + $0x99] sm:$0xff] %vm239_vm6, %v10783_v18  ;;  %5727 = vmatpush1.bf16.msra.mxu1 %v11858_v25  ;;  %5279 = vmatprep.mubr.bf16.mxu1 %v15422_v0  ;;  %v5434_v18 = vshll.u32 %v10494_v20, 16  ;;  %v11889_v39 = vld [vmem:[#allocation3 + $0x280] ss:$8 sps:$4 sm:$0xff]  }
 0x438   : > { %5728 = vmatprep.subr.bf16.mxu1 %v11864_v41  ;;  %v5431_v41 = vshrl.u32 %v10494_v20, 16  ;;  %v10500_v3 = vld [vmem:[%s12257_s9 + $0x90] sm:$0xf]  ;;  %v11894_v20 = vld [vmem:[#allocation3 + $0x294] ss:$8 sps:$4 sm:$0xff]  }
 0x439   : > { %v10784_v48 = vpop.f32.mrb[24].mxu1  ;;  %8400 = vrot.lane.b32.xlu1 %v13521_v14, %s12131_s26 }
 0x43a   : > { %8018 = vrot.lane.b32.xlu0 %v7950_v53, %s12126_s15  ;;  %v10785_v38 = vpop.f32.mrb[25].mxu1 }
 0x43b   : > { %v10786_v16 = vadd.f32 %v10785_v38, %v10784_v48  ;;  %v10787_v60 = vpop.f32.mrb[26].mxu1  ;;  %5729 = vmatpush1.bf16.msra.mxu1 %v11862_v29  ;;  %v5440_v29 = vshll.u32 %v13589_v52, 16 }
 0x43c   : > { %v10788_v55 = vpop.f32.mrb[27].mxu1  ;;  %5730 = vmatprep.subr.bf16.mxu1 %v11868_v35  ;;  %v5413_v35 = vor.u32 %v5412_v37, %v5409_v59  ;;  %v7766_v17 = vld [vmem:[#allocation2 + $0x91] sm:$0xff] }
 0x43d   : > { %4004 = vst.msk [vmem:[#allocation2 + $0xa9] sm:$0xff] %vm239_vm6, %v10786_v16  ;;  %v10789_v27 = vadd.f32 %v10788_v55, %v10787_v60  ;;  %8592 = vrot.lane.b32.xlu1 %v13529_v28, %s12132_s6  ;;  %v5433_v16 = vrot.slane %v5431_v41, 4  ;;  %v5436_v60 = vrot.slane %v5434_v18, 5  ;;  %v13606_v55 = vrot.slane %v5440_v29, 5 }
 0x43e   : > { %8590 = vrot.lane.b32.xlu0 %v7950_v53, %s12132_s6  ;;  %5280 = vmatmul.mubr.bf16.gmra.mrb[36].mxu1 %v11861_v61  ;;  %v8144_v61 = vld [vmem:[#allocation2 + $0x60] sm:$0xff]  ;;  %v5474_v29 = vshll.u32 %v13642_v50, 16 }
 0x43f   : > { %4005 = vst.msk [vmem:[#allocation2 + $0xb1] sm:$0xff] %vm239_vm6, %v10789_v27  ;;  %5289 = vmatprep.mubr.bf16.mxu1 %v15422_v0  ;;  %5731 = vmatpush1.bf16.msra.mxu1 %v11866_v36  ;;  %v13604_v36 = vpop.permute.xlu0 %7820  ;;  %v11885_v27 = vld [vmem:[%s12257_s9 + $0xc0] sm:$0xff]  }
 0x440   : > { %5732 = vmatprep.subr.bf16.mxu1 %v11872_v5 }
 0x441   : > { %v10790_v46 = vpop.f32.mrb[28].mxu1  ;;  %8781 = vrot.lane.b32.xlu1 %v8141_v51, %s12127_s16  ;;  %v13594_v51 = vld [vmem:[%s12257_s9 + $0x74] sm:$0x1] }
 0x442   : > { %9163 = vrot.lane.b32.xlu0 %v7950_v53, %s15432_s23  ;;  %v10791_v12 = vpop.f32.mrb[29].mxu1  ;;  %v5444_v53 = vshrl.u32 %v13589_v52, 16  ;;  %v5426_v38 = vshll.u32 %v13594_v51, 16 }
 0x443   : > { %v10792_v42 = vadd.f32 %v10791_v12, %v10790_v46  ;;  %v10793_v8 = vpop.f32.mrb[30].mxu1  ;;  %5733 = vmatpush1.bf16.msra.mxu1 %v11870_v31  ;;  %v13610_v31 = vld [vmem:[%s12257_s9 + $0x80] sm:$0x1]  ;;  %v5414_v46 = vrot.slane %v5413_v35, 4 }
 0x444   : > { %v10794_v26 = vpop.f32.mrb[31].mxu1  ;;  %5734 = vmatprep.subr.bf16.mxu1 %v11876_v45  ;;  %v5446_v5 = vrot.slane %v5444_v53, 4  ;;  %v10497_v45 = vld [vmem:[%s12257_s9 + $0x84] sm:$0xf]  ;;  %v5482_v53 = vshll.u32 %v10500_v3, 16 }
 0x445   : > { %4006 = vst.msk [vmem:[#allocation2 + $0xc1] sm:$0xff] %vm239_vm6, %v10792_v42  ;;  %v10795_v10 = vadd.f32 %v10794_v26, %v10793_v8  ;;  %8973 = vrot.lane.b32.xlu1 %v13521_v14, %s12128_s17  ;;  %v5420_v14 = vshrl.u32 %v13577_v7, 16  ;;  %v13614_v42 = vld [vmem:[%s12257_s9 + $0x88] sm:$0xf] }
 0x446   : > { %7830 = vrot.lane.b32.xlu0 %v7760_v15, %s12125_s14  ;;  %5290 = vmatmul.mubr.bf16.gmra.mrb[40].mxu1 %v11865_v43  ;;  %v5428_v43 = vrot.slane %v5426_v38, 5  ;;  %v13616_v8 = vld [vmem:[#allocation2 + $0x69] sm:$0xff]  ;;  %v5447_v26 = vor.u32 %v5446_v5, %v13606_v55 }
 0x447   : > { %4007 = vst.msk [vmem:[#allocation2 + $0xc9] sm:$0xff] %vm239_vm6, %v10795_v10  ;;  %5299 = vmatprep.mubr.bf16.mxu1 %v15422_v0  ;;  %5735 = vmatpush1.bf16.msra.mxu1 %v11874_v56  ;;  %v5422_v25 = vrot.slane %v5420_v14, 4  ;;  %v5437_v56 = vor.u32 %v5436_v60, %v5433_v16  ;;  %v5458_v10 = vshll.u32 %v10497_v45, 16  ;;  %v8145_v14 = vld [vmem:[#allocation2 + $0x68] sm:$0xff]  ;;  %v11897_v16 = vld [vmem:[#allocation3 + $0x2a4] ss:$8 sps:$4 sm:$0xff]  }
 0x448   : > { %5736 = vmatprep.subr.bf16.mxu1 %v11880_v32  ;;  %v5455_v32 = vshrl.u32 %v10497_v45, 16  ;;  %v11892_v35 = vld [vmem:[#allocation3 + $0x290] ss:$8 sps:$4 sm:$0xff]   ;;  %v10503_v60 = vld [vmem:[%s12257_s9 + $0x9c] sm:$0xf] }
 0x449   : > { %9165 = vrot.lane.b32.xlu1 %v13529_v28, %s15432_s23  ;;  %v11881_v28 = vld [vmem:[%s12257_s9 + $0xb4] sm:$0xff]   ;;  %v5423_v48 = vor.u32 %v5422_v25, %v5418_v19 }
 0x44a   : > { %8210 = vrot.lane.b32.xlu0 %v8142_v24, %s12130_s25 }
 0x44b   : > { %5737 = vmatpush1.bf16.msra.mxu1 %v11878_v63  ;;  %v5424_v12 = vrot.slane %v5423_v48, 4  ;;  %v5464_v63 = vshll.u32 %v13614_v42, 16 }
 0x44c   : > { %5738 = vmatprep.subr.bf16.mxu1 %v11884_v47  ;;  %v5419_v47 = vsel %vm12287_vm2, %v5414_v46, %v5418_v19  ;;  %v5476_v46 = vrot.slane %v5474_v29, 5  ;;  %v13702_v29 = vld [vmem:[%s12257_s9 + $0xa4] sm:$0x1] }
 0x44d   : > { %7832 = vrot.lane.b32.xlu1 %v7761_v62, %s12125_s14 }
 0x44e   : > { %8402 = vrot.lane.b32.xlu0 %v7760_v15, %s12131_s26  ;;  %5300 = vmatmul.mubr.bf16.gmra.mrb[44].mxu1 %v11869_v58  ;;  %v5429_v58 = vsel %vm12287_vm2, %v5424_v12, %v5428_v43  ;;  %v5484_v43 = vrot.slane %v5482_v53, 5 }
 0x44f   : > { %5309 = vmatprep.mubr.bf16.mxu1 %v15422_v0  ;;  %5739 = vmatpush1.bf16.msra.mxu1 %v11882_v34  ;;  %v13630_v34 = vpop.permute.xlu1 %8012 }
 0x450   : > { %5740 = vmatprep.subr.bf16.mxu1 %v11888_v6  ;;  %v13634_v6 = vld [vmem:[#allocation2 + $0x6a] sm:$0xff] }
 0x451   : > { %8024 = vrot.lane.b32.xlu1 %v7953_v21, %s12126_s15 }
 0x452   : > { %8783 = vrot.lane.b32.xlu0 %v8142_v24, %s12127_s16  ;;  %v5468_v24 = vshrl.u32 %v13614_v42, 16 }
 0x453   : > { %5741 = vmatpush1.bf16.msra.mxu1 %v11886_v44  ;;  %v5438_v44 = vrot.slane %v5437_v56, 4  ;;  %v13650_v59 = vpop.permute.xlu1 %8841 }
 0x454   : > { %6087 = vmatprep.subr.bf16.mxu1 %v11891_v54  ;;  %v5470_v23 = vrot.slane %v5468_v24, 4  ;;  %15465 = vst [vmem:[#allocation14_spill] sm:$0xff] %v13650_v59  ;;  %v5506_v24 = vshll.u32 %v10503_v60, 16 }
 0x455   : > { %8212 = vrot.lane.b32.xlu1 %v8143_v9, %s12130_s25  ;;  %v5443_v19 = vsel %vm12287_vm2, %v5438_v44, %v13606_v55 }
 0x456   : > { %8975 = vrot.lane.b32.xlu0 %v7760_v15, %s12128_s17  ;;  %5310 = vmatmul.mubr.bf16.gmra.mrb[48].mxu1 %v11873_v13  ;;  %v5450_v15 = vshll.u32 %v13610_v31, 16  ;;  %v5457_v13 = vrot.slane %v5455_v32, 4 }
 0x457   : > { %5319 = vmatprep.mubr.bf16.mxu1 %v15422_v0  ;;  %v13671_v56 = vpop.permute.xlu1 %9033 }
 0x458   : > { %v5452_v54 = vrot.slane %v5450_v15, 5  ;;  %15467 = vst [vmem:[#allocation16_spill] sm:$0xff] %v13671_v56  ;;  %v11895_v15 = vld [vmem:[#allocation3 + $0x2a0] ss:$8 sps:$4 sm:$0xff]  }
 0x459   : > { %8404 = vrot.lane.b32.xlu1 %v7761_v62, %s12131_s26  ;;  %v7958_v56 = vld [vmem:[#allocation2 + $0x92] sm:$0xff] }
 0x45a   : > { %8022 = vrot.lane.b32.xlu0 %v7952_v49, %s12126_s15 }
 0x45d   : > { %8596 = vrot.lane.b32.xlu1 %v7953_v21, %s12132_s6 }
 0x45e   : > { %8594 = vrot.lane.b32.xlu0 %v7952_v49, %s12132_s6  ;;  %5320 = vmatmul.mubr.bf16.gmra.mrb[52].mxu1 %v11877_v22  ;;  %v13639_v22 = vrot.slane %v5464_v63, 5  ;;  %v5503_v63 = vshrl.u32 %v10503_v60, 16 }
 0x45f   : > { %5329 = vmatprep.mubr.bf16.mxu1 %v15422_v0 }
 0x460   : > { %v5471_v18 = vor.u32 %v5470_v23, %v13639_v22 }
 0x461   : > { %8785 = vrot.lane.b32.xlu1 %v8143_v9, %s12127_s16  ;;  %v5460_v9 = vrot.slane %v5458_v10, 5 }
 0x462   : > { %9167 = vrot.lane.b32.xlu0 %v7952_v49, %s15432_s23  ;;  %v10515_v49 = vcombine.low %v5419_v47, %v5429_v58  ;;  %v5472_v45 = vrot.slane %v5471_v18, 4  ;;  %v13678_v47 = vld [vmem:[%s12257_s9 + $0x98] sm:$0x1]  ;;  %v11900_v58 = vld [vmem:[#allocation3 + $0x2b4] ss:$8 sps:$4 sm:$0xff]  }
 0x463   : > { %v5461_v41 = vor.u32 %v5460_v9, %v5457_v13  ;;  %v5498_v23 = vshll.u32 %v13678_v47, 16 }
 0x464   : > { %v5477_v13 = vsel %vm12287_vm2, %v5472_v45, %v5476_v46  ;;  %v11906_v46 = vld [vmem:[#allocation3 + $0x2d4] ss:$8 sps:$4 sm:$0xff]  }
 0x465   : > { %8977 = vrot.lane.b32.xlu1 %v7761_v62, %s12128_s17  ;;  %v13632_v62 = vpop.permute.xlu0 %8010  ;;  %v5462_v5 = vrot.slane %v5461_v41, 4  ;;  %v13697_v41 = vpop.permute.xlu1 %9225 }
 0x466   : > { %7834 = vrot.lane.b32.xlu0 %v7762_v57, %s12125_s14  ;;  %5330 = vmatmul.mubr.bf16.gmra.mrb[56].mxu1 %v11881_v28  ;;  %v13646_v28 = vld [vmem:[%s12257_s9 + $0x94] sm:$0xf]  ;;  %15469 = vst [vmem:[#allocation18_spill] sm:$0xff] %v13697_v41 }
 0x467   : > { %5339 = vmatprep.mubr.bf16.mxu1 %v15422_v0  ;;  %v5488_v48 = vshll.u32 %v13646_v28, 16  ;;  %v5492_v38 = vshrl.u32 %v13646_v28, 16 }
 0x469   : > { %9169 = vrot.lane.b32.xlu1 %v7953_v21, %s15432_s23  ;;  %v5448_v21 = vrot.slane %v5447_v26, 4  ;;  %v13652_v37 = vpop.permute.xlu0 %8839  ;;  %v13675_v32 = vrot.slane %v5488_v48, 5  ;;  %v5494_v10 = vrot.slane %v5492_v38, 4 }
 0x46a   : > { %8214 = vrot.lane.b32.xlu0 %v8144_v61, %s12130_s25  ;;  %15466 = vst [vmem:[#allocation15_spill] sm:$0xff] %v13652_v37 }
 0x46b   : > { %v5453_v25 = vsel %vm12287_vm2, %v5448_v21, %v5452_v54  ;;  %v5467_v54 = vsel %vm12287_vm2, %v5462_v5, %v13639_v22  ;;  %v13708_v5 = vld [vmem:[#allocation2 + $0x79] sm:$0xff] }
 0x46c   : > { %v10516_v55 = vcombine.low %v5443_v19, %v5453_v25  ;;  %v11903_v25 = vld [vmem:[#allocation3 + $0x2c4] ss:$8 sps:$4 sm:$0xff]   ;;  %v10517_v53 = vcombine.low %v5467_v54, %v5477_v13 }
 0x46d   : > { %7836 = vrot.lane.b32.xlu1 %v13616_v8, %s12125_s14  ;;  %v13673_v26 = vpop.permute.xlu0 %9031 }
 0x46e   : > { %8406 = vrot.lane.b32.xlu0 %v7762_v57, %s12131_s26  ;;  %5340 = vmatmul.mubr.bf16.gmra.mrb[60].mxu1 %v11885_v27  ;;  %v13669_v27 = vld [vmem:[%s12257_s9 + $0xa0] sm:$0xf]  ;;  %15468 = vst [vmem:[#allocation17_spill] sm:$0xff] %v13673_v26  ;;  %v5919_v26 = vrot.slane %v13614_v42, 5  ;;  %v5922_v42 = vrot.slane %v13642_v50, 5 }
 0x46f   : > { %5758 = vmatprep.mubr.bf16.mxu1 %v15422_v0  ;;  %v5512_v44 = vshll.u32 %v13669_v27, 16  ;;  %v5516_v21 = vshrl.u32 %v13669_v27, 16 }
 0x471   : > { %8028 = vrot.lane.b32.xlu1 %v13634_v6, %s12126_s15  ;;  %v13693_v19 = vrot.slane %v5512_v44, 5  ;;  %v5518_v22 = vrot.slane %v5516_v21, 4  ;;  %v13699_v18 = vpop.permute.xlu0 %9223  ;;  %v11904_v44 = vld [vmem:[#allocation3 + $0x2d0] ss:$8 sps:$4 sm:$0xff]   ;;  %v8146_v21 = vld [vmem:[#allocation2 + $0x78] sm:$0xff] }
 0x472   : > { %8787 = vrot.lane.b32.xlu0 %v8144_v61, %s12127_s16  ;;  %v7954_v61 = vld [vmem:[#allocation2 + $0x62] sm:$0xff]  ;;  %15470 = vst [vmem:[#allocation19_spill] sm:$0xff] %v13699_v18 }
 0x475   : > { %8216 = vrot.lane.b32.xlu1 %v8145_v14, %s12130_s25 }
 0x476   : > { %8979 = vrot.lane.b32.xlu0 %v7762_v57, %s12128_s17  ;;  %5759 = vmatmul.mubr.bf16.vlgmr.msra.gmra.mrb[32].mxu1 %v10515_v49  ;;  %v5479_v57 = vshrl.u32 %v10500_v3, 16  ;;  %v5495_v49 = vor.u32 %v5494_v10, %v13675_v32  ;;  %v5505_v3 = vrot.slane %v5503_v63, 4 }
 0x477   : > { %6088 = vmatpush1.bf16.msra.mxu1 %v11889_v39  ;;  %5768 = vmatprep.mubr.bf16.mxu1 %v15422_v0  ;;  %v11898_v39 = vld [vmem:[#allocation3 + $0x2b0] ss:$8 sps:$4 sm:$0xff]  }
 0x478   : > { %6089 = vmatprep.subr.bf16.mxu1 %v11894_v20  ;;  %v5481_v12 = vrot.slane %v5479_v57, 4  ;;  %v5508_v20 = vrot.slane %v5506_v24, 5  ;;  %v10506_v57 = vld [vmem:[%s12257_s9 + $0xa8] sm:$0xf]  ;;  %v5496_v38 = vrot.slane %v5495_v49, 4 }
 0x479   : > { %8408 = vrot.lane.b32.xlu1 %v13616_v8, %s12131_s26  ;;  %v5527_v45 = vshrl.u32 %v10506_v57, 16  ;;  %v11909_v49 = vld [vmem:[#allocation3 + $0x2e4] ss:$8 sps:$4 sm:$0xff]  }
 0x47a   : > { %8026 = vrot.lane.b32.xlu0 %v7954_v61, %s12126_s15  ;;  %v5485_v9 = vor.u32 %v5484_v43, %v5481_v12  ;;  %v5509_v60 = vor.u32 %v5508_v20, %v5505_v3  ;;  %v5530_v12 = vshll.u32 %v10506_v57, 16  ;;  %v13734_v20 = vld [vmem:[%s12257_s9 + $0xb0] sm:$0x1] }
 0x47b   : > { %6090 = vmatpush1.bf16.msra.mxu1 %v11892_v35  ;;  %v13706_v35 = vld [vmem:[%s12257_s9 + $0xac] sm:$0xf] }
 0x47c   : > { %6091 = vmatprep.subr.bf16.mxu1 %v11897_v16  ;;  %v5486_v48 = vrot.slane %v5485_v9, 4  ;;  %v5500_v16 = vrot.slane %v5498_v23, 5  ;;  %v5536_v43 = vshll.u32 %v13706_v35, 16  ;;  %v5529_v9 = vrot.slane %v5527_v45, 4 }
 0x47d   : > { %8600 = vrot.lane.b32.xlu1 %v13634_v6, %s12132_s6  ;;  %v5546_v45 = vshll.u32 %v13734_v20, 16 }
 0x47e   : > { %8598 = vrot.lane.b32.xlu0 %v7954_v61, %s12132_s6  ;;  %5769 = vmatmul.mubr.bf16.gmra.mrb[36].mxu1 %v10516_v55  ;;  %v11901_v55 = vld [vmem:[#allocation3 + $0x2c0] ss:$8 sps:$4 sm:$0xff]   ;;  %v5491_v24 = vsel %vm12287_vm2, %v5486_v48, %v13675_v32  ;;  %v5532_v32 = vrot.slane %v5530_v12, 5  ;;  %v13731_v23 = vrot.slane %v5536_v43, 5 }
 0x47f   : > { %5778 = vmatprep.mubr.bf16.mxu1 %v15422_v0  ;;  %6092 = vmatpush1.bf16.msra.mxu1 %v11895_v15  ;;  %v5540_v15 = vshrl.u32 %v13706_v35, 16  ;;  %v13743_v48 = vld [vmem:[%s12257_s9 + $0xb8] sm:$0xf] }
 0x480   : > { %6093 = vmatprep.subr.bf16.mxu1 %v11900_v58  ;;  %v5510_v58 = vrot.slane %v5509_v60, 4  ;;  %v11912_v60 = vld [vmem:[#allocation3 + $0x2f4] ss:$8 sps:$4 sm:$0xff]   ;;  %v5564_v43 = vshrl.u32 %v13743_v48, 16 }
 0x481   : > { %8789 = vrot.lane.b32.xlu1 %v8145_v14, %s12127_s16  ;;  %v5519_v14 = vor.u32 %v5518_v22, %v13693_v19  ;;  %v15420_v22 = vmov 1  }
 0x482   : > { %9171 = vrot.lane.b32.xlu0 %v7954_v61, %s15432_s23  ;;  %v5522_v61 = vshll.u32 %v13702_v29, 16  ;;  %11439 = vset.pattern.permute.xlu1 %v15420_v22  ;;  %v10512_v22 = vld [vmem:[%s12257_s9 + $0xc0] sm:$0xf] }
 0x483   : > { %6094 = vmatpush1.bf16.msra.mxu1 %v11898_v39  ;;  %v5520_v54 = vrot.slane %v5519_v14, 4  ;;  %v5542_v39 = vrot.slane %v5540_v15, 4  ;;  %v5533_v14 = vor.u32 %v5532_v32, %v5529_v9 }
 0x484   : > { %6095 = vmatprep.subr.bf16.mxu1 %v11903_v25  ;;  %v5524_v13 = vrot.slane %v5522_v61, 5 }
 0x485   : > { %8981 = vrot.lane.b32.xlu1 %v13616_v8, %s12128_s17  ;;  %v5501_v8 = vsel %vm12287_vm2, %v5496_v38, %v5500_v16  ;;  %v13745_v38 = vld [vmem:[#allocation2 + $0x81] sm:$0xff]  ;;  %v5515_v16 = vsel %vm12287_vm2, %v5510_v58, %v13693_v19  ;;  %v5543_v61 = vor.u32 %v5542_v39, %v13731_v23  ;;  %v5560_v19 = vshll.u32 %v13743_v48, 16 }
 0x486   : > { %7838 = vrot.lane.b32.xlu0 %v13708_v5, %s12125_s14  ;;  %5779 = vmatmul.mubr.bf16.gmra.mrb[40].mxu1 %v10517_v53  ;;  %v10518_v3 = vcombine.low %v5491_v24, %v5501_v8  ;;  %v10509_v53 = vld [vmem:[%s12257_s9 + $0xb4] sm:$0xf]  ;;  %v11910_v8 = vld [vmem:[#allocation3 + $0x2f0] ss:$8 sps:$4 sm:$0xff]  }
 0x487   : > { %v13718_v10 = vpop.permute.xlu1 %7822  ;;  %5788 = vmatprep.mubr.bf16.mxu1 %v15422_v0  ;;  %6096 = vmatpush1.bf16.msra.mxu1 %v11901_v55  ;;  %v5525_v55 = vsel %vm12287_vm2, %v5520_v54, %v5524_v13  ;;  %v5554_v12 = vshll.u32 %v10509_v53, 16  ;;  %v13765_v58 = vld [vmem:[#allocation2 + $0x82] sm:$0xff]  ;;  %v5534_v13 = vrot.slane %v5533_v14, 4  ;;  %v5544_v9 = vrot.slane %v5543_v61, 4 }
 0x488   : > { %v13720_v63 = vpop.permute.xlu0 %8202  ;;  %6097 = vmatprep.subr.bf16.mxu1 %v11906_v46  ;;  %v5551_v46 = vshrl.u32 %v10509_v53, 16  ;;  %v10519_v54 = vcombine.low %v5515_v16, %v5525_v55  ;;  %v5566_v53 = vrot.slane %v5564_v43, 4 }
 0x489   : > { %9173 = vrot.lane.b32.xlu1 %v13634_v6, %s15432_s23  ;;  %v11907_v6 = vld [vmem:[#allocation3 + $0x2e0] ss:$8 sps:$4 sm:$0xff]   ;;  %v5556_v39 = vrot.slane %v5554_v12, 5  ;;  %v15471_v12 = vmov 0  }
 0x48a   : > { %8218 = vrot.lane.b32.xlu0 %v8146_v21, %s12130_s25  ;;  %v5553_v32 = vrot.slane %v5551_v46, 4 }
 0x48b   : > { %v13737_v25 = vpop.permute.xlu1 %7824  ;;  %6098 = vmatpush1.bf16.msra.mxu1 %v11904_v44  ;;  %v11915_v44 = vld [vmem:[#allocation3 + $0x304] ss:$8 sps:$4 sm:$0xff]  }
 0x48c   : > { %v13739_v57 = vpop.permute.xlu0 %8394  ;;  %6099 = vmatprep.subr.bf16.mxu1 %v11909_v49  ;;  %v5548_v49 = vrot.slane %v5546_v45, 5  ;;  %v5557_v55 = vor.u32 %v5556_v39, %v5553_v32 }
 0x48d   : > { %7840 = vrot.lane.b32.xlu1 %v13745_v38, %s12125_s14 }
 0x48e   : > { %8410 = vrot.lane.b32.xlu0 %v13708_v5, %s12131_s26  ;;  %5789 = vmatmul.mubr.bf16.gmra.mrb[44].mxu1 %v10518_v3  ;;  %v5562_v3 = vrot.slane %v5560_v19, 5  ;;  %v5549_v16 = vsel %vm12287_vm2, %v5544_v9, %v5548_v49  ;;  %v5575_v19 = vshrl.u32 %v10512_v22, 16 }
 0x48f   : > { %v13760_v15 = vpop.permute.xlu1 %8016  ;;  %5798 = vmatprep.mubr.bf16.mxu1 %v15422_v0  ;;  %6100 = vmatpush1.bf16.msra.mxu1 %v11907_v6  ;;  %v13779_v0 = vld [vmem:[%s12257_s9 + $0xc4] sm:$0xf] }
 0x490   : > { %v13762_v24 = vpop.permute.xlu0 %8014  ;;  %6101 = vmatprep.subr.bf16.mxu1 %v11912_v60  ;;  %v13775_v60 = vld [vmem:[%s12257_s9 + $0xbc] sm:$0x1]  ;;  %v5567_v14 = vor.u32 %v5566_v53, %v5562_v3  ;;  %v5584_v43 = vshll.u32 %v13779_v0, 16 }
 0x491   : > { %8032 = vrot.lane.b32.xlu1 %v13765_v58, %s12126_s15  ;;  %v5570_v61 = vshll.u32 %v13775_v60, 16 }
 0x492   : > { %8791 = vrot.lane.b32.xlu0 %v8146_v21, %s12127_s16  ;;  %v5539_v21 = vsel %vm12287_vm2, %v5534_v13, %v13731_v23  ;;  %v5588_v23 = vshrl.u32 %v13779_v0, 16  ;;  %v5568_v13 = vrot.slane %v5567_v14, 4  ;;  %v5586_v53 = vrot.slane %v5584_v43, 5 }
 0x493   : > { %v13770_v6 = vpop.permute.xlu1 %8204  ;;  %6102 = vmatpush1.bf16.msra.mxu1 %v11910_v8  ;;  %v7956_v8 = vld [vmem:[#allocation2 + $0x7a] sm:$0xff]  ;;  %v5572_v9 = vrot.slane %v5570_v61, 5 }
 0x494   : > { %v13772_v33 = vpop.permute.xlu0 %8586  ;;  %6393 = vmatprep.subr.bf16.mxu1 %v11915_v44  ;;  %v10520_v44 = vcombine.low %v5539_v21, %v5549_v16  ;;  %v5590_v18 = vrot.slane %v5588_v23, 4 }
 0x495   : > { %8220 = vrot.lane.b32.xlu1 %v8147_v2, %s12130_s25  ;;  %v5573_v14 = vsel %vm12287_vm2, %v5568_v13, %v5572_v9  ;;  %v5905_v9 = vrot.slane %v13577_v7, 5 }
 0x496   : > { %8983 = vrot.lane.b32.xlu0 %v13708_v5, %s12128_s17  ;;  %5799 = vmatmul.mubr.bf16.gmra.mrb[48].mxu1 %v10519_v54  ;;  %v5578_v5 = vshll.u32 %v10512_v22, 16  ;;  %v5558_v54 = vrot.slane %v5557_v55, 4  ;;  %v5577_v22 = vrot.slane %v5575_v19, 4  ;;  %v5591_v19 = vor.u32 %v5590_v18, %v5586_v53 }
 0x497   : > { %v13790_v45 = vpop.permute.xlu1 %8396  ;;  %5808 = vmatprep.mubr.bf16.mxu1 %v15471_v12 }
 0x498   : > { %v13792_v46 = vpop.permute.xlu0 %7826  ;;  %v5580_v39 = vrot.slane %v5578_v5, 5  ;;  %v5563_v21 = vsel %vm12287_vm2, %v5558_v54, %v5562_v3  ;;  %v5594_v5 = vshll.u32 %v13805_v1, 16  ;;  %v5592_v54 = vrot.slane %v5591_v19, 4 }
 0x499   : > { %8412 = vrot.lane.b32.xlu1 %v13745_v38, %s12131_s26  ;;  %v10521_v43 = vcombine.low %v5563_v21, %v5573_v14  ;;  %v5908_v19 = vrot.slane %v13594_v51, 5 }
 0x49a   : > { %8030 = vrot.lane.b32.xlu0 %v7956_v8, %s12126_s15  ;;  %v5581_v61 = vor.u32 %v5580_v39, %v5577_v22  ;;  %v5596_v41 = vrot.slane %v5594_v5, 5  ;;  %v8148_v22 = vld [vmem:[#allocation2 + $0x90] sm:$0xff]  ;;  %v10539_v39 = vld [vmem:[%s12257_s9 + $0x6c] sm:$0xe] }
 0x49b   : > { %v13800_v49 = vpop.permute.xlu1 %8588 }
 0x49c   : > { %v13802_v32 = vpop.permute.xlu0 %8206  ;;  %v5597_v13 = vsel %vm12287_vm2, %v5592_v54, %v5596_v41  ;;  %v13848_v41 = vld [vmem:[#allocation2 + $0x99] sm:$0xff] }
 0x49d   : > { %8604 = vrot.lane.b32.xlu1 %v13765_v58, %s12132_s6  ;;  %v10540_v54 = vld [vmem:[%s12257_s9 + $0x78] sm:$0xe] }
 0x49e   : > { %8602 = vrot.lane.b32.xlu0 %v7956_v8, %s12132_s6  ;;  %5809 = vmatmul.mubr.bf16.gmra.mrb[52].mxu1 %v10520_v44  ;;  %v5582_v44 = vrot.slane %v5581_v61, 4  ;;  %v10547_v61 = vrot.slane %v10539_v39, 9 }
 0x49f   : > { %v13812_v16 = vpop.permute.xlu1 %7828  ;;  %5818 = vmatprep.mubr.bf16.mxu1 %v15471_v12 }
 0x4a0   : > { %v13814_v55 = vpop.permute.xlu0 %8398  ;;  %v5906_v5 = vsel %vm12427_vm5, %v10547_v61, %v5905_v9 }
 0x4a1   : > { %8793 = vrot.lane.b32.xlu1 %v8147_v2, %s12127_s16 }
 0x4a2   : > { %9175 = vrot.lane.b32.xlu0 %v7956_v8, %s15432_s23  ;;  %v5587_v8 = vsel %vm12287_vm2, %v5582_v44, %v5586_v53  ;;  %v5907_v53 = vrot.slane %v5905_v9, 4  ;;  %v13863_v44 = vld [vmem:[#allocation2 + $0x9a] sm:$0xff]  ;;  %v10548_v9 = vrot.slane %v10540_v54, 9 }
 0x4a3   : > { %v13822_v23 = vpop.permute.xlu1 %8020  ;;  %v11916_v54 = vld [vmem:[#allocation3 + $0x310] ss:$8 sps:$4 sm:$0xff]  }
 0x4a4   : > { %v13824_v3 = vpop.permute.xlu0 %8779  ;;  %v5909_v51 = vsel %vm12427_vm5, %v5907_v53, %v5908_v19  ;;  %v5915_v53 = vrot.slane %v13610_v31, 5  ;;  %v11918_v19 = vld [vmem:[#allocation3 + $0x314] ss:$8 sps:$4 sm:$0xff]  }
 0x4a5   : > { %8985 = vrot.lane.b32.xlu1 %v13745_v38, %s12128_s17  ;;  %v10522_v38 = vcombine.low %v5587_v8, %v5597_v13  ;;  %v10555_v8 = vcombine.low %v5906_v5, %v5909_v51 }
 0x4a6   : > { %7842 = vrot.lane.b32.xlu0 %v7766_v17, %s12125_s14  ;;  %5819 = vmatmul.mubr.bf16.gmra.mrb[56].mxu1 %v10521_v43  ;;  %v5912_v43 = vrot.slane %v13589_v52, 5  ;;  %v8149_v52 = vld [vmem:[#allocation2 + $0x98] sm:$0xff] }
 0x4a7   : > { %v13829_v18 = vpop.permute.xlu1 %8208  ;;  %5828 = vmatprep.mubr.bf16.mxu1 %v15471_v12 }
 0x4a8   : > { %v13831_v2 = vpop.permute.xlu0 %8971  ;;  %v5914_v61 = vrot.slane %v5912_v43, 4  ;;  %v5913_v51 = vsel %vm12427_vm5, %v10548_v9, %v5912_v43  ;;  %v5921_v9 = vrot.slane %v5919_v26, 4 }
 0x4a9   : > { %9177 = vrot.lane.b32.xlu1 %v13765_v58, %s15432_s23 }
 0x4aa   : > { %8222 = vrot.lane.b32.xlu0 %v8148_v22, %s12130_s25  ;;  %v5916_v31 = vsel %vm12427_vm5, %v5914_v61, %v5915_v53  ;;  %v11919_v61 = vld [vmem:[#allocation3 + $0x320] ss:$8 sps:$4 sm:$0xff]   ;;  %v11924_v53 = vld [vmem:[#allocation3 + $0x334] ss:$8 sps:$4 sm:$0xff]   ;;  %v5923_v50 = vsel %vm12427_vm5, %v5921_v9, %v5922_v42  ;;  %v5929_v9 = vrot.slane %v13678_v47, 5 }
 0x4ab   : > { %v13843_v21 = vpop.permute.xlu1 %8400  ;;  %v11925_v42 = vld [vmem:[#allocation3 + $0x340] ss:$8 sps:$4 sm:$0xff]  }
 0x4ac   : > { %v13845_v14 = vpop.permute.xlu0 %8018 }
 0x4ad   : > { %7844 = vrot.lane.b32.xlu1 %v13848_v41, %s12125_s14 }
 0x4ae   : > { %8414 = vrot.lane.b32.xlu0 %v7766_v17, %s12131_s26  ;;  %5829 = vmatmul.mubr.bf16.gmra.mrb[60].mxu1 %v10522_v38  ;;  %v11913_v38 = vld [vmem:[#allocation3 + $0x300] ss:$8 sps:$4 sm:$0xff]  }
 0x4af   : > { %v13853_v7 = vpop.permute.xlu1 %8592  ;;  %6119 = vmatprep.mubr.bf16.mxu1 %v15471_v12 }
 0x4b0   : > { %v13855_v58 = vpop.permute.xlu0 %8590 }
 0x4b1   : > { %8036 = vrot.lane.b32.xlu1 %v13863_v44, %s12126_s15 }
 0x4b2   : > { %8795 = vrot.lane.b32.xlu0 %v8148_v22, %s12127_s16 }
 0x4b3   : > { %v13869_v13 = vpop.permute.xlu1 %8781 }
 0x4b4   : > { %v13871_v39 = vpop.permute.xlu0 %9163 }
 0x4b5   : > { %8224 = vrot.lane.b32.xlu1 %v8149_v52, %s12130_s25 }
 0x4b6   : > { %8987 = vrot.lane.b32.xlu0 %v7766_v17, %s12128_s17  ;;  %6120 = vmatmul.mubr.bf16.vlgmr.msra.gmra.mrb[32].mxu1 %v10555_v8  ;;  %v10541_v17 = vld [vmem:[%s12257_s9 + $0x84] sm:$0xe]  ;;  %v11921_v8 = vld [vmem:[#allocation3 + $0x324] ss:$8 sps:$4 sm:$0xff]  }
 0x4b7   : > { %6394 = vmatpush1.bf16.msra.mxu1 %v11913_v38  ;;  %v13876_v22 = vpop.permute.xlu1 %8973  ;;  %6129 = vmatprep.mubr.bf16.mxu1 %v15471_v12  ;;  %v10556_v38 = vcombine.low %v5913_v51, %v5916_v31  ;;  %v10549_v43 = vrot.slane %v10541_v17, 9  ;;  %v11922_v17 = vld [vmem:[#allocation3 + $0x330] ss:$8 sps:$4 sm:$0xff]  }
 0x4b8   : > { %v13878_v5 = vpop.permute.xlu0 %7830  ;;  %6395 = vmatprep.subr.bf16.mxu1 %v11918_v19 }
 0x4b9   : > { %8416 = vrot.lane.b32.xlu1 %v13848_v41, %s12131_s26  ;;  %v5920_v31 = vsel %vm12427_vm5, %v10549_v43, %v5919_v26 }
 0x4ba   : > { %8034 = vrot.lane.b32.xlu0 %v7958_v56, %s12126_s15 }
 0x4bb   : > { %v13890_v37 = vpop.permute.xlu1 %9165  ;;  %6396 = vmatpush1.bf16.msra.mxu1 %v11916_v54  ;;  %v5926_v54 = vrot.slane %v13646_v28, 5  ;;  %v7768_v28 = vld [vmem:[#allocation2 + $0xa9] sm:$0xff] }
 0x4bc   : > { %v13892_v59 = vpop.permute.xlu0 %8210  ;;  %6397 = vmatprep.subr.bf16.mxu1 %v11921_v8  ;;  %v10542_v8 = vld [vmem:[%s12257_s9 + $0x90] sm:$0xe] }
 0x4bd   : > { %8608 = vrot.lane.b32.xlu1 %v13863_v44, %s12132_s6  ;;  %v10550_v26 = vrot.slane %v10542_v8, 9  ;;  %v5928_v43 = vrot.slane %v5926_v54, 4 }
 0x4be   : > { %8606 = vrot.lane.b32.xlu0 %v7958_v56, %s12132_s6  ;;  %6130 = vmatmul.mubr.bf16.gmra.mrb[36].mxu1 %v10556_v38  ;;  %v10557_v38 = vcombine.low %v5920_v31, %v5923_v50  ;;  %v11928_v31 = vld [vmem:[#allocation3 + $0x350] ss:$8 sps:$4 sm:$0xff]   ;;  %v10543_v50 = vld [vmem:[%s12257_s9 + $0x9c] sm:$0xe] }
 0x4bf   : > { %v13898_v19 = vpop.permute.xlu1 %7832  ;;  %6139 = vmatprep.mubr.bf16.mxu1 %v15471_v12  ;;  %6398 = vmatpush1.bf16.msra.mxu1 %v11919_v61  ;;  %v11930_v61 = vld [vmem:[#allocation3 + $0x354] ss:$8 sps:$4 sm:$0xff]   ;;  %v5927_v47 = vsel %vm12427_vm5, %v10550_v26, %v5926_v54  ;;  %v10551_v26 = vrot.slane %v10543_v50, 9  ;;  %v11934_v50 = vld [vmem:[#allocation3 + $0x370] ss:$8 sps:$4 sm:$0xff]  }
 0x4c0   : > { %15472 = vst [vmem:[#allocation20_spill] sm:$0xff] %v13898_v19  ;;  %v13900_v51 = vpop.permute.xlu0 %8402  ;;  %6399 = vmatprep.subr.bf16.mxu1 %v11924_v53  ;;  %v5930_v53 = vsel %vm12427_vm5, %v5928_v43, %v5929_v9  ;;  %v11931_v9 = vld [vmem:[#allocation3 + $0x360] ss:$8 sps:$4 sm:$0xff]  }
 0x4c1   : > { %8797 = vrot.lane.b32.xlu1 %v8149_v52, %s12127_s16  ;;  %v10558_v8 = vcombine.low %v5927_v47, %v5930_v53 }
 0x4c2   : > { %9179 = vrot.lane.b32.xlu0 %v7958_v56, %s15432_s23 }
 0x4c3   : > { %v13911_v40 = vpop.permute.xlu1 %8024  ;;  %6400 = vmatpush1.bf16.msra.mxu1 %v11922_v17  ;;  %v11933_v17 = vld [vmem:[#allocation3 + $0x364] ss:$8 sps:$4 sm:$0xff]  }
 0x4c4   : > { %15473 = vst [vmem:[#allocation21_spill] sm:$0xff] %v13911_v40  ;;  %v13913_v19 = vpop.permute.xlu0 %8783  ;;  %6401 = vmatprep.subr.bf16.mxu1 %v11927_v30  ;;  %v5933_v30 = vrot.slane %v13669_v27, 5  ;;  %v5936_v27 = vrot.slane %v13702_v29, 5  ;;  %v10544_v40 = vld [vmem:[%s12257_s9 + $0xa8] sm:$0xe] }
 0x4c5   : > { %8989 = vrot.lane.b32.xlu1 %v13848_v41, %s12128_s17  ;;  %v8150_v41 = vld [vmem:[#allocation2 + $0xa8] sm:$0xff] }
 0x4c6   : > { %7846 = vrot.lane.b32.xlu0 %v7768_v28, %s12125_s14  ;;  %6140 = vmatmul.mubr.bf16.gmra.mrb[40].mxu1 %v10557_v38  ;;  %v5935_v43 = vrot.slane %v5933_v30, 4  ;;  %v5934_v29 = vsel %vm12427_vm5, %v10551_v26, %v5933_v30  ;;  %v10552_v30 = vrot.slane %v10544_v40, 9 }
 0x4c7   : > { %v13919_v56 = vpop.permute.xlu1 %8212  ;;  %6149 = vmatprep.mubr.bf16.mxu1 %v15471_v12  ;;  %6402 = vmatpush1.bf16.msra.mxu1 %v11925_v42  ;;  %v13938_v42 = vld [vmem:[#allocation2 + $0xb1] sm:$0xff] }
 0x4c8   : > { %v13921_v52 = vpop.permute.xlu0 %8975  ;;  %6403 = vmatprep.subr.bf16.mxu1 %v11930_v61  ;;  %v11936_v61 = vld [vmem:[#allocation3 + $0x374] ss:$8 sps:$4 sm:$0xff]   ;;  %v5937_v53 = vsel %vm12427_vm5, %v5935_v43, %v5936_v27  ;;  %v8151_v43 = vld [vmem:[#allocation2 + $0xb0] sm:$0xff] }
 0x4c9   : > { %15474 = vst [vmem:[#allocation22_spill] sm:$0xff] %v13921_v52  ;;  %9181 = vrot.lane.b32.xlu1 %v13863_v44, %s15432_s23  ;;  %v10559_v52 = vcombine.low %v5934_v29, %v5937_v53  ;;  %v10545_v29 = vld [vmem:[%s12257_s9 + $0xb4] sm:$0xe] }
 0x4ca   : > { %8226 = vrot.lane.b32.xlu0 %v8150_v41, %s12130_s25 }
 0x4cb   : > { %v13933_v38 = vpop.permute.xlu1 %8404  ;;  %6404 = vmatpush1.bf16.msra.mxu1 %v11928_v31  ;;  %v5940_v31 = vrot.slane %v13706_v35, 5  ;;  %v5943_v35 = vrot.slane %v13734_v20, 5 }
 0x4cc   : > { %v13935_v54 = vpop.permute.xlu0 %8022  ;;  %6405 = vmatprep.subr.bf16.mxu1 %v11933_v17  ;;  %v7961_v17 = vld [vmem:[#allocation2 + $0xb2] sm:$0xff] }
 0x4cd   : > { %15475 = vst [vmem:[#allocation23_spill] sm:$0xff] %v13935_v54  ;;  %7848 = vrot.lane.b32.xlu1 %v13938_v42, %s12125_s14  ;;  %v5942_v26 = vrot.slane %v5940_v31, 4  ;;  %v5941_v40 = vsel %vm12427_vm5, %v10552_v30, %v5940_v31 }
 0x4ce   : > { %8418 = vrot.lane.b32.xlu0 %v7768_v28, %s12131_s26  ;;  %6150 = vmatmul.mubr.bf16.gmra.mrb[44].mxu1 %v10558_v8  ;;  %v11940_v8 = vld [vmem:[#allocation3 + $0x384] ss:$8 sps:$4 sm:$0xff]  }
 0x4cf   : > { %v13943_v44 = vpop.permute.xlu1 %8596  ;;  %6159 = vmatprep.mubr.bf16.mxu1 %v15471_v12  ;;  %6406 = vmatpush1.bf16.msra.mxu1 %v11931_v9  ;;  %v5944_v20 = vsel %vm12427_vm5, %v5942_v26, %v5943_v35  ;;  %v5947_v9 = vrot.slane %v13743_v48, 5 }
 0x4d0   : > { %15476 = vst [vmem:[#allocation24_spill] sm:$0xff] %v13943_v44  ;;  %v13945_v47 = vpop.permute.xlu0 %8594  ;;  %6407 = vmatprep.subr.bf16.mxu1 %v11936_v61  ;;  %v7960_v61 = vld [vmem:[#allocation2 + $0xaa] sm:$0xff] }
 0x4d1   : > { %8040 = vrot.lane.b32.xlu1 %v7961_v17, %s12126_s15  ;;  %v5949_v31 = vrot.slane %v5947_v9, 4 }
 0x4d2   : > { %8799 = vrot.lane.b32.xlu0 %v8150_v41, %s12127_s16 }
 0x4d3   : > { %v13956_v44 = vpop.permute.xlu1 %8785  ;;  %6408 = vmatpush1.bf16.msra.mxu1 %v11934_v50  ;;  %v10553_v50 = vrot.slane %v10545_v29, 9 }
 0x4d4   : > { %v13958_v54 = vpop.permute.xlu0 %9167  ;;  %6882 = vmatprep.subr.bf16.mxu1 %v11940_v8  ;;  %v5950_v8 = vrot.slane %v13775_v60, 5  ;;  %v10546_v60 = vld [vmem:[%s12257_s9 + $0xc0] sm:$0xe] }
 0x4d5   : > { %8228 = vrot.lane.b32.xlu1 %v8151_v43, %s12130_s25  ;;  %v5948_v26 = vsel %vm12427_vm5, %v10553_v50, %v5947_v9  ;;  %v7770_v9 = vld [vmem:[#allocation2 + $0xc1] sm:$0xff] }
 0x4d6   : > { %8991 = vrot.lane.b32.xlu0 %v7768_v28, %s12128_s17  ;;  %6160 = vmatmul.mubr.bf16.gmra.mrb[48].mxu1 %v10559_v52  ;;  %v10560_v28 = vcombine.low %v5941_v40, %v5944_v20  ;;  %v5951_v35 = vsel %vm12427_vm5, %v5949_v31, %v5950_v8  ;;  %v5954_v40 = vrot.slane %v13779_v0, 5 }
 0x4d7   : > { %v13963_v27 = vpop.permute.xlu1 %8977  ;;  %6169 = vmatprep.mubr.bf16.mxu1 %v15471_v12  ;;  %v10561_v20 = vcombine.low %v5948_v26, %v5951_v35  ;;  %v14020_v35 = vld [vmem:[#allocation2 + $0xc9] sm:$0xff] }
 0x4d8   : > { %v13965_v41 = vpop.permute.xlu0 %7834 }
 0x4d9   : > { %15477 = vst [vmem:[#allocation25_spill] sm:$0xff] %v13965_v41  ;;  %8420 = vrot.lane.b32.xlu1 %v13938_v42, %s12131_s26  ;;  %v5956_v41 = vrot.slane %v5954_v40, 4 }
 0x4da   : > { %8038 = vrot.lane.b32.xlu0 %v7960_v61, %s12126_s15 }
 0x4db   : > { %v13977_v52 = vpop.permute.xlu1 %9169 }
 0x4dc   : > { %v13979_v53 = vpop.permute.xlu0 %8214 }
 0x4dd   : > { %8612 = vrot.lane.b32.xlu1 %v7961_v17, %s12132_s6 }
 0x4de   : > { %8610 = vrot.lane.b32.xlu0 %v7960_v61, %s12132_s6  ;;  %6170 = vmatmul.mubr.bf16.gmra.mrb[52].mxu1 %v10560_v28 }
 0x4df   : > { %v13984_v48 = vpop.permute.xlu1 %7836  ;;  %6179 = vmatprep.mubr.bf16.mxu1 %v15471_v12 }
 0x4e0   : > { %15478 = vst [vmem:[#allocation26_spill] sm:$0xff] %v13984_v48  ;;  %v13986_v30 = vpop.permute.xlu0 %8406  ;;  %v10554_v48 = vrot.slane %v10546_v60, 9 }
 0x4e1   : > { %15479 = vst [vmem:[#allocation27_spill] sm:$0xff] %v13986_v30  ;;  %8801 = vrot.lane.b32.xlu1 %v8151_v43, %s12127_s16  ;;  %v5957_v30 = vrot.slane %v13805_v1, 5  ;;  %v8152_v1 = vld [vmem:[#allocation2 + $0xc0] sm:$0xff] }
 0x4e2   : > { %9183 = vrot.lane.b32.xlu0 %v7960_v61, %s15432_s23  ;;  %v5955_v61 = vsel %vm12427_vm5, %v10554_v48, %v5954_v40 }
 0x4e3   : > { %v13997_v29 = vpop.permute.xlu1 %8028  ;;  %v5958_v50 = vsel %vm12427_vm5, %v5956_v41, %v5957_v30  ;;  %v14031_v30 = vld [vmem:[#allocation2 + $0xca] sm:$0xff] }
 0x4e4   : > { %15480 = vst [vmem:[#allocation28_spill] sm:$0xff] %v13997_v29  ;;  %v13999_v28 = vpop.permute.xlu0 %8787  ;;  %v10562_v31 = vcombine.low %v5955_v61, %v5958_v50 }
 0x4e5   : > { %8993 = vrot.lane.b32.xlu1 %v13938_v42, %s12128_s17  ;;  %v7722_v42 = vld [vmem:[#allocation2] sm:$0xff] }
 0x4e6   : > { %7850 = vrot.lane.b32.xlu0 %v7770_v9, %s12125_s14  ;;  %6180 = vmatmul.mubr.bf16.gmra.mrb[56].mxu1 %v10561_v20  ;;  %v7914_v60 = vadd.f32 %v13591_v4, %v7722_v42  ;;  %v11937_v20 = vld [vmem:[%s12257_s9 + $0x78] sm:$0xff]  }
 0x4e7   : > { %v14005_v0 = vpop.permute.xlu1 %8216  ;;  %6189 = vmatprep.mubr.bf16.mxu1 %v15471_v12  ;;  %v11938_v42 = vld [vmem:[#allocation3 + $0x380] ss:$8 sps:$4 sm:$0xff]  }
 0x4e8   : > { %v14007_v43 = vpop.permute.xlu0 %8979  ;;  %v8106_v40 = vadd.f32 %v13632_v62, %v7914_v60 }
 0x4e9   : > { %9185 = vrot.lane.b32.xlu1 %v7961_v17, %s15432_s23  ;;  %v7723_v17 = vld [vmem:[#allocation2 + $0x8] sm:$0xff] }
 0x4ea   : > { %8230 = vrot.lane.b32.xlu0 %v8152_v1, %s12130_s25  ;;  %v7915_v4 = vadd.f32 %v13604_v36, %v7723_v17  ;;  %v8298_v29 = vadd.f32 %v13720_v63, %v8106_v40  ;;  %v11942_v17 = vld [vmem:[#allocation3 + $0x390] ss:$8 sps:$4 sm:$0xff]   ;;  %v11948_v63 = vld [vmem:[#allocation3 + $0x3a4] ss:$8 sps:$4 sm:$0xff]  }
 0x4eb   : > { %v14016_v8 = vpop.permute.xlu1 %8408 }
 0x4ec   : > { %v14018_v26 = vpop.permute.xlu0 %8026  ;;  %v8107_v62 = vadd.f32 %v13630_v34, %v7915_v4  ;;  %v8490_v36 = vadd.f32 %v13739_v57, %v8298_v29  ;;  %v11941_v57 = vld [vmem:[%s12257_s9 + $0x84] sm:$0xff]  }
 0x4ed   : > { %15481 = vst [vmem:[#allocation29_spill] sm:$0xff] %v14018_v26  ;;  %7852 = vrot.lane.b32.xlu1 %v14020_v35, %s12125_s14  ;;  %v7962_v26 = vld [vmem:[#allocation2 + $0xc2] sm:$0xff] }
 0x4ee   : > { %8422 = vrot.lane.b32.xlu0 %v7770_v9, %s12131_s26  ;;  %6190 = vmatmul.mubr.bf16.gmra.mrb[60].mxu1 %v10562_v31  ;;  %v8153_v31 = vld [vmem:[#allocation2 + $0xc8] sm:$0xff]  ;;  %v8682_v40 = vadd.f32 %v13772_v33, %v8490_v36  ;;  %v8299_v34 = vadd.f32 %v13770_v6, %v8107_v62  ;;  %v12009_v29 = vld [vmem:[#allocation2 + $0x20] sm:$0xff] }
 0x4ef   : > { %v14026_v41 = vpop.permute.xlu1 %8600  ;;  %6425 = vmatprep.mubr.bf16.mxu1 %v15471_v12  ;;  %v11952_v36 = vld [vmem:[#allocation3 + $0x3b4] ss:$8 sps:$4 sm:$0xff]  }
 0x4f0   : > { %v14028_v48 = vpop.permute.xlu0 %8598  ;;  %v8875_v4 = vadd.f32 %v13824_v3, %v8682_v40  ;;  %v8491_v33 = vadd.f32 %v13790_v45, %v8299_v34 }
 0x4f1   : > { %8044 = vrot.lane.b32.xlu1 %v14031_v30, %s12126_s15 }
 0x4f2   : > { %8803 = vrot.lane.b32.xlu0 %v8152_v1, %s12127_s16  ;;  %v9067_v6 = vadd.f32 %v13831_v2, %v8875_v4  ;;  %v12010_v2 = vld [vmem:[#allocation2 + $0x30] sm:$0xff] }
 0x4f3   : > { %v14039_v61 = vpop.permute.xlu1 %8789 }
 0x4f4   : > { %v14041_v50 = vpop.permute.xlu0 %9171  ;;  %v9259_v62 = vadd.f32 %v13871_v39, %v9067_v6 }
 0x4f5   : > { %8232 = vrot.lane.b32.xlu1 %v8153_v31, %s12130_s25 }
 0x4f6   : > { %8995 = vrot.lane.b32.xlu0 %v7770_v9, %s12128_s17  ;;  %6426 = vmatmul.mubr.bf16.vlgmr.msra.gmra.mrb[32].mxu1 %v11937_v20  ;;  %v7917_v9 = vadd.f32 %v12009_v29, %v13737_v25  ;;  %v8683_v25 = vadd.f32 %v13800_v49, %v8491_v33  ;;  %v14084_v49 = vld [vmem:[%s15413_s4] ss:$0 sm:$0xff] }
 0x4f7   : > { %6883 = vmatpush1.bf16.msra.mxu1 %v11938_v42  ;;  %v14048_v1 = vpop.permute.xlu1 %8981  ;;  %6435 = vmatprep.mubr.bf16.mxu1 %v15471_v12 }
 0x4f8   : > { %v14050_v60 = vpop.permute.xlu0 %7838  ;;  %6884 = vmatprep.subr.bf16.mxu1 %v11944_v11  ;;  %v11946_v11 = vld [vmem:[#allocation3 + $0x3a0] ss:$8 sps:$4 sm:$0xff]   ;;  %v8876_v40 = vadd.f32 %v13869_v13, %v8683_v25 }
 0x4f9   : > { %15482 = vst [vmem:[#allocation30_spill] sm:$0xff] %v14050_v60  ;;  %8424 = vrot.lane.b32.xlu1 %v14020_v35, %s12131_s26  ;;  %v8109_v60 = vadd.f32 %v13760_v15, %v7917_v9  ;;  %v11950_v15 = vld [vmem:[#allocation3 + $0x3b0] ss:$8 sps:$4 sm:$0xff]   ;;  %v9298_v9 = vadd.f32 %v14084_v49, %v9259_v62 }
 0x4fa   : > { %8042 = vrot.lane.b32.xlu0 %v7962_v26, %s12126_s15  ;;  %v9068_v13 = vadd.f32 %v13876_v22, %v8876_v40  ;;  %v12012_v22 = vld [vmem:[#allocation2 + $0x38] sm:$0xff] }
 0x4fb   : > { %v14061_v20 = vpop.permute.xlu1 %9173  ;;  %6885 = vmatpush1.bf16.msra.mxu1 %v11942_v17  ;;  %v8301_v3 = vadd.f32 %v13829_v18, %v8109_v60  ;;  %v11956_v18 = vld [vmem:[#allocation3 + $0x3c4] ss:$8 sps:$4 sm:$0xff]   ;;  %v7919_v33 = vadd.f32 %v12012_v22, %v13812_v16  ;;  %v11958_v16 = vld [vmem:[#allocation3 + $0x3d0] ss:$8 sps:$4 sm:$0xff]  }
 0x4fc   : > { %v14063_v42 = vpop.permute.xlu0 %8218  ;;  %6886 = vmatprep.subr.bf16.mxu1 %v11948_v63  ;;  %v7918_v63 = vadd.f32 %v12010_v2, %v13792_v46  ;;  %v12011_v60 = vld [vmem:[#allocation2 + $0x18] sm:$0xff] }
 0x4fd   : > { %8616 = vrot.lane.b32.xlu1 %v14031_v30, %s12132_s6  ;;  %v8493_v39 = vadd.f32 %v13843_v21, %v8301_v3  ;;  %v7916_v34 = vadd.f32 %v12011_v60, %v13718_v10  ;;  %v11954_v21 = vld [vmem:[#allocation3 + $0x3c0] ss:$8 sps:$4 sm:$0xff]   ;;  %v15483_v3 = vmov 1  }
 0x4fe   : > { %8614 = vrot.lane.b32.xlu0 %v7962_v26, %s12132_s6  ;;  %6436 = vmatmul.mubr.bf16.gmra.mrb[36].mxu1 %v11941_v57  ;;  %v8110_v46 = vadd.f32 %v13845_v14, %v7918_v63  ;;  %v11945_v57 = vld [vmem:[%s12257_s9 + $0x90] sm:$0xff]   ;;  %v11960_v14 = vld [vmem:[#allocation3 + $0x3d4] ss:$8 sps:$4 sm:$0xff]  }
 0x4ff   : > { %v14074_v17 = vpop.permute.xlu1 %7840  ;;  %6445 = vmatprep.mubr.bf16.mxu1 %v15471_v12  ;;  %6887 = vmatpush1.bf16.msra.mxu1 %v11946_v11  ;;  %v8685_v29 = vadd.f32 %v13853_v7, %v8493_v39  ;;  %v11962_v39 = vld [vmem:[#allocation3 + $0x3e0] ss:$8 sps:$4 sm:$0xff]  }
 0x500   : > { %v14076_v45 = vpop.permute.xlu0 %8410  ;;  %6888 = vmatprep.subr.bf16.mxu1 %v11952_v36  ;;  %v8302_v10 = vadd.f32 %v13892_v59, %v8110_v46 }
 0x501   : > { %8805 = vrot.lane.b32.xlu1 %v8153_v31, %s12127_s16  ;;  %v9260_v31 = vadd.f32 %v13890_v37, %v9068_v13  ;;  %v8878_v7 = vadd.f32 %v13956_v44, %v8685_v29  ;;  %v8111_v37 = vadd.f32 %v13822_v23, %v7919_v33 }
 0x502   : > { %9187 = vrot.lane.b32.xlu0 %v7962_v26, %s15432_s23  ;;  %v8108_v26 = vadd.f32 %v13762_v24, %v7916_v34  ;;  %v8494_v6 = vadd.f32 %v13900_v51, %v8302_v10  ;;  %v15486_v34 = vld [vmem:[#allocation22_spill] sm:$0xff]  ;;  %v11966_v10 = vld [vmem:[#allocation3 + $0x3f0] ss:$8 sps:$4 sm:$0xff]  }
 0x503   : > { %v14095_v4 = vpop.permute.xlu1 %8032  ;;  %6889 = vmatpush1.bf16.msra.mxu1 %v11950_v15  ;;  %v9070_v59 = vadd.f32 %v13963_v27, %v8878_v7  ;;  %v8303_v23 = vadd.f32 %v13919_v56, %v8111_v37  ;;  %v12013_v15 = vld [vmem:[#allocation2 + $0x48] sm:$0xff] }
 0x504   : > { %v14097_v11 = vpop.permute.xlu0 %8791  ;;  %6890 = vmatprep.subr.bf16.mxu1 %v11956_v18  ;;  %v8300_v36 = vadd.f32 %v13802_v32, %v8108_v26  ;;  %v9299_v32 = vadd.f32 %v14084_v49, %v9260_v31  ;;  %v8686_v51 = vadd.f32 %v13945_v47, %v8494_v6  ;;  %v11949_v47 = vld [vmem:[%s12257_s9 + $0x9c] sm:$0xff]   ;;  %v11953_v6 = vld [vmem:[%s12257_s9 + $0xa8] sm:$0xff]  }
 0x505   : > { %8997 = vrot.lane.b32.xlu1 %v14020_v35, %s12128_s17  ;;  %v11964_v35 = vld [vmem:[#allocation3 + $0x3e4] ss:$8 sps:$4 sm:$0xff]   ;;  %v9262_v27 = vadd.f32 %v13977_v52, %v9070_v59  ;;  %v8495_v63 = vadd.f32 %v13933_v38, %v8303_v23  ;;  %v11968_v38 = vld [vmem:[#allocation3 + $0x3f4] ss:$8 sps:$4 sm:$0xff]  }
 0x506   : > { %9363 = vperm.xlu0 %11438, %v9298_v9   ;;  %6446 = vmatmul.mubr.bf16.gmra.mrb[40].mxu1 %v11945_v57  ;;  %v8492_v44 = vadd.f32 %v13814_v55, %v8300_v36  ;;  %v7920_v55 = vadd.f32 %v12013_v15, %v13878_v5  ;;  %v8879_v2 = vadd.f32 %v13999_v28, %v8686_v51  ;;  %v15485_v5 = vld [vmem:[#allocation24_spill] sm:$0xff] }
 0x507   : > { %v14110_v24 = vpop.permute.xlu1 %8220  ;;  %6455 = vmatprep.mubr.bf16.mxu1 %v15471_v12  ;;  %6891 = vmatpush1.bf16.msra.mxu1 %v11954_v21  ;;  %v8687_v60 = vadd.f32 %v15485_v5, %v8495_v63  ;;  %v14137_v28 = vadd.f32 %v14084_v49, %v9262_v27 }
 0x508   : > { %v14112_v25 = vpop.permute.xlu0 %8983  ;;  %6892 = vmatprep.subr.bf16.mxu1 %v11960_v14  ;;  %v8684_v62 = vadd.f32 %v13855_v58, %v8492_v44  ;;  %v9071_v58 = vadd.f32 %v14007_v43, %v8879_v2  ;;  %v15487_v43 = vld [vmem:[#allocation20_spill] sm:$0xff]  ;;  %v15489_v14 = vld [vmem:[#allocation21_spill] sm:$0xff] }
 0x509   : > { %9189 = vrot.lane.b32.xlu1 %v14031_v30, %s15432_s23  ;;  %v15484_v30 = vld [vmem:[#allocation23_spill] sm:$0xff]  ;;  %v8880_v21 = vadd.f32 %v14039_v61, %v8687_v60  ;;  %v11971_v61 = vld [vmem:[#allocation3 + $0x404] ss:$8 sps:$4 sm:$0xff]   ;;  %v14201_v60 = vld [vmem:[%s12257_s9 + $0x88] sm:$0xf] }
 0x50a   : > { %11441 = vset.pattern.permute.xlu0 %v15483_v3  ;;  %v8877_v52 = vadd.f32 %v13913_v19, %v8684_v62  ;;  %v8112_v18 = vadd.f32 %v15484_v30, %v7920_v55  ;;  %v9263_v57 = vadd.f32 %v14041_v50, %v9071_v58  ;;  %v12014_v19 = vld [vmem:[#allocation2 + $0x50] sm:$0xff]  ;;  %v15488_v50 = vld [vmem:[#allocation27_spill] sm:$0xff]  ;;  %v10619_v62 = vld [vmem:[%s12257_s9 + $0x78] sm:$0xf] }
 0x50b   : > { %9636 = vperm.xlu0 %11441, %v9299_v32   ;;  %v14128_v40 = vpop.permute.xlu1 %8412  ;;  %6893 = vmatpush1.bf16.msra.mxu1 %v11958_v16  ;;  %v7921_v29 = vadd.f32 %v12014_v19, %v15487_v43  ;;  %v9072_v33 = vadd.f32 %v14048_v1, %v8880_v21  ;;  %v14184_v55 = vld [vmem:[%s12257_s9 + $0x7c] sm:$0xf]  ;;  %v6566_v63 = vshll.u32 %v10619_v62, 16  ;;  %v14212_v21 = vld [vmem:[%s12257_s9 + $0x80] sm:$0x1] }
 0x50c   : > { %v14130_v56 = vpop.permute.xlu0 %8030  ;;  %6894 = vmatprep.subr.bf16.mxu1 %v11964_v35  ;;  %v9069_v46 = vadd.f32 %v15486_v34, %v8877_v52  ;;  %v8304_v13 = vadd.f32 %v13979_v53, %v8112_v18  ;;  %v9302_v36 = vadd.f32 %v14084_v49, %v9263_v57  ;;  %v6572_v18 = vshll.u32 %v14184_v55, 16 }
 0x50d   : > { %9633 = vperm.xlu1 %11439, %v9298_v9   ;;  %v8113_v22 = vadd.f32 %v15489_v14, %v7921_v29  ;;  %v9264_v37 = vadd.f32 %v14061_v20, %v9072_v33  ;;  %v6576_v58 = vshrl.u32 %v14184_v55, 16 }
 0x50e   : > { %6456 = vmatmul.mubr.bf16.gmra.mrb[44].mxu1 %v11949_v47  ;;  %v9261_v53 = vadd.f32 %v13958_v54, %v9069_v46  ;;  %v8496_v9 = vadd.f32 %v15488_v50, %v8304_v13  ;;  %v6563_v47 = vshrl.u32 %v10619_v62, 16  ;;  %v6568_v46 = vrot.slane %v6566_v63, 5  ;;  %v7731_v63 = vld [vmem:[#allocation2 + $0x68] sm:$0xff] }
 0x50f   : > { %11443 = vset.pattern.permute.xlu0 %v15471_v12  ;;  %v14145_v26 = vpop.permute.xlu1 %8604  ;;  %6465 = vmatprep.mubr.bf16.mxu1 %v15471_v12  ;;  %v8305_v54 = vadd.f32 %v14005_v0, %v8113_v22  ;;  %v14168_v20 = vadd.f32 %v14084_v49, %v9264_v37  ;;  %v14209_v57 = vrot.slane %v6572_v18, 5  ;;  %v6578_v19 = vrot.slane %v6576_v58, 4  ;;  %v15491_v37 = vld [vmem:[#allocation29_spill] sm:$0xff] }
 0x510   : > { %v14147_v31 = vpop.permute.xlu0 %8602  ;;  %9372 = vperm.xlu0 %11443, %v14137_v28   ;;  %6895 = vmatpush1.bf16.msra.mxu1 %v11962_v39  ;;  %v8688_v7 = vadd.f32 %v14028_v48, %v8496_v9  ;;  %v9300_v1 = vadd.f32 %v14084_v49, %v9261_v53  ;;  %v10622_v39 = vld [vmem:[%s12257_s9 + $0x84] sm:$0xf]  ;;  %v6565_v34 = vrot.slane %v6563_v47, 4  ;;  %v6596_v53 = vshll.u32 %v14201_v60, 16 }
 0x511   : > { %11440 = vset.pattern.permute.xlu1 %v15471_v12  ;;  %6896 = vmatprep.subr.bf16.mxu1 %v11968_v38  ;;  %v8497_v48 = vadd.f32 %v14016_v8, %v8305_v54  ;;  %v11961_v38 = vld [vmem:[%s12257_s9 + $0xc0] sm:$0xff]   ;;  %v6587_v43 = vshrl.u32 %v10622_v39, 16  ;;  %v6590_v29 = vshll.u32 %v10622_v39, 16  ;;  %v6600_v50 = vshrl.u32 %v14201_v60, 16 }
 0x512   : > { %9366 = vperm.xlu1 %11440, %v9299_v32   ;;  %v8881_v44 = vadd.f32 %v14097_v11, %v8688_v7  ;;  %v7730_v9 = vld [vmem:[#allocation2 + $0x60] sm:$0xff]  ;;  %v6569_v22 = vor.u32 %v6568_v46, %v6565_v34  ;;  %v6579_v7 = vor.u32 %v6578_v19, %v14209_v57 }
 0x513   : > { %v8794_v59 = vpop.permute.xlu1 %8793  ;;  %v8689_v0 = vadd.f32 %v14026_v41, %v8497_v48  ;;  %v6592_v54 = vrot.slane %v6590_v29, 5 }
 0x514   : > { %v9176_v16 = vpop.permute.xlu0 %9175  ;;  %11445 = vset.pattern.permute.xlu0 %v15483_v3  ;;  %6897 = vmatpush1.bf16.msra.mxu1 %v11966_v10  ;;  %v9073_v32 = vadd.f32 %v14112_v25, %v8881_v44  ;;  %v11957_v25 = vld [vmem:[%s12257_s9 + $0xb4] sm:$0xff]   ;;  %v14229_v44 = vld [vmem:[%s12257_s9 + $0x8c] sm:$0x1] }
 0x515   : > { %9645 = vperm.xlu0 %11445, %v9302_v36   ;;  %7243 = vmatprep.subr.bf16.mxu1 %v11971_v61  ;;  %v8882_v8 = vadd.f32 %v8794_v59, %v8689_v0  ;;  %v15490_v10 = vld [vmem:[#allocation25_spill] sm:$0xff]  ;;  %v6606_v47 = vshll.u32 %v14229_v44, 16 }
 0x516   : > { %6466 = vmatmul.mubr.bf16.gmra.mrb[48].mxu1 %v11953_v6  ;;  %9369 = vperm.xlu1 %11440, %v9300_v1   ;;  %v9265_v11 = vadd.f32 %v9176_v16, %v9073_v32  ;;  %v7922_v14 = vadd.f32 %v15490_v10, %v7730_v9  ;;  %v6589_v6 = vrot.slane %v6587_v43, 4  ;;  %v14225_v16 = vrot.slane %v6596_v53, 5  ;;  %v11965_v32 = vld [vmem:[%s12257_s9 + $0xcc] sm:$0xff]  }
 0x517   : > { %v8986_v51 = vpop.permute.xlu1 %8985  ;;  %6475 = vmatprep.mubr.bf16.mxu1 %v15471_v12  ;;  %v10625_v0 = vld [vmem:[%s12257_s9 + $0x90] sm:$0xf]  ;;  %v15494_v9 = vld [vmem:[#allocation28_spill] sm:$0xff] }
 0x518   : > { %v14170_v35 = vpop.permute.xlu0 %7842  ;;  %v9074_v23 = vadd.f32 %v8986_v51, %v8882_v8  ;;  %v14181_v15 = vadd.f32 %v14084_v49, %v9265_v11  ;;  %v8114_v59 = vadd.f32 %v15491_v37, %v7922_v14  ;;  %v14235_v51 = vld [vmem:[%s12257_s9 + $0x94] sm:$0xf]  ;;  %v6593_v62 = vor.u32 %v6592_v54, %v6589_v6 }
 0x519   : > { %11446 = vset.pattern.permute.xlu0 %v15471_v12  ;;  %v6614_v18 = vshll.u32 %v10625_v0, 16  ;;  %v6620_v58 = vshll.u32 %v14235_v51, 16  ;;  %v6624_v39 = vshrl.u32 %v14235_v51, 16  ;;  %v6608_v14 = vrot.slane %v6606_v47, 5 }
 0x51a   : > { %9378 = vperm.xlu0 %11446, %v14168_v20   ;;  %11442 = vset.pattern.permute.xlu1 %v15483_v3  ;;  %v8306_v48 = vadd.f32 %v14063_v42, %v8114_v59  ;;  %v6611_v42 = vshrl.u32 %v10625_v0, 16  ;;  %v14266_v59 = vld [vmem:[%s12257_s9 + $0x98] sm:$0x1] }
 0x51b   : > { %v9178_v41 = vpop.permute.xlu1 %9177  ;;  %9639 = vperm.xlu1 %11442, %v9300_v1   ;;  %v6602_v1 = vrot.slane %v6600_v50, 4  ;;  %v6594_v50 = vrot.slane %v6593_v62, 4  ;;  %v6626_v6 = vrot.slane %v6624_v39, 4 }
 0x51c   : > { %v14177_v27 = vpop.permute.xlu0 %8222  ;;  %v9266_v2 = vadd.f32 %v9178_v41, %v9074_v23  ;;  %v6580_v23 = vrot.slane %v6579_v7, 4  ;;  %v6616_v7 = vrot.slane %v6614_v18, 5  ;;  %v11972_v18 = vld [vmem:[#allocation3 + $0x410] ss:$8 sps:$4 sm:$0xff]  }
 0x51e   : > { %11449 = vset.pattern.permute.xlu0 %v15483_v3  ;;  %6476 = vmatmul.mubr.bf16.gmra.mrb[52].mxu1 %v11957_v25  ;;  %v14198_v5 = vadd.f32 %v14084_v49, %v9266_v2  ;;  %v6570_v25 = vrot.slane %v6569_v22, 4  ;;  %v8498_v2 = vadd.f32 %v14076_v45, %v8306_v48  ;;  %v6613_v22 = vrot.slane %v6611_v42, 4 }
 0x51f   : > { %9651 = vperm.xlu0 %11449, %v14181_v15   ;;  %v14188_v52 = vpop.permute.xlu1 %7844  ;;  %9642 = vperm.xlu1 %11442, %v14137_v28  }
 0x520   : > { %v14190_v30 = vpop.permute.xlu0 %8414  ;;  %6485 = vmatprep.mubr.bf16.mxu1 %v15471_v12  ;;  %v8690_v46 = vadd.f32 %v14147_v31, %v8498_v2  ;;  %v6575_v29 = vsel %vm12287_vm2, %v6570_v25, %v14209_v57  ;;  %v6617_v62 = vor.u32 %v6616_v7, %v6613_v22  ;;  %v11975_v7 = vld [vmem:[#allocation3 + $0x420] ss:$8 sps:$4 sm:$0xff]  }
 0x523   : > { %11450 = vset.pattern.permute.xlu0 %v15471_v12  ;;  %v14205_v13 = vpop.permute.xlu1 %8036  ;;  %11444 = vset.pattern.permute.xlu1 %v15471_v12 }
 0x524   : > { %v8796_v28 = vpop.permute.xlu0 %8795  ;;  %9384 = vperm.xlu0 %11450, %v14198_v5   ;;  %9375 = vperm.xlu1 %11444, %v9302_v36   ;;  %v6582_v36 = vshll.u32 %v14212_v21, 16 }
 0x525   : > { %v8883_v10 = vadd.f32 %v8796_v28, %v8690_v46  ;;  %v11969_v28 = vld [vmem:[#allocation3 + $0x400] ss:$8 sps:$4 sm:$0xff]   ;;  %v6618_v46 = vrot.slane %v6617_v62, 4 }
 0x526   : > { %6486 = vmatmul.mubr.bf16.gmra.mrb[56].mxu1 %v11961_v38  ;;  %v6584_v41 = vrot.slane %v6582_v36, 5  ;;  %v15492_v38 = vld [vmem:[#allocation26_spill] sm:$0xff]  ;;  %v14261_v36 = vrot.slane %v6620_v58, 5 }
 0x527   : > { %v14217_v33 = vpop.permute.xlu1 %8224  ;;  %6495 = vmatprep.mubr.bf16.mxu1 %v15471_v12  ;;  %v7923_v34 = vadd.f32 %v15492_v38, %v7731_v63 }
 0x528   : > { %v8988_v61 = vpop.permute.xlu0 %8987  ;;  %11453 = vset.pattern.permute.xlu0 %v15483_v3  ;;  %11447 = vset.pattern.permute.xlu1 %v15483_v3  ;;  %v6585_v53 = vsel %vm12287_vm2, %v6580_v23, %v6584_v41  ;;  %v6599_v23 = vsel %vm12287_vm2, %v6594_v50, %v14225_v16  ;;  %v11974_v41 = vld [vmem:[#allocation3 + $0x414] ss:$8 sps:$4 sm:$0xff]   ;;  %v6627_v2 = vor.u32 %v6626_v6, %v14261_v36 }
 0x529   : > { %9648 = vperm.xlu1 %11447, %v14168_v20   ;;  %v6603_v20 = vor.u32 %v6602_v1, %v14225_v16  ;;  %v8115_v31 = vadd.f32 %v15494_v9, %v7923_v34  ;;  %v9075_v37 = vadd.f32 %v8988_v61, %v8883_v10  ;;  %v10643_v57 = vcombine.low %v6575_v29, %v6585_v53  ;;  %v11977_v53 = vld [vmem:[#allocation3 + $0x424] ss:$8 sps:$4 sm:$0xff]   ;;  %v14291_v50 = vld [vmem:[%s12257_s9 + $0xac] sm:$0xf] }
 0x52b   : > { %v14237_v11 = vpop.permute.xlu1 %8416  ;;  %v8307_v54 = vadd.f32 %v14110_v24, %v8115_v31  ;;  %v14275_v24 = vld [vmem:[%s12257_s9 + $0xa0] sm:$0xf]  ;;  %v6628_v31 = vrot.slane %v6627_v2, 4 }
 0x52c   : > { %v14239_v8 = vpop.permute.xlu0 %8034  ;;  %v6644_v58 = vshll.u32 %v14275_v24, 16  ;;  %v6648_v39 = vshrl.u32 %v14275_v24, 16 }
 0x52d   : > { %11448 = vset.pattern.permute.xlu1 %v15471_v12  ;;  %v8499_v0 = vadd.f32 %v14128_v40, %v8307_v54 }
 0x52e   : > { %6496 = vmatmul.mubr.bf16.gmra.mrb[60].mxu1 %v11965_v32  ;;  %9381 = vperm.xlu1 %11448, %v14181_v15   ;;  %v6604_v15 = vrot.slane %v6603_v20, 4  ;;  %v10628_v32 = vld [vmem:[%s12257_s9 + $0x9c] sm:$0xf]  ;;  %v14295_v6 = vrot.slane %v6644_v58, 5  ;;  %v6650_v54 = vrot.slane %v6648_v39, 4 }
 0x52f   : > { %v14250_v45 = vpop.permute.xlu1 %8608  ;;  %6914 = vmatprep.mubr.bf16.mxu1 %v15471_v12  ;;  %v8691_v20 = vadd.f32 %v14145_v26, %v8499_v0  ;;  %v6635_v47 = vshrl.u32 %v10628_v32, 16  ;;  %v6638_v63 = vshll.u32 %v10628_v32, 16  ;;  %v10631_v26 = vld [vmem:[%s12257_s9 + $0xa8] sm:$0xf]  ;;  %v6672_v32 = vshrl.u32 %v14291_v50, 16 }
 0x530   : > { %v14252_v19 = vpop.permute.xlu0 %8606  ;;  %v6609_v61 = vsel %vm12287_vm2, %v6604_v15, %v6608_v14  ;;  %v11980_v0 = vld [vmem:[#allocation3 + $0x434] ss:$8 sps:$4 sm:$0xff]   ;;  %v11983_v58 = vld [vmem:[#allocation3 + $0x444] ss:$8 sps:$4 sm:$0xff]  }
 0x531   : > { %v10644_v34 = vcombine.low %v6599_v23, %v6609_v61  ;;  %v6637_v10 = vrot.slane %v6635_v47, 4  ;;  %v6640_v15 = vrot.slane %v6638_v63, 5  ;;  %v6623_v23 = vsel %vm12287_vm2, %v6618_v46, %v14261_v36  ;;  %v14318_v63 = vld [vmem:[%s12257_s9 + $0xb0] sm:$0x1]  ;;  %v10634_v39 = vld [vmem:[%s12257_s9 + $0xb4] sm:$0xf] }
 0x532   : > { %11451 = vset.pattern.permute.xlu1 %v15483_v3 }
 0x533   : > { %v8798_v1 = vpop.permute.xlu1 %8797  ;;  %9654 = vperm.xlu1 %11451, %v14198_v5   ;;  %v6630_v5 = vshll.u32 %v14266_v59, 16 }
 0x534   : > { %v9180_v48 = vpop.permute.xlu0 %9179  ;;  %v8884_v38 = vadd.f32 %v8798_v1, %v8691_v20 }
 0x535   : > { %v9267_v25 = vadd.f32 %v9180_v48, %v9075_v37  ;;  %v6632_v29 = vrot.slane %v6630_v5, 5  ;;  %v6659_v37 = vshrl.u32 %v10631_v26, 16  ;;  %v14300_v48 = vld [vmem:[%s12257_s9 + $0xa4] sm:$0x1]  ;;  %v6651_v5 = vor.u32 %v6650_v54, %v14295_v6 }
 0x536   : > { %6915 = vmatmul.mubr.bf16.vlgmr.msra.gmra.mrb[32].mxu1 %v10643_v57  ;;  %v6662_v57 = vshll.u32 %v10631_v26, 16  ;;  %v6654_v20 = vshll.u32 %v14300_v48, 16  ;;  %v6686_v54 = vshll.u32 %v10634_v39, 16 }
 0x537   : > { %v9306_v40 = vadd.f32 %v14084_v49, %v9267_v25  ;;  %7244 = vmatpush1.bf16.msra.mxu1 %v11969_v28  ;;  %v8990_v16 = vpop.permute.xlu1 %8989  ;;  %11452 = vset.pattern.permute.xlu1 %v15471_v12  ;;  %v6668_v28 = vshll.u32 %v14291_v50, 16  ;;  %v6633_v61 = vsel %vm12287_vm2, %v6628_v31, %v6632_v29  ;;  %v6661_v47 = vrot.slane %v6659_v37, 4  ;;  %v11986_v37 = vld [vmem:[#allocation3 + $0x454] ss:$8 sps:$4 sm:$0xff]  }
 0x538   : > { %v14283_v42 = vpop.permute.xlu0 %7846  ;;  %6924 = vmatprep.mubr.bf16.mxu1 %v15471_v12  ;;  %7245 = vmatprep.subr.bf16.mxu1 %v11974_v41  ;;  %v9076_v9 = vadd.f32 %v8990_v16, %v8884_v38  ;;  %v6641_v41 = vor.u32 %v6640_v15, %v6637_v10  ;;  %v6664_v36 = vrot.slane %v6662_v57, 5  ;;  %v10645_v38 = vcombine.low %v6623_v23, %v6633_v61  ;;  %v11981_v15 = vld [vmem:[#allocation3 + $0x440] ss:$8 sps:$4 sm:$0xff]  }
 0x539   : > { %9387 = vperm.xlu1 %11452, %v9306_v40   ;;  %9657 = vperm.xlu0 %11453, %v9306_v40   ;;  %v11978_v40 = vld [vmem:[#allocation3 + $0x430] ss:$8 sps:$4 sm:$0xff]   ;;  %v14320_v16 = vrot.slane %v6668_v28, 5  ;;  %v6678_v10 = vshll.u32 %v14318_v63, 16  ;;  %v12015_v28 = vld [vmem:[#allocation2 + $0x78] sm:$0xff] }
 0x53a   : > { %v6642_v26 = vrot.slane %v6641_v41, 4  ;;  %v6665_v31 = vor.u32 %v6664_v36, %v6661_v47 }
 0x53b   : > { %v9182_v14 = vpop.permute.xlu1 %9181  ;;  %7246 = vmatpush1.bf16.msra.mxu1 %v11972_v18  ;;  %v6674_v18 = vrot.slane %v6672_v32, 4  ;;  %v15497_v32 = vld [vmem:[#allocation30_spill] sm:$0xff] }
 0x53c   : > { %v14293_v22 = vpop.permute.xlu0 %8226  ;;  %v9268_v1 = vadd.f32 %v9182_v14, %v9076_v9  ;;  %7247 = vmatprep.subr.bf16.mxu1 %v11977_v53  ;;  %v6652_v53 = vrot.slane %v6651_v5, 4  ;;  %v6656_v9 = vrot.slane %v6654_v20, 5  ;;  %v6647_v61 = vsel %vm12287_vm2, %v6642_v26, %v14295_v6 }
 0x53d   : > { %11455 = vset.pattern.permute.xlu1 %v15483_v3  ;;  %11454 = vset.pattern.permute.xlu0 %v15471_v12  ;;  %v6675_v14 = vor.u32 %v6674_v18, %v14320_v16  ;;  %v6666_v5 = vrot.slane %v6665_v31, 4  ;;  %v6680_v20 = vrot.slane %v6678_v10, 5 }
 0x53e   : > { %v9307_v25 = vadd.f32 %v14084_v49, %v9268_v1  ;;  %6925 = vmatmul.mubr.bf16.gmra.mrb[36].mxu1 %v10644_v34  ;;  %v14324_v34 = vld [vmem:[%s12257_s9 + $0xb8] sm:$0xf]  ;;  %v6657_v41 = vsel %vm12287_vm2, %v6652_v53, %v6656_v9  ;;  %v14350_v53 = vld [vmem:[%s12257_s9 + $0xbc] sm:$0x1]  ;;  %v10637_v9 = vld [vmem:[%s12257_s9 + $0xc0] sm:$0xf] }
 0x53f   : > { %v14310_v62 = vpop.permute.xlu1 %7848  ;;  %6934 = vmatprep.mubr.bf16.mxu1 %v15471_v12  ;;  %7248 = vmatpush1.bf16.msra.mxu1 %v11975_v7  ;;  %v6683_v7 = vshrl.u32 %v10634_v39, 16  ;;  %v6692_v57 = vshll.u32 %v14324_v34, 16  ;;  %v6696_v1 = vshrl.u32 %v14324_v34, 16  ;;  %v6676_v36 = vrot.slane %v6675_v14, 4  ;;  %v11989_v39 = vld [vmem:[#allocation3 + $0x464] ss:$8 sps:$4 sm:$0xff]  }
 0x540   : > { %15495 = vst [vmem:[#allocation23_spill] sm:$0xff] %v14310_v62  ;;  %v14312_v2 = vpop.permute.xlu0 %8418  ;;  %9660 = vperm.xlu1 %11455, %v9307_v25   ;;  %9390 = vperm.xlu0 %11454, %v9307_v25   ;;  %v14381_v62 = vld [vmem:[%s12257_s9 + $0xc8] sm:$0x1] }
 0x541   : > { %7249 = vmatprep.subr.bf16.mxu1 %v11980_v0  ;;  %v7924_v0 = vadd.f32 %v12015_v28, %v15497_v32  ;;  %v6685_v18 = vrot.slane %v6683_v7, 4  ;;  %v6698_v6 = vrot.slane %v6696_v1, 4  ;;  %v10646_v28 = vcombine.low %v6647_v61, %v6657_v41  ;;  %v12016_v61 = vld [vmem:[#allocation2 + $0x80] sm:$0xff] }
 0x542   : > { %v6671_v7 = vsel %vm12287_vm2, %v6666_v5, %v14320_v16  ;;  %v6702_v1 = vshll.u32 %v14350_v53, 16  ;;  %v6707_v32 = vshrl.u32 %v10637_v9, 16  ;;  %v7925_v41 = vadd.f32 %v12016_v61, %v14074_v17 }
 0x543   : > { %v14326_v46 = vpop.permute.xlu1 %8040  ;;  %7250 = vmatpush1.bf16.msra.mxu1 %v11978_v40  ;;  %v11984_v40 = vld [vmem:[#allocation3 + $0x450] ss:$8 sps:$4 sm:$0xff]   ;;  %v8116_v47 = vadd.f32 %v14130_v56, %v7924_v0  ;;  %v14358_v56 = vld [vmem:[%s12257_s9 + $0xc4] sm:$0xf]  ;;  %v6710_v0 = vshll.u32 %v10637_v9, 16 }
 0x544   : > { %15496 = vst [vmem:[#allocation24_spill] sm:$0xff] %v14326_v46  ;;  %v14328_v29 = vpop.permute.xlu0 %8799  ;;  %7251 = vmatprep.subr.bf16.mxu1 %v11983_v58  ;;  %11456 = vset.pattern.permute.xlu1 %v15471_v12  ;;  %v6688_v58 = vrot.slane %v6686_v54, 5  ;;  %v6716_v16 = vshll.u32 %v14358_v56, 16  ;;  %v6720_v5 = vshrl.u32 %v14358_v56, 16 }
 0x545   : > { %11457 = vset.pattern.permute.xlu0 %v15483_v3  ;;  %v8308_v26 = vadd.f32 %v14177_v27, %v8116_v47  ;;  %v6681_v27 = vsel %vm12287_vm2, %v6676_v36, %v6680_v20  ;;  %v11990_v47 = vld [vmem:[#allocation3 + $0x470] ss:$8 sps:$4 sm:$0xff]   ;;  %v8117_v36 = vadd.f32 %v14095_v4, %v7925_v41 }
 0x546   : > { %6935 = vmatmul.mubr.bf16.gmra.mrb[40].mxu1 %v10645_v38  ;;  %v14346_v38 = vrot.slane %v6692_v57, 5  ;;  %v6689_v54 = vor.u32 %v6688_v58, %v6685_v18  ;;  %v10647_v18 = vcombine.low %v6671_v7, %v6681_v27  ;;  %v10640_v7 = vld [vmem:[%s12257_s9 + $0xcc] sm:$0xf]  ;;  %v14386_v27 = vld [vmem:[%s12257_s9 + $0xd0] sm:$0xf] }
 0x547   : > { %v14337_v25 = vpop.permute.xlu1 %8228  ;;  %6944 = vmatprep.mubr.bf16.mxu1 %v15471_v12  ;;  %7252 = vmatpush1.bf16.msra.mxu1 %v11981_v15  ;;  %v11987_v15 = vld [vmem:[#allocation3 + $0x460] ss:$8 sps:$4 sm:$0xff]   ;;  %v8500_v14 = vadd.f32 %v14190_v30, %v8308_v26  ;;  %v6712_v26 = vrot.slane %v6710_v0, 5  ;;  %v6731_v0 = vshrl.u32 %v10640_v7, 16  ;;  %v6734_v41 = vshll.u32 %v10640_v7, 16 }
 0x548   : > { %v8992_v23 = vpop.permute.xlu0 %8991  ;;  %7253 = vmatprep.subr.bf16.mxu1 %v11986_v37  ;;  %v11992_v37 = vld [vmem:[#allocation3 + $0x474] ss:$8 sps:$4 sm:$0xff]   ;;  %v6699_v57 = vor.u32 %v6698_v6, %v14346_v38  ;;  %v6709_v6 = vrot.slane %v6707_v32, 4 }
 0x549   : > { %v8692_v30 = vadd.f32 %v14252_v19, %v8500_v14  ;;  %v6690_v19 = vrot.slane %v6689_v54, 4  ;;  %v6718_v14 = vrot.slane %v6716_v16, 5 }
 0x54a   : > { %v6700_v58 = vrot.slane %v6699_v57, 4 }
 0x54b   : > { %v14353_v31 = vpop.permute.xlu1 %8420  ;;  %7254 = vmatpush1.bf16.msra.mxu1 %v11984_v40  ;;  %v8885_v17 = vadd.f32 %v14328_v29, %v8692_v30  ;;  %v6695_v54 = vsel %vm12287_vm2, %v6690_v19, %v14346_v38  ;;  %v6740_v38 = vshll.u32 %v14386_v27, 16  ;;  %v6744_v30 = vshrl.u32 %v14386_v27, 16 }
 0x54c   : > { %v14355_v10 = vpop.permute.xlu0 %8038  ;;  %7255 = vmatprep.subr.bf16.mxu1 %v11989_v39  ;;  %v6704_v39 = vrot.slane %v6702_v1, 5 }
 0x54d   : > { %v9077_v9 = vadd.f32 %v8992_v23, %v8885_v17  ;;  %v6713_v23 = vor.u32 %v6712_v26, %v6709_v6  ;;  %v6742_v6 = vrot.slane %v6740_v38, 5  ;;  %v6746_v26 = vrot.slane %v6744_v30, 4 }
 0x54e   : > { %6945 = vmatmul.mubr.bf16.gmra.mrb[44].mxu1 %v10646_v28  ;;  %v8309_v28 = vadd.f32 %v14217_v33, %v8117_v36  ;;  %v6705_v33 = vsel %vm12287_vm2, %v6700_v58, %v6704_v39  ;;  %v6733_v58 = vrot.slane %v6731_v0, 4  ;;  %v6736_v39 = vrot.slane %v6734_v41, 5  ;;  %v12017_v0 = vld [vmem:[#allocation2 + $0x90] sm:$0xff] }
 0x54f   : > { %v14372_v20 = vpop.permute.xlu1 %8612  ;;  %6954 = vmatprep.mubr.bf16.mxu1 %v15471_v12  ;;  %7256 = vmatpush1.bf16.msra.mxu1 %v11987_v15  ;;  %v6722_v15 = vrot.slane %v6720_v5, 4  ;;  %v7926_v41 = vadd.f32 %v12017_v0, %v14170_v35 }
 0x550   : > { %v14374_v40 = vpop.permute.xlu0 %8610  ;;  %7257 = vmatprep.subr.bf16.mxu1 %v11992_v37  ;;  %v8501_v4 = vadd.f32 %v14237_v11, %v8309_v28  ;;  %v6726_v11 = vshll.u32 %v14381_v62, 16 }
 0x551   : > { %v6723_v1 = vor.u32 %v6722_v15, %v6718_v14 }
 0x552   : > { %v8693_v37 = vadd.f32 %v14250_v45, %v8501_v4  ;;  %v10648_v45 = vcombine.low %v6695_v54, %v6705_v33  ;;  %v6728_v17 = vrot.slane %v6726_v11, 5  ;;  %v6737_v54 = vor.u32 %v6736_v39, %v6733_v58 }
 0x553   : > { %v8802_v61 = vpop.permute.xlu1 %8801  ;;  %7258 = vmatpush1.bf16.msra.mxu1 %v11990_v47  ;;  %v6714_v47 = vrot.slane %v6713_v23, 4  ;;  %v6724_v36 = vrot.slane %v6723_v1, 4  ;;  %v6747_v33 = vor.u32 %v6746_v26, %v6742_v6 }
 0x554   : > { %v9184_v46 = vpop.permute.xlu0 %9183  ;;  %v8886_v16 = vadd.f32 %v8802_v61, %v8693_v37 }
 0x555   : > { %v9269_v29 = vadd.f32 %v9184_v46, %v9077_v9  ;;  %v14406_v9 = vld [vmem:[%s12257_s9 + $0xd4] sm:$0x1]  ;;  %v6719_v61 = vsel %vm12287_vm2, %v6714_v47, %v6718_v14  ;;  %v6729_v7 = vsel %vm12287_vm2, %v6724_v36, %v6728_v17  ;;  %v6738_v14 = vrot.slane %v6737_v54, 4  ;;  %v10667_v36 = vld [vmem:[%s12257_s9 + $0x78] sm:$0xe] }
 0x556   : > { %6955 = vmatmul.mubr.bf16.gmra.mrb[48].mxu1 %v10647_v18  ;;  %v6750_v23 = vshll.u32 %v14406_v9, 16  ;;  %v10649_v37 = vcombine.low %v6719_v61, %v6729_v7  ;;  %v6748_v11 = vrot.slane %v6747_v33, 4  ;;  %v8118_v47 = vadd.f32 %v14239_v8, %v7926_v41  ;;  %v10668_v33 = vld [vmem:[%s12257_s9 + $0x84] sm:$0xe] }
 0x557   : > { %v9308_v57 = vadd.f32 %v14084_v49, %v9269_v29  ;;  %v8994_v46 = vpop.permute.xlu1 %8993  ;;  %6964 = vmatprep.mubr.bf16.mxu1 %v15471_v12  ;;  %v10675_v39 = vrot.slane %v10667_v36, 9  ;;  %v7071_v41 = vrot.slane %v14229_v44, 5 }
 0x558   : > { %v14396_v32 = vpop.permute.xlu0 %7850  ;;  %v9078_v5 = vadd.f32 %v8994_v46, %v8886_v16  ;;  %v6752_v46 = vrot.slane %v6750_v23, 5  ;;  %v6743_v16 = vsel %vm12287_vm2, %v6738_v14, %v6742_v6  ;;  %v8310_v17 = vadd.f32 %v14293_v22, %v8118_v47 }
 0x559   : > { %9393 = vperm.xlu1 %11456, %v9308_v57   ;;  %9663 = vperm.xlu0 %11457, %v9308_v57   ;;  %v7064_v6 = vrot.slane %v14212_v21, 5 }
 0x55a   : > { %v8502_v43 = vadd.f32 %v14312_v2, %v8310_v17  ;;  %v7068_v2 = vrot.slane %v14201_v60, 5 }
 0x55b   : > { %v9186_v18 = vpop.permute.xlu1 %9185 }
 0x55c   : > { %v14401_v19 = vpop.permute.xlu0 %8230  ;;  %v9270_v28 = vadd.f32 %v9186_v18, %v9078_v5  ;;  %v7061_v5 = vrot.slane %v14184_v55, 5  ;;  %v8694_v8 = vadd.f32 %v14374_v40, %v8502_v43  ;;  %v7070_v0 = vrot.slane %v7068_v2, 4 }
 0x55d   : > { %11459 = vset.pattern.permute.xlu1 %v15483_v3  ;;  %11458 = vset.pattern.permute.xlu0 %v15471_v12 }
 0x55e   : > { %v9309_v15 = vadd.f32 %v14084_v49, %v9270_v28  ;;  %6965 = vmatmul.mubr.bf16.gmra.mrb[52].mxu1 %v10648_v45  ;;  %v6753_v45 = vsel %vm12287_vm2, %v6748_v11, %v6752_v46  ;;  %v7063_v26 = vrot.slane %v7061_v5, 4  ;;  %v12018_v28 = vld [vmem:[#allocation2 + $0x98] sm:$0xff]  ;;  %v7062_v7 = vsel %vm12427_vm5, %v10675_v39, %v7061_v5 }
 0x55f   : > { %v14411_v4 = vpop.permute.xlu1 %7852  ;;  %6974 = vmatprep.mubr.bf16.mxu1 %v15471_v12  ;;  %v10650_v35 = vcombine.low %v6743_v16, %v6753_v45  ;;  %v7927_v55 = vadd.f32 %v12018_v28, %v14188_v52  ;;  %v10676_v46 = vrot.slane %v10668_v33, 9  ;;  %v7075_v5 = vrot.slane %v14235_v51, 5 }
 0x560   : > { %v14413_v29 = vpop.permute.xlu0 %8422  ;;  %9666 = vperm.xlu1 %11459, %v9309_v15   ;;  %9396 = vperm.xlu0 %11458, %v9309_v15   ;;  %v7065_v21 = vsel %vm12427_vm5, %v7063_v26, %v7064_v6  ;;  %v7078_v39 = vrot.slane %v14266_v59, 5  ;;  %v7082_v28 = vrot.slane %v14275_v24, 5  ;;  %v10670_v59 = vld [vmem:[%s12257_s9 + $0x9c] sm:$0xe]  ;;  %v11995_v24 = vld [vmem:[%s15412_s3 + $0x48] sm:$0xff]   ;;  %v7089_v33 = vrot.slane %v14291_v50, 5 }
 0x561   : > { %v8119_v54 = vadd.f32 %v14205_v13, %v7927_v55  ;;  %v11999_v50 = vld [vmem:[%s15412_s3 + $0x58] sm:$0xff]  }
 0x563   : > { %v14419_v57 = vpop.permute.xlu1 %8044  ;;  %v8311_v40 = vadd.f32 %v14337_v25, %v8119_v54  ;;  %v7069_v25 = vsel %vm12427_vm5, %v10676_v46, %v7068_v2  ;;  %v11994_v2 = vld [vmem:[%s15412_s3] sm:$0xff]   ;;  %v7091_v46 = vrot.slane %v7089_v33, 4 }
 0x564   : > { %v8804_v1 = vpop.permute.xlu0 %8803  ;;  %11460 = vset.pattern.permute.xlu1 %v15471_v12  ;;  %11461 = vset.pattern.permute.xlu0 %v15483_v3 }
 0x565   : > { %v8887_v52 = vadd.f32 %v8804_v1, %v8694_v8  ;;  %v8503_v16 = vadd.f32 %v14353_v31, %v8311_v40  ;;  %v10669_v31 = vld [vmem:[%s12257_s9 + $0x90] sm:$0xe]  ;;  %v10678_v8 = vrot.slane %v10670_v59, 9  ;;  %v10674_v59 = vld [vmem:[%s12257_s9 + $0xcc] sm:$0xe] }
 0x566   : > { %6975 = vmatmul.mubr.bf16.gmra.mrb[56].mxu1 %v10649_v37  ;;  %v10683_v37 = vcombine.low %v7062_v7, %v7065_v21  ;;  %v10677_v17 = vrot.slane %v10669_v31, 9  ;;  %v7084_v7 = vrot.slane %v7082_v28, 4  ;;  %v7085_v21 = vrot.slane %v14300_v48, 5  ;;  %v11996_v48 = vld [vmem:[%s15412_s3 + $0x8] sm:$0xff]   ;;  %v11997_v40 = vld [vmem:[%s15412_s3 + $0x50] sm:$0xff]  }
 0x567   : > { %v14424_v38 = vpop.permute.xlu1 %8232  ;;  %6984 = vmatprep.mubr.bf16.mxu1 %v15471_v12  ;;  %v8695_v60 = vadd.f32 %v14372_v20, %v8503_v16  ;;  %v7083_v54 = vsel %vm12427_vm5, %v10678_v8, %v7082_v28  ;;  %v12004_v31 = vld [vmem:[%s15412_s3 + $0x28] sm:$0xff]   ;;  %v7110_v28 = vrot.slane %v14386_v27, 5  ;;  %v10682_v8 = vrot.slane %v10674_v59, 9  ;;  %v12007_v27 = vld [vmem:[%s15412_s3 + $0x78] sm:$0xff]  }
 0x568   : > { %v8996_v30 = vpop.permute.xlu0 %8995  ;;  %v7076_v51 = vsel %vm12427_vm5, %v10677_v17, %v7075_v5  ;;  %v10673_v17 = vld [vmem:[%s12257_s9 + $0xc0] sm:$0xe] }
 0x569   : > { %v9079_v23 = vadd.f32 %v8996_v30, %v8887_v52  ;;  %v7072_v30 = vsel %vm12427_vm5, %v7070_v0, %v7071_v41  ;;  %v7086_v52 = vsel %vm12427_vm5, %v7084_v7, %v7085_v21  ;;  %v7092_v0 = vrot.slane %v14318_v63, 5  ;;  %v12000_v41 = vld [vmem:[%s15412_s3 + $0x18] sm:$0xff]  }
 0x56a   : > { %v10684_v20 = vcombine.low %v7069_v25, %v7072_v30  ;;  %v7096_v63 = vrot.slane %v14324_v34, 5  ;;  %v12002_v25 = vld [vmem:[%s15412_s3 + $0x20] sm:$0xff]   ;;  %v12003_v34 = vld [vmem:[%s15412_s3 + $0x68] sm:$0xff]   ;;  %v7112_v7 = vrot.slane %v7110_v28, 4  ;;  %v7113_v21 = vrot.slane %v14406_v9, 5 }
 0x56b   : > { %v14435_v18 = vpop.permute.xlu1 %8424  ;;  %v7388_v9 = vld [vmem:[%s15411_s2] sm:$0x3] }
 0x56c   : > { %v14437_v58 = vpop.permute.xlu0 %8042 }
 0x56e   : > { %6985 = vmatmul.mubr.bf16.gmra.mrb[60].mxu1 %v10650_v35  ;;  %v7077_v35 = vrot.slane %v7075_v5, 4  ;;  %v7098_v5 = vrot.slane %v7096_v63, 4 }
 0x56f   : > { %v14443_v15 = vpop.permute.xlu1 %8616  ;;  %7275 = vmatprep.mubr.bf16.mxu1 %v15471_v12 }
 0x570   : > { %v14445_v22 = vpop.permute.xlu0 %8614  ;;  %v7079_v43 = vsel %vm12427_vm5, %v7077_v35, %v7078_v39  ;;  %v12006_v39 = vld [vmem:[%s15412_s3 + $0x30] sm:$0xff]  }
 0x571   : > { %v10685_v55 = vcombine.low %v7076_v51, %v7079_v43  ;;  %v7106_v51 = vrot.slane %v14381_v62, 5  ;;  %v7111_v62 = vsel %vm12427_vm5, %v10682_v8, %v7110_v28 }
 0x573   : > { %v8806_v14 = vpop.permute.xlu1 %8805 }
 0x574   : > { %v9188_v11 = vpop.permute.xlu0 %9187  ;;  %v8888_v44 = vadd.f32 %v8806_v14, %v8695_v60  ;;  %v11998_v14 = vld [vmem:[%s15412_s3 + $0x10] sm:$0xff]   ;;  %v12001_v60 = vld [vmem:[%s15412_s3 + $0x60] sm:$0xff]  }
 0x575   : > { %v9271_v45 = vadd.f32 %v9188_v11, %v9079_v23  ;;  %v10671_v23 = vld [vmem:[%s12257_s9 + $0xa8] sm:$0xe] }
 0x576   : > { %7276 = vmatmul.mubr.bf16.vlgmr.msra.gmra.mrb[32].mxu1 %v10683_v37  ;;  %v10686_v37 = vcombine.low %v7083_v54, %v7086_v52  ;;  %v10679_v11 = vrot.slane %v10671_v23, 9 }
 0x577   : > { %v9310_v13 = vadd.f32 %v14084_v49, %v9271_v45  ;;  %v8998_v1 = vpop.permute.xlu1 %8997  ;;  %7285 = vmatprep.mubr.bf16.mxu1 %v15471_v12  ;;  %v7093_v45 = vsel %vm12427_vm5, %v7091_v46, %v7092_v0 }
 0x578   : > { %v9080_v47 = vadd.f32 %v8998_v1, %v8888_v44  ;;  %v7090_v16 = vsel %vm12427_vm5, %v10679_v11, %v7089_v33  ;;  %v7099_v44 = vrot.slane %v14350_v53, 5  ;;  %v7103_v53 = vrot.slane %v14358_v56, 5 }
 0x579   : > { %9399 = vperm.xlu1 %11460, %v9310_v13   ;;  %9669 = vperm.xlu0 %11461, %v9310_v13   ;;  %v10672_v13 = vld [vmem:[%s12257_s9 + $0xb4] sm:$0xe]  ;;  %v10687_v1 = vcombine.low %v7090_v16, %v7093_v45  ;;  %s12134_s9 = smov [#allocation6]  }
 0x57a   : > { %v10680_v30 = vrot.slane %v10672_v13, 9  ;;  %s12056_s30 = sshll.u32 %s12134_s9, 4  ;;  %s12057_s30 = int_to_ptr.vmem [resolvable:$false] %s12056_s30 }
 0x57b   : > { %v9190_v36 = vpop.permute.xlu1 %9189  ;;  %s12058_s7 = scalar_lea.vmem %s12057_s30, 1024 }
 0x57c   : > { %v9272_v26 = vadd.f32 %v9190_v36, %v9080_v47  ;;  %v7097_v47 = vsel %vm12427_vm5, %v10680_v30, %v7096_v63  ;;  %v12005_v36 = vld [vmem:[%s15412_s3 + $0x70] sm:$0xff]  }
 0x57d   : > { %11463 = vset.pattern.permute.xlu1 %v15483_v3  ;;  %11462 = vset.pattern.permute.xlu0 %v15471_v12 }
 0x57e   : > { %v9311_v6 = vadd.f32 %v14084_v49, %v9272_v26  ;;  %7286 = vmatmul.mubr.bf16.gmra.mrb[36].mxu1 %v10684_v20  ;;  %v11993_v49 = vld [vmem:[%s15412_s3 + $0x40] sm:$0xff]   ;;  %v7100_v20 = vsel %vm12427_vm5, %v7098_v5, %v7099_v44  ;;  %v10681_v26 = vrot.slane %v10673_v17, 9 }
 0x57f   : > { %7295 = vmatprep.mubr.bf16.mxu1 %v15471_v12  ;;  %10796 = vmatprep.subr.bf16.mxu0 %v11993_v49  ;;  %v10688_v35 = vcombine.low %v7097_v47, %v7100_v20  ;;  %v7114_v49 = vsel %vm12427_vm5, %v7112_v7, %v7113_v21 }
 0x580   : > { %9672 = vperm.xlu1 %11463, %v9311_v6   ;;  %9402 = vperm.xlu0 %11462, %v9311_v6   ;;  %v7105_v6 = vrot.slane %v7103_v53, 4  ;;  %v7104_v56 = vsel %vm12427_vm5, %v10681_v26, %v7103_v53 }
 0x581   : > { %10797 = vmatpush3.bf16.msra.mxu0 %v11994_v2  ;;  %v10690_v2 = vcombine.low %v7111_v62, %v7114_v49 }
 0x582   : > { %10798 = vmatprep.subr.bf16.mxu0 %v11995_v24  ;;  %v7107_v43 = vsel %vm12427_vm5, %v7105_v6, %v7106_v51  ;;  %v12008_v24 = vld [vmem:[%s15412_s3 + $0x38] sm:$0xff]  }
 0x584   : > { %11465 = vset.pattern.permute.xlu0 %v15483_v3  ;;  %11464 = vset.pattern.permute.xlu1 %v15471_v12 }
 0x585   : > { %10799 = vmatpush3.bf16.msra.mxu0 %v11996_v48  ;;  %v15499_v48 = vld [vmem:[#allocation11_spill] sm:$0xff] }
 0x586   : > { %7296 = vmatmul.mubr.bf16.gmra.mrb[40].mxu1 %v10685_v55  ;;  %10800 = vmatprep.subr.bf16.mxu0 %v11997_v40  ;;  %v10689_v55 = vcombine.low %v7104_v56, %v7107_v43  ;;  %v15500_v54 = vsub.s32 0, %v15499_v48  ;;  %v15501_v52 = vsub.s32 1, %v15499_v48 }
 0x587   : > { %7305 = vmatprep.mubr.bf16.mxu1 %v15471_v12 }
 0x588   : > { %v14571_v61 = vrot.slane %v7388_v9, %v15500_v54  ;;  %v14575_v33 = vrot.slane %v7388_v9, %v15501_v52 }
 0x589   : > { %10801 = vmatpush3.bf16.msra.mxu0 %v11998_v14 }
 0x58a   : > { %10802 = vmatprep.subr.bf16.mxu0 %v11999_v50 }
 0x58d   : > { %10803 = vmatpush3.bf16.msra.mxu0 %v12000_v41 }
 0x58e   : > { %7306 = vmatmul.mubr.bf16.gmra.mrb[44].mxu1 %v10686_v37  ;;  %10804 = vmatprep.subr.bf16.mxu0 %v12001_v60 }
 0x58f   : > { %7315 = vmatprep.mubr.bf16.mxu1 %v15471_v12 }
 0x591   : > { %10805 = vmatpush3.bf16.msra.mxu0 %v12002_v25 }
 0x592   : > { %10806 = vmatprep.subr.bf16.mxu0 %v12003_v34 }
 0x595   : > { %10807 = vmatpush3.bf16.msra.mxu0 %v12004_v31 }
 0x596   : > { %7316 = vmatmul.mubr.bf16.gmra.mrb[48].mxu1 %v10687_v1  ;;  %10808 = vmatprep.subr.bf16.mxu0 %v12005_v36 }
 0x597   : > { %7325 = vmatprep.mubr.bf16.mxu1 %v15471_v12 }
 0x599   : > { %10809 = vmatpush3.bf16.msra.mxu0 %v12006_v39 }
 0x59a   : > { %10810 = vmatprep.subr.bf16.mxu0 %v12007_v27 }
 0x59d   : > { %10811 = vmatpush3.bf16.msra.mxu0 %v12008_v24 }
 0x59e   : > { %7326 = vmatmul.mubr.bf16.gmra.mrb[52].mxu1 %v10688_v35 }
 0x59f   : > { %7335 = vmatprep.mubr.bf16.mxu1 %v15471_v12 }
 0x5a6   : > { %7336 = vmatmul.mubr.bf16.gmra.mrb[56].mxu1 %v10689_v55 }
 0x5a7   : > { %7345 = vmatprep.mubr.bf16.mxu1 %v15471_v12 }
 0x5ae   : > { %7346 = vmatmul.mubr.bf16.gmra.mrb[60].mxu1 %v10690_v2 }
 0x649   : > { %v7277_v40 = vpop.f32.mrb[32].mxu1 }
 0x64a   : > { %v7400_v23 = vadd.f32 %v14571_v61, %v7277_v40  ;;  %v7279_v37 = vpop.f32.mrb[33].mxu1 }
 0x64b   : > { %v7401_v14 = vadd.f32 %v14575_v33, %v7279_v37  ;;  %v7281_v11 = vpop.f32.mrb[34].mxu1 }
 0x64c   : > { %v7402_v46 = vadd.f32 %v14571_v61, %v7281_v11  ;;  %v7283_v0 = vpop.f32.mrb[35].mxu1  ;;  %v7432_v41 = vmax.f32 %v7400_v23, 0.0 }
 0x64d   : > { %v7403_v50 = vadd.f32 %v14575_v33, %v7283_v0  ;;  %v7433_v45 = vmax.f32 %v7401_v14, 0.0 }
 0x64e   : > { %v7434_v16 = vmax.f32 %v7402_v46, 0.0 }
 0x64f   : > { %v7435_v63 = vmax.f32 %v7403_v50, 0.0 }
 0x650   : > { %v7464_v60 = vpack.c.bf16 %v7434_v16, %v7432_v41 }
 0x651   : > { %v7465_v13 = vpack.c.bf16 %v7435_v63, %v7433_v45  ;;  %v7287_v1 = vpop.f32.mrb[36].mxu1 }
 0x652   : > { %v7404_v25 = vadd.f32 %v14571_v61, %v7287_v1  ;;  %v7289_v30 = vpop.f32.mrb[37].mxu1 }
 0x653   : > { %v7405_v5 = vadd.f32 %v14575_v33, %v7289_v30  ;;  %v7291_v44 = vpop.f32.mrb[38].mxu1  ;;  %7640 = vmatprep.mubr.bf16.mxu0 %v7465_v13 }
 0x654   : > { %v7406_v34 = vadd.f32 %v14571_v61, %v7291_v44  ;;  %v7293_v31 = vpop.f32.mrb[39].mxu1  ;;  %7641 = vmatmul.mubr.bf16.vlgmr.msra.gmra.mrb[32].mxu0 %v7464_v60  ;;  %v7436_v20 = vmax.f32 %v7404_v25, 0.0 }
 0x655   : > { %v7407_v47 = vadd.f32 %v14575_v33, %v7293_v31  ;;  %v7437_v36 = vmax.f32 %v7405_v5, 0.0 }
 0x656   : > { %v7438_v53 = vmax.f32 %v7406_v34, 0.0 }
 0x657   : > { %v7439_v17 = vmax.f32 %v7407_v47, 0.0 }
 0x658   : > { %v7466_v35 = vpack.c.bf16 %v7438_v53, %v7436_v20 }
 0x659   : > { %v7467_v39 = vpack.c.bf16 %v7439_v17, %v7437_v36  ;;  %v7297_v26 = vpop.f32.mrb[40].mxu1 }
 0x65a   : > { %v7408_v6 = vadd.f32 %v14571_v61, %v7297_v26  ;;  %v7299_v51 = vpop.f32.mrb[41].mxu1 }
 0x65b   : > { %v7409_v56 = vadd.f32 %v14575_v33, %v7299_v51  ;;  %v7301_v43 = vpop.f32.mrb[42].mxu1  ;;  %7648 = vmatprep.mubr.bf16.mxu0 %v7467_v39 }
 0x65c   : > { %v7410_v28 = vadd.f32 %v14571_v61, %v7301_v43  ;;  %v7303_v59 = vpop.f32.mrb[43].mxu1  ;;  %7649 = vmatmul.mubr.bf16.gmra.mrb[36].mxu0 %v7466_v35  ;;  %v7440_v8 = vmax.f32 %v7408_v6, 0.0 }
 0x65d   : > { %v7411_v55 = vadd.f32 %v14575_v33, %v7303_v59  ;;  %v7441_v21 = vmax.f32 %v7409_v56, 0.0 }
 0x65e   : > { %v7442_v7 = vmax.f32 %v7410_v28, 0.0 }
 0x65f   : > { %v7443_v62 = vmax.f32 %v7411_v55, 0.0 }
 0x660   : > { %v7468_v49 = vpack.c.bf16 %v7442_v7, %v7440_v8 }
 0x661   : > { %v7469_v2 = vpack.c.bf16 %v7443_v62, %v7441_v21  ;;  %v7307_v27 = vpop.f32.mrb[44].mxu1 }
 0x662   : > { %v7412_v24 = vadd.f32 %v14571_v61, %v7307_v27  ;;  %v7309_v9 = vpop.f32.mrb[45].mxu1 }
 0x663   : > { %v7413_v48 = vadd.f32 %v14575_v33, %v7309_v9  ;;  %v7311_v54 = vpop.f32.mrb[46].mxu1  ;;  %7656 = vmatprep.mubr.bf16.mxu0 %v7469_v2 }
 0x664   : > { %v7414_v52 = vadd.f32 %v14571_v61, %v7311_v54  ;;  %v7313_v40 = vpop.f32.mrb[47].mxu1  ;;  %7657 = vmatmul.mubr.bf16.gmra.mrb[40].mxu0 %v7468_v49  ;;  %v7444_v37 = vmax.f32 %v7412_v24, 0.0 }
 0x665   : > { %v7415_v23 = vadd.f32 %v14575_v33, %v7313_v40  ;;  %v7445_v11 = vmax.f32 %v7413_v48, 0.0 }
 0x666   : > { %v7446_v14 = vmax.f32 %v7414_v52, 0.0 }
 0x667   : > { %v7447_v46 = vmax.f32 %v7415_v23, 0.0 }
 0x668   : > { %v7470_v0 = vpack.c.bf16 %v7446_v14, %v7444_v37 }
 0x669   : > { %v7471_v50 = vpack.c.bf16 %v7447_v46, %v7445_v11  ;;  %v7317_v41 = vpop.f32.mrb[48].mxu1 }
 0x66a   : > { %v7416_v16 = vadd.f32 %v14571_v61, %v7317_v41  ;;  %v7319_v45 = vpop.f32.mrb[49].mxu1 }
 0x66b   : > { %v7417_v63 = vadd.f32 %v14575_v33, %v7319_v45  ;;  %v7321_v60 = vpop.f32.mrb[50].mxu1  ;;  %7664 = vmatprep.mubr.bf16.mxu0 %v7471_v50 }
 0x66c   : > { %v7418_v13 = vadd.f32 %v14571_v61, %v7321_v60  ;;  %v7323_v1 = vpop.f32.mrb[51].mxu1  ;;  %7665 = vmatmul.mubr.bf16.gmra.mrb[44].mxu0 %v7470_v0  ;;  %v7448_v30 = vmax.f32 %v7416_v16, 0.0 }
 0x66d   : > { %v7419_v25 = vadd.f32 %v14575_v33, %v7323_v1  ;;  %v7449_v44 = vmax.f32 %v7417_v63, 0.0 }
 0x66e   : > { %v7450_v5 = vmax.f32 %v7418_v13, 0.0 }
 0x66f   : > { %v7451_v34 = vmax.f32 %v7419_v25, 0.0 }
 0x670   : > { %v7472_v31 = vpack.c.bf16 %v7450_v5, %v7448_v30 }
 0x671   : > { %v7473_v47 = vpack.c.bf16 %v7451_v34, %v7449_v44  ;;  %v7327_v20 = vpop.f32.mrb[52].mxu1 }
 0x672   : > { %v7420_v53 = vadd.f32 %v14571_v61, %v7327_v20  ;;  %v7329_v36 = vpop.f32.mrb[53].mxu1 }
 0x673   : > { %v7421_v17 = vadd.f32 %v14575_v33, %v7329_v36  ;;  %v7331_v35 = vpop.f32.mrb[54].mxu1  ;;  %7672 = vmatprep.mubr.bf16.mxu0 %v7473_v47 }
 0x674   : > { %v7422_v39 = vadd.f32 %v14571_v61, %v7331_v35  ;;  %v7333_v26 = vpop.f32.mrb[55].mxu1  ;;  %7673 = vmatmul.mubr.bf16.gmra.mrb[48].mxu0 %v7472_v31  ;;  %v7452_v51 = vmax.f32 %v7420_v53, 0.0 }
 0x675   : > { %v7423_v6 = vadd.f32 %v14575_v33, %v7333_v26  ;;  %v7453_v43 = vmax.f32 %v7421_v17, 0.0 }
 0x676   : > { %v7454_v56 = vmax.f32 %v7422_v39, 0.0 }
 0x677   : > { %v7455_v28 = vmax.f32 %v7423_v6, 0.0 }
 0x678   : > { %v7474_v59 = vpack.c.bf16 %v7454_v56, %v7452_v51 }
 0x679   : > { %v7475_v55 = vpack.c.bf16 %v7455_v28, %v7453_v43  ;;  %v7337_v8 = vpop.f32.mrb[56].mxu1 }
 0x67a   : > { %v7424_v7 = vadd.f32 %v14571_v61, %v7337_v8  ;;  %v7339_v21 = vpop.f32.mrb[57].mxu1 }
 0x67b   : > { %v7425_v62 = vadd.f32 %v14575_v33, %v7339_v21  ;;  %v7341_v49 = vpop.f32.mrb[58].mxu1  ;;  %7680 = vmatprep.mubr.bf16.mxu0 %v7475_v55 }
 0x67c   : > { %v7426_v2 = vadd.f32 %v14571_v61, %v7341_v49  ;;  %v7343_v27 = vpop.f32.mrb[59].mxu1  ;;  %7681 = vmatmul.mubr.bf16.gmra.mrb[52].mxu0 %v7474_v59  ;;  %v7456_v9 = vmax.f32 %v7424_v7, 0.0 }
 0x67d   : > { %v7427_v24 = vadd.f32 %v14575_v33, %v7343_v27  ;;  %v7457_v54 = vmax.f32 %v7425_v62, 0.0 }
 0x67e   : > { %v7458_v48 = vmax.f32 %v7426_v2, 0.0 }
 0x67f   : > { %v7459_v52 = vmax.f32 %v7427_v24, 0.0 }
 0x680   : > { %v7476_v40 = vpack.c.bf16 %v7458_v48, %v7456_v9 }
 0x681   : > { %v7477_v23 = vpack.c.bf16 %v7459_v52, %v7457_v54  ;;  %v7347_v37 = vpop.f32.mrb[60].mxu1 }
 0x682   : > { %v7428_v14 = vadd.f32 %v14571_v61, %v7347_v37  ;;  %v7349_v11 = vpop.f32.mrb[61].mxu1 }
 0x683   : > { %v7429_v46 = vadd.f32 %v14575_v33, %v7349_v11  ;;  %v7351_v0 = vpop.f32.mrb[62].mxu1  ;;  %7688 = vmatprep.mubr.bf16.mxu0 %v7477_v23 }
 0x684   : > { %v7430_v50 = vadd.f32 %v14571_v61, %v7351_v0  ;;  %v7353_v41 = vpop.f32.mrb[63].mxu1  ;;  %7689 = vmatmul.mubr.bf16.gmra.mrb[56].mxu0 %v7476_v40  ;;  %v7460_v45 = vmax.f32 %v7428_v14, 0.0 }
 0x685   : > { %v7431_v16 = vadd.f32 %v14575_v33, %v7353_v41  ;;  %v7461_v60 = vmax.f32 %v7429_v46, 0.0 }
 0x686   : > { %v7462_v63 = vmax.f32 %v7430_v50, 0.0 }
 0x687   : > { %v7463_v13 = vmax.f32 %v7431_v16, 0.0 }
 0x688   : > { %v7478_v1 = vpack.c.bf16 %v7462_v63, %v7460_v45 }
 0x689   : > { %v7479_v25 = vpack.c.bf16 %v7463_v13, %v7461_v60 }
 0x68b   : > { %7696 = vmatprep.mubr.bf16.mxu0 %v7479_v25 }
 0x68c   : > { %7697 = vmatmul.mubr.bf16.gmra.mrb[60].mxu0 %v7478_v1  ;;  %v14651_v1 = vpop.permute.xlu1 %9633 }
 0x68d   : > { %15504 = vst [vmem:[#allocation20_spill] sm:$0xff] %v14651_v1 }
 0x727   : > { %v10812_v30 = vpop.f32.mrb[32].mxu0 }
 0x728   : > { %v10813_v5 = vpop.f32.mrb[33].mxu0 }
 0x729   : > { %v10814_v44 = vadd.f32 %v10813_v5, %v10812_v30  ;;  %v10815_v34 = vpop.f32.mrb[34].mxu0 }
 0x72a   : > { %v10816_v31 = vpop.f32.mrb[35].mxu0 }
 0x72b   : > { %7706 = vst.msk [vmem:[#allocation2 + $0xd9] sm:$0xff] %vm239_vm6, %v10814_v44  ;;  %v10817_v61 = vadd.f32 %v10816_v31, %v10815_v34  ;;  %v14661_v31 = vpop.permute.xlu1 %9366 }
 0x72c   : > { %15505 = vst [vmem:[#allocation27_spill] sm:$0xff] %v14661_v31 }
 0x72d   : > { %7707 = vst.msk [vmem:[#allocation2 + $0xe1] sm:$0xff] %vm239_vm6, %v10817_v61 }
 0x72f   : > { %v10818_v47 = vpop.f32.mrb[36].mxu0 }
 0x730   : > { %v10819_v33 = vpop.f32.mrb[37].mxu0 }
 0x731   : > { %v10820_v20 = vadd.f32 %v10819_v33, %v10818_v47  ;;  %v10821_v53 = vpop.f32.mrb[38].mxu0 }
 0x732   : > { %v10822_v36 = vpop.f32.mrb[39].mxu0  ;;  %v7772_v17 = vld [vmem:[#allocation2 + $0xd9] sm:$0xff] }
 0x733   : > { %7708 = vst.msk [vmem:[#allocation2 + $0xf1] sm:$0xff] %vm239_vm6, %v10820_v20  ;;  %v10823_v35 = vadd.f32 %v10822_v36, %v10821_v53  ;;  %7854 = vrot.lane.b32.xlu0 %v7772_v17, %s12125_s14  ;;  %v14615_v26 = vld [vmem:[#allocation2 + $0xd8] sm:$0xff] }
 0x734   : > { %v7773_v39 = vld [vmem:[#allocation2 + $0xe1] sm:$0xff] }
 0x735   : > { %7709 = vst.msk [vmem:[#allocation2 + $0xf9] sm:$0xff] %vm239_vm6, %v10823_v35  ;;  %7856 = vrot.lane.b32.xlu1 %v7773_v39, %s12125_s14  ;;  %v7965_v56 = vld [vmem:[#allocation2 + $0xe2] sm:$0xff]  ;;  %v7964_v24 = vld [vmem:[#allocation2 + $0xda] sm:$0xff]  ;;  %v14670_v35 = vpop.permute.xlu1 %9369 }
 0x736   : > { %v14622_v8 = vld [vmem:[#allocation2 + $0xe0] sm:$0xff]  ;;  %15507 = vst [vmem:[#allocation25_spill] sm:$0xff] %v14670_v35 }
 0x737   : > { %v10824_v6 = vpop.f32.mrb[40].mxu0  ;;  %8234 = vrot.lane.b32.xlu0 %v14615_v26, %s12130_s25 }
 0x738   : > { %v10825_v51 = vpop.f32.mrb[41].mxu0 }
 0x739   : > { %v10826_v43 = vadd.f32 %v10825_v51, %v10824_v6  ;;  %v10827_v28 = vpop.f32.mrb[42].mxu0  ;;  %8048 = vrot.lane.b32.xlu1 %v7965_v56, %s12126_s15  ;;  %v14679_v51 = vpop.permute.xlu1 %9639 }
 0x73a   : > { %v10828_v59 = vpop.f32.mrb[43].mxu0  ;;  %v7774_v50 = vld [vmem:[#allocation2 + $0xf1] sm:$0xff]  ;;  %15509 = vst [vmem:[#allocation26_spill] sm:$0xff] %v14679_v51 }
 0x73b   : > { %7710 = vst.msk [vmem:[#allocation2 + $0x109] sm:$0xff] %vm239_vm6, %v10826_v43  ;;  %v10829_v55 = vadd.f32 %v10828_v59, %v10827_v28  ;;  %8426 = vrot.lane.b32.xlu0 %v7772_v17, %s12131_s26  ;;  %v14647_v45 = vld [vmem:[#allocation2 + $0xf0] sm:$0xff] }
 0x73c   : > { %v7775_v16 = vld [vmem:[#allocation2 + $0xf9] sm:$0xff]  ;;  %15503 = vst [vmem:[#allocation22_spill] sm:$0xff] %v14647_v45 }
 0x73d   : > { %7711 = vst.msk [vmem:[#allocation2 + $0x111] sm:$0xff] %vm239_vm6, %v10829_v55  ;;  %8236 = vrot.lane.b32.xlu1 %v14622_v8, %s12130_s25  ;;  %v7967_v13 = vld [vmem:[#allocation2 + $0xfa] sm:$0xff]  ;;  %v14686_v43 = vpop.permute.xlu1 %9642 }
 0x73e   : > { %v14656_v34 = vld [vmem:[#allocation2 + $0xf8] sm:$0xff]  ;;  %15511 = vst [vmem:[#allocation28_spill] sm:$0xff] %v14686_v43 }
 0x73f   : > { %v10830_v7 = vpop.f32.mrb[44].mxu0  ;;  %8807 = vrot.lane.b32.xlu0 %v14615_v26, %s12127_s16 }
 0x740   : > { %v10831_v21 = vpop.f32.mrb[45].mxu0 }
 0x741   : > { %v10832_v62 = vadd.f32 %v10831_v21, %v10830_v7  ;;  %v10833_v49 = vpop.f32.mrb[46].mxu0  ;;  %8428 = vrot.lane.b32.xlu1 %v7773_v39, %s12131_s26  ;;  %v14695_v21 = vpop.permute.xlu1 %9375 }
 0x742   : > { %v10834_v2 = vpop.f32.mrb[47].mxu0  ;;  %v7776_v28 = vld [vmem:[#allocation2 + $0x109] sm:$0xff]  ;;  %15514 = vst [vmem:[#allocation11_spill] sm:$0xff] %v14695_v21 }
 0x743   : > { %7712 = vst.msk [vmem:[#allocation2 + $0x121] sm:$0xff] %vm239_vm6, %v10832_v62  ;;  %v10835_v27 = vadd.f32 %v10834_v2, %v10833_v49  ;;  %8999 = vrot.lane.b32.xlu0 %v7772_v17, %s12128_s17  ;;  %v14668_v17 = vpop.permute.xlu0 %9363  ;;  %v14691_v55 = vld [vmem:[#allocation2 + $0x108] sm:$0xff] }
 0x744   : > { %15506 = vst [vmem:[#allocation21_spill] sm:$0xff] %v14668_v17  ;;  %v7777_v59 = vld [vmem:[#allocation2 + $0x111] sm:$0xff]  ;;  %15512 = vst [vmem:[#allocation30_spill] sm:$0xff] %v14691_v55 }
 0x745   : > { %7713 = vst.msk [vmem:[#allocation2 + $0x129] sm:$0xff] %vm239_vm6, %v10835_v27  ;;  %8620 = vrot.lane.b32.xlu1 %v7965_v56, %s12132_s6  ;;  %v7969_v62 = vld [vmem:[#allocation2 + $0x112] sm:$0xff]  ;;  %v14705_v27 = vpop.permute.xlu1 %9648 }
 0x746   : > { %v14701_v49 = vld [vmem:[#allocation2 + $0x110] sm:$0xff]  ;;  %15517 = vst [vmem:[#allocation33_spill] sm:$0xff] %v14705_v27 }
 0x747   : > { %v10836_v9 = vpop.f32.mrb[48].mxu0  ;;  %8046 = vrot.lane.b32.xlu0 %v7964_v24, %s12126_s15  ;;  %v14677_v6 = vpop.permute.xlu0 %9636  ;;  %15515 = vst [vmem:[#allocation31_spill] sm:$0xff] %v14701_v49 }
 0x748   : > { %v10837_v48 = vpop.f32.mrb[49].mxu0  ;;  %15508 = vst [vmem:[#allocation29_spill] sm:$0xff] %v14677_v6 }
 0x749   : > { %v10838_v54 = vadd.f32 %v10837_v48, %v10836_v9  ;;  %v10839_v52 = vpop.f32.mrb[50].mxu0  ;;  %8809 = vrot.lane.b32.xlu1 %v14622_v8, %s12127_s16  ;;  %v14714_v9 = vpop.permute.xlu1 %9381  ;;  %v7968_v48 = vld [vmem:[#allocation2 + $0x10a] sm:$0xff] }
 0x74a   : > { %v10840_v40 = vpop.f32.mrb[51].mxu0  ;;  %15519 = vst [vmem:[#allocation35_spill] sm:$0xff] %v14714_v9 }
 0x74b   : > { %7714 = vst.msk [vmem:[#allocation2 + $0x139] sm:$0xff] %vm239_vm6, %v10838_v54  ;;  %v10841_v23 = vadd.f32 %v10840_v40, %v10839_v52  ;;  %8618 = vrot.lane.b32.xlu0 %v7964_v24, %s12132_s6 }
 0x74d   : > { %7715 = vst.msk [vmem:[#allocation2 + $0x141] sm:$0xff] %vm239_vm6, %v10841_v23  ;;  %9001 = vrot.lane.b32.xlu1 %v7773_v39, %s12128_s17  ;;  %v7966_v39 = vld [vmem:[#allocation2 + $0xf2] sm:$0xff]  ;;  %v14721_v52 = vpop.permute.xlu1 %9654 }
 0x74e   : > { %15521 = vst [vmem:[#allocation37_spill] sm:$0xff] %v14721_v52 }
 0x74f   : > { %v10842_v37 = vpop.f32.mrb[52].mxu0  ;;  %9191 = vrot.lane.b32.xlu0 %v7964_v24, %s15502_s10 }
 0x750   : > { %v10843_v14 = vpop.f32.mrb[53].mxu0 }
 0x751   : > { %v10844_v11 = vadd.f32 %v10843_v14, %v10842_v37  ;;  %v10845_v46 = vpop.f32.mrb[54].mxu0  ;;  %9193 = vrot.lane.b32.xlu1 %v7965_v56, %s15502_s10  ;;  %v14684_v56 = vpop.permute.xlu0 %9372  ;;  %v7778_v14 = vld [vmem:[#allocation2 + $0x121] sm:$0xff] }
 0x752   : > { %v10846_v0 = vpop.f32.mrb[55].mxu0  ;;  %15510 = vst [vmem:[#allocation9_spill] sm:$0xff] %v14684_v56  ;;  %v14729_v23 = vpop.permute.xlu1 %9387 }
 0x753   : > { %7716 = vst.msk [vmem:[#allocation2 + $0x151] sm:$0xff] %vm239_vm6, %v10844_v11  ;;  %v10847_v41 = vadd.f32 %v10846_v0, %v10845_v46  ;;  %7858 = vrot.lane.b32.xlu0 %v7774_v50, %s12125_s14  ;;  %15523 = vst [vmem:[#allocation39_spill] sm:$0xff] %v14729_v23  ;;  %v7779_v46 = vld [vmem:[#allocation2 + $0x129] sm:$0xff] }
 0x755   : > { %7717 = vst.msk [vmem:[#allocation2 + $0x159] sm:$0xff] %vm239_vm6, %v10847_v41  ;;  %7860 = vrot.lane.b32.xlu1 %v7775_v16, %s12125_s14  ;;  %v14693_v7 = vpop.permute.xlu0 %9645 }
 0x756   : > { %15513 = vst [vmem:[#allocation10_spill] sm:$0xff] %v14693_v7  ;;  %v14735_v11 = vpop.permute.xlu1 %9660 }
 0x757   : > { %v10848_v63 = vpop.f32.mrb[56].mxu0  ;;  %8238 = vrot.lane.b32.xlu0 %v14647_v45, %s12130_s25  ;;  %15525 = vst [vmem:[#allocation41_spill] sm:$0xff] %v14735_v11 }
 0x758   : > { %v10849_v60 = vpop.f32.mrb[57].mxu0 }
 0x759   : > { %v10850_v25 = vadd.f32 %v10849_v60, %v10848_v63  ;;  %v10851_v30 = vpop.f32.mrb[58].mxu0  ;;  %8052 = vrot.lane.b32.xlu1 %v7967_v13, %s12126_s15  ;;  %v14703_v2 = vpop.permute.xlu0 %9378 }
 0x75a   : > { %v10852_v5 = vpop.f32.mrb[59].mxu0  ;;  %15516 = vst [vmem:[#allocation32_spill] sm:$0xff] %v14703_v2  ;;  %v14743_v41 = vpop.permute.xlu1 %9393  ;;  %v7782_v7 = vld [vmem:[#allocation2 + $0x151] sm:$0xff] }
 0x75b   : > { %7718 = vst.msk [vmem:[#allocation2 + $0x169] sm:$0xff] %vm239_vm6, %v10850_v25  ;;  %v10853_v44 = vadd.f32 %v10852_v5, %v10851_v30  ;;  %8430 = vrot.lane.b32.xlu0 %v7774_v50, %s12131_s26  ;;  %15528 = vst [vmem:[#allocation44_spill] sm:$0xff] %v14743_v41 }
 0x75c   : > { %v7783_v9 = vld [vmem:[#allocation2 + $0x159] sm:$0xff] }
 0x75d   : > { %7719 = vst.msk [vmem:[#allocation2 + $0x171] sm:$0xff] %vm239_vm6, %v10853_v44  ;;  %8240 = vrot.lane.b32.xlu1 %v14656_v34, %s12130_s25  ;;  %v14712_v24 = vpop.permute.xlu0 %9651  ;;  %v14865_v6 = vld [vmem:[#allocation2 + $0x158] sm:$0xff] }
 0x75e   : > { %15518 = vst [vmem:[#allocation34_spill] sm:$0xff] %v14712_v24  ;;  %v14750_v60 = vpop.permute.xlu1 %9666  ;;  %15540 = vst [vmem:[#allocation56_spill] sm:$0xff] %v14865_v6  ;;  %v7974_v31 = vld [vmem:[#allocation2 + $0x152] sm:$0xff] }
 0x75f   : > { %v10854_v61 = vpop.f32.mrb[60].mxu0  ;;  %8811 = vrot.lane.b32.xlu0 %v14647_v45, %s12127_s16  ;;  %15530 = vst [vmem:[#allocation46_spill] sm:$0xff] %v14750_v60  ;;  %v15569_v45 = vld [vmem:[#allocation23_spill] sm:$0xff] }
 0x760   : > { %v10855_v47 = vpop.f32.mrb[61].mxu0 }
 0x761   : > { %v10856_v33 = vadd.f32 %v10855_v47, %v10854_v61  ;;  %v10857_v20 = vpop.f32.mrb[62].mxu0  ;;  %8432 = vrot.lane.b32.xlu1 %v7775_v16, %s12131_s26  ;;  %v14719_v54 = vpop.permute.xlu0 %9384  ;;  %v7970_v47 = vld [vmem:[#allocation2 + $0x122] sm:$0xff] }
 0x762   : > { %v10858_v53 = vpop.f32.mrb[63].mxu0  ;;  %15520 = vst [vmem:[#allocation36_spill] sm:$0xff] %v14719_v54  ;;  %v14759_v30 = vpop.permute.xlu1 %9399 }
 0x763   : > { %7720 = vst.msk [vmem:[#allocation2 + $0x181] sm:$0xff] %vm239_vm6, %v10856_v33  ;;  %v10859_v36 = vadd.f32 %v10858_v53, %v10857_v20  ;;  %9003 = vrot.lane.b32.xlu0 %v7774_v50, %s12128_s17  ;;  %v14741_v50 = vld [vmem:[#allocation2 + $0x120] sm:$0xff]  ;;  %15533 = vst [vmem:[#allocation49_spill] sm:$0xff] %v14759_v30 }
 0x764   : > { %15527 = vst [vmem:[#allocation43_spill] sm:$0xff] %v14741_v50 }
 0x765   : > { %7721 = vst.msk [vmem:[#allocation2 + $0x189] sm:$0xff] %vm239_vm6, %v10859_v36  ;;  %8624 = vrot.lane.b32.xlu1 %v7967_v13, %s12132_s6  ;;  %v14726_v40 = vpop.permute.xlu0 %9657 }
 0x766   : > { %15522 = vst [vmem:[#allocation38_spill] sm:$0xff] %v14726_v40  ;;  %v14766_v44 = vpop.permute.xlu1 %9672 }
 0x767   : > { %8050 = vrot.lane.b32.xlu0 %v7966_v39, %s12126_s15  ;;  %15535 = vst [vmem:[#allocation51_spill] sm:$0xff] %v14766_v44  ;;  %v14809_v44 = vld [vmem:[#allocation2 + $0x140] sm:$0xff] }
 0x769   : > { %8813 = vrot.lane.b32.xlu1 %v14656_v34, %s12127_s16  ;;  %v14732_v37 = vpop.permute.xlu0 %9390 }
 0x76a   : > { %15524 = vst [vmem:[#allocation40_spill] sm:$0xff] %v14732_v37 }
 0x76b   : > { %8622 = vrot.lane.b32.xlu0 %v7966_v39, %s12132_s6 }
 0x76d   : > { %9005 = vrot.lane.b32.xlu1 %v7775_v16, %s12128_s17  ;;  %v14738_v0 = vpop.permute.xlu0 %9663  ;;  %v7971_v16 = vld [vmem:[#allocation2 + $0x12a] sm:$0xff] }
 0x76e   : > { %15526 = vst [vmem:[#allocation42_spill] sm:$0xff] %v14738_v0 }
 0x76f   : > { %9195 = vrot.lane.b32.xlu0 %v7966_v39, %s15502_s10 }
 0x771   : > { %9197 = vrot.lane.b32.xlu1 %v7967_v13, %s15502_s10  ;;  %v14747_v63 = vpop.permute.xlu0 %9396  ;;  %v14753_v13 = vld [vmem:[#allocation2 + $0x128] sm:$0xff] }
 0x772   : > { %15529 = vst [vmem:[#allocation45_spill] sm:$0xff] %v14747_v63  ;;  %15531 = vst [vmem:[#allocation47_spill] sm:$0xff] %v14753_v13  ;;  %v7972_v63 = vld [vmem:[#allocation2 + $0x13a] sm:$0xff] }
 0x773   : > { %7862 = vrot.lane.b32.xlu0 %v7776_v28, %s12125_s14 }
 0x775   : > { %7864 = vrot.lane.b32.xlu1 %v7777_v59, %s12125_s14  ;;  %v14755_v25 = vpop.permute.xlu0 %9669 }
 0x776   : > { %15532 = vst [vmem:[#allocation48_spill] sm:$0xff] %v14755_v25 }
 0x777   : > { %8242 = vrot.lane.b32.xlu0 %v14691_v55, %s12130_s25 }
 0x779   : > { %8056 = vrot.lane.b32.xlu1 %v7969_v62, %s12126_s15  ;;  %v14763_v5 = vpop.permute.xlu0 %9402 }
 0x77a   : > { %15534 = vst [vmem:[#allocation50_spill] sm:$0xff] %v14763_v5 }
 0x77b   : > { %8434 = vrot.lane.b32.xlu0 %v7776_v28, %s12131_s26 }
 0x77d   : > { %8244 = vrot.lane.b32.xlu1 %v14701_v49, %s12130_s25 }
 0x77f   : > { %8815 = vrot.lane.b32.xlu0 %v14691_v55, %s12127_s16  ;;  %v7784_v55 = vld [vmem:[#allocation2 + $0x169] sm:$0xff] }
 0x781   : > { %8436 = vrot.lane.b32.xlu1 %v7777_v59, %s12131_s26 }
 0x783   : > { %9007 = vrot.lane.b32.xlu0 %v7776_v28, %s12128_s17 }
 0x785   : > { %8628 = vrot.lane.b32.xlu1 %v7969_v62, %s12132_s6 }
 0x787   : > { %8054 = vrot.lane.b32.xlu0 %v7968_v48, %s12126_s15 }
 0x789   : > { %8817 = vrot.lane.b32.xlu1 %v14701_v49, %s12127_s16 }
 0x78b   : > { %8626 = vrot.lane.b32.xlu0 %v7968_v48, %s12132_s6 }
 0x78d   : > { %9009 = vrot.lane.b32.xlu1 %v7777_v59, %s12128_s17  ;;  %v7780_v59 = vld [vmem:[#allocation2 + $0x139] sm:$0xff] }
 0x78f   : > { %9199 = vrot.lane.b32.xlu0 %v7968_v48, %s15502_s10  ;;  %v7781_v48 = vld [vmem:[#allocation2 + $0x141] sm:$0xff] }
 0x791   : > { %9201 = vrot.lane.b32.xlu1 %v7969_v62, %s15502_s10 }
 0x793   : > { %7866 = vrot.lane.b32.xlu0 %v7778_v14, %s12125_s14 }
 0x795   : > { %7868 = vrot.lane.b32.xlu1 %v7779_v46, %s12125_s14 }
 0x797   : > { %8246 = vrot.lane.b32.xlu0 %v14741_v50, %s12130_s25 }
 0x799   : > { %8060 = vrot.lane.b32.xlu1 %v7971_v16, %s12126_s15 }
 0x79b   : > { %8438 = vrot.lane.b32.xlu0 %v7778_v14, %s12131_s26 }
 0x79d   : > { %8248 = vrot.lane.b32.xlu1 %v14753_v13, %s12130_s25 }
 0x79f   : > { %8819 = vrot.lane.b32.xlu0 %v14741_v50, %s12127_s16 }
 0x7a1   : > { %8440 = vrot.lane.b32.xlu1 %v7779_v46, %s12131_s26 }
 0x7a3   : > { %9011 = vrot.lane.b32.xlu0 %v7778_v14, %s12128_s17 }
 0x7a5   : > { %8632 = vrot.lane.b32.xlu1 %v7971_v16, %s12132_s6  ;;  %v14770_v61 = vpop.permute.xlu0 %7854 }
 0x7a7   : > { %v14772_v33 = vpop.permute.xlu1 %7856  ;;  %8058 = vrot.lane.b32.xlu0 %v7970_v47, %s12126_s15 }
 0x7a9   : > { %8821 = vrot.lane.b32.xlu1 %v14753_v13, %s12127_s16  ;;  %v14777_v20 = vpop.permute.xlu0 %8234 }
 0x7ab   : > { %v14779_v53 = vpop.permute.xlu1 %8048  ;;  %8630 = vrot.lane.b32.xlu0 %v7970_v47, %s12132_s6 }
 0x7ad   : > { %9013 = vrot.lane.b32.xlu1 %v7779_v46, %s12128_s17  ;;  %v14783_v36 = vpop.permute.xlu0 %8426  ;;  %v14797_v46 = vld [vmem:[#allocation2 + $0x138] sm:$0xff] }
 0x7ae   : > { %15536 = vst [vmem:[#allocation52_spill] sm:$0xff] %v14797_v46 }
 0x7af   : > { %v14785_v39 = vpop.permute.xlu1 %8236  ;;  %9203 = vrot.lane.b32.xlu0 %v7970_v47, %s15502_s10 }
 0x7b1   : > { %9205 = vrot.lane.b32.xlu1 %v7971_v16, %s15502_s10  ;;  %v14789_v28 = vpop.permute.xlu0 %8807  ;;  %v7973_v16 = vld [vmem:[#allocation2 + $0x142] sm:$0xff] }
 0x7b3   : > { %v14791_v62 = vpop.permute.xlu1 %8428  ;;  %7870 = vrot.lane.b32.xlu0 %v7780_v59, %s12125_s14 }
 0x7b5   : > { %7872 = vrot.lane.b32.xlu1 %v7781_v48, %s12125_s14  ;;  %v14795_v14 = vpop.permute.xlu0 %8999 }
 0x7b7   : > { %v14799_v25 = vpop.permute.xlu1 %8620  ;;  %8250 = vrot.lane.b32.xlu0 %v14797_v46, %s12130_s25 }
 0x7b9   : > { %8064 = vrot.lane.b32.xlu1 %v7973_v16, %s12126_s15  ;;  %v14804_v47 = vpop.permute.xlu0 %8046 }
 0x7bb   : > { %v14806_v0 = vpop.permute.xlu1 %8809  ;;  %8442 = vrot.lane.b32.xlu0 %v7780_v59, %s12131_s26 }
 0x7bd   : > { %8252 = vrot.lane.b32.xlu1 %v14809_v44, %s12130_s25  ;;  %v14813_v30 = vpop.permute.xlu0 %8618 }
 0x7bf   : > { %v14815_v60 = vpop.permute.xlu1 %9001  ;;  %8823 = vrot.lane.b32.xlu0 %v14797_v46, %s12127_s16 }
 0x7c1   : > { %8444 = vrot.lane.b32.xlu1 %v7781_v48, %s12131_s26  ;;  %v14820_v41 = vpop.permute.xlu0 %9191 }
 0x7c3   : > { %v14822_v5 = vpop.permute.xlu1 %9193  ;;  %9015 = vrot.lane.b32.xlu0 %v7780_v59, %s12128_s17 }
 0x7c5   : > { %8636 = vrot.lane.b32.xlu1 %v7973_v16, %s12132_s6  ;;  %v14826_v40 = vpop.permute.xlu0 %7858 }
 0x7c6   : > { %15537 = vst [vmem:[#allocation53_spill] sm:$0xff] %v14826_v40 }
 0x7c7   : > { %v14828_v11 = vpop.permute.xlu1 %7860  ;;  %8062 = vrot.lane.b32.xlu0 %v7972_v63, %s12126_s15 }
 0x7c9   : > { %8825 = vrot.lane.b32.xlu1 %v14809_v44, %s12127_s16  ;;  %v14833_v23 = vpop.permute.xlu0 %8238 }
 0x7cb   : > { %v14835_v54 = vpop.permute.xlu1 %8052  ;;  %8634 = vrot.lane.b32.xlu0 %v7972_v63, %s12132_s6 }
 0x7cd   : > { %9017 = vrot.lane.b32.xlu1 %v7781_v48, %s12128_s17  ;;  %v14839_v59 = vpop.permute.xlu0 %8430  ;;  %v14853_v48 = vld [vmem:[#allocation2 + $0x150] sm:$0xff] }
 0x7ce   : > { %15538 = vst [vmem:[#allocation54_spill] sm:$0xff] %v14853_v48 }
 0x7cf   : > { %v14841_v24 = vpop.permute.xlu1 %8240  ;;  %9207 = vrot.lane.b32.xlu0 %v7972_v63, %s15502_s10  ;;  %v7975_v63 = vld [vmem:[#allocation2 + $0x15a] sm:$0xff] }
 0x7d1   : > { %9209 = vrot.lane.b32.xlu1 %v7973_v16, %s15502_s10  ;;  %v14845_v37 = vpop.permute.xlu0 %8811 }
 0x7d3   : > { %v14847_v52 = vpop.permute.xlu1 %8432  ;;  %7874 = vrot.lane.b32.xlu0 %v7782_v7, %s12125_s14 }
 0x7d5   : > { %7876 = vrot.lane.b32.xlu1 %v7783_v9, %s12125_s14  ;;  %v14851_v2 = vpop.permute.xlu0 %9003 }
 0x7d7   : > { %v14855_v27 = vpop.permute.xlu1 %8624  ;;  %8254 = vrot.lane.b32.xlu0 %v14853_v48, %s12130_s25 }
 0x7d9   : > { %8068 = vrot.lane.b32.xlu1 %v7975_v63, %s12126_s15  ;;  %v14860_v16 = vpop.permute.xlu0 %8050 }
 0x7da   : > { %15539 = vst [vmem:[#allocation55_spill] sm:$0xff] %v14860_v16  ;;  %v7976_v16 = vld [vmem:[#allocation2 + $0x16a] sm:$0xff] }
 0x7db   : > { %v14862_v21 = vpop.permute.xlu1 %8813  ;;  %8446 = vrot.lane.b32.xlu0 %v7782_v7, %s12131_s26 }
 0x7dd   : > { %8256 = vrot.lane.b32.xlu1 %v14865_v6, %s12130_s25  ;;  %v14869_v51 = vpop.permute.xlu0 %8622 }
 0x7df   : > { %v14871_v1 = vpop.permute.xlu1 %9005  ;;  %8827 = vrot.lane.b32.xlu0 %v14853_v48, %s12127_s16 }
 0x7e1   : > { %8448 = vrot.lane.b32.xlu1 %v7783_v9, %s12131_s26  ;;  %v14876_v17 = vpop.permute.xlu0 %9195 }
 0x7e3   : > { %v14878_v56 = vpop.permute.xlu1 %9197  ;;  %9019 = vrot.lane.b32.xlu0 %v7782_v7, %s12128_s17 }
 0x7e5   : > { %8640 = vrot.lane.b32.xlu1 %v7975_v63, %s12132_s6  ;;  %v14882_v43 = vpop.permute.xlu0 %7862 }
 0x7e6   : > { %15541 = vst [vmem:[#allocation57_spill] sm:$0xff] %v14882_v43  ;;  %v7785_v43 = vld [vmem:[#allocation2 + $0x171] sm:$0xff] }
 0x7e7   : > { %v14884_v35 = vpop.permute.xlu1 %7864  ;;  %8066 = vrot.lane.b32.xlu0 %v7974_v31, %s12126_s15 }
 0x7e8   : > { %15542 = vst [vmem:[#allocation58_spill] sm:$0xff] %v14884_v35 }
 0x7e9   : > { %8829 = vrot.lane.b32.xlu1 %v14865_v6, %s12127_s16  ;;  %v14889_v48 = vpop.permute.xlu0 %8242 }
 0x7ea   : > { %15543 = vst [vmem:[#allocation59_spill] sm:$0xff] %v14889_v48 }
 0x7eb   : > { %v14891_v46 = vpop.permute.xlu1 %8056  ;;  %8638 = vrot.lane.b32.xlu0 %v7974_v31, %s12132_s6 }
 0x7ec   : > { %15544 = vst [vmem:[#allocation60_spill] sm:$0xff] %v14891_v46 }
 0x7ed   : > { %9021 = vrot.lane.b32.xlu1 %v7783_v9, %s12128_s17  ;;  %v14895_v7 = vpop.permute.xlu0 %8434  ;;  %v14909_v9 = vld [vmem:[#allocation2 + $0x168] sm:$0xff] }
 0x7ee   : > { %15545 = vst [vmem:[#allocation61_spill] sm:$0xff] %v14895_v7  ;;  %15550 = vst [vmem:[#allocation66_spill] sm:$0xff] %v14909_v9  ;;  %v14921_v7 = vld [vmem:[#allocation2 + $0x170] sm:$0xff] }
 0x7ef   : > { %v14897_v13 = vpop.permute.xlu1 %8244  ;;  %9211 = vrot.lane.b32.xlu0 %v7974_v31, %s15502_s10  ;;  %v7977_v31 = vld [vmem:[#allocation2 + $0x172] sm:$0xff]  ;;  %15553 = vst [vmem:[#allocation69_spill] sm:$0xff] %v14921_v7 }
 0x7f0   : > { %15546 = vst [vmem:[#allocation62_spill] sm:$0xff] %v14897_v13 }
 0x7f1   : > { %9213 = vrot.lane.b32.xlu1 %v7975_v63, %s15502_s10  ;;  %v14901_v50 = vpop.permute.xlu0 %8815 }
 0x7f2   : > { %15547 = vst [vmem:[#allocation63_spill] sm:$0xff] %v14901_v50 }
 0x7f3   : > { %v14903_v6 = vpop.permute.xlu1 %8436  ;;  %7878 = vrot.lane.b32.xlu0 %v7784_v55, %s12125_s14 }
 0x7f4   : > { %15548 = vst [vmem:[#allocation64_spill] sm:$0xff] %v14903_v6 }
 0x7f5   : > { %7880 = vrot.lane.b32.xlu1 %v7785_v43, %s12125_s14  ;;  %v14907_v46 = vpop.permute.xlu0 %9007 }
 0x7f6   : > { %15549 = vst [vmem:[#allocation65_spill] sm:$0xff] %v14907_v46 }
 0x7f7   : > { %v14911_v49 = vpop.permute.xlu1 %8628  ;;  %8258 = vrot.lane.b32.xlu0 %v14909_v9, %s12130_s25 }
 0x7f8   : > { %15551 = vst [vmem:[#allocation67_spill] sm:$0xff] %v14911_v49 }
 0x7f9   : > { %8072 = vrot.lane.b32.xlu1 %v7977_v31, %s12126_s15  ;;  %v14916_v63 = vpop.permute.xlu0 %8054 }
 0x7fa   : > { %15552 = vst [vmem:[#allocation68_spill] sm:$0xff] %v14916_v63 }
 0x7fb   : > { %v14918_v35 = vpop.permute.xlu1 %8817  ;;  %8450 = vrot.lane.b32.xlu0 %v7784_v55, %s12131_s26 }
 0x7fd   : > { %8260 = vrot.lane.b32.xlu1 %v14921_v7, %s12130_s25  ;;  %v14925_v48 = vpop.permute.xlu0 %8626 }
 0x7fe   : > { %15554 = vst [vmem:[#allocation70_spill] sm:$0xff] %v14925_v48 }
 0x7ff   : > { %v14927_v49 = vpop.permute.xlu1 %9009  ;;  %8831 = vrot.lane.b32.xlu0 %v14909_v9, %s12127_s16 }
 0x800   : > { %15555 = vst [vmem:[#allocation71_spill] sm:$0xff] %v14927_v49 }
 0x801   : > { %8452 = vrot.lane.b32.xlu1 %v7785_v43, %s12131_s26  ;;  %v14932_v6 = vpop.permute.xlu0 %9199 }
 0x802   : > { %15556 = vst [vmem:[#allocation72_spill] sm:$0xff] %v14932_v6 }
 0x803   : > { %v14934_v63 = vpop.permute.xlu1 %9201  ;;  %9023 = vrot.lane.b32.xlu0 %v7784_v55, %s12128_s17 }
 0x804   : > { %15557 = vst [vmem:[#allocation73_spill] sm:$0xff] %v14934_v63 }
 0x805   : > { %8644 = vrot.lane.b32.xlu1 %v7977_v31, %s12132_s6  ;;  %v14938_v46 = vpop.permute.xlu0 %7866 }
 0x806   : > { %15558 = vst [vmem:[#allocation74_spill] sm:$0xff] %v14938_v46  ;;  %v8168_v46 = vld [vmem:[#allocation2 + $0x180] sm:$0xff] }
 0x807   : > { %v14940_v13 = vpop.permute.xlu1 %7868  ;;  %8070 = vrot.lane.b32.xlu0 %v7976_v16, %s12126_s15 }
 0x808   : > { %15559 = vst [vmem:[#allocation75_spill] sm:$0xff] %v14940_v13 }
 0x809   : > { %8833 = vrot.lane.b32.xlu1 %v14921_v7, %s12127_s16  ;;  %v14945_v9 = vpop.permute.xlu0 %8246 }
 0x80a   : > { %15560 = vst [vmem:[#allocation76_spill] sm:$0xff] %v14945_v9 }
 0x80b   : > { %v14947_v48 = vpop.permute.xlu1 %8060  ;;  %8642 = vrot.lane.b32.xlu0 %v7976_v16, %s12132_s6 }
 0x80c   : > { %15561 = vst [vmem:[#allocation77_spill] sm:$0xff] %v14947_v48  ;;  %v8169_v48 = vld [vmem:[#allocation2 + $0x188] sm:$0xff] }
 0x80d   : > { %9025 = vrot.lane.b32.xlu1 %v7785_v43, %s12128_s17  ;;  %v14951_v55 = vpop.permute.xlu0 %8438  ;;  %v8360_v43 = vld [vmem:[#allocation2 + $0x181] sm:$0xff] }
 0x80e   : > { %15562 = vst [vmem:[#allocation78_spill] sm:$0xff] %v14951_v55  ;;  %v12019_v55 = vld [vmem:[#allocation2 + $0xa8] sm:$0xff] }
 0x80f   : > { %v14953_v6 = vpop.permute.xlu1 %8248  ;;  %9215 = vrot.lane.b32.xlu0 %v7976_v16, %s15502_s10  ;;  %v8361_v16 = vld [vmem:[#allocation2 + $0x189] sm:$0xff] }
 0x810   : > { %15563 = vst [vmem:[#allocation79_spill] sm:$0xff] %v14953_v6  ;;  %v7928_v6 = vadd.f32 %v12019_v55, %v14283_v42  ;;  %v8553_v55 = vld [vmem:[#allocation2 + $0x18a] sm:$0xff] }
 0x811   : > { %9217 = vrot.lane.b32.xlu1 %v7977_v31, %s15502_s10  ;;  %v14957_v13 = vpop.permute.xlu0 %8819 }
 0x812   : > { %15564 = vst [vmem:[#allocation80_spill] sm:$0xff] %v14957_v13  ;;  %v8120_v31 = vadd.f32 %v14355_v10, %v7928_v6  ;;  %v15570_v10 = vld [vmem:[#allocation24_spill] sm:$0xff] }
 0x813   : > { %v14959_v7 = vpop.permute.xlu1 %8440  ;;  %8262 = vrot.lane.b32.xlu0 %v8168_v46, %s12130_s25 }
 0x814   : > { %15565 = vst [vmem:[#allocation81_spill] sm:$0xff] %v14959_v7  ;;  %v8312_v13 = vadd.f32 %v14401_v19, %v8120_v31  ;;  %v12021_v19 = vld [vmem:[#allocation2 + $0xc8] sm:$0xff] }
 0x815   : > { %8264 = vrot.lane.b32.xlu1 %v8169_v48, %s12130_s25  ;;  %v14963_v9 = vpop.permute.xlu0 %9011 }
 0x816   : > { %15566 = vst [vmem:[#allocation82_spill] sm:$0xff] %v14963_v9  ;;  %v12020_v9 = vld [vmem:[#allocation2 + $0xb0] sm:$0xff] }
 0x817   : > { %v14966_v63 = vpop.permute.xlu1 %8632  ;;  %8454 = vrot.lane.b32.xlu0 %v8360_v43, %s12131_s26  ;;  %v7929_v42 = vadd.f32 %v12020_v9, %v15569_v45 }
 0x818   : > { %15567 = vst [vmem:[#allocation83_spill] sm:$0xff] %v14966_v63  ;;  %v8504_v63 = vadd.f32 %v14413_v29, %v8312_v13 }
 0x819   : > { %8456 = vrot.lane.b32.xlu1 %v8361_v16, %s12131_s26  ;;  %v14971_v7 = vpop.permute.xlu0 %8058  ;;  %v8121_v6 = vadd.f32 %v15570_v10, %v7929_v42 }
 0x81a   : > { %15568 = vst [vmem:[#allocation84_spill] sm:$0xff] %v14971_v7  ;;  %v8696_v7 = vadd.f32 %v14445_v22, %v8504_v63  ;;  %v8552_v22 = vld [vmem:[#allocation2 + $0x182] sm:$0xff] }
 0x81b   : > { %v14974_v50 = vpop.permute.xlu1 %8821  ;;  %8835 = vrot.lane.b32.xlu0 %v8168_v46, %s12127_s16  ;;  %v7931_v46 = vadd.f32 %v12021_v19, %v14411_v4  ;;  %v8313_v45 = vadd.f32 %v14424_v38, %v8121_v6  ;;  %v12022_v63 = vld [vmem:[#allocation2 + $0xc0] sm:$0xff] }
 0x81c   : > { %v8889_v9 = vadd.f32 %v14789_v28, %v8696_v7  ;;  %v7930_v42 = vadd.f32 %v12022_v63, %v14396_v32 }
 0x81d   : > { %8648 = vrot.lane.b32.xlu1 %v8553_v55, %s12132_s6  ;;  %v14980_v40 = vpop.permute.xlu0 %8630  ;;  %v8123_v13 = vadd.f32 %v14419_v57, %v7931_v46  ;;  %v8505_v31 = vadd.f32 %v14435_v18, %v8313_v45  ;;  %v7932_v45 = vadd.f32 %v14615_v26, %v14770_v61 }
 0x81e   : > { %v8122_v28 = vadd.f32 %v14437_v58, %v7930_v42  ;;  %v15573_v42 = vld [vmem:[#allocation22_spill] sm:$0xff] }
 0x81f   : > { %v14984_v49 = vpop.permute.xlu1 %9013  ;;  %9027 = vrot.lane.b32.xlu0 %v8360_v43, %s12128_s17  ;;  %v9081_v43 = vadd.f32 %v14795_v14, %v8889_v9  ;;  %v8697_v4 = vadd.f32 %v14443_v15, %v8505_v31  ;;  %v8315_v38 = vadd.f32 %v14785_v39, %v8123_v13 }
 0x821   : > { %8837 = vrot.lane.b32.xlu1 %v8169_v48, %s12127_s16  ;;  %v14991_v29 = vpop.permute.xlu0 %9203  ;;  %v9273_v57 = vadd.f32 %v14820_v41, %v9081_v43  ;;  %v8507_v32 = vadd.f32 %v14791_v62, %v8315_v38  ;;  %v8890_v14 = vadd.f32 %v14806_v0, %v8697_v4  ;;  %v8314_v48 = vadd.f32 %v14777_v20, %v8122_v28  ;;  %v15017_v41 = vld [vmem:[%s15413_s4] ss:$0 sm:$0xff]  ;;  %v15576_v38 = vld [vmem:[#allocation73_spill] sm:$0xff]  ;;  %s230_s16 = sand.u32 1, %s12110_s19  }
 0x822   : > { %v7933_v20 = vadd.f32 %v14622_v8, %v14772_v33  ;;  %v8124_v33 = vadd.f32 %v14804_v47, %v7932_v45  ;;  %v15574_v4 = vld [vmem:[#allocation63_spill] sm:$0xff]  ;;  %v15584_v45 = vld [vmem:[#allocation58_spill] sm:$0xff] }
 0x823   : > { %v14997_v10 = vpop.permute.xlu1 %9205  ;;  %8646 = vrot.lane.b32.xlu0 %v8552_v22, %s12132_s6  ;;  %v8699_v15 = vadd.f32 %v14799_v25, %v8507_v32  ;;  %v9082_v39 = vadd.f32 %v14815_v60, %v8890_v14  ;;  %v8506_v58 = vadd.f32 %v14783_v36, %v8314_v48  ;;  %v9312_v62 = vadd.f32 %v15017_v41, %v9273_v57  ;;  %v15577_v57 = vld [vmem:[#allocation55_spill] sm:$0xff]  ;;  %v15578_v32 = vld [vmem:[#allocation65_spill] sm:$0xff]  ;;  %s10731_s6 = sshll.u32 %s12188_s22, 9  ;;  %s15368_s22 = scalar_lea.sflag [#allocation5], %s230_s16 }
 0x824   : > { %v8125_v19 = vadd.f32 %v14779_v53, %v7933_v20  ;;  %s15361_s12 = scalar_lea.hbm %s15414_s5, %s10731_s6 }
 0x825   : > { %9029 = vrot.lane.b32.xlu1 %v8361_v16, %s12128_s17  ;;  %v15005_v18 = vpop.permute.xlu0 %7870  ;;  %v9274_v25 = vadd.f32 %v14822_v5, %v9082_v39  ;;  %v8892_v60 = vadd.f32 %v14862_v21, %v8699_v15  ;;  %v8698_v16 = vadd.f32 %v14813_v30, %v8506_v58  ;;  %v15580_v39 = vld [vmem:[#allocation59_spill] sm:$0xff]  ;;  %s9985_s17 = sshll.u32 %s230_s16, 5 }
 0x826   : > { %v8317_v30 = vadd.f32 %v14841_v24, %v8125_v19  ;;  %s15283_s25 = scalar_lea.vmem [#allocation6], %s9985_s17 }
 0x827   : > { %v7873_v7 = vpop.permute.xlu1 %7872  ;;  %9219 = vrot.lane.b32.xlu0 %v8552_v22, %s15502_s10  ;;  %v9084_v46 = vadd.f32 %v14871_v1, %v8892_v60  ;;  %v8891_v8 = vadd.f32 %v14845_v37, %v8698_v16  ;;  %v9313_v21 = vadd.f32 %v15017_v41, %v9274_v25  ;;  %v8316_v37 = vadd.f32 %v14833_v23, %v8124_v33  ;;  %v15571_v22 = vld [vmem:[#allocation71_spill] sm:$0xff]  ;;  %s9905_s26 = sshll.u32 %s15283_s25, 4  ;;  %s15353_s26 = int_to_ptr.vmem [resolvable:$true] %s9905_s26 }
 0x828   : > { %v7941_v36 = vadd.f32 %v14809_v44, %v7873_v7  ;;  %v8509_v26 = vadd.f32 %v14847_v52, %v8317_v30  ;;  %v7935_v52 = vadd.f32 %v14656_v34, %v14828_v11  ;;  %v15579_v7 = vld [vmem:[#allocation64_spill] sm:$0xff]  ;;  %v15582_v60 = vld [vmem:[#allocation67_spill] sm:$0xff]  ;;  %s12052_s13 = scalar_lea.vmem %s15353_s26, 512  ;;  %p12059_p2 = scmp.lt.s32.totalorder %s15353_s26, %s12057_s30 }
 0x829   : > { %9221 = vrot.lane.b32.xlu1 %v8553_v55, %s15502_s10  ;;  %v15021_v0 = vpop.permute.xlu0 %8250  ;;  %v9276_v44 = vadd.f32 %v14878_v56, %v9084_v46  ;;  %v9083_v1 = vadd.f32 %v14851_v2, %v8891_v8  ;;  %v8508_v2 = vadd.f32 %v14839_v59, %v8316_v37  ;;  %v15572_v59 = vld [vmem:[#allocation53_spill] sm:$0xff]  ;;  %v15585_v8 = vld [vmem:[#allocation31_spill] sm:$0xff]  ;;  %v15587_v37 = vld [vmem:[#allocation60_spill] sm:$0xff]  ;;  %p12053_p6 = scmp.ne.s32.totalorder %s15353_s26, %s12052_s13  ;;  %p12060_p3 = scmp.lt.s32.totalorder %s12058_s7, %s12052_s13 }
 0x82a   : > { %v8701_v56 = vadd.f32 %v14855_v27, %v8509_v26  ;;  %v8127_v27 = vadd.f32 %v14835_v54, %v7935_v52  ;;  %v7934_v43 = vadd.f32 %v15573_v42, %v15572_v59  ;;  %v15593_v42 = vld [vmem:[#allocation82_spill] sm:$0xff] }
 0x82b   : > { %v8065_v6 = vpop.permute.xlu1 %8064  ;;  %9675 = vperm.xlu0 %11465, %v9312_v62   ;;  %v9275_v61 = vadd.f32 %v14876_v17, %v9083_v1  ;;  %v9315_v47 = vadd.f32 %v15017_v41, %v9276_v44  ;;  %v8700_v17 = vadd.f32 %v14869_v51, %v8508_v2  ;;  %v15586_v44 = vld [vmem:[#allocation70_spill] sm:$0xff]  ;;  %p12054_p10 = pnand %p12053_p6, %p15645_p9  ;;  %p12061_p4 = por %p12060_p3, %p12059_p2 }
 0x82c   : > { %v15031_v55 = vadd.f32 %v8065_v6, %v7941_v36  ;;  %v8894_v23 = vadd.f32 %v14918_v35, %v8701_v56  ;;  %v15575_v35 = vld [vmem:[#allocation62_spill] sm:$0xff]  ;;  %v8126_v54 = vadd.f32 %v15577_v57, %v7934_v43  ;;  %v15583_v6 = vld [vmem:[#allocation61_spill] sm:$0xff]  ;;  %v15596_v57 = vld [vmem:[#allocation83_spill] sm:$0xff] }
 0x82d   : > { %9405 = vperm.xlu1 %11464, %v9312_v62   ;;  %v15036_v5 = vpop.permute.xlu0 %8442  ;;  %v9314_v13 = vadd.f32 %v15017_v41, %v9275_v61  ;;  %v8893_v34 = vadd.f32 %v15574_v4, %v8700_v17  ;;  %v8319_v51 = vadd.f32 %v15575_v35, %v8127_v27  ;;  %v15581_v62 = vld [vmem:[#allocation72_spill] sm:$0xff]  ;;  %v15589_v2 = vld [vmem:[#allocation30_spill] sm:$0xff]  ;;  %v15594_v4 = vld [vmem:[#allocation81_spill] sm:$0xff]  ;;  %p12055_p12 = pneg %p12054_p10 }
 0x82e   : > { %v9086_v63 = vadd.f32 %v15571_v22, %v8894_v23  ;;  %v8318_v58 = vadd.f32 %v15580_v39, %v8126_v54  ;;  %v15590_v23 = vld [vmem:[#allocation80_spill] sm:$0xff] }
 0x82f   : > { %v15043_v53 = vpop.permute.xlu1 %8252  ;;  %11466 = vset.pattern.permute.xlu0 %v15471_v12  ;;  %v9085_v14 = vadd.f32 %v15578_v32, %v8893_v34  ;;  %v8511_v15 = vadd.f32 %v15579_v7, %v8319_v51  ;;  %v15595_v35 = vld [vmem:[#allocation76_spill] sm:$0xff]  ;;  %v15597_v32 = vld [vmem:[#allocation78_spill] sm:$0xff]  ;;  %p12062_p7 = pnand %p12061_p4, %p12055_p12 }
 0x830   : > { %9408 = vperm.xlu0 %11466, %v9313_v21   ;;  %v9278_v28 = vadd.f32 %v15576_v38, %v9086_v63  ;;  %v8510_v19 = vadd.f32 %v15583_v6, %v8318_v58  ;;  %v15592_v63 = vld [vmem:[#allocation68_spill] sm:$0xff] }
 0x831   : > { %11467 = vset.pattern.permute.xlu1 %v15483_v3  ;;  %v15050_v24 = vpop.permute.xlu0 %8823  ;;  %v9277_v20 = vadd.f32 %v15581_v62, %v9085_v14  ;;  %v8703_v36 = vadd.f32 %v15582_v60, %v8511_v15 }
 0x832   : > { %9678 = vperm.xlu1 %11467, %v9313_v21   ;;  %v9317_v16 = vadd.f32 %v15017_v41, %v9278_v28  ;;  %v7937_v21 = vadd.f32 %v15585_v8, %v15584_v45  ;;  %v8702_v33 = vadd.f32 %v15586_v44, %v8510_v19 }
 0x833   : > { %v15055_v9 = vpop.permute.xlu1 %8444  ;;  %v8896_v30 = vadd.f32 %v14974_v50, %v8703_v36  ;;  %v9316_v1 = vadd.f32 %v15017_v41, %v9277_v20  ;;  %v15591_v50 = vld [vmem:[#allocation79_spill] sm:$0xff]  ;;  %v15598_v20 = vld [vmem:[#allocation56_spill] sm:$0xff] }
 0x834   : > { %9414 = vperm.xlu0 %11466, %v9315_v47   ;;  %v8129_v61 = vadd.f32 %v15587_v37, %v7937_v21  ;;  %v8895_v17 = vadd.f32 %v15590_v23, %v8702_v33  ;;  %v15599_v33 = vld [vmem:[#allocation74_spill] sm:$0xff]  ;;  %v15601_v37 = vld [vmem:[#allocation75_spill] sm:$0xff]  ;;  %v15604_v23 = vld [vmem:[#allocation77_spill] sm:$0xff] }
 0x835   : > { %v15062_v31 = vpop.permute.xlu0 %9015  ;;  %v9088_v56 = vadd.f32 %v14984_v49, %v8896_v30 }
 0x836   : > { %11468 = vset.pattern.permute.xlu1 %v15471_v12  ;;  %v8321_v27 = vadd.f32 %v15591_v50, %v8129_v61  ;;  %v9087_v43 = vadd.f32 %v15593_v42, %v8895_v17  ;;  %v15602_v61 = vld [vmem:[#allocation47_spill] sm:$0xff] }
 0x837   : > { %v15070_v11 = vpop.permute.xlu1 %8636  ;;  %9411 = vperm.xlu1 %11468, %v9314_v13   ;;  %v9280_v22 = vadd.f32 %v14997_v10, %v9088_v56  ;;  %v7939_v56 = vadd.f32 %v15602_v61, %v15601_v37 }
 0x838   : > { %11470 = vset.pattern.permute.xlu0 %v15483_v3  ;;  %v8513_v34 = vadd.f32 %v15594_v4, %v8321_v27  ;;  %v9279_v38 = vadd.f32 %v14991_v29, %v9087_v43 }
 0x839   : > { %9684 = vperm.xlu0 %11470, %v9315_v47   ;;  %v15077_v48 = vpop.permute.xlu0 %8062  ;;  %v15588_v47 = vld [vmem:[#allocation57_spill] sm:$0xff]  ;;  %v9319_v54 = vadd.f32 %v15017_v41, %v9280_v22  ;;  %v8131_v17 = vadd.f32 %v15604_v23, %v7939_v56 }
 0x83a   : > { %v7936_v52 = vadd.f32 %v15589_v2, %v15588_v47  ;;  %v8705_v10 = vadd.f32 %v15596_v57, %v8513_v34  ;;  %v9318_v29 = vadd.f32 %v15017_v41, %v9279_v38  ;;  %v15603_v47 = vld [vmem:[#allocation84_spill] sm:$0xff] }
 0x83b   : > { %v8826_v25 = vpop.permute.xlu1 %8825  ;;  %11469 = vset.pattern.permute.xlu1 %v15483_v3  ;;  %v8323_v22 = vadd.f32 %v15043_v53, %v8131_v17 }
 0x83c   : > { %9681 = vperm.xlu1 %11469, %v9314_v13   ;;  %v8128_v59 = vadd.f32 %v15592_v63, %v7936_v52  ;;  %v8898_v15 = vadd.f32 %v8826_v25, %v8705_v10 }
 0x83d   : > { %11473 = vset.pattern.permute.xlu0 %v15471_v12  ;;  %v15087_v46 = vpop.permute.xlu0 %8634 }
 0x83e   : > { %9420 = vperm.xlu0 %11473, %v9317_v16   ;;  %v8320_v51 = vadd.f32 %v15595_v35, %v8128_v59  ;;  %v8515_v59 = vadd.f32 %v15055_v9, %v8323_v22 }
 0x83f   : > { %v9018_v26 = vpop.permute.xlu1 %9017 }
 0x840   : > { %11471 = vset.pattern.permute.xlu1 %v15471_v12  ;;  %v8512_v14 = vadd.f32 %v15597_v32, %v8320_v51  ;;  %v9090_v62 = vadd.f32 %v9018_v26, %v8898_v15 }
 0x841   : > { %9417 = vperm.xlu1 %11471, %v9316_v1   ;;  %v9208_v13 = vpop.permute.xlu0 %9207 }
 0x842   : > { %11474 = vset.pattern.permute.xlu0 %v15483_v3  ;;  %v8704_v39 = vadd.f32 %v14980_v40, %v8512_v14 }
 0x843   : > { %v9210_v49 = vpop.permute.xlu1 %9209  ;;  %9690 = vperm.xlu0 %11474, %v9317_v16  }
 0x844   : > { %v8897_v36 = vadd.f32 %v15050_v24, %v8704_v39  ;;  %v9282_v6 = vadd.f32 %v9210_v49, %v9090_v62  ;;  %v8707_v49 = vadd.f32 %v15070_v11, %v8515_v59  ;;  %v15608_v59 = vld [vmem:[#allocation66_spill] sm:$0xff] }
 0x845   : > { %11472 = vset.pattern.permute.xlu1 %v15483_v3  ;;  %v15109_v28 = vpop.permute.xlu0 %7874 }
 0x846   : > { %9687 = vperm.xlu1 %11472, %v9316_v1   ;;  %v9089_v40 = vadd.f32 %v15062_v31, %v8897_v36  ;;  %v9321_v21 = vadd.f32 %v15017_v41, %v9282_v6  ;;  %v15600_v31 = vld [vmem:[#allocation43_spill] sm:$0xff] }
 0x847   : > { %v7877_v7 = vpop.permute.xlu1 %7876  ;;  %11477 = vset.pattern.permute.xlu0 %v15471_v12  ;;  %v7938_v1 = vadd.f32 %v15600_v31, %v15599_v33 }
 0x848   : > { %9426 = vperm.xlu0 %11477, %v9319_v54   ;;  %v7943_v60 = vadd.f32 %v15598_v20, %v7877_v7  ;;  %v9281_v45 = vadd.f32 %v9208_v13, %v9089_v40 }
 0x849   : > { %v15117_v58 = vpop.permute.xlu0 %8254  ;;  %v8130_v2 = vadd.f32 %v15603_v47, %v7938_v1 }
 0x84a   : > { %11475 = vset.pattern.permute.xlu1 %v15471_v12  ;;  %v9320_v30 = vadd.f32 %v15017_v41, %v9281_v45 }
 0x84b   : > { %v8069_v16 = vpop.permute.xlu1 %8068  ;;  %9423 = vperm.xlu1 %11475, %v9318_v29   ;;  %v8322_v13 = vadd.f32 %v15021_v0, %v8130_v2 }
 0x84c   : > { %v15122_v19 = vadd.f32 %v8069_v16, %v7943_v60  ;;  %11478 = vset.pattern.permute.xlu0 %v15483_v3 }
 0x84d   : > { %9696 = vperm.xlu0 %11478, %v9319_v54   ;;  %v15126_v25 = vpop.permute.xlu0 %8446  ;;  %v8514_v27 = vadd.f32 %v15036_v5, %v8322_v13  ;;  %v15607_v13 = vld [vmem:[#allocation69_spill] sm:$0xff] }
 0x84f   : > { %v15128_v8 = vpop.permute.xlu1 %8256  ;;  %11476 = vset.pattern.permute.xlu1 %v15483_v3  ;;  %v8706_v42 = vadd.f32 %v15087_v46, %v8514_v27 }
 0x850   : > { %9693 = vperm.xlu1 %11476, %v9318_v29   ;;  %v15605_v29 = vld [vmem:[#allocation52_spill] sm:$0xff]  ;;  %v8325_v45 = vadd.f32 %v15128_v8, %v15031_v55 }
 0x851   : > { %11481 = vset.pattern.permute.xlu0 %v15471_v12  ;;  %v8828_v24 = vpop.permute.xlu0 %8827  ;;  %v7940_v62 = vadd.f32 %v15605_v29, %v15005_v18 }
 0x852   : > { %9432 = vperm.xlu0 %11481, %v9321_v21   ;;  %v8899_v0 = vadd.f32 %v8828_v24, %v8706_v42 }
 0x853   : > { %v8449_v44 = vpop.permute.xlu1 %8448  ;;  %v8132_v60 = vadd.f32 %v15077_v48, %v7940_v62 }
 0x854   : > { %11479 = vset.pattern.permute.xlu1 %v15471_v12  ;;  %v8517_v24 = vadd.f32 %v8449_v44, %v8325_v45 }
 0x855   : > { %9429 = vperm.xlu1 %11479, %v9320_v30   ;;  %v9020_v26 = vpop.permute.xlu0 %9019  ;;  %v8324_v16 = vadd.f32 %v15117_v58, %v8132_v60 }
 0x856   : > { %11482 = vset.pattern.permute.xlu0 %v15483_v3  ;;  %v9091_v34 = vadd.f32 %v9020_v26, %v8899_v0 }
 0x857   : > { %v8641_v52 = vpop.permute.xlu1 %8640  ;;  %9702 = vperm.xlu0 %11482, %v9321_v21   ;;  %v8516_v40 = vadd.f32 %v15126_v25, %v8324_v16 }
 0x858   : > { %v8709_v31 = vadd.f32 %v8641_v52, %v8517_v24  ;;  %v15606_v52 = vld [vmem:[#allocation54_spill] sm:$0xff] }
 0x859   : > { %11480 = vset.pattern.permute.xlu1 %v15483_v3  ;;  %v15144_v50 = vpop.permute.xlu0 %8066  ;;  %v7942_v17 = vadd.f32 %v15606_v52, %v15109_v28  ;;  %v15622_v52 = vld [vmem:[#allocation20_spill] sm:$0xff] }
 0x85a   : > { %9699 = vperm.xlu1 %11480, %v9320_v30  }
 0x85b   : > { %v8830_v63 = vpop.permute.xlu1 %8829  ;;  %11485 = vset.pattern.permute.xlu0 %v15471_v12 }
 0x85c   : > { %v8900_v35 = vadd.f32 %v8830_v63, %v8707_v49  ;;  %v8134_v63 = vadd.f32 %v15144_v50, %v7942_v17 }
 0x85d   : > { %v8639_v43 = vpop.permute.xlu0 %8638 }
 0x85e   : > { %11483 = vset.pattern.permute.xlu1 %v15471_v12  ;;  %v8708_v30 = vadd.f32 %v8639_v43, %v8516_v40 }
 0x85f   : > { %v9022_v4 = vpop.permute.xlu1 %9021 }
 0x860   : > { %v9092_v51 = vadd.f32 %v9022_v4, %v8900_v35 }
 0x861   : > { %v9212_v5 = vpop.permute.xlu0 %9211 }
 0x862   : > { %v9283_v53 = vadd.f32 %v9212_v5, %v9091_v34 }
 0x863   : > { %v9214_v38 = vpop.permute.xlu1 %9213 }
 0x864   : > { %v9322_v57 = vadd.f32 %v15017_v41, %v9283_v53  ;;  %v9284_v10 = vadd.f32 %v9214_v38, %v9092_v51 }
 0x865   : > { %v7879_v54 = vpop.permute.xlu0 %7878 }
 0x866   : > { %v9323_v9 = vadd.f32 %v15017_v41, %v9284_v10  ;;  %9435 = vperm.xlu1 %11483, %v9322_v57   ;;  %v7944_v42 = vadd.f32 %v15608_v59, %v7879_v54 }
 0x867   : > { %v7881_v46 = vpop.permute.xlu1 %7880 }
 0x868   : > { %9438 = vperm.xlu0 %11485, %v9323_v9   ;;  %v7945_v27 = vadd.f32 %v15607_v13, %v7881_v46  ;;  %v15623_v13 = vld [vmem:[#allocation26_spill] sm:$0xff] }
 0x869   : > { %v8259_v11 = vpop.permute.xlu0 %8258 }
 0x86a   : > { %11484 = vset.pattern.permute.xlu1 %v15483_v3  ;;  %v8326_v0 = vadd.f32 %v8259_v11, %v8134_v63  ;;  %v15609_v11 = vld [vmem:[#allocation14_spill] sm:$0xff] }
 0x86b   : > { %v8073_v32 = vpop.permute.xlu1 %8072  ;;  %9705 = vperm.xlu1 %11484, %v9322_v57  }
 0x86c   : > { %11486 = vset.pattern.permute.xlu0 %v15483_v3  ;;  %v8137_v43 = vadd.f32 %v8073_v32, %v7945_v27 }
 0x86d   : > { %9708 = vperm.xlu0 %11486, %v9323_v9   ;;  %v8451_v14 = vpop.permute.xlu0 %8450 }
 0x86e   : > { %v8518_v5 = vadd.f32 %v8451_v14, %v8326_v0  ;;  %v15610_v14 = vld [vmem:[#allocation15_spill] sm:$0xff] }
 0x86f   : > { %v8261_v7 = vpop.permute.xlu1 %8260  ;;  %11487 = vset.pattern.permute.xlu1 %v15471_v12 }
 0x870   : > { %v8327_v51 = vadd.f32 %v8261_v7, %v15122_v19 }
 0x871   : > { %v8832_v15 = vpop.permute.xlu0 %8831  ;;  %11489 = vset.pattern.permute.xlu0 %v15471_v12 }
 0x872   : > { %v8901_v1 = vadd.f32 %v8832_v15, %v8708_v30  ;;  %v15612_v30 = vld [vmem:[#allocation17_spill] sm:$0xff] }
 0x873   : > { %v8453_v39 = vpop.permute.xlu1 %8452 }
 0x874   : > { %v8519_v9 = vadd.f32 %v8453_v39, %v8327_v51 }
 0x875   : > { %v9024_v20 = vpop.permute.xlu0 %9023 }
 0x876   : > { %v9093_v18 = vadd.f32 %v9024_v20, %v8901_v1 }
 0x877   : > { %v8645_v36 = vpop.permute.xlu1 %8644 }
 0x878   : > { %v8711_v15 = vadd.f32 %v8645_v36, %v8519_v9  ;;  %v15613_v36 = vld [vmem:[#allocation12_spill] sm:$0xff] }
 0x879   : > { %v8071_v6 = vpop.permute.xlu0 %8070  ;;  %v9731_v17 = vrot.slane %v15622_v52, %v15613_v36  ;;  %v9740_v27 = vrot.slane %v15623_v13, %v15613_v36  ;;  %v15643_v52 = vld [vmem:[#allocation42_spill] sm:$0xff] }
 0x87a   : > { %v8136_v4 = vadd.f32 %v8071_v6, %v7944_v42  ;;  %v15625_v42 = vld [vmem:[#allocation11_spill] sm:$0xff] }
 0x87b   : > { %v8834_v21 = vpop.permute.xlu1 %8833 }
 0x87c   : > { %v8902_v37 = vadd.f32 %v8834_v21, %v8709_v31  ;;  %v15611_v21 = vld [vmem:[#allocation16_spill] sm:$0xff]  ;;  %v15614_v31 = vld [vmem:[#allocation25_spill] sm:$0xff] }
 0x87d   : > { %v8643_v33 = vpop.permute.xlu0 %8642  ;;  %v9474_v1 = vrot.slane %v15614_v31, %v15613_v36 }
 0x87e   : > { %v8710_v57 = vadd.f32 %v8643_v33, %v8518_v5 }
 0x87f   : > { %v9026_v26 = vpop.permute.xlu1 %9025 }
 0x880   : > { %v9094_v48 = vadd.f32 %v9026_v26, %v8902_v37  ;;  %v15615_v26 = vld [vmem:[#allocation18_spill] sm:$0xff] }
 0x881   : > { %v9216_v61 = vpop.permute.xlu0 %9215 }
 0x882   : > { %v9285_v56 = vadd.f32 %v9216_v61, %v9093_v18  ;;  %v15616_v61 = vld [vmem:[#allocation13_spill] sm:$0xff] }
 0x883   : > { %v9218_v47 = vpop.permute.xlu1 %9217 }
 0x884   : > { %v9324_v58 = vadd.f32 %v15017_v41, %v9285_v56  ;;  %v9286_v2 = vadd.f32 %v9218_v47, %v9094_v48  ;;  %v15617_v48 = vld [vmem:[#allocation27_spill] sm:$0xff]  ;;  %v15618_v47 = vld [vmem:[#allocation28_spill] sm:$0xff] }
 0x885   : > { %v8263_v25 = vpop.permute.xlu0 %8262  ;;  %v9468_v56 = vrot.slane %v15617_v48, %v15616_v61 }
 0x886   : > { %v9325_v23 = vadd.f32 %v15017_v41, %v9286_v2  ;;  %9441 = vperm.xlu1 %11487, %v9324_v58   ;;  %v8328_v28 = vadd.f32 %v8263_v25, %v8136_v4  ;;  %v15619_v2 = vld [vmem:[#allocation19_spill] sm:$0xff] }
 0x887   : > { %v8265_v55 = vpop.permute.xlu1 %8264 }
 0x888   : > { %9444 = vperm.xlu0 %11489, %v9325_v23   ;;  %v8329_v34 = vadd.f32 %v8265_v55, %v8137_v43  ;;  %v9483_v43 = vrot.slane %v15625_v42, %v15613_v36 }
 0x889   : > { %v8455_v8 = vpop.permute.xlu0 %8454 }
 0x88a   : > { %11488 = vset.pattern.permute.xlu1 %v15483_v3  ;;  %v8520_v10 = vadd.f32 %v8455_v8, %v8328_v28  ;;  %v15621_v8 = vld [vmem:[#allocation21_spill] sm:$0xff]  ;;  %v15627_v28 = vld [vmem:[#allocation32_spill] sm:$0xff] }
 0x88b   : > { %v8457_v44 = vpop.permute.xlu1 %8456  ;;  %9711 = vperm.xlu1 %11488, %v9324_v58   ;;  %v9744_v58 = vrot.slane %v15618_v47, %v15616_v61  ;;  %v9487_v51 = vrot.slane %v15627_v28, %v15616_v61 }
 0x88c   : > { %11490 = vset.pattern.permute.xlu0 %v15483_v3  ;;  %v8521_v53 = vadd.f32 %v8457_v44, %v8329_v34  ;;  %v9463_v44 = vrot.slane %v15621_v8, %v15613_v36  ;;  %v15626_v34 = vld [vmem:[#allocation33_spill] sm:$0xff] }
 0x88d   : > { %9714 = vperm.xlu0 %11490, %v9325_v23   ;;  %v8836_v22 = vpop.permute.xlu0 %8835  ;;  %v15620_v23 = vld [vmem:[#allocation9_spill] sm:$0xff]  ;;  %v9745_v4 = vsel %vm9469_vm9, %v9744_v58, %v9740_v27 }
 0x88e   : > { %v8903_v54 = vadd.f32 %v8836_v22, %v8710_v57  ;;  %v9478_v55 = vrot.slane %v15620_v23, %v15616_v61  ;;  %v15624_v22 = vld [vmem:[#allocation29_spill] sm:$0xff]  ;;  %v9470_v0 = vsel %vm9469_vm9, %v9468_v56, %v9463_v44  ;;  %v15642_v23 = vld [vmem:[#allocation51_spill] sm:$0xff] }
 0x88f   : > { %v8649_v49 = vpop.permute.xlu1 %8648  ;;  %11491 = vset.pattern.permute.xlu1 %v15471_v12  ;;  %v9735_v63 = vrot.slane %v15624_v22, %v15616_v61  ;;  %v15629_v57 = vld [vmem:[#allocation37_spill] sm:$0xff]  ;;  %v15644_v22 = vld [vmem:[#allocation48_spill] sm:$0xff] }
 0x890   : > { %v8713_v50 = vadd.f32 %v8649_v49, %v8521_v53  ;;  %v9479_v59 = vsel %vm9469_vm9, %v9478_v55, %v9474_v1  ;;  %v15628_v53 = vld [vmem:[#allocation35_spill] sm:$0xff]  ;;  %v9789_v55 = vrot.slane %v15642_v23, %v15616_v61 }
 0x891   : > { %v9028_v35 = vpop.permute.xlu0 %9027  ;;  %v9736_v9 = vsel %vm9469_vm9, %v9735_v63, %v9731_v17  ;;  %v9776_v17 = vrot.slane %v15643_v52, %v15613_v36  ;;  %v9785_v63 = vrot.slane %v15644_v22, %v15613_v36 }
 0x892   : > { %v9095_v62 = vadd.f32 %v9028_v35, %v8903_v54  ;;  %v8906_v20 = vadd.f32 %v15609_v11, %v8713_v50  ;;  %v9753_v35 = vrot.slane %v15626_v34, %v15616_v61  ;;  %v15630_v50 = vld [vmem:[#allocation10_spill] sm:$0xff]  ;;  %v15631_v54 = vld [vmem:[#allocation40_spill] sm:$0xff] }
 0x893   : > { %v8838_v38 = vpop.permute.xlu1 %8837  ;;  %v15633_v11 = vld [vmem:[#allocation36_spill] sm:$0xff] }
 0x894   : > { %v8904_v60 = vadd.f32 %v8838_v38, %v8711_v15  ;;  %v9098_v39 = vadd.f32 %v15611_v21, %v8906_v20  ;;  %v9492_v38 = vrot.slane %v15628_v53, %v15613_v36  ;;  %v15632_v15 = vld [vmem:[#allocation34_spill] sm:$0xff]  ;;  %v9488_v20 = vsel %vm9469_vm9, %v9487_v51, %v9483_v43 }
 0x895   : > { %v8647_v46 = vpop.permute.xlu0 %8646 }
 0x896   : > { %v8712_v32 = vadd.f32 %v8647_v46, %v8520_v10  ;;  %v9290_v18 = vadd.f32 %v15615_v26, %v9098_v39  ;;  %v9762_v10 = vrot.slane %v15629_v57, %v15616_v61  ;;  %v9749_v46 = vrot.slane %v15630_v50, %v15613_v36  ;;  %v15639_v26 = vld [vmem:[#allocation44_spill] sm:$0xff] }
 0x897   : > { %v9030_v29 = vpop.permute.xlu1 %9029 }
 0x898   : > { %v8905_v6 = vadd.f32 %v15610_v14, %v8712_v32  ;;  %v9096_v19 = vadd.f32 %v9030_v29, %v8904_v60  ;;  %v9329_v49 = vadd.f32 %v15017_v41, %v9290_v18  ;;  %v9505_v32 = vrot.slane %v15631_v54, %v15616_v61 }
 0x899   : > { %v9220_v16 = vpop.permute.xlu0 %9219  ;;  %v9758_v29 = vrot.slane %v15632_v15, %v15613_v36  ;;  %v9754_v60 = vsel %vm9469_vm9, %v9753_v35, %v9749_v46  ;;  %v9510_v18 = vrot.slane %v15639_v26, %v15613_v36  ;;  %v9790_v35 = vsel %vm9469_vm9, %v9789_v55, %v9785_v63 }
 0x89a   : > { %v9287_v40 = vadd.f32 %v9220_v16, %v9095_v62  ;;  %v9097_v33 = vadd.f32 %v15612_v30, %v8905_v6  ;;  %v9872_v62 = vsel %vm9606_vm10, %v9745_v4, %v9736_v9  ;;  %v15634_v16 = vld [vmem:[#allocation39_spill] sm:$0xff]  ;;  %v15635_v6 = vld [vmem:[#allocation41_spill] sm:$0xff] }
 0x89b   : > { %v9222_v7 = vpop.permute.xlu1 %9221  ;;  %v9501_v14 = vrot.slane %v15634_v16, %v15613_v36  ;;  %v9763_v39 = vsel %vm9469_vm9, %v9762_v10, %v9758_v29  ;;  %v9873_v58 = vsel %vm9608_vm11, %v9754_v60, %v9872_v62 }
 0x89c   : > { %v9326_v45 = vadd.f32 %v15017_v41, %v9287_v40  ;;  %v9288_v24 = vadd.f32 %v9222_v7, %v9096_v19  ;;  %v9289_v25 = vadd.f32 %v15619_v2, %v9097_v33  ;;  %v9771_v40 = vrot.slane %v15635_v6, %v15616_v61  ;;  %v15636_v19 = vld [vmem:[#allocation45_spill] sm:$0xff]  ;;  %v15638_v33 = vld [vmem:[#allocation50_spill] sm:$0xff] }
 0x89d   : > { %v9514_v7 = vrot.slane %v15636_v19, %v15616_v61  ;;  %v9523_v31 = vrot.slane %v15638_v33, %v15616_v61  ;;  %v9506_v1 = vsel %vm9469_vm9, %v9505_v32, %v9501_v14  ;;  %v15641_v2 = vld [vmem:[#allocation49_spill] sm:$0xff]  ;;  %v9874_v13 = vsel %vm9610_vm12, %v9763_v39, %v9873_v58 }
 0x89e   : > { %9717 = vperm.xlu0 %11490, %v9326_v45   ;;  %9447 = vperm.xlu1 %11491, %v9326_v45   ;;  %v9327_v37 = vadd.f32 %v15017_v41, %v9288_v24  ;;  %v9328_v5 = vadd.f32 %v15017_v41, %v9289_v25  ;;  %v9607_v41 = vsel %vm9606_vm10, %v9479_v59, %v9470_v0  ;;  %v15637_v24 = vld [vmem:[#allocation38_spill] sm:$0xff] }
 0x89f   : > { %v9767_v30 = vrot.slane %v15637_v24, %v15613_v36  ;;  %v9609_v47 = vsel %vm9608_vm11, %v9488_v20, %v9607_v41  ;;  %v9519_v25 = vrot.slane %v15641_v2, %v15613_v36 }
 0x8a1   : > { %v9772_v44 = vsel %vm9469_vm9, %v9771_v40, %v9767_v30  ;;  %v9524_v59 = vsel %vm9469_vm9, %v9523_v31, %v9519_v25 }
 0x8a2   : > { %11492 = vset.pattern.permute.xlu0 %v15471_v12  ;;  %11493 = vset.pattern.permute.xlu1 %v15483_v3  ;;  %v9875_v4 = vsel %vm9612_vm13, %v9772_v44, %v9874_v13 }
 0x8a3   : > { %9450 = vperm.xlu0 %11492, %v9327_v37   ;;  %9720 = vperm.xlu1 %11493, %v9327_v37   ;;  %v15640_v37 = vld [vmem:[#allocation46_spill] sm:$0xff] }
 0x8a4   : > { %v9780_v48 = vrot.slane %v15640_v37, %v15616_v61 }
 0x8a6   : > { %v9781_v43 = vsel %vm9469_vm9, %v9780_v48, %v9776_v17 }
 0x8a7   : > { %9456 = vperm.xlu0 %11492, %v9329_v49   ;;  %11494 = vset.pattern.permute.xlu1 %v15471_v12  ;;  %v9496_v12 = vrot.slane %v15633_v11, %v15616_v61  ;;  %v9876_v57 = vsel %vm9614_vm14, %v9781_v43, %v9875_v4 }
 0x8a8   : > { %9453 = vperm.xlu1 %11494, %v9328_v5   ;;  %v9877_v9 = vsel %vm9616_vm15, %v9790_v35, %v9876_v57 }
 0x8a9   : > { %v9497_v21 = vsel %vm9469_vm9, %v9496_v12, %v9492_v38 }
 0x8aa   : > { %v9676_v45 = vpop.permute.xlu0 %9675  ;;  %v9611_v8 = vsel %vm9610_vm12, %v9497_v21, %v9609_v47 }
 0x8ab   : > { %11495 = vset.pattern.permute.xlu0 %v15483_v3  ;;  %v9613_v27 = vsel %vm9612_vm13, %v9506_v1, %v9611_v8  ;;  %v9794_v51 = vrot.slane %v9676_v45, %v15613_v36 }
 0x8ac   : > { %v9406_v56 = vpop.permute.xlu1 %9405  ;;  %9723 = vperm.xlu0 %11495, %v9328_v5   ;;  %11496 = vset.pattern.permute.xlu1 %v15483_v3  ;;  %v9515_v3 = vsel %vm9469_vm9, %v9514_v7, %v9510_v18 }
 0x8ad   : > { %9726 = vperm.xlu1 %11496, %v9329_v49   ;;  %v9528_v49 = vrot.slane %v9406_v56, %v15613_v36  ;;  %v9615_v34 = vsel %vm9614_vm14, %v9515_v3, %v9613_v27 }
 0x8ae   : > { %v9617_v28 = vsel %vm9616_vm15, %v9524_v59, %v9615_v34 }
 0x8af   : > { %v9409_v42 = vpop.permute.xlu0 %9408 }
 0x8b0   : > { %v9532_v0 = vrot.slane %v9409_v42, %v15616_v61 }
 0x8b1   : > { %v9679_v5 = vpop.permute.xlu1 %9678 }
 0x8b2   : > { %v9533_v53 = vsel %vm9469_vm9, %v9532_v0, %v9528_v49  ;;  %v9798_v38 = vrot.slane %v9679_v5, %v15616_v61 }
 0x8b3   : > { %v9619_v10 = vsel %vm9618_vm0, %v9533_v53, %v9617_v28  ;;  %v9415_v41 = vpop.permute.xlu0 %9414 }
 0x8b4   : > { %9630 = vst.msk [vmem:[%s15283_s25] sm:$0xff] %vm9629_vm1, %v9619_v10  ;;  %v9799_v50 = vsel %vm9469_vm9, %v9798_v38, %v9794_v51  ;;  %v9541_v58 = vrot.slane %v9415_v41, %v15616_v61 }
 0x8b5   : > { %v9878_v46 = vsel %vm9618_vm0, %v9799_v50, %v9877_v9 }
 0x8b6   : > { %10724 = vst.msk [vmem:[%s15283_s25 + $0x10] sm:$0xff] %vm9629_vm1, %v9878_v46  ;;  %v9412_v54 = vpop.permute.xlu1 %9411 }
 0x8b7   : > { %v9537_v18 = vrot.slane %v9412_v54, %v15613_v36 }
 0x8b8   : > { %v9685_v32 = vpop.permute.xlu0 %9684 }
 0x8b9   : > { %v9542_v44 = vsel %vm9469_vm9, %v9541_v58, %v9537_v18  ;;  %v9807_v52 = vrot.slane %v9685_v32, %v15616_v61 }
 0x8bb   : > { %v9682_v15 = vpop.permute.xlu1 %9681 }
 0x8bc   : > { %v9803_v2 = vrot.slane %v9682_v15, %v15613_v36 }
 0x8bd   : > { %v9421_v29 = vpop.permute.xlu0 %9420 }
 0x8be   : > { %v9550_v56 = vrot.slane %v9421_v29, %v15616_v61  ;;  %v9808_v43 = vsel %vm9469_vm9, %v9807_v52, %v9803_v2 }
 0x8c0   : > { %v9418_v62 = vpop.permute.xlu1 %9417 }
 0x8c1   : > { %v9546_v26 = vrot.slane %v9418_v62, %v15613_v36 }
 0x8c2   : > { %v9691_v11 = vpop.permute.xlu0 %9690 }
 0x8c3   : > { %v9551_v25 = vsel %vm9469_vm9, %v9550_v56, %v9546_v26  ;;  %v9816_v17 = vrot.slane %v9691_v11, %v15616_v61 }
 0x8c4   : > { %v9620_v49 = vsel %vm9606_vm10, %v9551_v25, %v9542_v44 }
 0x8c5   : > { %v9688_v12 = vpop.permute.xlu1 %9687 }
 0x8c6   : > { %v9812_v23 = vrot.slane %v9688_v12, %v15613_v36 }
 0x8c7   : > { %v9427_v20 = vpop.permute.xlu0 %9426 }
 0x8c8   : > { %v9559_v55 = vrot.slane %v9427_v20, %v15616_v61  ;;  %v9817_v34 = vsel %vm9469_vm9, %v9816_v17, %v9812_v23 }
 0x8ca   : > { %v9424_v60 = vpop.permute.xlu1 %9423 }
 0x8cb   : > { %v9555_v47 = vrot.slane %v9424_v60, %v15613_v36 }
 0x8cc   : > { %v9697_v16 = vpop.permute.xlu0 %9696 }
 0x8cd   : > { %v9560_v13 = vsel %vm9469_vm9, %v9559_v55, %v9555_v47  ;;  %v9825_v35 = vrot.slane %v9697_v16, %v15616_v61  ;;  %v9879_v16 = vsel %vm9606_vm10, %v9817_v34, %v9808_v43 }
 0x8ce   : > { %v9621_v51 = vsel %vm9608_vm11, %v9560_v13, %v9620_v49 }
 0x8cf   : > { %v9694_v14 = vpop.permute.xlu1 %9693 }
 0x8d0   : > { %v9821_v27 = vrot.slane %v9694_v14, %v15613_v36 }
 0x8d1   : > { %v9433_v6 = vpop.permute.xlu0 %9432 }
 0x8d2   : > { %v9568_v22 = vrot.slane %v9433_v6, %v15616_v61  ;;  %v9826_v10 = vsel %vm9469_vm9, %v9825_v35, %v9821_v27 }
 0x8d4   : > { %v9430_v40 = vpop.permute.xlu1 %9429 }
 0x8d5   : > { %v9564_v8 = vrot.slane %v9430_v40, %v15613_v36 }
 0x8d6   : > { %v9703_v19 = vpop.permute.xlu0 %9702 }
 0x8d7   : > { %v9569_v5 = vsel %vm9469_vm9, %v9568_v22, %v9564_v8  ;;  %v9834_v9 = vrot.slane %v9703_v19, %v15616_v61 }
 0x8d8   : > { %v9622_v54 = vsel %vm9610_vm12, %v9569_v5, %v9621_v51 }
 0x8d9   : > { %v9700_v7 = vpop.permute.xlu1 %9699 }
 0x8da   : > { %v9830_v53 = vrot.slane %v9700_v7, %v15613_v36 }
 0x8dc   : > { %v9835_v14 = vsel %vm9469_vm9, %v9834_v9, %v9830_v53 }
 0x8e5   : > { %v9436_v45 = vpop.permute.xlu1 %9435 }
 0x8e6   : > { %v9573_v0 = vrot.slane %v9436_v45, %v15613_v36 }
 0x8e7   : > { %v9439_v21 = vpop.permute.xlu0 %9438 }
 0x8e8   : > { %v9577_v3 = vrot.slane %v9439_v21, %v15616_v61 }
 0x8ea   : > { %v9706_v39 = vpop.permute.xlu1 %9705  ;;  %v9578_v38 = vsel %vm9469_vm9, %v9577_v3, %v9573_v0 }
 0x8eb   : > { %v9623_v11 = vsel %vm9612_vm13, %v9578_v38, %v9622_v54  ;;  %v9839_v12 = vrot.slane %v9706_v39, %v15613_v36  ;;  %v9880_v39 = vsel %vm9608_vm11, %v9826_v10, %v9879_v16 }
 0x8ec   : > { %v9709_v24 = vpop.permute.xlu0 %9708 }
 0x8ed   : > { %v9843_v50 = vrot.slane %v9709_v24, %v15616_v61 }
 0x8ef   : > { %v9844_v19 = vsel %vm9469_vm9, %v9843_v50, %v9839_v12 }
 0x905   : > { %v9442_v30 = vpop.permute.xlu1 %9441 }
 0x906   : > { %v9582_v28 = vrot.slane %v9442_v30, %v15613_v36 }
 0x907   : > { %v9445_v33 = vpop.permute.xlu0 %9444 }
 0x908   : > { %v9586_v63 = vrot.slane %v9445_v33, %v15616_v61 }
 0x90a   : > { %v9712_v31 = vpop.permute.xlu1 %9711  ;;  %v9587_v46 = vsel %vm9469_vm9, %v9586_v63, %v9582_v28 }
 0x90b   : > { %v9624_v6 = vsel %vm9614_vm14, %v9587_v46, %v9623_v11  ;;  %v9848_v40 = vrot.slane %v9712_v31, %v15613_v36  ;;  %v9881_v31 = vsel %vm9610_vm12, %v9835_v14, %v9880_v39 }
 0x90c   : > { %v9715_v1 = vpop.permute.xlu0 %9714 }
 0x90d   : > { %v9852_v32 = vrot.slane %v9715_v1, %v15616_v61 }
 0x90f   : > { %v9853_v24 = vsel %vm9469_vm9, %v9852_v32, %v9848_v40 }
 0x91d   : > { %v9448_v37 = vpop.permute.xlu1 %9447  ;;  %v9718_v48 = vpop.permute.xlu0 %9717 }
 0x91e   : > { %v9591_v57 = vrot.slane %v9448_v37, %v15613_v36  ;;  %v9857_v7 = vrot.slane %v9718_v48, %v15613_v36  ;;  %v9882_v37 = vsel %vm9612_vm13, %v9844_v19, %v9881_v31 }
 0x91f   : > { %v9883_v56 = vsel %vm9614_vm14, %v9853_v24, %v9882_v37 }
 0x922   : > { %v9721_v59 = vpop.permute.xlu1 %9720  ;;  %v9451_v42 = vpop.permute.xlu0 %9450 }
 0x923   : > { %v9595_v4 = vrot.slane %v9451_v42, %v15616_v61  ;;  %v9861_v20 = vrot.slane %v9721_v59, %v15616_v61 }
 0x925   : > { %v9596_v15 = vsel %vm9469_vm9, %v9595_v4, %v9591_v57  ;;  %v9862_v1 = vsel %vm9469_vm9, %v9861_v20, %v9857_v7 }
 0x926   : > { %v9457_v41 = vpop.permute.xlu0 %9456  ;;  %v9625_v45 = vsel %vm9616_vm15, %v9596_v15, %v9624_v6  ;;  %v9884_v47 = vsel %vm9616_vm15, %v9862_v1, %v9883_v56 }
 0x927   : > { %v9604_v29 = vrot.slane %v9457_v41, %v15616_v61  ;;  %v9454_v62 = vpop.permute.xlu1 %9453 }
 0x928   : > { %v9600_v60 = vrot.slane %v9454_v62, %v15613_v36 }
 0x92a   : > { %v9605_v21 = vsel %vm9469_vm9, %v9604_v29, %v9600_v60 }
 0x92b   : > { %v9626_v30 = vsel %vm9618_vm0, %v9605_v21, %v9625_v45  ;;  %v9724_v33 = vpop.permute.xlu0 %9723 }
 0x92c   : > { %9631 = vst.msk [vmem:[%s15283_s25 + $0x8] sm:$0xff] %vm9629_vm1, %v9626_v30  ;;  %v9866_v26 = vrot.slane %v9724_v33, %v15613_v36  ;;  %v9727_v18 = vpop.permute.xlu1 %9726 }
 0x92d   : > { %v9870_v48 = vrot.slane %v9727_v18, %v15616_v61 }
 0x92f   : > { %v9871_v58 = vsel %vm9469_vm9, %v9870_v48, %v9866_v26 }
 0x930   : > { %v9885_v36 = vsel %vm9618_vm0, %v9871_v58, %v9884_v47 }
 0x931   : > { %10725 = vst.msk [vmem:[%s15283_s25 + $0x18] sm:$0xff] %vm9629_vm1, %v9885_v36 }
 0x932   : > { %12065 = shalt.err (!%p12062_p7)
}
 0x933   : > { %s12066_s8 = scalar_lea.hbm %s15361_s12, 512  ;;  %s12070_s15 = scalar_lea.hbm %s15414_s5, 1024 }
 0x934   : > { %p12067_p8 = scmp.ne.s32.totalorder %s15361_s12, %s12066_s8  ;;  %p12071_p1 = scmp.lt.u32.totalorder %s15361_s12, %s15414_s5 }
 0x935   : > { %p12072_p0 = scmp.lt.u32.totalorder %s12070_s15, %s12066_s8  ;;  %p12074_p6 = scmp.lt.u32.totalorder %s12066_s8, %s15361_s12 }
 0x936   : > { %p12068_p11 = pnand %p12067_p8, %p15645_p9 }
 0x937   : > { %p12073_p5 = por %p12072_p0, %p12071_p1 }
 0x938   : > { %p12069_p13 = pneg %p12068_p11 }
 0x939   : > { %p12075_p10 = por %p12074_p6, %p12073_p5 }
 0x93b   : > { %p12076_p12 = pnand %p12075_p10, %p12069_p13 }
 0x93d   : > { %12079 = shalt.err (!%p12076_p12)
}
 0x93e   : > { %s12135_s25 = smov 128   ;;  %s12136_s6 = smov 8  }
 0x93f   : > { %11377 = dma.vmem_to_hbm [thread:$0]  (%p15645_p9), %s15353_s26, 512, %s15361_s12, %s15368_s22, %s12135_s25, %s12135_s25, %s12136_s6  }
 0x940 PF: > { %p11389_p2 = scmp.ge.s32.totalorder %s12118_s21, 2  ;;  %s9920_s23 = sand.u32 1, %s12106_s18  }
 0x941   : > { %p15646_p3 = scmp.ne.s32.totalorder %s15445_s29, 0  ;;  %s9921_s11 = scalar_lea.sflag [#allocation5], %s9920_s23 }
 0x943   : > { %p11384_p4 = pnand %p11389_p2, %p15646_p3 }
 0x945   : > { %12101 = dma.done.wait (!%p11384_p4), %s9921_s11, 512  }
 0x946   : > { %12103 = vsyncadd (!%p11384_p4), %s9921_s11, 4294966784  ;;  %p16_p7 = scmp.ge.s32.totalorder %s12192_s24, 4   ;;  %s15647_s18 = smov %s12110_s19 }
 0x947   : > { %s15648_s19 = smov %s12114_s20  ;;  %s15649_s20 = smov %s12203_s27 }
 0x948   : > { %s15650_s21 = smov %s12192_s24  ;;  %18 = sbr.rel (!%p16_p7) target bundleno = 4 (0x4), region = 98 }
 0x94f   :  { %9926 = vsyncpa [#allocation4], 1 }
 0x950   :  { %9928 = vsyncpa [#allocation4 + $0x1], 1 }
 0x951   :  { %9929 = vsyncpa [#allocation5], 1 }
 0x952   :  { %9931 = vsyncpa [#allocation5 + $0x1], 1 }

</bundles_post_ra>
